<compile_context>
chip_gen: v7x
topology: tpu7x:2x2x1
jax: 0.10.0
libtpu: 0.0.40
codegen_flags: <defaults>
</compile_context>

<pallas_src>
import functools

import jax
import jax.numpy as jnp
from jax.experimental import pallas as pl
from jax.experimental.pallas import tpu as pltpu

BN_EPS = 1e-5


def _round_up(x, m):
    return (x + m - 1) // m * m


def _vmem_limit_bytes():
    """Generation-aware VMEM cap: ~96 MiB on 128-MiB parts (v5e/v6e), ~48 MiB on v7x."""
    cap = 64 * 1024 * 1024
    try:
        cap = int(getattr(pltpu.get_tpu_info(), "vmem_capacity_bytes", cap))
    except Exception:
        pass
    return max(32 * 1024 * 1024, min(100 * 1024 * 1024, (cap * 3) // 4))


def _select_tk(c, hx, wxp, hw, rd, nr, vmem_limit):
    """Largest Cin slab whose per-grid-step VMEM footprint fits the budget."""
    budget = int(0.6 * vmem_limit)

    def est(tk):
        x_b = 2 * hx * wxp * tk * 2                 # bf16 plane, double-buffered
        w_b = 2 * (1 + 9 * nr) * tk * rd * 2        # bf16 weights, double-buffered
        o_b = 2 * hw * (2 + nr) * rd * 4            # f32 output, double-buffered
        a_b = hw * (1 + nr) * rd * 4                # f32 accumulator scratch
        m_b = hw * 3 * tk * 2                       # merged-K staging (upper bound)
        return x_b + w_b + o_b + a_b + m_b

    cands = ([c] if c <= 2048 else []) + [t for t in (512, 384, 256, 128) if t < c]
    for tk in cands:
        if tk != c and tk % 128 != 0:               # multi-slab tk must be lane-aligned
            continue
        if est(tk) <= budget:
            return tk
    return min(c, 128)


# ----------------------------------------------------------------------------
# Fused ASPP Pallas kernel: 1x1 branch + 3 dilated 3x3 branches + img broadcast
# ----------------------------------------------------------------------------
def _aspp_fused_kernel(x_ref, w1_ref, w3_ref, b_ref, img_ref, o_ref, acc_ref, *,
                       rates, rmax, hh, ww, rd, merge):
    """One (image, Cin-slab) grid step.

    x_ref   : (1, Hx, Wxp, tk)       bf16  zero-padded plane (shared by all branches)
    w1_ref  : (tk, rd)               bf16  1x1-branch weights (BN scale folded)
    w3_ref  : (nr, 3, 3, tk, rd)     bf16  dilated weights, (branch, col j, row i, Cin, Cout)
    b_ref   : (1, (1+nr)*rd)         f32   folded BN biases [1x1 | r0 | r1 | r2]
    img_ref : (1, 1, rd)             f32   image-pooling vector (already conv+ReLU'd)
    o_ref   : (1, hh*ww, (2+nr)*rd)  f32   [img | 1x1 | r0 | r1 | r2]
    acc_ref : (hh*ww, (1+nr)*rd)     f32   conv-branch accumulator (persists across Cin)
    """
    k = pl.program_id(1)
    hw = hh * ww

    @pl.when(k == 0)
    def _init():
        acc_ref[...] = jnp.zeros_like(acc_ref)

    # ---- 1x1 branch: single centre window, one matmul per Cin slab.
    xc = x_ref[0, rmax:rmax + hh, rmax:rmax + ww, :].reshape(hw, -1)
    acc_ref[:, 0:rd] += jnp.dot(xc, w1_ref[...], preferred_element_type=jnp.float32)

    # ---- dilated 3x3 branches.  dw (column) shifts hoisted to 3 per branch; dh (row)
    # shifts are plain address offsets on the untiled H axis.  With `merge`, the 3 row
    # taps of each column become one K=3*tk matmul.
    for bi, r in enumerate(rates):
        lo = (1 + bi) * rd
        for j in range(3):
            dw = rmax + (j - 1) * r
            xcol = x_ref[0, rmax - r:rmax + r + hh, dw:dw + ww, :]   # (hh+2r, ww, tk)
            if merge:
                xm = jnp.concatenate([xcol[i * r:i * r + hh] for i in range(3)],
                                     axis=-1).reshape(hw, -1)        # (hw, 3*tk)
                wm = w3_ref[bi, j].reshape(-1, rd)                   # (3*tk, rd)
                acc_ref[:, lo:lo + rd] += jnp.dot(
                    xm, wm, preferred_element_type=jnp.float32)
            else:
                for i in range(3):
                    xt = xcol[i * r:i * r + hh].reshape(hw, -1)
                    acc_ref[:, lo:lo + rd] += jnp.dot(
                        xt, w3_ref[bi, j, i], preferred_element_type=jnp.float32)

    # ---- epilogue on the last Cin slab: bias + ReLU, write the concatenated slab.
    @pl.when(k == pl.num_programs(1) - 1)
    def _store():
        # Image-pooling branch: bilinear upsample (align_corners=False) of a 1x1 map
        # is an exact broadcast — written straight into the fused output.
        o_ref[0, :, 0:rd] = jnp.broadcast_to(img_ref[0], (hw, rd)).astype(o_ref.dtype)
        y = jnp.maximum(acc_ref[...] + b_ref[...], 0.0)
        o_ref[0, :, rd:] = y.astype(o_ref.dtype)


# ----------------------------------------------------------------------------
# ASPP forward (Pallas) and a pure-JAX reference
# ----------------------------------------------------------------------------
@functools.partial(jax.jit, static_argnames=("rates",))
def aspp_forward(x_nchw, params, rates):
    """Matches AtrousSpatialPyramidPoolingModule.forward (eval BN). NCHW in -> NCHW out."""
    x = jnp.transpose(x_nchw, (0, 2, 3, 1)).astype(jnp.float32)      # NHWC
    n, h, w, c = x.shape
    rd = params["img_w"].shape[-1]
    nr = len(rates)
    rmax = max(rates)

    SUB = 16                                   # bf16 sublane packing
    ww = _round_up(w, SUB)                     # padded output width (sliced off later)
    hw = h * ww
    wxp = _round_up(ww + 2 * rmax, SUB)        # padded-plane width
    hx = h + 2 * rmax

    vmem_limit = _vmem_limit_bytes()
    tk = _select_tk(c, hx, wxp, hw, rd, nr, vmem_limit)
    cp = _round_up(c, tk)
    merge = hw * 3 * tk * 2 <= 4 * 1024 * 1024   # merged-K staging must stay small

    # One shared zero-padded bf16 plane feeds the 1x1 and all dilated branches:
    # a single HBM->VMEM stream per (image, Cin-slab) for the whole module.
    x_pad = jnp.pad(x.astype(jnp.bfloat16),
                    ((0, 0), (rmax, rmax), (rmax, wxp - w - rmax), (0, cp - c)))

    def fold_bn(wgt, bn):
        gamma, beta, mean, var = bn
        scale = gamma / jnp.sqrt(var + BN_EPS)
        return (wgt * scale).astype(jnp.bfloat16), (beta - mean * scale).astype(jnp.float32)

    # 1x1 branch weights (BN folded into weights + bias)
    w1, b1 = fold_bn(params["branches"][0]["w"], params["branches"][0]["bn"])
    w1 = jnp.pad(w1.reshape(c, rd), ((0, cp - c), (0, 0)))

    # Dilated branch weights laid out (branch, kernel-col j, kernel-row i, Cin, Cout)
    # so w3[b, j] reshaped to (3*tk, rd) matches the in-kernel K-merged window order.
    w3s, biases = [], [b1]
    for br in params["branches"][1:]:
        wf, bf = fold_bn(br["w"], br["bn"])
        w3s.append(jnp.pad(jnp.transpose(wf, (1, 0, 2, 3)),
                           ((0, 0), (0, 0), (0, cp - c), (0, 0))))
        biases.append(bf)
    w3 = jnp.stack(w3s, axis=0)                                      # (nr,3,3,cp,rd)
    bias_all = jnp.concatenate(biases).reshape(1, (1 + nr) * rd)

    # Image-pooling branch in plain JAX (M=1 GEMV — not worth a Pallas launch).
    pooled = jnp.mean(x, axis=(1, 2))                                # (n, c) f32
    img = jax.nn.relu(jnp.dot(pooled, params["img_w"].reshape(c, rd),
                              precision=jax.lax.Precision.HIGHEST))  # (n, rd)
    img = img.reshape(n, 1, rd)

    kernel = functools.partial(_aspp_fused_kernel, rates=tuple(rates), rmax=rmax,
                               hh=h, ww=ww, rd=rd, merge=merge)
    out = pl.pallas_call(
        kernel,
        out_shape=jax.ShapeDtypeStruct((n, hw, (2 + nr) * rd), jnp.float32),
        grid_spec=pltpu.PrefetchScalarGridSpec(
            num_scalar_prefetch=0,
            grid=(n, cp // tk),
            in_specs=[
                pl.BlockSpec((1, hx, wxp, tk), lambda b, k: (b, 0, 0, k)),
                pl.BlockSpec((tk, rd), lambda b, k: (k, 0)),
                pl.BlockSpec((nr, 3, 3, tk, rd), lambda b, k: (0, 0, 0, k, 0)),
                pl.BlockSpec((1, (1 + nr) * rd), lambda b, k: (0, 0)),
                pl.BlockSpec((1, 1, rd), lambda b, k: (b, 0, 0)),
            ],
            out_specs=pl.BlockSpec((1, hw, (2 + nr) * rd), lambda b, k: (b, 0, 0)),
            scratch_shapes=[pltpu.VMEM((hw, (1 + nr) * rd), jnp.float32)],
        ),
        compiler_params=pltpu.CompilerParams(
            dimension_semantics=("parallel", "arbitrary"),
            vmem_limit_bytes=vmem_limit,
        ),
    )(x_pad, w1, w3, bias_all, img)

    out = out.reshape(n, h, ww, (2 + nr) * rd)[:, :, :w, :]
    return jnp.transpose(out, (0, 3, 1, 2))                          # NCHW


def aspp_reference(x_nchw, params, rates):
    """Pure-JAX f32 reference (lax.conv_general_dilated) of the PyTorch module."""
    x = jnp.transpose(x_nchw, (0, 2, 3, 1)).astype(jnp.float32)
    n, h, w, _ = x.shape

    def conv(inp, wgt, dil):
        kh = wgt.shape[0]
        pad = dil * (kh - 1) // 2
        return jax.lax.conv_general_dilated(
            inp, wgt, window_strides=(1, 1),
            padding=[(pad, pad), (pad, pad)], rhs_dilation=(dil, dil),
            dimension_numbers=("NHWC", "HWIO", "NHWC"),
            precision=jax.lax.Precision.HIGHEST)

    def bn(y, p):
        gamma, beta, mean, var = p
        return (y - mean) / jnp.sqrt(var + BN_EPS) * gamma + beta

    pooled = jnp.mean(x, axis=(1, 2), keepdims=True)
    img = jax.nn.relu(conv(pooled, params["img_w"], 1))
    outs = [jnp.broadcast_to(img, (n, h, w, img.shape[-1]))]

    for dil, br in zip((1,) + tuple(rates), params["branches"]):
        outs.append(jax.nn.relu(bn(conv(x, br["w"], dil), br["bn"])))
    return jnp.transpose(jnp.concatenate(outs, axis=-1), (0, 3, 1, 2))


# ----------------------------------------------------------------------------
# Deterministic parameter init (conv weights HWIO, BN eval-mode stats)
# ----------------------------------------------------------------------------
def init_aspp_params(key, in_dim, reduction_dim, rates):
    n_branches = 1 + len(rates)
    keys = jax.random.split(key, 2 * n_branches + 1)

    def conv_w(k, kh, kw, ci, co):
        fan_in = kh * kw * ci
        return jax.random.normal(k, (kh, kw, ci, co), jnp.float32) / jnp.sqrt(fan_in)

    def bn_p(k, co):
        k1, k2, k3, k4 = jax.random.split(k, 4)
        return (jax.random.uniform(k1, (co,), jnp.float32, 0.5, 1.5),   # gamma
                0.1 * jax.random.normal(k2, (co,), jnp.float32),        # beta
                0.1 * jax.random.normal(k3, (co,), jnp.float32),        # running mean
                jax.random.uniform(k4, (co,), jnp.float32, 0.5, 1.5))   # running var

    branches = [{"w": conv_w(keys[0], 1, 1, in_dim, reduction_dim),
                 "bn": bn_p(keys[1], reduction_dim)}]
    for i in range(len(rates)):
        branches.append({"w": conv_w(keys[2 + 2 * i], 3, 3, in_dim, reduction_dim),
                         "bn": bn_p(keys[3 + 2 * i], reduction_dim)})
    return {"img_w": conv_w(keys[-1], 1, 1, in_dim, reduction_dim),
            "branches": branches}


# ----------------------------------------------------------------------------
# main
# ----------------------------------------------------------------------------
if __name__ == "__main__":
    key = jax.random.PRNGKey(0)
    k_param, k_input = jax.random.split(key)

    batch, in_dim, hw_size, reduction_dim = 2, 64, 16, 128
    output_stride = 16
    rates = (6, 12, 18)
    if output_stride == 8:
        rates = tuple(2 * r for r in rates)

    params = init_aspp_params(k_param, in_dim, reduction_dim, rates)
    x = jax.random.normal(k_input, (batch, in_dim, hw_size, hw_size), jnp.float32)

    out = aspp_forward(x, params, rates=rates)
    out = jax.block_until_ready(out)

    assert out.shape == (batch, 5 * reduction_dim, hw_size, hw_size), out.shape
    assert bool(jnp.all(jnp.isfinite(out)))

    ref = aspp_reference(x, params, rates)
    max_err = float(jnp.max(jnp.abs(out - ref)))
    assert bool(jnp.allclose(out, ref, atol=7.5e-2, rtol=5e-2)), max_err

    print("KERNEL_OK")
</pallas_src>

<mosaic_0001>
module attributes {stable_mosaic.version = 11 : i64} {
  func.func @_aspp_fused_kernel(%arg0: i32, %arg1: i32, %arg2: memref<1x52x64x64xbf16, #tpu.memory_space<vmem>>, %arg3: memref<64x128xbf16, #tpu.memory_space<vmem>>, %arg4: memref<3x3x3x64x128xbf16, #tpu.memory_space<vmem>>, %arg5: memref<1x512xf32, #tpu.memory_space<vmem>>, %arg6: memref<1x1x128xf32, #tpu.memory_space<vmem>>, %arg7: memref<1x256x640xf32, #tpu.memory_space<vmem>>, %arg8: memref<256x512xf32, #tpu.memory_space<vmem>>) attributes {dimension_semantics = [#tpu.dimension_semantics<parallel>, #tpu.dimension_semantics<arbitrary>], iteration_bounds = array<i64: 2, 1>, scalar_prefetch = 0 : i64, scratch_operands = 1 : i64, tpu.core_type = #tpu.core_type<tc>, window_params = [{transform_indices = @transform_0, window_bounds = array<i64: 1, 52, 64, 64>}, {transform_indices = @transform_1, window_bounds = array<i64: 64, 128>}, {transform_indices = @transform_2, window_bounds = array<i64: 3, 3, 3, 64, 128>}, {pipeline_mode = #tpu.pipeline_mode<synchronous>, transform_indices = @transform_3, window_bounds = array<i64: 1, 512>}, {transform_indices = @transform_4, window_bounds = array<i64: 1, 1, 128>}, {transform_indices = @transform_5, window_bounds = array<i64: 1, 256, 640>}]} {
    %c0_i32 = arith.constant 0 : i32
    %0 = arith.cmpi eq, %arg1, %c0_i32 : i32
    %1 = arith.extui %0 : i1 to i32
    %c0_i32_0 = arith.constant 0 : i32
    %2 = arith.cmpi ne, %1, %c0_i32_0 : i32
    scf.if %2 {
      %cst_127 = arith.constant 0.000000e+00 : f32
      %140 = vector.broadcast %cst_127 : f32 to vector<256x512xf32>
      %c0_128 = arith.constant 0 : index
      %c0_129 = arith.constant 0 : index
      %141 = vector.load %arg8[%c0_128, %c0_129] : memref<256x512xf32, #tpu.memory_space<vmem>>, vector<256x512xf32>
      tpu.vector_store %arg8[%c0_128, %c0_129], %140 {strides = array<i32>} : memref<256x512xf32, #tpu.memory_space<vmem>>, vector<256x512xf32>,
    } else {
    }
    %c0 = arith.constant 0 : index
    %c18 = arith.constant 18 : index
    %c18_1 = arith.constant 18 : index
    %c0_2 = arith.constant 0 : index
    %3 = vector.load %arg2[%c0, %c18, %c18_1, %c0_2] : memref<1x52x64x64xbf16, #tpu.memory_space<vmem>>, vector<1x16x16x64xbf16>
    %4 = vector.shape_cast %3 : vector<1x16x16x64xbf16> to vector<16x16x64xbf16>
    %5 = vector.shape_cast %4 : vector<16x16x64xbf16> to vector<256x64xbf16>
    %c0_3 = arith.constant 0 : index
    %c0_4 = arith.constant 0 : index
    %6 = vector.load %arg8[%c0_3, %c0_4] : memref<256x512xf32, #tpu.memory_space<vmem>>, vector<256x128xf32>
    %c0_5 = arith.constant 0 : index
    %c0_6 = arith.constant 0 : index
    %7 = vector.load %arg3[%c0_5, %c0_6] : memref<64x128xbf16, #tpu.memory_space<vmem>>, vector<64x128xbf16>
    %cst = arith.constant dense<0.000000e+00> : vector<256x128xf32>
    %8 = tpu.matmul %5, %7, %cst {dimension_numbers = #tpu.dot_dimension_numbers<[1], [0], [0], [1], [0, 0, 1, 1], [], []>} : vector<256x64xbf16>, vector<64x128xbf16>, vector<256x128xf32> -> vector<256x128xf32>
    %9 = arith.addf %6, %8 : vector<256x128xf32>
    %c0_7 = arith.constant 0 : index
    %c0_8 = arith.constant 0 : index
    %10 = vector.load %arg8[%c0_7, %c0_8] : memref<256x512xf32, #tpu.memory_space<vmem>>, vector<256x128xf32>
    tpu.vector_store %arg8[%c0_7, %c0_8], %9 {strides = array<i32>} : memref<256x512xf32, #tpu.memory_space<vmem>>, vector<256x128xf32>,
    %c0_9 = arith.constant 0 : index
    %c12 = arith.constant 12 : index
    %c12_10 = arith.constant 12 : index
    %c0_11 = arith.constant 0 : index
    %11 = vector.load %arg2[%c0_9, %c12, %c12_10, %c0_11] : memref<1x52x64x64xbf16, #tpu.memory_space<vmem>>, vector<1x28x16x64xbf16>
    %12 = vector.shape_cast %11 : vector<1x28x16x64xbf16> to vector<28x16x64xbf16>
    %13 = vector.extract_strided_slice %12 {offsets = [0, 0, 0], sizes = [16, 16, 64], strides = [1, 1, 1]} : vector<28x16x64xbf16> to vector<16x16x64xbf16>
    %14 = vector.extract_strided_slice %12 {offsets = [6, 0, 0], sizes = [16, 16, 64], strides = [1, 1, 1]} : vector<28x16x64xbf16> to vector<16x16x64xbf16>
    %15 = vector.extract_strided_slice %12 {offsets = [12, 0, 0], sizes = [16, 16, 64], strides = [1, 1, 1]} : vector<28x16x64xbf16> to vector<16x16x64xbf16>
    %16 = tpu.concatenate %13, %14, %15 in 2 : vector<16x16x64xbf16>, vector<16x16x64xbf16>, vector<16x16x64xbf16> -> vector<16x16x192xbf16>
    %17 = vector.shape_cast %16 : vector<16x16x192xbf16> to vector<256x192xbf16>
    %c0_12 = arith.constant 0 : index
    %c0_13 = arith.constant 0 : index
    %c0_14 = arith.constant 0 : index
    %c0_15 = arith.constant 0 : index
    %c0_16 = arith.constant 0 : index
    %18 = vector.load %arg4[%c0_12, %c0_13, %c0_14, %c0_15, %c0_16] : memref<3x3x3x64x128xbf16, #tpu.memory_space<vmem>>, vector<1x1x3x64x128xbf16>
    %19 = vector.shape_cast %18 : vector<1x1x3x64x128xbf16> to vector<3x64x128xbf16>
    %20 = vector.shape_cast %19 : vector<3x64x128xbf16> to vector<192x128xbf16>
    %c0_17 = arith.constant 0 : index
    %c128 = arith.constant 128 : index
    %21 = vector.load %arg8[%c0_17, %c128] : memref<256x512xf32, #tpu.memory_space<vmem>>, vector<256x128xf32>
    %cst_18 = arith.constant dense<0.000000e+00> : vector<256x128xf32>
    %22 = tpu.matmul %17, %20, %cst_18 {dimension_numbers = #tpu.dot_dimension_numbers<[1], [0], [0], [1], [0, 0, 1, 1], [], []>} : vector<256x192xbf16>, vector<192x128xbf16>, vector<256x128xf32> -> vector<256x128xf32>
    %23 = arith.addf %21, %22 : vector<256x128xf32>
    %c0_19 = arith.constant 0 : index
    %c128_20 = arith.constant 128 : index
    %24 = vector.load %arg8[%c0_19, %c128_20] : memref<256x512xf32, #tpu.memory_space<vmem>>, vector<256x128xf32>
    tpu.vector_store %arg8[%c0_19, %c128_20], %23 {strides = array<i32>} : memref<256x512xf32, #tpu.memory_space<vmem>>, vector<256x128xf32>,
    %c0_21 = arith.constant 0 : index
    %c12_22 = arith.constant 12 : index
    %c18_23 = arith.constant 18 : index
    %c0_24 = arith.constant 0 : index
    %25 = vector.load %arg2[%c0_21, %c12_22, %c18_23, %c0_24] : memref<1x52x64x64xbf16, #tpu.memory_space<vmem>>, vector<1x28x16x64xbf16>
    %26 = vector.shape_cast %25 : vector<1x28x16x64xbf16> to vector<28x16x64xbf16>
    %27 = vector.extract_strided_slice %26 {offsets = [0, 0, 0], sizes = [16, 16, 64], strides = [1, 1, 1]} : vector<28x16x64xbf16> to vector<16x16x64xbf16>
    %28 = vector.extract_strided_slice %26 {offsets = [6, 0, 0], sizes = [16, 16, 64], strides = [1, 1, 1]} : vector<28x16x64xbf16> to vector<16x16x64xbf16>
    %29 = vector.extract_strided_slice %26 {offsets = [12, 0, 0], sizes = [16, 16, 64], strides = [1, 1, 1]} : vector<28x16x64xbf16> to vector<16x16x64xbf16>
    %30 = tpu.concatenate %27, %28, %29 in 2 : vector<16x16x64xbf16>, vector<16x16x64xbf16>, vector<16x16x64xbf16> -> vector<16x16x192xbf16>
    %31 = vector.shape_cast %30 : vector<16x16x192xbf16> to vector<256x192xbf16>
    %c0_25 = arith.constant 0 : index
    %c1 = arith.constant 1 : index
    %c0_26 = arith.constant 0 : index
    %c0_27 = arith.constant 0 : index
    %c0_28 = arith.constant 0 : index
    %32 = vector.load %arg4[%c0_25, %c1, %c0_26, %c0_27, %c0_28] : memref<3x3x3x64x128xbf16, #tpu.memory_space<vmem>>, vector<1x1x3x64x128xbf16>
    %33 = vector.shape_cast %32 : vector<1x1x3x64x128xbf16> to vector<3x64x128xbf16>
    %34 = vector.shape_cast %33 : vector<3x64x128xbf16> to vector<192x128xbf16>
    %c0_29 = arith.constant 0 : index
    %c128_30 = arith.constant 128 : index
    %35 = vector.load %arg8[%c0_29, %c128_30] : memref<256x512xf32, #tpu.memory_space<vmem>>, vector<256x128xf32>
    %cst_31 = arith.constant dense<0.000000e+00> : vector<256x128xf32>
    %36 = tpu.matmul %31, %34, %cst_31 {dimension_numbers = #tpu.dot_dimension_numbers<[1], [0], [0], [1], [0, 0, 1, 1], [], []>} : vector<256x192xbf16>, vector<192x128xbf16>, vector<256x128xf32> -> vector<256x128xf32>
    %37 = arith.addf %35, %36 : vector<256x128xf32>
    %c0_32 = arith.constant 0 : index
    %c128_33 = arith.constant 128 : index
    %38 = vector.load %arg8[%c0_32, %c128_33] : memref<256x512xf32, #tpu.memory_space<vmem>>, vector<256x128xf32>
    tpu.vector_store %arg8[%c0_32, %c128_33], %37 {strides = array<i32>} : memref<256x512xf32, #tpu.memory_space<vmem>>, vector<256x128xf32>,
    %c0_34 = arith.constant 0 : index
    %c12_35 = arith.constant 12 : index
    %c24 = arith.constant 24 : index
    %c0_36 = arith.constant 0 : index
    %39 = vector.load %arg2[%c0_34, %c12_35, %c24, %c0_36] : memref<1x52x64x64xbf16, #tpu.memory_space<vmem>>, vector<1x28x16x64xbf16>
    %40 = vector.shape_cast %39 : vector<1x28x16x64xbf16> to vector<28x16x64xbf16>
    %41 = vector.extract_strided_slice %40 {offsets = [0, 0, 0], sizes = [16, 16, 64], strides = [1, 1, 1]} : vector<28x16x64xbf16> to vector<16x16x64xbf16>
    %42 = vector.extract_strided_slice %40 {offsets = [6, 0, 0], sizes = [16, 16, 64], strides = [1, 1, 1]} : vector<28x16x64xbf16> to vector<16x16x64xbf16>
    %43 = vector.extract_strided_slice %40 {offsets = [12, 0, 0], sizes = [16, 16, 64], strides = [1, 1, 1]} : vector<28x16x64xbf16> to vector<16x16x64xbf16>
    %44 = tpu.concatenate %41, %42, %43 in 2 : vector<16x16x64xbf16>, vector<16x16x64xbf16>, vector<16x16x64xbf16> -> vector<16x16x192xbf16>
    %45 = vector.shape_cast %44 : vector<16x16x192xbf16> to vector<256x192xbf16>
    %c0_37 = arith.constant 0 : index
    %c2 = arith.constant 2 : index
    %c0_38 = arith.constant 0 : index
    %c0_39 = arith.constant 0 : index
    %c0_40 = arith.constant 0 : index
    %46 = vector.load %arg4[%c0_37, %c2, %c0_38, %c0_39, %c0_40] : memref<3x3x3x64x128xbf16, #tpu.memory_space<vmem>>, vector<1x1x3x64x128xbf16>
    %47 = vector.shape_cast %46 : vector<1x1x3x64x128xbf16> to vector<3x64x128xbf16>
    %48 = vector.shape_cast %47 : vector<3x64x128xbf16> to vector<192x128xbf16>
    %c0_41 = arith.constant 0 : index
    %c128_42 = arith.constant 128 : index
    %49 = vector.load %arg8[%c0_41, %c128_42] : memref<256x512xf32, #tpu.memory_space<vmem>>, vector<256x128xf32>
    %cst_43 = arith.constant dense<0.000000e+00> : vector<256x128xf32>
    %50 = tpu.matmul %45, %48, %cst_43 {dimension_numbers = #tpu.dot_dimension_numbers<[1], [0], [0], [1], [0, 0, 1, 1], [], []>} : vector<256x192xbf16>, vector<192x128xbf16>, vector<256x128xf32> -> vector<256x128xf32>
    %51 = arith.addf %49, %50 : vector<256x128xf32>
    %c0_44 = arith.constant 0 : index
    %c128_45 = arith.constant 128 : index
    %52 = vector.load %arg8[%c0_44, %c128_45] : memref<256x512xf32, #tpu.memory_space<vmem>>, vector<256x128xf32>
    tpu.vector_store %arg8[%c0_44, %c128_45], %51 {strides = array<i32>} : memref<256x512xf32, #tpu.memory_space<vmem>>, vector<256x128xf32>,
    %c0_46 = arith.constant 0 : index
    %c6 = arith.constant 6 : index
    %c6_47 = arith.constant 6 : index
    %c0_48 = arith.constant 0 : index
    %53 = vector.load %arg2[%c0_46, %c6, %c6_47, %c0_48] : memref<1x52x64x64xbf16, #tpu.memory_space<vmem>>, vector<1x40x16x64xbf16>
    %54 = vector.shape_cast %53 : vector<1x40x16x64xbf16> to vector<40x16x64xbf16>
    %55 = vector.extract_strided_slice %54 {offsets = [0, 0, 0], sizes = [16, 16, 64], strides = [1, 1, 1]} : vector<40x16x64xbf16> to vector<16x16x64xbf16>
    %56 = vector.extract_strided_slice %54 {offsets = [12, 0, 0], sizes = [16, 16, 64], strides = [1, 1, 1]} : vector<40x16x64xbf16> to vector<16x16x64xbf16>
    %57 = vector.extract_strided_slice %54 {offsets = [24, 0, 0], sizes = [16, 16, 64], strides = [1, 1, 1]} : vector<40x16x64xbf16> to vector<16x16x64xbf16>
    %58 = tpu.concatenate %55, %56, %57 in 2 : vector<16x16x64xbf16>, vector<16x16x64xbf16>, vector<16x16x64xbf16> -> vector<16x16x192xbf16>
    %59 = vector.shape_cast %58 : vector<16x16x192xbf16> to vector<256x192xbf16>
    %c1_49 = arith.constant 1 : index
    %c0_50 = arith.constant 0 : index
    %c0_51 = arith.constant 0 : index
    %c0_52 = arith.constant 0 : index
    %c0_53 = arith.constant 0 : index
    %60 = vector.load %arg4[%c1_49, %c0_50, %c0_51, %c0_52, %c0_53] : memref<3x3x3x64x128xbf16, #tpu.memory_space<vmem>>, vector<1x1x3x64x128xbf16>
    %61 = vector.shape_cast %60 : vector<1x1x3x64x128xbf16> to vector<3x64x128xbf16>
    %62 = vector.shape_cast %61 : vector<3x64x128xbf16> to vector<192x128xbf16>
    %c0_54 = arith.constant 0 : index
    %c256 = arith.constant 256 : index
    %63 = vector.load %arg8[%c0_54, %c256] : memref<256x512xf32, #tpu.memory_space<vmem>>, vector<256x128xf32>
    %cst_55 = arith.constant dense<0.000000e+00> : vector<256x128xf32>
    %64 = tpu.matmul %59, %62, %cst_55 {dimension_numbers = #tpu.dot_dimension_numbers<[1], [0], [0], [1], [0, 0, 1, 1], [], []>} : vector<256x192xbf16>, vector<192x128xbf16>, vector<256x128xf32> -> vector<256x128xf32>
    %65 = arith.addf %63, %64 : vector<256x128xf32>
    %c0_56 = arith.constant 0 : index
    %c256_57 = arith.constant 256 : index
    %66 = vector.load %arg8[%c0_56, %c256_57] : memref<256x512xf32, #tpu.memory_space<vmem>>, vector<256x128xf32>
    tpu.vector_store %arg8[%c0_56, %c256_57], %65 {strides = array<i32>} : memref<256x512xf32, #tpu.memory_space<vmem>>, vector<256x128xf32>,
    %c0_58 = arith.constant 0 : index
    %c6_59 = arith.constant 6 : index
    %c18_60 = arith.constant 18 : index
    %c0_61 = arith.constant 0 : index
    %67 = vector.load %arg2[%c0_58, %c6_59, %c18_60, %c0_61] : memref<1x52x64x64xbf16, #tpu.memory_space<vmem>>, vector<1x40x16x64xbf16>
    %68 = vector.shape_cast %67 : vector<1x40x16x64xbf16> to vector<40x16x64xbf16>
    %69 = vector.extract_strided_slice %68 {offsets = [0, 0, 0], sizes = [16, 16, 64], strides = [1, 1, 1]} : vector<40x16x64xbf16> to vector<16x16x64xbf16>
    %70 = vector.extract_strided_slice %68 {offsets = [12, 0, 0], sizes = [16, 16, 64], strides = [1, 1, 1]} : vector<40x16x64xbf16> to vector<16x16x64xbf16>
    %71 = vector.extract_strided_slice %68 {offsets = [24, 0, 0], sizes = [16, 16, 64], strides = [1, 1, 1]} : vector<40x16x64xbf16> to vector<16x16x64xbf16>
    %72 = tpu.concatenate %69, %70, %71 in 2 : vector<16x16x64xbf16>, vector<16x16x64xbf16>, vector<16x16x64xbf16> -> vector<16x16x192xbf16>
    %73 = vector.shape_cast %72 : vector<16x16x192xbf16> to vector<256x192xbf16>
    %c1_62 = arith.constant 1 : index
    %c1_63 = arith.constant 1 : index
    %c0_64 = arith.constant 0 : index
    %c0_65 = arith.constant 0 : index
    %c0_66 = arith.constant 0 : index
    %74 = vector.load %arg4[%c1_62, %c1_63, %c0_64, %c0_65, %c0_66] : memref<3x3x3x64x128xbf16, #tpu.memory_space<vmem>>, vector<1x1x3x64x128xbf16>
    %75 = vector.shape_cast %74 : vector<1x1x3x64x128xbf16> to vector<3x64x128xbf16>
    %76 = vector.shape_cast %75 : vector<3x64x128xbf16> to vector<192x128xbf16>
    %c0_67 = arith.constant 0 : index
    %c256_68 = arith.constant 256 : index
    %77 = vector.load %arg8[%c0_67, %c256_68] : memref<256x512xf32, #tpu.memory_space<vmem>>, vector<256x128xf32>
    %cst_69 = arith.constant dense<0.000000e+00> : vector<256x128xf32>
    %78 = tpu.matmul %73, %76, %cst_69 {dimension_numbers = #tpu.dot_dimension_numbers<[1], [0], [0], [1], [0, 0, 1, 1], [], []>} : vector<256x192xbf16>, vector<192x128xbf16>, vector<256x128xf32> -> vector<256x128xf32>
    %79 = arith.addf %77, %78 : vector<256x128xf32>
    %c0_70 = arith.constant 0 : index
    %c256_71 = arith.constant 256 : index
    %80 = vector.load %arg8[%c0_70, %c256_71] : memref<256x512xf32, #tpu.memory_space<vmem>>, vector<256x128xf32>
    tpu.vector_store %arg8[%c0_70, %c256_71], %79 {strides = array<i32>} : memref<256x512xf32, #tpu.memory_space<vmem>>, vector<256x128xf32>,
    %c0_72 = arith.constant 0 : index
    %c6_73 = arith.constant 6 : index
    %c30 = arith.constant 30 : index
    %c0_74 = arith.constant 0 : index
    %81 = vector.load %arg2[%c0_72, %c6_73, %c30, %c0_74] : memref<1x52x64x64xbf16, #tpu.memory_space<vmem>>, vector<1x40x16x64xbf16>
    %82 = vector.shape_cast %81 : vector<1x40x16x64xbf16> to vector<40x16x64xbf16>
    %83 = vector.extract_strided_slice %82 {offsets = [0, 0, 0], sizes = [16, 16, 64], strides = [1, 1, 1]} : vector<40x16x64xbf16> to vector<16x16x64xbf16>
    %84 = vector.extract_strided_slice %82 {offsets = [12, 0, 0], sizes = [16, 16, 64], strides = [1, 1, 1]} : vector<40x16x64xbf16> to vector<16x16x64xbf16>
    %85 = vector.extract_strided_slice %82 {offsets = [24, 0, 0], sizes = [16, 16, 64], strides = [1, 1, 1]} : vector<40x16x64xbf16> to vector<16x16x64xbf16>
    %86 = tpu.concatenate %83, %84, %85 in 2 : vector<16x16x64xbf16>, vector<16x16x64xbf16>, vector<16x16x64xbf16> -> vector<16x16x192xbf16>
    %87 = vector.shape_cast %86 : vector<16x16x192xbf16> to vector<256x192xbf16>
    %c1_75 = arith.constant 1 : index
    %c2_76 = arith.constant 2 : index
    %c0_77 = arith.constant 0 : index
    %c0_78 = arith.constant 0 : index
    %c0_79 = arith.constant 0 : index
    %88 = vector.load %arg4[%c1_75, %c2_76, %c0_77, %c0_78, %c0_79] : memref<3x3x3x64x128xbf16, #tpu.memory_space<vmem>>, vector<1x1x3x64x128xbf16>
    %89 = vector.shape_cast %88 : vector<1x1x3x64x128xbf16> to vector<3x64x128xbf16>
    %90 = vector.shape_cast %89 : vector<3x64x128xbf16> to vector<192x128xbf16>
    %c0_80 = arith.constant 0 : index
    %c256_81 = arith.constant 256 : index
    %91 = vector.load %arg8[%c0_80, %c256_81] : memref<256x512xf32, #tpu.memory_space<vmem>>, vector<256x128xf32>
    %cst_82 = arith.constant dense<0.000000e+00> : vector<256x128xf32>
    %92 = tpu.matmul %87, %90, %cst_82 {dimension_numbers = #tpu.dot_dimension_numbers<[1], [0], [0], [1], [0, 0, 1, 1], [], []>} : vector<256x192xbf16>, vector<192x128xbf16>, vector<256x128xf32> -> vector<256x128xf32>
    %93 = arith.addf %91, %92 : vector<256x128xf32>
    %c0_83 = arith.constant 0 : index
    %c256_84 = arith.constant 256 : index
    %94 = vector.load %arg8[%c0_83, %c256_84] : memref<256x512xf32, #tpu.memory_space<vmem>>, vector<256x128xf32>
    tpu.vector_store %arg8[%c0_83, %c256_84], %93 {strides = array<i32>} : memref<256x512xf32, #tpu.memory_space<vmem>>, vector<256x128xf32>,
    %c0_85 = arith.constant 0 : index
    %c0_86 = arith.constant 0 : index
    %c0_87 = arith.constant 0 : index
    %c0_88 = arith.constant 0 : index
    %95 = vector.load %arg2[%c0_85, %c0_86, %c0_87, %c0_88] : memref<1x52x64x64xbf16, #tpu.memory_space<vmem>>, vector<1x52x16x64xbf16>
    %96 = vector.shape_cast %95 : vector<1x52x16x64xbf16> to vector<52x16x64xbf16>
    %97 = vector.extract_strided_slice %96 {offsets = [0, 0, 0], sizes = [16, 16, 64], strides = [1, 1, 1]} : vector<52x16x64xbf16> to vector<16x16x64xbf16>
    %98 = vector.extract_strided_slice %96 {offsets = [18, 0, 0], sizes = [16, 16, 64], strides = [1, 1, 1]} : vector<52x16x64xbf16> to vector<16x16x64xbf16>
    %99 = vector.extract_strided_slice %96 {offsets = [36, 0, 0], sizes = [16, 16, 64], strides = [1, 1, 1]} : vector<52x16x64xbf16> to vector<16x16x64xbf16>
    %100 = tpu.concatenate %97, %98, %99 in 2 : vector<16x16x64xbf16>, vector<16x16x64xbf16>, vector<16x16x64xbf16> -> vector<16x16x192xbf16>
    %101 = vector.shape_cast %100 : vector<16x16x192xbf16> to vector<256x192xbf16>
    %c2_89 = arith.constant 2 : index
    %c0_90 = arith.constant 0 : index
    %c0_91 = arith.constant 0 : index
    %c0_92 = arith.constant 0 : index
    %c0_93 = arith.constant 0 : index
    %102 = vector.load %arg4[%c2_89, %c0_90, %c0_91, %c0_92, %c0_93] : memref<3x3x3x64x128xbf16, #tpu.memory_space<vmem>>, vector<1x1x3x64x128xbf16>
    %103 = vector.shape_cast %102 : vector<1x1x3x64x128xbf16> to vector<3x64x128xbf16>
    %104 = vector.shape_cast %103 : vector<3x64x128xbf16> to vector<192x128xbf16>
    %c0_94 = arith.constant 0 : index
    %c384 = arith.constant 384 : index
    %105 = vector.load %arg8[%c0_94, %c384] : memref<256x512xf32, #tpu.memory_space<vmem>>, vector<256x128xf32>
    %cst_95 = arith.constant dense<0.000000e+00> : vector<256x128xf32>
    %106 = tpu.matmul %101, %104, %cst_95 {dimension_numbers = #tpu.dot_dimension_numbers<[1], [0], [0], [1], [0, 0, 1, 1], [], []>} : vector<256x192xbf16>, vector<192x128xbf16>, vector<256x128xf32> -> vector<256x128xf32>
    %107 = arith.addf %105, %106 : vector<256x128xf32>
    %c0_96 = arith.constant 0 : index
    %c384_97 = arith.constant 384 : index
    %108 = vector.load %arg8[%c0_96, %c384_97] : memref<256x512xf32, #tpu.memory_space<vmem>>, vector<256x128xf32>
    tpu.vector_store %arg8[%c0_96, %c384_97], %107 {strides = array<i32>} : memref<256x512xf32, #tpu.memory_space<vmem>>, vector<256x128xf32>,
    %c0_98 = arith.constant 0 : index
    %c0_99 = arith.constant 0 : index
    %c18_100 = arith.constant 18 : index
    %c0_101 = arith.constant 0 : index
    %109 = vector.load %arg2[%c0_98, %c0_99, %c18_100, %c0_101] : memref<1x52x64x64xbf16, #tpu.memory_space<vmem>>, vector<1x52x16x64xbf16>
    %110 = vector.shape_cast %109 : vector<1x52x16x64xbf16> to vector<52x16x64xbf16>
    %111 = vector.extract_strided_slice %110 {offsets = [0, 0, 0], sizes = [16, 16, 64], strides = [1, 1, 1]} : vector<52x16x64xbf16> to vector<16x16x64xbf16>
    %112 = vector.extract_strided_slice %110 {offsets = [18, 0, 0], sizes = [16, 16, 64], strides = [1, 1, 1]} : vector<52x16x64xbf16> to vector<16x16x64xbf16>
    %113 = vector.extract_strided_slice %110 {offsets = [36, 0, 0], sizes = [16, 16, 64], strides = [1, 1, 1]} : vector<52x16x64xbf16> to vector<16x16x64xbf16>
    %114 = tpu.concatenate %111, %112, %113 in 2 : vector<16x16x64xbf16>, vector<16x16x64xbf16>, vector<16x16x64xbf16> -> vector<16x16x192xbf16>
    %115 = vector.shape_cast %114 : vector<16x16x192xbf16> to vector<256x192xbf16>
    %c2_102 = arith.constant 2 : index
    %c1_103 = arith.constant 1 : index
    %c0_104 = arith.constant 0 : index
    %c0_105 = arith.constant 0 : index
    %c0_106 = arith.constant 0 : index
    %116 = vector.load %arg4[%c2_102, %c1_103, %c0_104, %c0_105, %c0_106] : memref<3x3x3x64x128xbf16, #tpu.memory_space<vmem>>, vector<1x1x3x64x128xbf16>
    %117 = vector.shape_cast %116 : vector<1x1x3x64x128xbf16> to vector<3x64x128xbf16>
    %118 = vector.shape_cast %117 : vector<3x64x128xbf16> to vector<192x128xbf16>
    %c0_107 = arith.constant 0 : index
    %c384_108 = arith.constant 384 : index
    %119 = vector.load %arg8[%c0_107, %c384_108] : memref<256x512xf32, #tpu.memory_space<vmem>>, vector<256x128xf32>
    %cst_109 = arith.constant dense<0.000000e+00> : vector<256x128xf32>
    %120 = tpu.matmul %115, %118, %cst_109 {dimension_numbers = #tpu.dot_dimension_numbers<[1], [0], [0], [1], [0, 0, 1, 1], [], []>} : vector<256x192xbf16>, vector<192x128xbf16>, vector<256x128xf32> -> vector<256x128xf32>
    %121 = arith.addf %119, %120 : vector<256x128xf32>
    %c0_110 = arith.constant 0 : index
    %c384_111 = arith.constant 384 : index
    %122 = vector.load %arg8[%c0_110, %c384_111] : memref<256x512xf32, #tpu.memory_space<vmem>>, vector<256x128xf32>
    tpu.vector_store %arg8[%c0_110, %c384_111], %121 {strides = array<i32>} : memref<256x512xf32, #tpu.memory_space<vmem>>, vector<256x128xf32>,
    %c0_112 = arith.constant 0 : index
    %c0_113 = arith.constant 0 : index
    %c36 = arith.constant 36 : index
    %c0_114 = arith.constant 0 : index
    %123 = vector.load %arg2[%c0_112, %c0_113, %c36, %c0_114] : memref<1x52x64x64xbf16, #tpu.memory_space<vmem>>, vector<1x52x16x64xbf16>
    %124 = vector.shape_cast %123 : vector<1x52x16x64xbf16> to vector<52x16x64xbf16>
    %125 = vector.extract_strided_slice %124 {offsets = [0, 0, 0], sizes = [16, 16, 64], strides = [1, 1, 1]} : vector<52x16x64xbf16> to vector<16x16x64xbf16>
    %126 = vector.extract_strided_slice %124 {offsets = [18, 0, 0], sizes = [16, 16, 64], strides = [1, 1, 1]} : vector<52x16x64xbf16> to vector<16x16x64xbf16>
    %127 = vector.extract_strided_slice %124 {offsets = [36, 0, 0], sizes = [16, 16, 64], strides = [1, 1, 1]} : vector<52x16x64xbf16> to vector<16x16x64xbf16>
    %128 = tpu.concatenate %125, %126, %127 in 2 : vector<16x16x64xbf16>, vector<16x16x64xbf16>, vector<16x16x64xbf16> -> vector<16x16x192xbf16>
    %129 = vector.shape_cast %128 : vector<16x16x192xbf16> to vector<256x192xbf16>
    %c2_115 = arith.constant 2 : index
    %c2_116 = arith.constant 2 : index
    %c0_117 = arith.constant 0 : index
    %c0_118 = arith.constant 0 : index
    %c0_119 = arith.constant 0 : index
    %130 = vector.load %arg4[%c2_115, %c2_116, %c0_117, %c0_118, %c0_119] : memref<3x3x3x64x128xbf16, #tpu.memory_space<vmem>>, vector<1x1x3x64x128xbf16>
    %131 = vector.shape_cast %130 : vector<1x1x3x64x128xbf16> to vector<3x64x128xbf16>
    %132 = vector.shape_cast %131 : vector<3x64x128xbf16> to vector<192x128xbf16>
    %c0_120 = arith.constant 0 : index
    %c384_121 = arith.constant 384 : index
    %133 = vector.load %arg8[%c0_120, %c384_121] : memref<256x512xf32, #tpu.memory_space<vmem>>, vector<256x128xf32>
    %cst_122 = arith.constant dense<0.000000e+00> : vector<256x128xf32>
    %134 = tpu.matmul %129, %132, %cst_122 {dimension_numbers = #tpu.dot_dimension_numbers<[1], [0], [0], [1], [0, 0, 1, 1], [], []>} : vector<256x192xbf16>, vector<192x128xbf16>, vector<256x128xf32> -> vector<256x128xf32>
    %135 = arith.addf %133, %134 : vector<256x128xf32>
    %c0_123 = arith.constant 0 : index
    %c384_124 = arith.constant 384 : index
    %136 = vector.load %arg8[%c0_123, %c384_124] : memref<256x512xf32, #tpu.memory_space<vmem>>, vector<256x128xf32>
    tpu.vector_store %arg8[%c0_123, %c384_124], %135 {strides = array<i32>} : memref<256x512xf32, #tpu.memory_space<vmem>>, vector<256x128xf32>,
    %c0_i32_125 = arith.constant 0 : i32
    %137 = arith.cmpi eq, %arg1, %c0_i32_125 : i32
    %138 = arith.extui %137 : i1 to i32
    %c0_i32_126 = arith.constant 0 : i32
    %139 = arith.cmpi ne, %138, %c0_i32_126 : i32
    scf.if %139 {
      %c0_127 = arith.constant 0 : index
      %c0_128 = arith.constant 0 : index
      %c0_129 = arith.constant 0 : index
      %140 = vector.load %arg6[%c0_127, %c0_128, %c0_129] : memref<1x1x128xf32, #tpu.memory_space<vmem>>, vector<1x1x128xf32>
      %141 = vector.shape_cast %140 : vector<1x1x128xf32> to vector<1x128xf32>
      %142 = vector.shape_cast %141 : vector<1x128xf32> to vector<1x128xf32>
      %143 = vector.broadcast %142 : vector<1x128xf32> to vector<256x128xf32>
      %c0_130 = arith.constant 0 : index
      %c0_131 = arith.constant 0 : index
      %c0_132 = arith.constant 0 : index
      %144 = vector.load %arg7[%c0_130, %c0_131, %c0_132] : memref<1x256x640xf32, #tpu.memory_space<vmem>>, vector<1x256x128xf32>
      %145 = vector.shape_cast %144 : vector<1x256x128xf32> to vector<256x128xf32>
      %146 = vector.shape_cast %143 : vector<256x128xf32> to vector<1x256x128xf32>
      tpu.vector_store %arg7[%c0_130, %c0_131, %c0_132], %146 {strides = array<i32>} : memref<1x256x640xf32, #tpu.memory_space<vmem>>, vector<1x256x128xf32>,
      %c0_133 = arith.constant 0 : index
      %c0_134 = arith.constant 0 : index
      %147 = vector.load %arg8[%c0_133, %c0_134] : memref<256x512xf32, #tpu.memory_space<vmem>>, vector<256x512xf32>
      %c0_135 = arith.constant 0 : index
      %c0_136 = arith.constant 0 : index
      %148 = vector.load %arg5[%c0_135, %c0_136] : memref<1x512xf32, #tpu.memory_space<vmem>>, vector<1x512xf32>
      %149 = vector.broadcast %148 : vector<1x512xf32> to vector<256x512xf32>
      %150 = arith.addf %147, %149 : vector<256x512xf32>
      %cst_137 = arith.constant 0.000000e+00 : f32
      %151 = vector.broadcast %cst_137 : f32 to vector<256x512xf32>
      %152 = arith.maximumf %150, %151 : vector<256x512xf32>
      %c0_138 = arith.constant 0 : index
      %c0_139 = arith.constant 0 : index
      %c128_140 = arith.constant 128 : index
      %153 = vector.load %arg7[%c0_138, %c0_139, %c128_140] : memref<1x256x640xf32, #tpu.memory_space<vmem>>, vector<1x256x512xf32>
      %154 = vector.shape_cast %153 : vector<1x256x512xf32> to vector<256x512xf32>
      %155 = vector.shape_cast %152 : vector<256x512xf32> to vector<1x256x512xf32>
      tpu.vector_store %arg7[%c0_138, %c0_139, %c128_140], %155 {strides = array<i32>} : memref<1x256x640xf32, #tpu.memory_space<vmem>>, vector<1x256x512xf32>,
    } else {
    }
    return
  }
  func.func @transform_0(%arg0: i32, %arg1: i32) -> (i32, i32, i32, i32) {
    %c0_i32 = arith.constant 0 : i32
    %c0_i32_0 = arith.constant 0 : i32
    %c0_i32_1 = arith.constant 0 : i32
    return %arg0, %c0_i32, %c0_i32_0, %arg1 : i32, i32, i32, i32
  }
  func.func @transform_1(%arg0: i32, %arg1: i32) -> (i32, i32) {
    %c0_i32 = arith.constant 0 : i32
    %c0_i32_0 = arith.constant 0 : i32
    return %arg1, %c0_i32 : i32, i32
  }
  func.func @transform_2(%arg0: i32, %arg1: i32) -> (i32, i32, i32, i32, i32) {
    %c0_i32 = arith.constant 0 : i32
    %c0_i32_0 = arith.constant 0 : i32
    %c0_i32_1 = arith.constant 0 : i32
    %c0_i32_2 = arith.constant 0 : i32
    %c0_i32_3 = arith.constant 0 : i32
    return %c0_i32, %c0_i32_0, %c0_i32_1, %arg1, %c0_i32_2 : i32, i32, i32, i32, i32
  }
  func.func @transform_3(%arg0: i32, %arg1: i32) -> (i32, i32) {
    %c0_i32 = arith.constant 0 : i32
    %c0_i32_0 = arith.constant 0 : i32
    %c0_i32_1 = arith.constant 0 : i32
    return %c0_i32, %c0_i32_0 : i32, i32
  }
  func.func @transform_4(%arg0: i32, %arg1: i32) -> (i32, i32, i32) {
    %c0_i32 = arith.constant 0 : i32
    %c0_i32_0 = arith.constant 0 : i32
    %c0_i32_1 = arith.constant 0 : i32
    return %arg0, %c0_i32, %c0_i32_0 : i32, i32, i32
  }
  func.func @transform_5(%arg0: i32, %arg1: i32) -> (i32, i32, i32) {
    %c0_i32 = arith.constant 0 : i32
    %c0_i32_0 = arith.constant 0 : i32
    %c0_i32_1 = arith.constant 0 : i32
    return %arg0, %c0_i32, %c0_i32_0 : i32, i32, i32
  }
}

</mosaic_0001>

<bundles_post_ra>
// kernel: aspp_forward.1
= control target key start
LH: loop header
LB: loop body
LE: loop exit
PB: predicated region body
PF: predicated region fallthrough
CT: control target
= control target key end

     0   :  { %10 = vsyncpa [#allocation4], 0  ;;  %s18051_s0 = inlined_call_operand.vmem [shape: bf16[2,52,64,64], index: 0, kind: input, shape index: {}]   ;;  %s18052_s1 = inlined_call_operand.vmem [shape: bf16[64,128], index: 1, kind: input, shape index: {}]   ;;  %s18053_s2 = inlined_call_operand.vmem [shape: bf16[3,3,3,64,128], index: 2, kind: input, shape index: {}]   ;;  %s18054_s3 = inlined_call_operand.vmem [shape: f32[1,512], index: 3, kind: input, shape index: {}]   ;;  %s18055_s4 = inlined_call_operand.vmem [shape: f32[2,1,128], index: 4, kind: input, shape index: {}]   ;;  %s18056_s5 = inlined_call_operand.hbm [shape: f32[2,256,640], index: 5, kind: output, shape index: {}]  }
   0x1   :  { %12 = vsyncpa [#allocation4 + $0x1], 0  ;;  %s14038_s18 = smov 0   ;;  %s14040_s19 = smov 0  }
   0x2   :  { %s14042_s20 = smov 0   ;;  %s14044_s21 = smov 0  }
   0x3   :  { %s14046_s22 = smov 0   ;;  %s14048_s23 = smov 0  }
   0x4 LB: > { %s11202_s24 = sadd.s32 4294967295, %s14001_s23   ;;  %s11203_s25 = sadd.s32 4294967294, %s14001_s23   ;;  %s14001_s23 = sphi %s14048_s23, %s18_s23   ;;  %s13997_s22 = sphi %s14046_s22, %s18068_s22   ;;  %s13993_s21 = sphi %s14044_s21, %s18067_s21   ;;  %s13989_s20 = sphi %s14042_s20, %s18066_s20   ;;  %s13985_s19 = sphi %s14040_s19, %s18065_s19   ;;  %s13981_s18 = sphi %s14038_s18, %s18064_s18  }
   0x5   : > { %s30_s26 = sadd.s32 1, %s13997_s22  ;;  %s164_s27 = sadd.s32 1, %s13989_s20 }
   0x6   : > { %p32_p0 = scmp.ge.s32.totalorder %s30_s26, 2  ;;  %p174_p1 = scmp.ne.s32.totalorder %s13989_s20, %s13985_s19 }
   0x7   : > { %p175_p2 = scmp.eq.s32.totalorder %s11202_s24, 1  ;;  %p180_p3 = scmp.ne.s32.totalorder %s13985_s19, %s13981_s18 }
   0x8   : > { %s18070_s26 = smov (%p32_p0, %s30_s26), 0  ;;  %p181_p5 = scmp.eq.s32.totalorder %s11203_s25, 1 }
   0x9   : > { %p14078_p4 = por %p175_p2, %p174_p1  ;;  %s161_s29 = ssub.s32 %s13997_s22, %s18070_s26 }
   0xa   : > { %p11208_p6 = scmp.ge.s32.totalorder %s14001_s23, 1  ;;  %p162_p7 = scmp.eq.s32.totalorder %s161_s29, 0 }
   0xb   : > { %p14085_p8 = por %p181_p5, %p180_p3  ;;  %p237_p9 = scmp.lt.s32.totalorder %s14001_s23, 3 }
   0xc   : > { %s14091_s6 = scalar_select %p162_p7, %s13989_s20, %s164_s27  }
   0xd   : > { %p238_p10 = pnand %p11208_p6, %p237_p9 }
   0xe   : > { %p281_p11 = scmp.lt.s32.totalorder (!%p238_p10), %s13993_s21, 1  ;;  %v13136_v0 = vld [vmem:[%s18052_s1] sm:$0xff] (!%p238_p10)   ;;  %v13139_v1 = vld [vmem:[%s18052_s1 + $0x8] sm:$0xff] (!%p238_p10)   ;;  %v13142_v2 = vld [vmem:[%s18052_s1 + $0x10] sm:$0xff] (!%p238_p10)   ;;  %v14003_v3 = vmov (!%p238_p10), 0   ;;  %s14004_s7 = smov (!%p238_p10), 64  }
   0xf   : > { %241 = sbr.rel (%p238_p10) target bundleno = 985 (0x3d9), region = 40  ;;  %12982 = vmatprep.subr.bf16.mxu0 (!%p238_p10), %v13136_v0  ;;  %13022 = vmatprep.subr.bf16.mxu1 (!%p238_p10), %v14003_v3  ;;  %v14111_v4 = vld [vmem:[%s18053_s2] sm:$0xff] (!%p238_p10)   ;;  %v14121_v5 = vld [vmem:[%s18053_s2 + $0x8] sm:$0xff] (!%p238_p10)   ;;  %v13145_v9 = vld [vmem:[%s18052_s1 + $0x18] sm:$0xff] (!%p238_p10)   ;;  %vm1536_vm0 = vcmask (!%p238_p10), 1045504   ;;  %vm534_vm1 = vcmask (!%p238_p10), 1042432  }
  0x10   : > { %12983 = vmatpush3.bf16.msra.mxu0 (!%p238_p10), %v13136_v0  ;;  %13034 = vmatpush1.bf16.msra.mxu1 (!%p238_p10), %v14111_v4  ;;  %v14143_v11 = vld [vmem:[%s18053_s2 + $0x10] sm:$0xff] (!%p238_p10)   ;;  %v14155_v14 = vld [vmem:[%s18053_s2 + $0x18] sm:$0xff] (!%p238_p10)   ;;  %v14168_v18 = vld [vmem:[%s18053_s2 + $0x20] sm:$0xff] (!%p238_p10)   ;;  %vm535_vm2 = vcmask (!%p238_p10), 1046532   ;;  %vm761_vm3 = vcmask (!%p238_p10), 523264   ;;  %vm2550_vm5 = vcmask (!%p238_p10), 1046528  }
  0x11   : > { %12984 = vmatprep.subr.bf16.mxu0 (!%p238_p10), %v13139_v1  ;;  %13023 = vmatprep.subr.bf16.mxu1 (!%p238_p10), %v14003_v3  ;;  %v14180_v20 = vld [vmem:[%s18053_s2 + $0x28] sm:$0xff] (!%p238_p10)   ;;  %v14196_v23 = vld [vmem:[%s18053_s2 + $0x30] sm:$0xff] (!%p238_p10)   ;;  %v14215_v27 = vld [vmem:[%s18053_s2 + $0x38] sm:$0xff] (!%p238_p10)   ;;  %s278_s15 = sand.u32 (!%p238_p10), 1, %s13985_s19   ;;  %vm4388_vm6 = vcmask (!%p238_p10), 1044480  }
  0x12   : > { %v14241_v35 = vld [vmem:[%s18053_s2 + $0x40] sm:$0xff] (!%p238_p10)   ;;  %v14271_v44 = vld [vmem:[%s18053_s2 + $0x48] sm:$0xff] (!%p238_p10)   ;;  %vm14288_vm4 = vmor (!%p238_p10), %vm534_vm1, %vm535_vm2  ;;  %s15362_s24 = smul.u32 (!%p238_p10), 1280, %s278_s15 }
  0x13   : > { %v14301_v52 = vld [vmem:[%s18053_s2 + $0x50] sm:$0xff] (!%p238_p10)  }
  0x14   : > { %12985 = vmatpush3.bf16.msra.mxu0 (!%p238_p10), %v13139_v1  ;;  %13035 = vmatpush1.bf16.msra.mxu1 (!%p238_p10), %v14121_v5  ;;  %s15422_s8 = scalar_lea.vmem (!%p238_p10), [#allocation3], %s15362_s24 }
  0x15   : > { %12986 = vmatprep.subr.bf16.mxu0 (!%p238_p10), %v13142_v2  ;;  %13024 = vmatprep.subr.bf16.mxu1 (!%p238_p10), %v14003_v3  ;;  %s11087_s16 = sshll.u32 (!%p238_p10), %s15422_s8, 4  ;;  %s17999_s16 = int_to_ptr.vmem [resolvable:$true] %s11087_s16 }
  0x16   : > { %s14098_s9 = scalar_select %p281_p11, %s13993_s21, 1 }
  0x17   : > { %s13923_s29 = scalar_lea.vmem %s17999_s16, 20480 }
  0x18   : > { %s13047_s12 = smul.u32 1664, %s14098_s9  ;;  %12987 = vmatpush3.bf16.msra.mxu0 %v13142_v2  ;;  %13036 = vmatpush1.bf16.msra.mxu1 %v14143_v11  ;;  %s303_s14 = scalar_lea.vmem %s18055_s4, %s14098_s9 }
  0x19   : > { %12988 = vmatprep.subr.bf16.mxu0 %v13145_v9  ;;  %13025 = vmatprep.subr.bf16.mxu1 %v14003_v3  ;;  %s13048_s9 = smul.u32 20480, %s13993_s21  ;;  %s18005_s21 = scalar_lea.sflag [#allocation4], %s278_s15 }
  0x1a   : > { %s14116_s25 = scalar_lea.vmem %s18051_s0, %s13047_s12  ;;  %p13924_p12 = scmp.ne.s32.totalorder %s17999_s16, %s13923_s29 }
  0x1b   : > { %v13108_v6 = vld [vmem:[%s14116_s25 + $0x324] sm:$0xfc]   ;;  %v13110_v8 = vld [vmem:[%s14116_s25 + $0x32c] ss:$0 sps:$4 sm:$0x33]   ;;  %s17997_s27 = scalar_lea.hbm %s18056_s5, %s13048_s9 }
  0x1c   : > { %v14126_v7 = vld [vmem:[%s14116_s25 + $0x304] sm:$0xfc]   ;;  %1324 = vrot.lane.b32.xlu1 %v13108_v6, %s14004_s7  ;;  %v14137_v10 = vld [vmem:[%s14116_s25 + $0x30c] ss:$0 sps:$4 sm:$0x33]   ;;  %12989 = vmatpush3.bf16.msra.mxu0 %v13145_v9  ;;  %p13925_p13 = pnand %p13924_p12, %p14078_p4 }
  0x1d   : > { %1320 = vrot.lane.b32.xlu0 %v14126_v7, %s14004_s7  ;;  %v13112_v12 = vld [vmem:[%s14116_s25 + $0x34c] ss:$0 sps:$4 sm:$0x33]   ;;  %v13113_v13 = vld [vmem:[%s14116_s25 + $0x344] sm:$0xfc]   ;;  %1825 = vmatprep.subr.bf16.mxu0 %v14003_v3 }
  0x1e   : > { %v13114_v15 = vld [vmem:[%s14116_s25 + $0x36c] ss:$0 sps:$4 sm:$0x33]   ;;  %v13115_v16 = vld [vmem:[%s14116_s25 + $0x364] sm:$0xfc]   ;;  %13037 = vmatpush1.bf16.msra.mxu1 %v14155_v14  ;;  %p13926_p0 = pneg %p13925_p13 }
  0x1f   : > { %v13116_v17 = vld [vmem:[%s14116_s25 + $0x24c] ss:$0 sps:$4 sm:$0x33]   ;;  %13026 = vmatprep.subr.bf16.mxu1 %v14003_v3  ;;  %v14174_v19 = vld [vmem:[%s14116_s25 + $0x244] sm:$0xfc]  }
  0x20   : > { %1326 = vrot.lane.b32.xlu1 %v13110_v8, %s14004_s7  ;;  %v14185_v21 = vld [vmem:[%s14116_s25 + $0x38c] ss:$0 sps:$4 sm:$0x33]   ;;  %v14190_v22 = vld [vmem:[%s14116_s25 + $0x384] sm:$0xfc]  }
  0x21   : > { %1322 = vrot.lane.b32.xlu0 %v14137_v10, %s14004_s7  ;;  %v14199_v24 = vld [vmem:[%s14116_s25 + $0x26c] ss:$0 sps:$4 sm:$0x33]   ;;  %v14205_v25 = vld [vmem:[%s14116_s25 + $0x264] sm:$0xfc]   ;;  %v1565_v31 = vrot.slane %v14185_v21, 2 }
  0x22   : > { %13038 = vmatpush1.bf16.msra.mxu1 %v14168_v18  ;;  %v14210_v26 = vld [vmem:[%s14116_s25 + $0x3ec] ss:$0 sps:$4 sm:$0x33]   ;;  %v14218_v28 = vld [vmem:[%s14116_s25 + $0x3e4] sm:$0xfc]   ;;  %v1564_v40 = vrot.slane %v14190_v22, 2 }
  0x23   : > { %13027 = vmatprep.subr.bf16.mxu1 %v14003_v3  ;;  %v14222_v29 = vld [vmem:[%s14116_s25 + $0x3ac] ss:$0 sps:$4 sm:$0x33]   ;;  %v1583_v30 = vrot.slane %v14210_v26, 2  ;;  %v14230_v32 = vld [vmem:[%s14116_s25 + $0x3a4] sm:$0xfc]  }
  0x24   : > { %1330 = vrot.lane.b32.xlu1 %v13112_v12, %s14004_s7  ;;  %v1582_v33 = vrot.slane %v14218_v28, 2  ;;  %v14236_v34 = vld [vmem:[%s14116_s25 + $0x40c] ss:$0 sps:$4 sm:$0x33]   ;;  %v14244_v36 = vld [vmem:[%s14116_s25 + $0x404] sm:$0xfc]  }
  0x25   : > { %1328 = vrot.lane.b32.xlu0 %v13113_v13, %s14004_s7  ;;  %v14251_v38 = vld [vmem:[%s14116_s25 + $0x28c] ss:$0 sps:$4 sm:$0x33]   ;;  %v1589_v39 = vrot.slane %v14236_v34, 2  ;;  %v1588_v41 = vrot.slane %v14244_v36, 2  ;;  %v1571_v12 = vrot.slane %v14222_v29, 2 }
  0x26   : > { %13039 = vmatpush1.bf16.msra.mxu1 %v14180_v20  ;;  %v14248_v37 = vsel %vm1536_vm0, %v1582_v33, %v1583_v30  ;;  %v14262_v42 = vld [vmem:[%s14116_s25 + $0x284] sm:$0xfc]   ;;  %v14265_v43 = vld [vmem:[%s14116_s25 + $0x42c] ss:$0 sps:$4 sm:$0x33]   ;;  %v14329_v13 = vld [vmem:[%s18053_s2 + $0x58] sm:$0xff]  }
  0x27   : > { %13028 = vmatprep.subr.bf16.mxu1 %v14003_v3  ;;  %v14274_v45 = vsel %vm1536_vm0, %v1588_v41, %v1589_v39  ;;  %v14277_v46 = vld [vmem:[%s14116_s25 + $0x424] sm:$0xfc]   ;;  %v14283_v47 = vld [vmem:[%s14116_s25 + $0x3cc] ss:$0 sps:$4 sm:$0x33]   ;;  %v1595_v48 = vrot.slane %v14265_v43, 2 }
  0x28   : > { %1334 = vrot.lane.b32.xlu1 %v13114_v15, %s14004_s7  ;;  %v14295_v50 = vld [vmem:[%s14116_s25 + $0x3c4] sm:$0xfc]   ;;  %v1594_v51 = vrot.slane %v14277_v46, 2  ;;  %v14304_v53 = vld [vmem:[%s14116_s25 + $0x2ac] ss:$0 sps:$4 sm:$0x33]   ;;  %v14332_v15 = vsel %vm1536_vm0, %v1564_v40, %v1565_v31 }
  0x29   : > { %1332 = vrot.lane.b32.xlu0 %v13115_v16, %s14004_s7  ;;  %v11210_v54 = vld [vmem:[%s14116_s25 + $0x248] sm:$0xe]  ;;  %v11211_v55 = vld [vmem:[%s14116_s25 + $0x24c] sm:$0xf]  ;;  %v11212_v57 = vld [vmem:[%s14116_s25 + $0x250] sm:$0x1] }
  0x2a   : > { %13040 = vmatpush1.bf16.msra.mxu1 %v14196_v23  ;;  %v13129_v56 = vld [vmem:[%s14116_s25 + $0x2a4] sm:$0xfc]   ;;  %v11258_v58 = vrot.slane %v11210_v54, 9  ;;  %v539_v59 = vrot.slane %v11211_v55, 5  ;;  %v14314_v61 = vsel %vm1536_vm0, %v1594_v51, %v1595_v48  ;;  %v542_v62 = vrot.slane %v11212_v57, 5  ;;  %v13180_v49 = vld [vmem:[%s14116_s25 + $0x32c] sm:$0xff]  }
  0x2b   : > { %13029 = vmatprep.subr.bf16.mxu1 %v14003_v3  ;;  %v11213_v60 = vld [vmem:[%s14116_s25 + $0x268] sm:$0xe]  ;;  %v11214_v63 = vld [vmem:[%s14116_s25 + $0x26c] sm:$0xf]  ;;  %v11215_v0 = vld [vmem:[%s14116_s25 + $0x270] sm:$0x1] }
  0x2c   : > { %1298 = vrot.lane.b32.xlu1 %v13116_v17, %s14004_s7  ;;  %v11259_v1 = vrot.slane %v11213_v60, 9  ;;  %v540_v2 = vsel %vm14288_vm4, %v11258_v58, %v539_v59  ;;  %v541_v6 = vrot.slane %v539_v59, 4  ;;  %v546_v8 = vrot.slane %v11214_v63, 5  ;;  %v11216_v30 = vld [vmem:[%s14116_s25 + $0x288] sm:$0xe] }
  0x2d   : > { %1296 = vrot.lane.b32.xlu0 %v14174_v19, %s14004_s7  ;;  %v549_v9 = vrot.slane %v11215_v0, 5  ;;  %v1570_v16 = vrot.slane %v14230_v32, 2  ;;  %v11217_v31 = vld [vmem:[%s14116_s25 + $0x28c] sm:$0xf]  ;;  %v11218_v33 = vld [vmem:[%s14116_s25 + $0x290] sm:$0x1] }
  0x2e   : > { %13041 = vmatpush1.bf16.msra.mxu1 %v14215_v27  ;;  %v543_v17 = vsel %vm14288_vm4, %v541_v6, %v542_v62  ;;  %v11260_v39 = vrot.slane %v11216_v30, 9  ;;  %v553_v40 = vrot.slane %v11217_v31, 5  ;;  %v11219_v41 = vld [vmem:[%s14116_s25 + $0x2a8] sm:$0xe]  ;;  %v556_v51 = vrot.slane %v11218_v33, 5 }
  0x2f   : > { %13030 = vmatprep.subr.bf16.mxu1 %v14003_v3  ;;  %v11220_v54 = vld [vmem:[%s14116_s25 + $0x2ac] sm:$0xf]  ;;  %v11221_v55 = vld [vmem:[%s14116_s25 + $0x2b0] sm:$0x1]  ;;  %v11261_v57 = vrot.slane %v11219_v41, 9  ;;  %v1576_v63 = vrot.slane %v14295_v50, 2 }
  0x30   : > { %1338 = vrot.lane.b32.xlu1 %v14185_v21, %s14004_s7  ;;  %v547_v21 = vsel %vm14288_vm4, %v11259_v1, %v546_v8  ;;  %v555_v58 = vrot.slane %v553_v40, 4  ;;  %v560_v59 = vrot.slane %v11220_v54, 5  ;;  %v563_v60 = vrot.slane %v11221_v55, 5  ;;  %v13132_v62 = vld [vmem:[%s14116_s25 + $0x2cc] ss:$0 sps:$4 sm:$0x33]  }
  0x31   : > { %1336 = vrot.lane.b32.xlu0 %v14190_v22, %s14004_s7  ;;  %v548_v22 = vrot.slane %v546_v8, 4  ;;  %v13133_v0 = vld [vmem:[%s14116_s25 + $0x2c4] sm:$0xfc]  }
  0x32   : > { %13042 = vmatpush1.bf16.msra.mxu1 %v14241_v35  ;;  %v557_v1 = vsel %vm14288_vm4, %v555_v58, %v556_v51  ;;  %v562_v6 = vrot.slane %v560_v59, 4  ;;  %v11225_v31 = vld [vmem:[%s14116_s25 + $0x2e8] sm:$0xe]  ;;  %v11229_v58 = vld [vmem:[%s14116_s25 + $0x30c] sm:$0xf] }
  0x33   : > { %13031 = vmatprep.subr.bf16.mxu1 %v14003_v3  ;;  %v13138_v54 = vld [vmem:[%s14116_s25 + $0x2e4] sm:$0xfc]  }
  0x34   : > { %1302 = vrot.lane.b32.xlu1 %v14199_v24, %s14004_s7 }
  0x35   : > { %1300 = vrot.lane.b32.xlu0 %v14205_v25, %s14004_s7 }
  0x36   : > { %13043 = vmatpush1.bf16.msra.mxu1 %v14271_v44 }
  0x37   : > { %13032 = vmatprep.subr.bf16.mxu1 %v14003_v3 }
  0x38   : > { %1342 = vrot.lane.b32.xlu1 %v14222_v29, %s14004_s7  ;;  %v11274_v29 = vcombine.low %v540_v2, %v543_v17  ;;  %v561_v2 = vsel %vm14288_vm4, %v11261_v57, %v560_v59  ;;  %v11223_v17 = vld [vmem:[%s14116_s25 + $0x2cc] sm:$0xf] }
  0x39   : > { %1340 = vrot.lane.b32.xlu0 %v14230_v32, %s14004_s7  ;;  %v550_v32 = vsel %vm14288_vm4, %v548_v22, %v549_v9  ;;  %v11222_v9 = vld [vmem:[%s14116_s25 + $0x2c8] sm:$0xe] }
  0x3a   : > { %13044 = vmatpush1.bf16.msra.mxu1 %v14301_v52  ;;  %12990 = vmatprep.mubr.msk.bf16.mxu0 %vm761_vm3, %v11274_v29  ;;  %v11275_v48 = vcombine.low %v547_v21, %v550_v32  ;;  %v11224_v21 = vld [vmem:[%s14116_s25 + $0x2d0] sm:$0x1]  ;;  %v567_v29 = vrot.slane %v11223_v17, 5  ;;  %v11263_v32 = vrot.slane %v11225_v31, 9 }
  0x3b   : > { %13033 = vmatprep.subr.bf16.mxu1 %v14003_v3  ;;  %v570_v30 = vrot.slane %v11224_v21, 5  ;;  %v13144_v21 = vld [vmem:[%s14116_s25 + $0x248] sm:$0xfe]   ;;  %v11236_v31 = vld [vmem:[%s14116_s25 + $0x350] sm:$0x1] }
  0x3c   : > { %1306 = vrot.lane.b32.xlu1 %v14251_v38, %s14004_s7  ;;  %12991 = vmatmul.mubr.msk.bf16.vlgmr.msra.gmra.mrb[0].mxu0 %vm761_vm3, %v11275_v48  ;;  %v13137_v48 = vld [vmem:[%s14116_s25 + $0x2ec] ss:$0 sps:$4 sm:$0x33]  }
  0x3d   : > { %1304 = vrot.lane.b32.xlu0 %v14262_v42, %s14004_s7  ;;  %1826 = vmatpush1.bf16.msra.mxu0 %v14111_v4 }
  0x3e   : > { %13045 = vmatpush1.bf16.msra.mxu1 %v14329_v13  ;;  %1827 = vmatprep.subr.bf16.mxu0 %v14003_v3 }
  0x3f   : > { %3530 = vmatprep.subr.bf16.mxu1 %v14003_v3 }
  0x40   : > { %1346 = vrot.lane.b32.xlu1 %v14283_v47, %s14004_s7 }
  0x41   : > { %1344 = vrot.lane.b32.xlu0 %v14295_v50, %s14004_s7  ;;  %v564_v50 = vsel %vm14288_vm4, %v562_v6, %v563_v60  ;;  %1828 = vmatpush1.bf16.msra.mxu0 %v14121_v5 }
  0x42   : > { %v11277_v4 = vcombine.low %v561_v2, %v564_v50  ;;  %1829 = vmatprep.subr.bf16.mxu0 %v14003_v3 }
  0x44   : > { %1310 = vrot.lane.b32.xlu1 %v14304_v53, %s14004_s7 }
  0x45   : > { %1308 = vrot.lane.b32.xlu0 %v13129_v56, %s14004_s7  ;;  %v554_v56 = vsel %vm14288_vm4, %v11260_v39, %v553_v40  ;;  %v569_v39 = vrot.slane %v567_v29, 4  ;;  %1830 = vmatpush1.bf16.msra.mxu0 %v14143_v11  ;;  %v11232_v11 = vld [vmem:[%s14116_s25 + $0x32c] sm:$0xf] }
  0x46   : > { %v11276_v8 = vcombine.low %v554_v56, %v557_v1  ;;  %1831 = vmatprep.subr.bf16.mxu0 %v14003_v3  ;;  %v11228_v56 = vld [vmem:[%s14116_s25 + $0x308] sm:$0xe]  ;;  %v11233_v1 = vld [vmem:[%s14116_s25 + $0x330] sm:$0x1] }
  0x47   : > { %v571_v5 = vsel %vm14288_vm4, %v569_v39, %v570_v30  ;;  %v11264_v60 = vrot.slane %v11228_v56, 9  ;;  %v591_v50 = vrot.slane %v11233_v1, 5  ;;  %v13146_v30 = vld [vmem:[%s14116_s25 + $0x24c] sm:$0xff]  }
  0x48   : > { %1350 = vrot.lane.b32.xlu1 %v14210_v26, %s14004_s7  ;;  %v1577_v26 = vrot.slane %v14283_v47, 2  ;;  %12994 = vmatprep.mubr.msk.bf16.mxu0 %vm761_vm3, %v11276_v8  ;;  %v11262_v47 = vrot.slane %v11222_v9, 9  ;;  %v588_v8 = vrot.slane %v11232_v11, 5  ;;  %v13143_v9 = vld [vmem:[%s14116_s25 + $0x250] ss:$0 sps:$4 sm:$0x11]  }
  0x49   : > { %1348 = vrot.lane.b32.xlu0 %v14218_v28, %s14004_s7  ;;  %v14372_v28 = vsel %vm1536_vm0, %v1570_v16, %v1571_v12  ;;  %v11226_v12 = vld [vmem:[%s14116_s25 + $0x2ec] sm:$0xf]  ;;  %v11227_v16 = vld [vmem:[%s14116_s25 + $0x2f0] sm:$0x1]  ;;  %12995 = vmatmul.mubr.msk.bf16.gmra.mrb[4].mxu0 %vm761_vm3, %v11277_v4 }
  0x4a   : > { %v1578_v22 = vsel %vm1536_vm0, %v1576_v63, %v1577_v26  ;;  %v568_v33 = vsel %vm14288_vm4, %v11262_v47, %v567_v29  ;;  %v574_v40 = vrot.slane %v11226_v12, 5  ;;  %v577_v41 = vrot.slane %v11227_v16, 5  ;;  %1832 = vmatpush1.bf16.msra.mxu0 %v14155_v14  ;;  %v11234_v29 = vld [vmem:[%s14116_s25 + $0x348] sm:$0xe]  ;;  %v11238_v39 = vld [vmem:[%s14116_s25 + $0x36c] sm:$0xf] }
  0x4b   : > { %11468 = vmatprep.mubr.msk.bf16.mxu1 %vm761_vm3, %v1578_v22  ;;  %v11278_v55 = vcombine.low %v568_v33, %v571_v5  ;;  %1833 = vmatprep.subr.bf16.mxu0 %v14003_v3  ;;  %v590_v17 = vrot.slane %v588_v8, 4  ;;  %v11266_v12 = vrot.slane %v11234_v29, 9  ;;  %v11237_v33 = vld [vmem:[%s14116_s25 + $0x368] sm:$0xe] }
  0x4c   : > { %1314 = vrot.lane.b32.xlu1 %v13132_v62, %s14004_s7  ;;  %v576_v51 = vrot.slane %v574_v40, 4  ;;  %v575_v57 = vsel %vm14288_vm4, %v11263_v32, %v574_v40  ;;  %v581_v62 = vrot.slane %v11229_v58, 5  ;;  %v11239_v40 = vld [vmem:[%s14116_s25 + $0x370] sm:$0x1] }
  0x4d   : > { %1312 = vrot.lane.b32.xlu0 %v13133_v0, %s14004_s7  ;;  %12998 = vmatprep.mubr.msk.bf16.mxu0 %vm761_vm3, %v11278_v55  ;;  %v11231_v0 = vld [vmem:[%s14116_s25 + $0x328] sm:$0xe]  ;;  %v592_v47 = vsel %vm14288_vm4, %v590_v17, %v591_v50 }
  0x4e   : > { %v11265_v2 = vrot.slane %v11231_v0, 9  ;;  %v582_v6 = vsel %vm14288_vm4, %v11264_v60, %v581_v62  ;;  %v583_v26 = vrot.slane %v581_v62, 4  ;;  %1834 = vmatpush1.bf16.msra.mxu0 %v14168_v18  ;;  %v598_v18 = vrot.slane %v11236_v31, 5  ;;  %v11240_v60 = vld [vmem:[%s14116_s25 + $0x388] sm:$0xe]  ;;  %v13160_v31 = vld [vmem:[%s14116_s25 + $0x2ac] sm:$0xff]  }
  0x4f   : > { %1835 = vmatprep.subr.bf16.mxu0 %v14003_v3  ;;  %v11241_v62 = vld [vmem:[%s14116_s25 + $0x38c] sm:$0xf]  ;;  %v11242_v0 = vld [vmem:[%s14116_s25 + $0x390] sm:$0x1]  ;;  %v11268_v11 = vrot.slane %v11240_v60, 9 }
  0x50   : > { %1354 = vrot.lane.b32.xlu1 %v14236_v34, %s14004_s7  ;;  %v578_v34 = vsel %vm14288_vm4, %v576_v51, %v577_v41  ;;  %v589_v4 = vsel %vm14288_vm4, %v11265_v2, %v588_v8  ;;  %v11267_v41 = vrot.slane %v11237_v33, 9  ;;  %v609_v1 = vrot.slane %v11241_v62, 5  ;;  %v11243_v2 = vld [vmem:[%s14116_s25 + $0x3a8] sm:$0xe]  ;;  %v11244_v8 = vld [vmem:[%s14116_s25 + $0x3ac] sm:$0xf] }
  0x51   : > { %1352 = vrot.lane.b32.xlu0 %v14244_v36, %s14004_s7  ;;  %v11230_v36 = vld [vmem:[%s14116_s25 + $0x310] sm:$0x1]  ;;  %v11279_v59 = vcombine.low %v575_v57, %v578_v34  ;;  %v11281_v16 = vcombine.low %v589_v4, %v592_v47  ;;  %v11269_v50 = vrot.slane %v11243_v2, 9  ;;  %v616_v17 = vrot.slane %v11244_v8, 5  ;;  %v13157_v47 = vld [vmem:[%s14116_s25 + $0x2a8] sm:$0xfe]  }
  0x52   : > { %v584_v63 = vrot.slane %v11230_v36, 5  ;;  %1836 = vmatpush1.bf16.msra.mxu0 %v14180_v20  ;;  %v13148_v57 = vld [vmem:[%s14116_s25 + $0x270] ss:$0 sps:$4 sm:$0x11]   ;;  %v11252_v60 = vld [vmem:[%s14116_s25 + $0x408] sm:$0xe] }
  0x53   : > { %12999 = vmatmul.mubr.msk.bf16.gmra.mrb[8].mxu0 %vm761_vm3, %v11279_v59  ;;  %1837 = vmatprep.subr.bf16.mxu0 %v14003_v3  ;;  %v13150_v34 = vld [vmem:[%s14116_s25 + $0x26c] sm:$0xff]  }
  0x54   : > { %1318 = vrot.lane.b32.xlu1 %v13137_v48, %s14004_s7  ;;  %v585_v14 = vsel %vm14288_vm4, %v583_v26, %v584_v63  ;;  %v602_v48 = vrot.slane %v11238_v39, 5  ;;  %v13152_v59 = vld [vmem:[%s14116_s25 + $0x290] ss:$0 sps:$4 sm:$0x11]   ;;  %v13153_v63 = vld [vmem:[%s14116_s25 + $0x288] sm:$0xfe]  }
  0x55   : > { %1316 = vrot.lane.b32.xlu0 %v13138_v54, %s14004_s7  ;;  %v11280_v22 = vcombine.low %v582_v6, %v585_v14  ;;  %v605_v54 = vrot.slane %v11239_v40, 5  ;;  %v612_v26 = vrot.slane %v11242_v0, 5  ;;  %v611_v14 = vrot.slane %v609_v1, 4  ;;  %v11249_v40 = vld [vmem:[%s14116_s25 + $0x3e8] sm:$0xe] }
  0x56   : > { %v604_v55 = vrot.slane %v602_v48, 4  ;;  %v603_v58 = vsel %vm14288_vm4, %v11267_v41, %v602_v48  ;;  %1838 = vmatpush1.bf16.msra.mxu0 %v14196_v23  ;;  %v11245_v23 = vld [vmem:[%s14116_s25 + $0x3b0] sm:$0x1]  ;;  %v11250_v41 = vld [vmem:[%s14116_s25 + $0x3ec] sm:$0xf]  ;;  %v11272_v0 = vrot.slane %v11252_v60, 9 }
  0x57   : > { %13002 = vmatprep.mubr.msk.bf16.mxu0 %vm761_vm3, %v11280_v22  ;;  %1839 = vmatprep.subr.bf16.mxu0 %v14003_v3  ;;  %v13155_v22 = vld [vmem:[%s14116_s25 + $0x28c] sm:$0xff]   ;;  %v613_v4 = vsel %vm14288_vm4, %v611_v14, %v612_v26 }
  0x58   : > { %1358 = vrot.lane.b32.xlu1 %v14265_v43, %s14004_s7  ;;  %v13147_v43 = vld [vmem:[%s14116_s25 + $0x268] sm:$0xfe]   ;;  %v606_v36 = vsel %vm14288_vm4, %v604_v55, %v605_v54  ;;  %v11257_v26 = vld [vmem:[%s14116_s25 + $0x430] sm:$0x1] }
  0x59   : > { %1356 = vrot.lane.b32.xlu0 %v14277_v46, %s14004_s7  ;;  %v11235_v46 = vld [vmem:[%s14116_s25 + $0x34c] sm:$0xf]  ;;  %v11283_v6 = vcombine.low %v603_v58, %v606_v36 }
  0x5a   : > { %v595_v32 = vrot.slane %v11235_v46, 5  ;;  %1840 = vmatpush1.bf16.msra.mxu0 %v14215_v27  ;;  %v617_v27 = vsel %vm14288_vm4, %v11269_v50, %v616_v17  ;;  %v11246_v46 = vld [vmem:[%s14116_s25 + $0x3c8] sm:$0xe]  ;;  %v11253_v62 = vld [vmem:[%s14116_s25 + $0x40c] sm:$0xf] }
  0x5b   : > { %13003 = vmatmul.mubr.msk.bf16.gmra.mrb[12].mxu0 %vm761_vm3, %v11281_v16  ;;  %1841 = vmatprep.subr.bf16.mxu0 %v14003_v3  ;;  %v11248_v16 = vld [vmem:[%s14116_s25 + $0x3d0] sm:$0x1]  ;;  %v13167_v8 = vld [vmem:[%s14116_s25 + $0x2e8] sm:$0xfe]  }
  0x5c   : > { %2312 = vrot.lane.b32.xlu1 %v13143_v9, %s14004_s7  ;;  %v596_v5 = vsel %vm14288_vm4, %v11266_v12, %v595_v32  ;;  %v597_v51 = vrot.slane %v595_v32, 4  ;;  %v610_v9 = vsel %vm14288_vm4, %v11268_v11, %v609_v1  ;;  %v11247_v12 = vld [vmem:[%s14116_s25 + $0x3cc] sm:$0xf]  ;;  %v11270_v32 = vrot.slane %v11246_v46, 9  ;;  %v11255_v1 = vld [vmem:[%s14116_s25 + $0x428] sm:$0xe] }
  0x5d   : > { %2310 = vrot.lane.b32.xlu0 %v13144_v21, %s14004_s7  ;;  %v619_v21 = vrot.slane %v11245_v23, 5  ;;  %v11284_v29 = vcombine.low %v610_v9, %v613_v4  ;;  %v623_v33 = vrot.slane %v11247_v12, 5  ;;  %v626_v39 = vrot.slane %v11248_v16, 5  ;;  %v13165_v14 = vld [vmem:[%s14116_s25 + $0x2cc] sm:$0xff]  }
  0x5e   : > { %v599_v20 = vsel %vm14288_vm4, %v597_v51, %v598_v18  ;;  %1842 = vmatpush1.bf16.msra.mxu0 %v14241_v35  ;;  %v13158_v18 = vld [vmem:[%s14116_s25 + $0x2b0] ss:$0 sps:$4 sm:$0x11]   ;;  %v11271_v35 = vrot.slane %v11249_v40, 9  ;;  %v630_v51 = vrot.slane %v11250_v41, 5  ;;  %v637_v11 = vrot.slane %v11253_v62, 5 }
  0x5f   : > { %v11282_v56 = vcombine.low %v596_v5, %v599_v20  ;;  %1843 = vmatprep.subr.bf16.mxu0 %v14003_v3  ;;  %v11251_v5 = vld [vmem:[%s14116_s25 + $0x3f0] sm:$0x1]  ;;  %v624_v54 = vsel %vm14288_vm4, %v11270_v32, %v623_v33  ;;  %v625_v55 = vrot.slane %v623_v33, 4  ;;  %v14558_v32 = vld [vmem:[%s14116_s25 + $0x328] sm:$0xfe]  }
  0x60   : > { %2314 = vrot.lane.b32.xlu1 %v13147_v43, %s14004_s7  ;;  %v618_v43 = vrot.slane %v616_v17, 4  ;;  %v632_v20 = vrot.slane %v630_v51, 4  ;;  %v639_v50 = vrot.slane %v637_v11, 4  ;;  %v11273_v17 = vrot.slane %v11255_v1, 9  ;;  %v13175_v16 = vld [vmem:[%s14116_s25 + $0x30c] sm:$0xff]  }
  0x61   : > { %3231 = vrot.lane.b32.xlu0 %v13146_v30, %s14004_s7  ;;  %13006 = vmatprep.mubr.msk.bf16.mxu0 %vm761_vm3, %v11282_v56  ;;  %v13163_v56 = vld [vmem:[%s14116_s25 + $0x2c8] sm:$0xfe]   ;;  %v627_v58 = vsel %vm14288_vm4, %v625_v55, %v626_v39  ;;  %v14574_v33 = vld [vmem:[%s14116_s25 + $0x350] ss:$0 sps:$4 sm:$0x11]  }
  0x62   : > { %v620_v30 = vsel %vm14288_vm4, %v618_v43, %v619_v21  ;;  %1844 = vmatpush1.bf16.msra.mxu0 %v14271_v44  ;;  %v11286_v36 = vcombine.low %v624_v54, %v627_v58  ;;  %v631_v44 = vsel %vm14288_vm4, %v11271_v35, %v630_v51  ;;  %v647_v21 = vrot.slane %v11257_v26, 5  ;;  %v13168_v43 = vld [vmem:[%s14116_s25 + $0x2f0] ss:$0 sps:$4 sm:$0x11]   ;;  %v14580_v39 = vld [vmem:[%s14116_s25 + $0x348] sm:$0xfe]  }
  0x63   : > { %13007 = vmatmul.mubr.msk.bf16.gmra.mrb[16].mxu0 %vm761_vm3, %v11283_v6  ;;  %v11285_v48 = vcombine.low %v617_v27, %v620_v30  ;;  %1845 = vmatprep.subr.bf16.mxu0 %v14003_v3  ;;  %v11256_v6 = vld [vmem:[%s14116_s25 + $0x42c] sm:$0xf]  ;;  %v1540_v27 = vrot.slane %v14126_v7, 2  ;;  %v13188_v35 = vld [vmem:[%s14116_s25 + $0x370] ss:$0 sps:$4 sm:$0x11]  }
  0x64   : > { %3233 = vrot.lane.b32.xlu1 %v13150_v34, %s14004_s7  ;;  %13010 = vmatprep.mubr.msk.bf16.mxu0 %vm761_vm3, %v11284_v29  ;;  %v13162_v34 = vld [vmem:[%s14116_s25 + $0x2d0] ss:$0 sps:$4 sm:$0x11]   ;;  %v644_v9 = vrot.slane %v11256_v6, 5  ;;  %v14552_v7 = vld [vmem:[%s14116_s25 + $0x308] sm:$0xfe]  }
  0x65   : > { %2316 = vrot.lane.b32.xlu0 %v13148_v57, %s14004_s7  ;;  %v633_v57 = vrot.slane %v11251_v5, 5  ;;  %v13187_v40 = vld [vmem:[%s14116_s25 + $0x368] sm:$0xfe]   ;;  %v14601_v58 = vld [vmem:[%s14116_s25 + $0x390] ss:$0 sps:$4 sm:$0x11]  }
  0x66   : > { %1846 = vmatpush1.bf16.msra.mxu0 %v14301_v52  ;;  %v638_v52 = vsel %vm14288_vm4, %v11272_v0, %v637_v11  ;;  %v646_v4 = vrot.slane %v644_v9, 4  ;;  %v645_v30 = vsel %vm14288_vm4, %v11273_v17, %v644_v9  ;;  %v13186_v41 = vld [vmem:[%s14116_s25 + $0x34c] sm:$0xff]   ;;  %v14612_v0 = vld [vmem:[%s14116_s25 + $0x324] sm:$0xfc]  }
  0x67   : > { %1847 = vmatprep.subr.bf16.mxu0 %v14003_v3  ;;  %v13193_v51 = vld [vmem:[%s14116_s25 + $0x36c] sm:$0xff]   ;;  %v1546_v11 = vrot.slane %v14612_v0, 2  ;;  %v13184_v17 = vld [vmem:[%s14116_s25 + $0x184] sm:$0xfc]  }
  0x68   : > { %2320 = vrot.lane.b32.xlu1 %v13152_v59, %s14004_s7  ;;  %v634_v59 = vsel %vm14288_vm4, %v632_v20, %v633_v57  ;;  %v648_v46 = vsel %vm14288_vm4, %v646_v4, %v647_v21  ;;  %v14616_v1 = vld [vmem:[%s14116_s25 + $0x32c] ss:$0 sps:$4 sm:$0x33]  }
  0x69   : > { %2318 = vrot.lane.b32.xlu0 %v13153_v63, %s14004_s7  ;;  %v11254_v63 = vld [vmem:[%s14116_s25 + $0x410] sm:$0x1]  ;;  %v11287_v23 = vcombine.low %v631_v44, %v634_v59  ;;  %v14605_v59 = vld [vmem:[%s14116_s25 + $0x388] sm:$0xfe]  }
  0x6a   : > { %v640_v2 = vrot.slane %v11254_v63, 5  ;;  %1848 = vmatpush1.bf16.msra.mxu0 %v14329_v13  ;;  %v1541_v13 = vrot.slane %v14137_v10, 2  ;;  %v11289_v10 = vcombine.low %v645_v30, %v648_v46  ;;  %v13185_v63 = vld [vmem:[%s18053_s2 + $0xc8] sm:$0xff]  }
  0x6b   : > { %13011 = vmatmul.mubr.msk.bf16.gmra.mrb[20].mxu0 %vm761_vm3, %v11285_v48  ;;  %2840 = vmatprep.subr.bf16.mxu0 %v14003_v3  ;;  %v13211_v21 = vld [vmem:[%s14116_s25 + $0x3ac] sm:$0xff]  }
  0x6c   : > { %2322 = vrot.lane.b32.xlu1 %v13157_v47, %s14004_s7  ;;  %13014 = vmatprep.mubr.msk.bf16.mxu0 %vm761_vm3, %v11286_v36  ;;  %v13170_v47 = vld [vmem:[%s14116_s25 + $0x2ec] sm:$0xff]   ;;  %v1542_v12 = vsel %vm1536_vm0, %v1540_v27, %v1541_v13  ;;  %v2579_v27 = vrot.slane %v14601_v58, 1 }
  0x6d   : > { %3235 = vrot.lane.b32.xlu0 %v13155_v22, %s14004_s7  ;;  %v641_v22 = vsel %vm14288_vm4, %v639_v50, %v640_v2  ;;  %v1547_v2 = vrot.slane %v14616_v1, 2  ;;  %v14633_v50 = vld [vmem:[%s14116_s25 + $0x344] sm:$0xfc]   ;;  %v14658_v13 = vld [vmem:[%s14116_s25 + $0x44c] ss:$0 sps:$4 sm:$0x33]  }
  0x6e   : > { %v11288_v29 = vcombine.low %v638_v52, %v641_v22  ;;  %v13201_v52 = vld [vmem:[%s14116_s25 + $0x38c] sm:$0xff]  }
  0x70   : > { %3237 = vrot.lane.b32.xlu1 %v13160_v31, %s14004_s7  ;;  %v14548_v31 = vld [vmem:[%s14116_s25 + $0x310] ss:$0 sps:$4 sm:$0x11]  }
  0x71   : > { %2324 = vrot.lane.b32.xlu0 %v13158_v18, %s14004_s7  ;;  %v14571_v18 = vld [vmem:[%s14116_s25 + $0x330] ss:$0 sps:$4 sm:$0x11]  }
  0x73   : > { %13015 = vmatmul.mubr.msk.bf16.gmra.mrb[24].mxu0 %vm761_vm3, %v11287_v23  ;;  %v13183_v23 = vld [vmem:[%s14116_s25 + $0x18c] ss:$0 sps:$4 sm:$0x33]  }
  0x74   : > { %2328 = vrot.lane.b32.xlu1 %v13162_v34, %s14004_s7  ;;  %13018 = vmatprep.mubr.msk.bf16.mxu0 %vm761_vm3, %v11288_v29  ;;  %v13840_v34 = vld [vmem:[%s14116_s25 + $0x24c] ss:$0 sps:$4 sm:$0x33]   ;;  %v14654_v29 = vld [vmem:[%s14116_s25 + $0x444] sm:$0xfc]  }
  0x75   : > { %2326 = vrot.lane.b32.xlu0 %v13163_v56, %s14004_s7  ;;  %v13179_v56 = vld [vmem:[%s18053_s2 + $0xc0] sm:$0xff]  }
  0x78   : > { %2330 = vrot.lane.b32.xlu1 %v13167_v8, %s14004_s7  ;;  %v14626_v8 = vld [vmem:[%s14116_s25 + $0x3a8] sm:$0xfe]  }
  0x79   : > { %3239 = vrot.lane.b32.xlu0 %v13165_v14, %s14004_s7 }
  0x7b   : > { %13019 = vmatmul.mubr.msk.bf16.gmra.mrb[28].mxu0 %vm761_vm3, %v11289_v10 }
  0x7c   : > { %3241 = vrot.lane.b32.xlu1 %v13170_v47, %s14004_s7  ;;  %11462 = vmatprep.mubr.msk.bf16.mxu0 %vm761_vm3, %v1542_v12  ;;  %v14649_v47 = vld [vmem:[%s14116_s25 + $0x3b0] ss:$0 sps:$4 sm:$0x11]   ;;  %v2578_v12 = vrot.slane %v14605_v59, 1 }
  0x7d   : > { %2332 = vrot.lane.b32.xlu0 %v13168_v43, %s14004_s7  ;;  %v13190_v43 = vld [vmem:[%s18053_s2 + $0xd0] sm:$0xff]  }
  0x80   : > { %2336 = vrot.lane.b32.xlu1 %v14548_v31, %s14004_s7 }
  0x81   : > { %2334 = vrot.lane.b32.xlu0 %v14552_v7, %s14004_s7 }
  0x84   : > { %2338 = vrot.lane.b32.xlu1 %v14558_v32, %s14004_s7 }
  0x85   : > { %3243 = vrot.lane.b32.xlu0 %v13175_v16, %s14004_s7  ;;  %v14668_v16 = vld [vmem:[%s14116_s25 + $0x3d0] ss:$0 sps:$4 sm:$0x11]  }
  0x88   : > { %3245 = vrot.lane.b32.xlu1 %v13180_v49, %s14004_s7 }
  0x89   : > { %2340 = vrot.lane.b32.xlu0 %v14571_v18, %s14004_s7 }
  0x8c   : > { %2344 = vrot.lane.b32.xlu1 %v14574_v33, %s14004_s7 }
  0x8d   : > { %2342 = vrot.lane.b32.xlu0 %v14580_v39, %s14004_s7 }
  0x8e   : > { %v1325_v48 = vpop.permute.xlu1 %1324 }
  0x8f   : > { %v1321_v5 = vpop.permute.xlu0 %1320  ;;  %v1452_v6 = vsel %vm761_vm3, %v14205_v25, %v1325_v48  ;;  %v1552_v25 = vrot.slane %v14633_v50, 2  ;;  %v2585_v48 = vrot.slane %v14649_v47, 1 }
  0x90   : > { %2346 = vrot.lane.b32.xlu1 %v13187_v40, %s14004_s7  ;;  %v1446_v54 = vsel %vm761_vm3, %v14174_v19, %v1321_v5 }
  0x91   : > { %3247 = vrot.lane.b32.xlu0 %v13186_v41, %s14004_s7  ;;  %v1573_v36 = vrot.slane %v1446_v54, 2  ;;  %v1600_v54 = vrot.slane %v14654_v29, 2 }
  0x92   : > { %v1327_v55 = vpop.permute.xlu1 %1326 }
  0x93   : > { %v1323_v57 = vpop.permute.xlu0 %1322  ;;  %v1455_v26 = vsel %vm761_vm3, %v14199_v24, %v1327_v55  ;;  %v14637_v24 = vld [vmem:[%s14116_s25 + $0x34c] ss:$0 sps:$4 sm:$0x33]  }
  0x94   : > { %v1449_v20 = vsel %vm761_vm3, %v13840_v34, %v1323_v57  ;;  %3249 = vrot.lane.b32.xlu1 %v13193_v51, %s14004_s7  ;;  %v1553_v9 = vrot.slane %v14637_v24, 2  ;;  %v1580_v22 = vrot.slane %v1455_v26, 2  ;;  %v13195_v51 = vld [vmem:[%s18053_s2 + $0xd8] sm:$0xff]   ;;  %v13194_v26 = vld [vmem:[%s18053_s2 + $0x68] sm:$0xff]  }
  0x95   : > { %v1574_v44 = vrot.slane %v1449_v20, 2  ;;  %2348 = vrot.lane.b32.xlu0 %v13188_v35, %s14004_s7  ;;  %v13191_v20 = vld [vmem:[%s14116_s25 + $0x1ac] ss:$0 sps:$4 sm:$0x33]  }
  0x96   : > { %v1331_v19 = vpop.permute.xlu1 %1330 }
  0x97   : > { %v1329_v60 = vpop.permute.xlu0 %1328  ;;  %v1575_v62 = vsel %vm1536_vm0, %v1573_v36, %v1574_v44  ;;  %v1461_v30 = vsel %vm761_vm3, %v14251_v38, %v1331_v19  ;;  %v13189_v38 = vld [vmem:[%s18053_s2 + $0x60] sm:$0xff]  }
  0x98   : > { %1906 = vmatmul.mubr.bf16.vlgmr.msra.gmra.mrb[0].mxu1 %v1575_v62  ;;  %2352 = vrot.lane.b32.xlu1 %v14601_v58, %s14004_s7  ;;  %v1458_v46 = vsel %vm761_vm3, %v14262_v42, %v1329_v60  ;;  %v2584_v42 = vrot.slane %v14626_v8, 1  ;;  %v1586_v55 = vrot.slane %v1461_v30, 2  ;;  %v13192_v19 = vld [vmem:[%s14116_s25 + $0x1a4] sm:$0xfc]   ;;  %v1548_v60 = vsel %vm1536_vm0, %v1546_v11, %v1547_v2 }
  0x99   : > { %3531 = vmatpush1.bf16.msra.mxu1 %v13179_v56  ;;  %11469 = vmatprep.mubr.msk.bf16.mxu1 %vm761_vm3, %v14248_v37  ;;  %v1579_v37 = vrot.slane %v1452_v6, 2  ;;  %v1585_v57 = vrot.slane %v1458_v46, 2  ;;  %v1601_v56 = vrot.slane %v14658_v13, 2  ;;  %v14697_v62 = vld [vmem:[%s14116_s25 + $0x3c8] sm:$0xfe]   ;;  %v13203_v11 = vld [vmem:[%s18053_s2 + $0xe0] sm:$0xff]   ;;  %v14791_v13 = vsel %vm2550_vm5, %v2578_v12, %v2579_v27 }
  0x9a   : > { %v1335_v14 = vpop.permute.xlu1 %1334  ;;  %3532 = vmatprep.subr.bf16.mxu1 %v14003_v3  ;;  %2350 = vrot.lane.b32.xlu0 %v14605_v59, %s14004_s7  ;;  %v2591_v2 = vrot.slane %v14668_v16, 1  ;;  %v13221_v59 = vld [vmem:[%s18053_s2 + $0xf0] sm:$0xff]  }
  0x9b   : > { %v1333_v4 = vpop.permute.xlu0 %1332  ;;  %v1581_v41 = vsel %vm1536_vm0, %v1579_v37, %v1580_v22  ;;  %v14689_v36 = vsel %vm761_vm3, %v14304_v53, %v1335_v14  ;;  %v13222_v37 = vld [vmem:[%s14116_s25 + $0x3cc] sm:$0xff]  }
  0x9c   : > { %2354 = vrot.lane.b32.xlu1 %v14626_v8, %s14004_s7  ;;  %v1592_v14 = vrot.slane %v14689_v36, 2 }
  0x9d   : > { %3533 = vmatpush1.bf16.msra.mxu1 %v13185_v63  ;;  %v13845_v63 = vld [vmem:[%s14116_s25 + $0x2a4] sm:$0xfc]  }
  0x9e   : > { %v1299_v10 = vpop.permute.xlu1 %1298  ;;  %3534 = vmatprep.subr.bf16.mxu1 %v14003_v3  ;;  %3251 = vrot.lane.b32.xlu0 %v13201_v52, %s14004_s7  ;;  %v14715_v52 = vld [vmem:[%s14116_s25 + $0x3f0] ss:$0 sps:$4 sm:$0x11]  }
  0x9f   : > { %v1413_v49 = vsel %vm761_vm3, %v13183_v23, %v1299_v10  ;;  %v1297_v40 = vpop.permute.xlu0 %1296  ;;  %v14706_v23 = vld [vmem:[%s14116_s25 + $0x3e8] sm:$0xfe]   ;;  %v13198_v10 = vld [vmem:[%s18053_s2 + $0x70] sm:$0xff]  }
  0xa0   : > { %v1538_v5 = vrot.slane %v1413_v49, 2  ;;  %v1410_v35 = vsel %vm761_vm3, %v13184_v17, %v1297_v40  ;;  %1914 = vmatmul.mubr.bf16.gmra.mrb[4].mxu1 %v1581_v41  ;;  %3253 = vrot.lane.b32.xlu1 %v13211_v21, %s14004_s7  ;;  %v1587_v17 = vsel %vm1536_vm0, %v1585_v57, %v1586_v55  ;;  %v2590_v21 = vrot.slane %v14697_v62, 1  ;;  %v13234_v40 = vld [vmem:[%s14116_s25 + $0x410] ss:$0 sps:$4 sm:$0x11]  }
  0xa1   : > { %v1537_v34 = vrot.slane %v1410_v35, 2  ;;  %3535 = vmatpush1.bf16.msra.mxu1 %v13190_v43  ;;  %11470 = vmatprep.mubr.msk.bf16.mxu1 %vm761_vm3, %v14274_v45  ;;  %v1464_v45 = vsel %vm761_vm3, %v13845_v63, %v1333_v4  ;;  %v13232_v43 = vld [vmem:[%s14116_s25 + $0x3ec] sm:$0xff]   ;;  %v2596_v49 = vrot.slane %v14706_v23, 1  ;;  %v2597_v35 = vrot.slane %v14715_v52, 1  ;;  %v14744_v57 = vld [vmem:[%s14116_s25 + $0x464] sm:$0xfc]  }
  0xa2   : > { %v1339_v44 = vpop.permute.xlu1 %1338  ;;  %3536 = vmatprep.subr.bf16.mxu1 %v14003_v3  ;;  %2356 = vrot.lane.b32.xlu0 %v14649_v47, %s14004_s7  ;;  %v1591_v22 = vrot.slane %v1464_v45, 2  ;;  %v13199_v55 = vld [vmem:[%s14116_s25 + $0x1cc] ss:$0 sps:$4 sm:$0x33]   ;;  %v14811_v47 = vsel %vm2550_vm5, %v2590_v21, %v2591_v2 }
  0xa3   : > { %v1337_v6 = vpop.permute.xlu0 %1336  ;;  %v1539_v53 = vsel %vm1536_vm0, %v1537_v34, %v1538_v5  ;;  %v13213_v5 = vld [vmem:[%s18053_s2 + $0xe8] sm:$0xff]   ;;  %v2603_v34 = vrot.slane %v13234_v40, 1  ;;  %v14814_v8 = vsel %vm2550_vm5, %v2596_v49, %v2597_v35 }
  0xa4   : > { %1858 = vmatmul.mubr.bf16.vlgmr.msra.gmra.mrb[32].mxu0 %v1539_v53  ;;  %2360 = vrot.lane.b32.xlu1 %v14668_v16, %s14004_s7  ;;  %v14763_v63 = vld [vmem:[%s14116_s25 + $0x46c] ss:$0 sps:$4 sm:$0x33]  }
  0xa5   : > { %2841 = vmatpush1.bf16.msra.mxu0 %v13189_v38  ;;  %11463 = vmatprep.mubr.msk.bf16.mxu0 %vm761_vm3, %v1548_v60  ;;  %v1554_v60 = vsel %vm1536_vm0, %v1552_v25, %v1553_v9  ;;  %v13846_v53 = vld [vmem:[%s14116_s25 + $0x2cc] ss:$0 sps:$4 sm:$0x33]   ;;  %v1593_v25 = vsel %vm1536_vm0, %v1591_v22, %v1592_v14  ;;  %v1602_v9 = vsel %vm1536_vm0, %v1600_v54, %v1601_v56  ;;  %v14783_v14 = vld [vmem:[%s14116_s25 + $0x364] sm:$0xfc]   ;;  %v1607_v16 = vrot.slane %v14763_v63, 2 }
  0xa6   : > { %v1303_v4 = vpop.permute.xlu1 %1302  ;;  %2842 = vmatprep.subr.bf16.mxu0 %v14003_v3  ;;  %3537 = vmatpush1.bf16.msra.mxu1 %v13195_v51  ;;  %v1558_v29 = vrot.slane %v14783_v14, 2  ;;  %v14798_v54 = vsel %vm2550_vm5, %v2584_v42, %v2585_v48  ;;  %v13206_v48 = vld [vmem:[%s18053_s2 + $0x80] sm:$0xff]   ;;  %v13231_v22 = vld [vmem:[%s18053_s2 + $0xf8] sm:$0xff]   ;;  %v13246_v35 = vld [vmem:[%s14116_s25 + $0x428] sm:$0xfe]  }
  0xa7   : > { %v1419_v30 = vsel %vm761_vm3, %v13191_v20, %v1303_v4  ;;  %v1301_v46 = vpop.permute.xlu0 %1300  ;;  %3538 = vmatprep.subr.bf16.mxu1 %v14003_v3  ;;  %2358 = vrot.lane.b32.xlu0 %v14697_v62, %s14004_s7  ;;  %v14747_v20 = vld [vmem:[%s14116_s25 + $0x408] sm:$0xfe]  }
  0xa8   : > { %v1544_v41 = vrot.slane %v1419_v30, 2  ;;  %v1416_v38 = vsel %vm761_vm3, %v13192_v19, %v1301_v46  ;;  %1922 = vmatmul.mubr.bf16.gmra.mrb[8].mxu1 %v1587_v17  ;;  %2362 = vrot.lane.b32.xlu1 %v14706_v23, %s14004_s7  ;;  %v13200_v19 = vld [vmem:[%s14116_s25 + $0x1c4] sm:$0xfc]   ;;  %v2602_v45 = vrot.slane %v14747_v20, 1  ;;  %v1606_v17 = vrot.slane %v14744_v57, 2 }
  0xa9   : > { %v1543_v51 = vrot.slane %v1416_v38, 2  ;;  %2843 = vmatpush1.bf16.msra.mxu0 %v13194_v26  ;;  %11471 = vmatprep.mubr.msk.bf16.mxu1 %vm761_vm3, %v14314_v61  ;;  %v1473_v26 = vsel %vm761_vm3, %v13846_v53, %v1339_v44  ;;  %v13847_v23 = vld [vmem:[%s14116_s25 + $0x2c4] sm:$0xfc]   ;;  %v13202_v44 = vld [vmem:[%s18053_s2 + $0x78] sm:$0xff]   ;;  %v13242_v38 = vld [vmem:[%s14116_s25 + $0x40c] sm:$0xff]   ;;  %v2608_v53 = vrot.slane %v13246_v35, 1 }
  0xaa   : > { %v14749_v36 = vpop.permute.xlu1 %1342  ;;  %2844 = vmatprep.subr.bf16.mxu0 %v14003_v3  ;;  %3539 = vmatpush1.bf16.msra.mxu1 %v13203_v11  ;;  %v1470_v11 = vsel %vm761_vm3, %v13847_v23, %v1337_v6  ;;  %v14802_v6 = vld [vmem:[%s14116_s25 + $0x36c] ss:$0 sps:$4 sm:$0x33]   ;;  %v14817_v27 = vsel %vm2550_vm5, %v2602_v45, %v2603_v34  ;;  %v1598_v2 = vrot.slane %v1473_v26, 2  ;;  %v13208_v46 = vld [vmem:[%s14116_s25 + $0x1e4] sm:$0xfc]   ;;  %v1608_v63 = vsel %vm1536_vm0, %v1606_v17, %v1607_v16 }
  0xab   : > { %v14758_v62 = vpop.permute.xlu0 %1340  ;;  %v1545_v61 = vsel %vm1536_vm0, %v1543_v51, %v1544_v41  ;;  %3540 = vmatprep.subr.bf16.mxu1 %v14003_v3  ;;  %3255 = vrot.lane.b32.xlu0 %v13222_v37, %s14004_s7  ;;  %v1559_v58 = vrot.slane %v14802_v6, 2  ;;  %v1597_v4 = vrot.slane %v1470_v11, 2  ;;  %v13207_v30 = vld [vmem:[%s14116_s25 + $0x1ec] ss:$0 sps:$4 sm:$0x33]  }
  0xac   : > { %1866 = vmatmul.mubr.bf16.gmra.mrb[36].mxu0 %v1545_v61  ;;  %3257 = vrot.lane.b32.xlu1 %v13232_v43, %s14004_s7  ;;  %v13212_v41 = vld [vmem:[%s18053_s2 + $0x88] sm:$0xff]   ;;  %v13247_v57 = vld [vmem:[%s14116_s25 + $0x430] ss:$0 sps:$4 sm:$0x11]  }
  0xad   : > { %2845 = vmatpush1.bf16.msra.mxu0 %v13198_v10  ;;  %11464 = vmatprep.mubr.msk.bf16.mxu0 %vm761_vm3, %v1554_v60  ;;  %v1560_v10 = vsel %vm1536_vm0, %v1558_v29, %v1559_v58  ;;  %v1599_v51 = vsel %vm1536_vm0, %v1597_v4, %v1598_v2  ;;  %v13850_v34 = vld [vmem:[%s14116_s25 + $0x2ec] ss:$0 sps:$4 sm:$0x33]  }
  0xae   : > { %v1307_v56 = vpop.permute.xlu1 %1306  ;;  %2846 = vmatprep.subr.bf16.mxu0 %v14003_v3  ;;  %3541 = vmatpush1.bf16.msra.mxu1 %v13213_v5  ;;  %v14851_v5 = vld [vmem:[%s14116_s25 + $0x484] sm:$0xfc]   ;;  %v13230_v45 = vld [vmem:[%s14116_s25 + $0x48c] ss:$0 sps:$4 sm:$0x33]  }
  0xaf   : > { %v1425_v12 = vsel %vm761_vm3, %v13199_v55, %v1307_v56  ;;  %v1305_v42 = vpop.permute.xlu0 %1304  ;;  %3542 = vmatprep.subr.bf16.mxu1 %v14003_v3  ;;  %2364 = vrot.lane.b32.xlu0 %v14715_v52, %s14004_s7  ;;  %v13237_v55 = vld [vmem:[%s18053_s2 + $0x100] sm:$0xff]   ;;  %v13252_v23 = vld [vmem:[%s14116_s25 + $0x42c] sm:$0xff]  }
  0xb0   : > { %v1550_v21 = vrot.slane %v1425_v12, 2  ;;  %v1422_v37 = vsel %vm761_vm3, %v13200_v19, %v1305_v42  ;;  %1930 = vmatmul.mubr.bf16.gmra.mrb[12].mxu1 %v1593_v25  ;;  %2368 = vrot.lane.b32.xlu1 %v13234_v40, %s14004_s7  ;;  %v13851_v19 = vld [vmem:[%s14116_s25 + $0x2e4] sm:$0xfc]   ;;  %v13216_v56 = vld [vmem:[%s18053_s2 + $0x90] sm:$0xff]   ;;  %v1612_v42 = vrot.slane %v14851_v5, 2 }
  0xb1   : > { %v1549_v43 = vrot.slane %v1422_v37, 2  ;;  %2847 = vmatpush1.bf16.msra.mxu0 %v13202_v44  ;;  %11472 = vmatprep.mubr.msk.bf16.mxu1 %vm761_vm3, %v1602_v9  ;;  %v1476_v60 = vsel %vm761_vm3, %v13851_v19, %v14758_v62  ;;  %v13217_v58 = vld [vmem:[%s14116_s25 + $0x20c] ss:$0 sps:$4 sm:$0x33]   ;;  %v13240_v37 = vld [vmem:[%s14116_s25 + $0x4a4] sm:$0xfc]  }
  0xb2   : > { %v14835_v52 = vpop.permute.xlu1 %1346  ;;  %2848 = vmatprep.subr.bf16.mxu0 %v14003_v3  ;;  %3543 = vmatpush1.bf16.msra.mxu1 %v13221_v59  ;;  %v1603_v44 = vrot.slane %v1476_v60, 2  ;;  %v13245_v17 = vld [vmem:[%s18053_s2 + $0x108] sm:$0xff]   ;;  %v13253_v5 = vld [vmem:[%s18053_s2 + $0x110] sm:$0xff]  }
  0xb3   : > { %v14840_v49 = vpop.permute.xlu0 %1344  ;;  %v1551_v40 = vsel %vm1536_vm0, %v1549_v43, %v1550_v21  ;;  %3544 = vmatprep.subr.bf16.mxu1 %v14003_v3  ;;  %2366 = vrot.lane.b32.xlu0 %v14747_v20, %s14004_s7  ;;  %v1479_v20 = vsel %vm761_vm3, %v13850_v34, %v14749_v36  ;;  %v2609_v36 = vrot.slane %v13247_v57, 1  ;;  %v13218_v21 = vld [vmem:[%s14116_s25 + $0x204] sm:$0xfc]   ;;  %v13852_v4 = vld [vmem:[%s14116_s25 + $0x30c] ss:$0 sps:$4 sm:$0x33]  }
  0xb4   : > { %1874 = vmatmul.mubr.bf16.gmra.mrb[40].mxu0 %v1551_v40  ;;  %2370 = vrot.lane.b32.xlu1 %v13246_v35, %s14004_s7  ;;  %v1604_v11 = vrot.slane %v1479_v20, 2  ;;  %v1485_v43 = vsel %vm761_vm3, %v13852_v4, %v14835_v52  ;;  %v13853_v40 = vld [vmem:[%s14116_s25 + $0x304] sm:$0xfc]   ;;  %v13227_v60 = vld [vmem:[%s14116_s25 + $0x22c] ss:$0 sps:$4 sm:$0x33]  }
  0xb5   : > { %2849 = vmatpush1.bf16.msra.mxu0 %v13206_v48  ;;  %11465 = vmatprep.mubr.msk.bf16.mxu0 %vm761_vm3, %v1560_v10  ;;  %v14881_v59 = vsel %vm2550_vm5, %v2608_v53, %v2609_v36  ;;  %v1613_v48 = vrot.slane %v13230_v45, 2  ;;  %v13254_v10 = vld [vmem:[%s14116_s25 + $0x248] ss:$0 sps:$4 sm:$0x77]   ;;  %v13226_v34 = vld [vmem:[%s18053_s2 + $0xa0] sm:$0xff]  }
  0xb6   : > { %v1311_v61 = vpop.permute.xlu1 %1310  ;;  %2850 = vmatprep.subr.bf16.mxu0 %v14003_v3  ;;  %3545 = vmatpush1.bf16.msra.mxu1 %v13231_v22  ;;  %v13241_v22 = vld [vmem:[%s14116_s25 + $0x4ac] ss:$0 sps:$4 sm:$0x33]   ;;  %v13238_v4 = vld [vmem:[%s14116_s25 + $0x190] ss:$0 sps:$4 sm:$0x11]  }
  0xb7   : > { %v1431_v26 = vsel %vm761_vm3, %v13207_v30, %v1311_v61  ;;  %v1309_v25 = vpop.permute.xlu0 %1308  ;;  %3546 = vmatprep.subr.bf16.mxu1 %v14003_v3  ;;  %3259 = vrot.lane.b32.xlu0 %v13242_v38, %s14004_s7  ;;  %v1605_v30 = vsel %vm1536_vm0, %v1603_v44, %v1604_v11  ;;  %v1614_v52 = vsel %vm1536_vm0, %v1612_v42, %v1613_v48  ;;  %v1619_v45 = vrot.slane %v13241_v22, 2  ;;  %v13233_v36 = vld [vmem:[%s18053_s2 + $0xa8] sm:$0xff]  }
  0xb8   : > { %v1556_v9 = vrot.slane %v1431_v26, 2  ;;  %v1428_v62 = vsel %vm761_vm3, %v13208_v46, %v1309_v25  ;;  %1938 = vmatmul.mubr.bf16.gmra.mrb[16].mxu1 %v1599_v51  ;;  %3261 = vrot.lane.b32.xlu1 %v13252_v23, %s14004_s7  ;;  %v13223_v46 = vld [vmem:[%s18053_s2 + $0x98] sm:$0xff]   ;;  %v13228_v25 = vld [vmem:[%s14116_s25 + $0x224] sm:$0xfc]   ;;  %v2554_v23 = vrot.slane %v14552_v7, 1  ;;  %v2555_v11 = vrot.slane %v14548_v31, 1 }
  0xb9   : > { %v1555_v29 = vrot.slane %v1428_v62, 2  ;;  %2851 = vmatpush1.bf16.msra.mxu0 %v13212_v41  ;;  %11473 = vmatprep.mubr.msk.bf16.mxu1 %vm761_vm3, %v1608_v63  ;;  %v1482_v41 = vsel %vm761_vm3, %v13853_v40, %v14840_v49  ;;  %v1618_v63 = vrot.slane %v13240_v37, 2  ;;  %v13262_v62 = vld [vmem:[%s18053_s2 + $0x118] sm:$0xff]   ;;  %v13251_v44 = vld [vmem:[%s14116_s25 + $0x4cc] ss:$0 sps:$4 sm:$0x33]  }
  0xba   : > { %v1351_v12 = vpop.permute.xlu1 %1350  ;;  %2852 = vmatprep.subr.bf16.mxu0 %v14003_v3  ;;  %3547 = vmatpush1.bf16.msra.mxu1 %v13237_v55  ;;  %v1610_v55 = vrot.slane %v1485_v43, 2  ;;  %v1609_v20 = vrot.slane %v1482_v41, 2  ;;  %v13261_v42 = vld [vmem:[%s14116_s25 + $0x248] sm:$0xfe]  }
  0xbb   : > { %v1349_v16 = vpop.permute.xlu0 %1348  ;;  %v1557_v2 = vsel %vm1536_vm0, %v1555_v29, %v1556_v9  ;;  %3548 = vmatprep.subr.bf16.mxu1 %v14003_v3  ;;  %2372 = vrot.lane.b32.xlu0 %v13247_v57, %s14004_s7  ;;  %v13260_v9 = vld [vmem:[%s14116_s25 + $0x250] ss:$0 sps:$4 sm:$0x11]   ;;  %v1491_v29 = vsel %vm761_vm3, %v14616_v1, %v1351_v12  ;;  %v1620_v31 = vsel %vm1536_vm0, %v1618_v63, %v1619_v45  ;;  %v2567_v45 = vrot.slane %v14574_v33, 1 }
  0xbc   : > { %1882 = vmatmul.mubr.bf16.gmra.mrb[44].mxu0 %v1557_v2  ;;  %4102 = vrot.lane.b32.xlu1 %v13254_v10, %s14004_s7  ;;  %v1488_v48 = vsel %vm761_vm3, %v14612_v0, %v1349_v16  ;;  %v1616_v0 = vrot.slane %v1491_v29, 2  ;;  %v1625_v10 = vrot.slane %v13251_v44, 2  ;;  %v13249_v29 = vld [vmem:[%s14116_s25 + $0x1b0] ss:$0 sps:$4 sm:$0x11]  }
  0xbd   : > { %2853 = vmatpush1.bf16.msra.mxu0 %v13216_v56  ;;  %11466 = vmatprep.mubr.msk.bf16.mxu0 %vm761_vm3, %v14332_v15  ;;  %v13255_v15 = vld [vmem:[%s14116_s25 + $0x240] sm:$0xf8]   ;;  %v1611_v56 = vsel %vm1536_vm0, %v1609_v20, %v1610_v55  ;;  %v1615_v37 = vrot.slane %v1488_v48, 2  ;;  %v13248_v20 = vld [vmem:[%s14116_s25 + $0x1a8] sm:$0xfe]  }
  0xbe   : > { %v1315_v38 = vpop.permute.xlu1 %1314  ;;  %2854 = vmatprep.subr.bf16.mxu0 %v14003_v3  ;;  %3549 = vmatpush1.bf16.msra.mxu1 %v13245_v17  ;;  %v13263_v17 = vld [vmem:[%s14116_s25 + $0x268] ss:$0 sps:$4 sm:$0x77]  }
  0xbf   : > { %v1437_v35 = vsel %vm761_vm3, %v13217_v58, %v1315_v38  ;;  %v1313_v51 = vpop.permute.xlu0 %1312  ;;  %3550 = vmatprep.subr.bf16.mxu1 %v14003_v3  ;;  %4100 = vrot.lane.b32.xlu0 %v13255_v15, %s14004_s7  ;;  %v13250_v58 = vld [vmem:[%s14116_s25 + $0x4c4] sm:$0xfc]   ;;  %v13259_v15 = vld [vmem:[%s14116_s25 + $0x4ec] ss:$0 sps:$4 sm:$0x33]  }
  0xc0   : > { %v1562_v57 = vrot.slane %v1437_v35, 2  ;;  %v1434_v49 = vsel %vm761_vm3, %v13218_v21, %v1313_v51  ;;  %1946 = vmatmul.mubr.bf16.gmra.mrb[20].mxu1 %v1605_v30  ;;  %5249 = vrot.lane.b32.xlu1 %v13260_v9, %s14004_s7  ;;  %v13264_v21 = vld [vmem:[%s14116_s25 + $0x260] sm:$0xf8]   ;;  %v2556_v30 = vsel %vm2550_vm5, %v2554_v23, %v2555_v11  ;;  %v13239_v38 = vld [vmem:[%s14116_s25 + $0x188] sm:$0xfe]   ;;  %v2561_v35 = vrot.slane %v14571_v18, 1 }
  0xc1   : > { %v1561_v19 = vrot.slane %v1434_v49, 2  ;;  %2855 = vmatpush1.bf16.msra.mxu0 %v13223_v46  ;;  %11474 = vmatprep.mubr.msk.bf16.mxu1 %vm761_vm3, %v1614_v52  ;;  %v1624_v46 = vrot.slane %v13250_v58, 2  ;;  %v13243_v52 = vld [vmem:[%s18053_s2 + $0xb8] sm:$0xff]   ;;  %v13258_v51 = vld [vmem:[%s14116_s25 + $0x4e4] sm:$0xfc]   ;;  %v2566_v49 = vrot.slane %v14580_v39, 1 }
  0xc2   : > { %v1355_v61 = vpop.permute.xlu1 %1354  ;;  %2856 = vmatprep.subr.bf16.mxu0 %v14003_v3  ;;  %3551 = vmatpush1.bf16.msra.mxu1 %v13253_v5  ;;  %v2560_v5 = vrot.slane %v14558_v32, 1  ;;  %v13269_v32 = vld [vmem:[%s14116_s25 + $0x270] ss:$0 sps:$4 sm:$0x11]   ;;  %v1630_v33 = vrot.slane %v13258_v51, 2  ;;  %v13265_v23 = vld [vmem:[%s18053_s2 + $0x120] sm:$0xff]  }
  0xc3   : > { %v14924_v53 = vpop.permute.xlu0 %1352  ;;  %v1563_v26 = vsel %vm1536_vm0, %v1561_v19, %v1562_v57  ;;  %3552 = vmatprep.subr.bf16.mxu1 %v14003_v3  ;;  %5247 = vrot.lane.b32.xlu0 %v13261_v42, %s14004_s7  ;;  %v1497_v55 = vsel %vm761_vm3, %v14637_v24, %v1355_v61  ;;  %v1617_v57 = vsel %vm1536_vm0, %v1615_v37, %v1616_v0  ;;  %v13270_v19 = vld [vmem:[%s14116_s25 + $0x268] sm:$0xfe]  }
  0xc4   : > { %1890 = vmatmul.mubr.bf16.gmra.mrb[48].mxu0 %v1563_v26  ;;  %4106 = vrot.lane.b32.xlu1 %v13263_v17, %s14004_s7  ;;  %v1494_v18 = vsel %vm761_vm3, %v14633_v50, %v14924_v53  ;;  %v1626_v24 = vsel %vm1536_vm0, %v1624_v46, %v1625_v10  ;;  %v13271_v50 = vld [vmem:[%s14116_s25 + $0x288] ss:$0 sps:$4 sm:$0x77]   ;;  %v1622_v53 = vrot.slane %v1497_v55, 2  ;;  %v13277_v17 = vld [vmem:[%s14116_s25 + $0x288] sm:$0xfe]  }
  0xc5   : > { %2857 = vmatpush1.bf16.msra.mxu0 %v13226_v34  ;;  %11467 = vmatprep.mubr.msk.bf16.mxu0 %vm761_vm3, %v14372_v28  ;;  %v13236_v28 = vld [vmem:[%s18053_s2 + $0xb0] sm:$0xff]   ;;  %v1621_v9 = vrot.slane %v1494_v18, 2  ;;  %v13278_v48 = vld [vmem:[%s18053_s2 + $0x128] sm:$0xff]  }
  0xc6   : > { %v1319_v7 = vpop.permute.xlu1 %1318  ;;  %2858 = vmatprep.subr.bf16.mxu0 %v14003_v3  ;;  %3553 = vmatpush1.bf16.msra.mxu1 %v13262_v62  ;;  %v13287_v46 = vld [vmem:[%s18053_s2 + $0x130] sm:$0xff]  }
  0xc7   : > { %v1443_v1 = vsel %vm761_vm3, %v13227_v60, %v1319_v7  ;;  %v1317_v12 = vpop.permute.xlu0 %1316  ;;  %5824 = vmatprep.subr.bf16.mxu1 %v14003_v3  ;;  %4104 = vrot.lane.b32.xlu0 %v13264_v21, %s14004_s7 }
  0xc8   : > { %v1568_v16 = vrot.slane %v1443_v1, 2  ;;  %v1440_v2 = vsel %vm761_vm3, %v13228_v25, %v1317_v12  ;;  %1954 = vmatmul.mubr.bf16.gmra.mrb[24].mxu1 %v1611_v56  ;;  %5253 = vrot.lane.b32.xlu1 %v13269_v32, %s14004_s7  ;;  %v2562_v56 = vsel %vm2550_vm5, %v2560_v5, %v2561_v35  ;;  %v13276_v1 = vld [vmem:[%s14116_s25 + $0x290] ss:$0 sps:$4 sm:$0x11]   ;;  %v1623_v12 = vsel %vm1536_vm0, %v1621_v9, %v1622_v53  ;;  %v13266_v5 = vld [vmem:[%s14116_s25 + $0x1e8] sm:$0xfe]  }
  0xc9   : > { %v1567_v22 = vrot.slane %v1440_v2, 2  ;;  %2859 = vmatpush1.bf16.msra.mxu0 %v13233_v36  ;;  %11475 = vmatprep.mubr.msk.bf16.mxu1 %vm761_vm3, %v1620_v31  ;;  %v13272_v36 = vld [vmem:[%s14116_s25 + $0x280] sm:$0xf8]   ;;  %v13854_v35 = vld [vmem:[%s14116_s25 + $0x368] sm:$0xfe]  }
  0xca   : > { %v1359_v43 = vpop.permute.xlu1 %1358  ;;  %2860 = vmatprep.subr.bf16.mxu0 %v14003_v3  ;;  %v2572_v51 = vrot.slane %v13854_v35, 1  ;;  %v13301_v35 = vld [vmem:[%s14116_s25 + $0x308] ss:$0 sps:$4 sm:$0x77]  }
  0xcb   : > { %v1357_v40 = vpop.permute.xlu0 %1356  ;;  %v1569_v41 = vsel %vm1536_vm0, %v1567_v22, %v1568_v16  ;;  %v14991_v60 = vsel %vm761_vm3, %v14802_v6, %v1359_v43  ;;  %5251 = vrot.lane.b32.xlu0 %v13270_v19, %s14004_s7  ;;  %v13257_v16 = vld [vmem:[%s14116_s25 + $0x1c8] sm:$0xfe]   ;;  %v13280_v22 = vld [vmem:[%s14116_s25 + $0x2a8] ss:$0 sps:$4 sm:$0x77]  }
  0xcc   : > { %1898 = vmatmul.mubr.bf16.gmra.mrb[52].mxu0 %v1569_v41  ;;  %v15002_v6 = vsel %vm761_vm3, %v14783_v14, %v1357_v40  ;;  %v1628_v11 = vrot.slane %v14991_v60, 2  ;;  %v1631_v14 = vrot.slane %v13259_v15, 2  ;;  %4110 = vrot.lane.b32.xlu1 %v13271_v50, %s14004_s7  ;;  %v13281_v43 = vld [vmem:[%s14116_s25 + $0x2a0] sm:$0xf8]   ;;  %v2568_v40 = vsel %vm2550_vm5, %v2566_v49, %v2567_v45  ;;  %v13296_v49 = vld [vmem:[%s18053_s2 + $0x138] sm:$0xff]   ;;  %v13244_v60 = vld [vmem:[%s14116_s25 + $0x18c] sm:$0xff]  }
  0xcd   : > { %2861 = vmatpush1.bf16.msra.mxu0 %v13236_v28  ;;  %11654 = vmatprep.mubr.msk.bf16.mxu0 %vm761_vm3, %v2556_v30  ;;  %v1627_v7 = vrot.slane %v15002_v6, 2  ;;  %v13256_v28 = vld [vmem:[%s14116_s25 + $0x1d0] ss:$0 sps:$4 sm:$0x11]   ;;  %v13286_v19 = vld [vmem:[%s14116_s25 + $0x2a8] sm:$0xfe]  }
  0xce   : > { %v2313_v34 = vpop.permute.xlu1 %2312  ;;  %2862 = vmatprep.subr.bf16.mxu0 %v14003_v3  ;;  %v1632_v2 = vsel %vm1536_vm0, %v1630_v33, %v1631_v14  ;;  %v13855_v15 = vld [vmem:[%s14116_s25 + $0x370] ss:$0 sps:$4 sm:$0x11]   ;;  %v13306_v50 = vld [vmem:[%s18053_s2 + $0x140] sm:$0xff]  }
  0xcf   : > { %v2427_v61 = vsel %vm761_vm3, %v13238_v4, %v2313_v34  ;;  %v2311_v63 = vpop.permute.xlu0 %2310  ;;  %4108 = vrot.lane.b32.xlu0 %v13272_v36, %s14004_s7  ;;  %v2573_v55 = vrot.slane %v13855_v15, 1  ;;  %v1629_v34 = vsel %vm1536_vm0, %v1627_v7, %v1628_v11  ;;  %v13268_v33 = vld [vmem:[%s18053_s2 + $0x180] sm:$0xff]   ;;  %v13284_v15 = vld [vmem:[%s14116_s25 + $0x1cc] sm:$0xff]  }
  0xd0   : > { %v2552_v26 = vrot.slane %v2427_v61, 1  ;;  %v2424_v25 = vsel %vm761_vm3, %v13239_v38, %v2311_v63  ;;  %1962 = vmatmul.mubr.bf16.gmra.mrb[28].mxu1 %v1617_v57  ;;  %5257 = vrot.lane.b32.xlu1 %v13276_v1, %s14004_s7  ;;  %v13285_v57 = vld [vmem:[%s14116_s25 + $0x2b0] ss:$0 sps:$4 sm:$0x11]  }
  0xd1   : > { %v2551_v62 = vrot.slane %v2424_v25, 1  ;;  %2863 = vmatpush1.bf16.msra.mxu0 %v13243_v52  ;;  %11476 = vmatprep.mubr.msk.bf16.mxu1 %vm761_vm3, %v1626_v24  ;;  %v13267_v24 = vld [vmem:[%s14116_s25 + $0x1f0] ss:$0 sps:$4 sm:$0x11]   ;;  %v13289_v25 = vld [vmem:[%s14116_s25 + $0x2c0] sm:$0xf8]   ;;  %v2574_v9 = vsel %vm2550_vm5, %v2572_v51, %v2573_v55 }
  0xd2   : > { %v2315_v44 = vpop.permute.xlu1 %2314  ;;  %4678 = vmatprep.subr.bf16.mxu0 %v14003_v3  ;;  %v13288_v63 = vld [vmem:[%s14116_s25 + $0x2c8] ss:$0 sps:$4 sm:$0x77]   ;;  %v13298_v55 = vld [vmem:[%s18053_s2 + $0x198] sm:$0xff]  }
  0xd3   : > { %v15012_v58 = vpop.permute.xlu0 %3231  ;;  %v2553_v42 = vsel %vm2550_vm5, %v2551_v62, %v2552_v26  ;;  %v2430_v31 = vsel %vm761_vm3, %v13248_v20, %v2315_v44  ;;  %5255 = vrot.lane.b32.xlu0 %v13277_v17, %s14004_s7  ;;  %v13856_v26 = vld [vmem:[%s14116_s25 + $0x30c] sm:$0xff]  }
  0xd4   : > { %2873 = vmatmul.mubr.bf16.vlgmr.msra.gmra.mrb[56].mxu0 %v2553_v42  ;;  %v2557_v21 = vrot.slane %v2430_v31, 1  ;;  %4114 = vrot.lane.b32.xlu1 %v13280_v22, %s14004_s7  ;;  %v13273_v44 = vld [vmem:[%s14116_s25 + $0x210] ss:$0 sps:$4 sm:$0x11]   ;;  %v3295_v14 = vsel %vm761_vm3, %v13244_v60, %v15012_v58  ;;  %v13295_v31 = vld [vmem:[%s14116_s25 + $0x2e0] sm:$0xf8]  }
  0xd5   : > { %11655 = vmatprep.mubr.msk.bf16.mxu0 %vm761_vm3, %v2562_v56  ;;  %4679 = vmatpush1.bf16.msra.mxu0 %v13265_v23  ;;  %v13292_v23 = vld [vmem:[%s14116_s25 + $0x2d0] ss:$0 sps:$4 sm:$0x11]   ;;  %v13293_v56 = vld [vmem:[%s14116_s25 + $0x2c8] sm:$0xfe]  }
  0xd6   : > { %v15027_v0 = vpop.permute.xlu1 %3233  ;;  %4680 = vmatprep.subr.bf16.mxu0 %v14003_v3  ;;  %v13312_v58 = vld [vmem:[%s18053_s2 + $0x148] sm:$0xff]  }
  0xd7   : > { %v2317_v37 = vpop.permute.xlu0 %2316  ;;  %4112 = vrot.lane.b32.xlu0 %v13281_v43, %s14004_s7  ;;  %v13857_v17 = vld [vmem:[%s14116_s25 + $0x32c] sm:$0xff]  }
  0xd8   : > { %v2433_v4 = vsel %vm761_vm3, %v13249_v29, %v2317_v37  ;;  %1970 = vmatmul.mubr.bf16.gmra.mrb[32].mxu1 %v1623_v12  ;;  %5261 = vrot.lane.b32.xlu1 %v13285_v57, %s14004_s7  ;;  %v13274_v29 = vld [vmem:[%s14116_s25 + $0x208] sm:$0xfe]   ;;  %v13290_v43 = vld [vmem:[%s18053_s2 + $0x190] sm:$0xff]   ;;  %v13332_v57 = vld [vmem:[%s18053_s2 + $0x158] sm:$0xff]  }
  0xd9   : > { %v2558_v30 = vrot.slane %v2433_v4, 1  ;;  %11477 = vmatprep.mubr.msk.bf16.mxu1 %vm761_vm3, %v1632_v2  ;;  %4681 = vmatpush1.bf16.msra.mxu0 %v13278_v48  ;;  %v13294_v48 = vld [vmem:[%s14116_s25 + $0x2e8] ss:$0 sps:$4 sm:$0x77]   ;;  %v13275_v12 = vld [vmem:[%s14116_s25 + $0x1ac] sm:$0xff]  }
  0xda   : > { %v2321_v10 = vpop.permute.xlu1 %2320  ;;  %4682 = vmatprep.subr.bf16.mxu0 %v14003_v3  ;;  %v13299_v2 = vld [vmem:[%s14116_s25 + $0x2f0] ss:$0 sps:$4 sm:$0x11]  }
  0xdb   : > { %v2559_v41 = vsel %vm2550_vm5, %v2557_v21, %v2558_v30  ;;  %v2439_v38 = vsel %vm761_vm3, %v13256_v28, %v2321_v10  ;;  %v2319_v52 = vpop.permute.xlu0 %2318  ;;  %5259 = vrot.lane.b32.xlu0 %v13286_v19, %s14004_s7  ;;  %v13300_v30 = vld [vmem:[%s14116_s25 + $0x2e8] sm:$0xfe]   ;;  %v13283_v10 = vld [vmem:[%s14116_s25 + $0x230] ss:$0 sps:$4 sm:$0x11]  }
  0xdc   : > { %2881 = vmatmul.mubr.bf16.gmra.mrb[60].mxu0 %v2559_v41  ;;  %v2436_v39 = vsel %vm761_vm3, %v13257_v16, %v2319_v52  ;;  %v2564_v32 = vrot.slane %v2439_v38, 1  ;;  %4118 = vrot.lane.b32.xlu1 %v13288_v63, %s14004_s7  ;;  %v13279_v16 = vld [vmem:[%s18053_s2 + $0x188] sm:$0xff]   ;;  %v3299_v52 = vsel %vm761_vm3, %v13275_v12, %v15027_v0  ;;  %v13302_v0 = vld [vmem:[%s14116_s25 + $0x300] sm:$0xf8]  }
  0xdd   : > { %v2563_v18 = vrot.slane %v2436_v39, 1  ;;  %11656 = vmatprep.mubr.msk.bf16.mxu0 %vm761_vm3, %v2568_v40  ;;  %4683 = vmatpush1.bf16.msra.mxu0 %v13287_v46  ;;  %v13282_v46 = vld [vmem:[%s14116_s25 + $0x228] sm:$0xfe]   ;;  %v13322_v40 = vld [vmem:[%s18053_s2 + $0x150] sm:$0xff]  }
  0xde   : > { %v2323_v20 = vpop.permute.xlu1 %2322  ;;  %4684 = vmatprep.subr.bf16.mxu0 %v14003_v3  ;;  %v13858_v39 = vld [vmem:[%s14116_s25 + $0x34c] sm:$0xff]  }
  0xdf   : > { %v15063_v61 = vpop.permute.xlu0 %3235  ;;  %v2442_v45 = vsel %vm761_vm3, %v13266_v5, %v2323_v20  ;;  %v2565_v53 = vsel %vm2550_vm5, %v2563_v18, %v2564_v32  ;;  %4116 = vrot.lane.b32.xlu0 %v13289_v25, %s14004_s7  ;;  %v13309_v25 = vld [vmem:[%s14116_s25 + $0x320] sm:$0xf8]  }
  0xe0   : > { %1978 = vmatmul.mubr.bf16.gmra.mrb[36].mxu1 %v1629_v34  ;;  %v2569_v6 = vrot.slane %v2442_v45, 1  ;;  %5265 = vrot.lane.b32.xlu1 %v13292_v23, %s14004_s7  ;;  %v13304_v34 = vld [vmem:[%s14116_s25 + $0x310] ss:$0 sps:$4 sm:$0x11]   ;;  %v3303_v63 = vsel %vm761_vm3, %v13284_v15, %v15063_v61  ;;  %v13307_v45 = vld [vmem:[%s18053_s2 + $0x1a0] sm:$0xff]  }
  0xe1   : > { %11790 = vmatprep.mubr.msk.bf16.mxu1 %vm761_vm3, %v13856_v26  ;;  %4685 = vmatpush1.bf16.msra.mxu0 %v13296_v49  ;;  %v13343_v61 = vld [vmem:[%s18053_s2 + $0x160] sm:$0xff]   ;;  %v13320_v15 = vld [vmem:[%s14116_s25 + $0x368] ss:$0 sps:$4 sm:$0x77]  }
  0xe2   : > { %v15076_v36 = vpop.permute.xlu1 %3237  ;;  %4686 = vmatprep.subr.bf16.mxu0 %v14003_v3 }
  0xe3   : > { %v2325_v62 = vpop.permute.xlu0 %2324  ;;  %5263 = vrot.lane.b32.xlu0 %v13293_v56, %s14004_s7  ;;  %v13310_v56 = vld [vmem:[%s14116_s25 + $0x330] ss:$0 sps:$4 sm:$0x11]  }
  0xe4   : > { %2889 = vmatmul.mubr.bf16.gmra.mrb[64].mxu0 %v2565_v53  ;;  %v2445_v11 = vsel %vm761_vm3, %v13267_v24, %v2325_v62  ;;  %4122 = vrot.lane.b32.xlu1 %v13294_v48, %s14004_s7  ;;  %v13305_v24 = vld [vmem:[%s14116_s25 + $0x308] sm:$0xfe]  }
  0xe5   : > { %v2570_v42 = vrot.slane %v2445_v11, 1  ;;  %11657 = vmatprep.mubr.msk.bf16.mxu0 %vm761_vm3, %v2574_v9  ;;  %4687 = vmatpush1.bf16.msra.mxu0 %v13306_v50  ;;  %v13291_v53 = vld [vmem:[%s14116_s25 + $0x1ec] sm:$0xff]  }
  0xe6   : > { %v2329_v7 = vpop.permute.xlu1 %2328  ;;  %4688 = vmatprep.subr.bf16.mxu0 %v14003_v3  ;;  %v13315_v9 = vld [vmem:[%s18053_s2 + $0x1a8] sm:$0xff]  }
  0xe7   : > { %v2327_v1 = vpop.permute.xlu0 %2326  ;;  %v2571_v28 = vsel %vm2550_vm5, %v2569_v6, %v2570_v42  ;;  %v2451_v21 = vsel %vm761_vm3, %v13273_v44, %v2329_v7  ;;  %4120 = vrot.lane.b32.xlu0 %v13295_v31, %s14004_s7  ;;  %v13859_v62 = vld [vmem:[%s14116_s25 + $0x36c] sm:$0xff]   ;;  %v3307_v31 = vsel %vm761_vm3, %v13291_v53, %v15076_v36 }
  0xe8   : > { %3563 = vmatmul.mubr.bf16.vlgmr.msra.gmra.mrb[40].mxu1 %v3295_v14  ;;  %v2448_v37 = vsel %vm761_vm3, %v13274_v29, %v2327_v1  ;;  %v2576_v41 = vrot.slane %v2451_v21, 1  ;;  %5269 = vrot.lane.b32.xlu1 %v13299_v2, %s14004_s7  ;;  %v13861_v11 = vld [vmem:[%s14116_s25 + $0x248] sm:$0xfe]   ;;  %v13323_v1 = vld [vmem:[%s18053_s2 + $0x1b0] sm:$0xff]  }
  0xe9   : > { %5825 = vmatpush1.bf16.msra.mxu1 %v13268_v33  ;;  %11791 = vmatprep.mubr.msk.bf16.mxu1 %vm761_vm3, %v13857_v17  ;;  %v2575_v38 = vrot.slane %v2448_v37, 1  ;;  %v13860_v33 = vld [vmem:[%s14116_s25 + $0x250] ss:$0 sps:$4 sm:$0x11]   ;;  %v13311_v42 = vld [vmem:[%s14116_s25 + $0x328] sm:$0xfe]  }
  0xea   : > { %5826 = vmatprep.subr.bf16.mxu1 %v14003_v3  ;;  %v2331_v22 = vpop.permute.xlu1 %2330  ;;  %4689 = vmatpush1.bf16.msra.mxu0 %v13312_v58  ;;  %v13297_v58 = vld [vmem:[%s14116_s25 + $0x20c] sm:$0xff]   ;;  %v13313_v17 = vld [vmem:[%s14116_s25 + $0x348] ss:$0 sps:$4 sm:$0x77]   ;;  %v13335_v37 = vld [vmem:[%s18053_s2 + $0x1b8] sm:$0xff]  }
  0xeb   : > { %v15112_v4 = vpop.permute.xlu0 %3239  ;;  %4690 = vmatprep.subr.bf16.mxu0 %v14003_v3  ;;  %5267 = vrot.lane.b32.xlu0 %v13300_v30, %s14004_s7  ;;  %v2454_v49 = vsel %vm761_vm3, %v13282_v46, %v2331_v22  ;;  %v13862_v36 = vld [vmem:[%s14116_s25 + $0x268] sm:$0xfe]   ;;  %v13864_v22 = vld [vmem:[%s14116_s25 + $0x270] ss:$0 sps:$4 sm:$0x11]  }
  0xec   : > { %2897 = vmatmul.mubr.bf16.gmra.mrb[68].mxu0 %v2571_v28  ;;  %4126 = vrot.lane.b32.xlu1 %v13301_v35, %s14004_s7  ;;  %v2581_v19 = vrot.slane %v2454_v49, 1  ;;  %v13863_v21 = vld [vmem:[%s14116_s25 + $0x38c] sm:$0xff]   ;;  %v13346_v35 = vld [vmem:[%s18053_s2 + $0x1c0] sm:$0xff]  }
  0xed   : > { %11658 = vmatprep.mubr.msk.bf16.mxu0 %vm761_vm3, %v14791_v13  ;;  %5827 = vmatpush1.bf16.msra.mxu1 %v13279_v16  ;;  %v2577_v13 = vsel %vm2550_vm5, %v2575_v38, %v2576_v41  ;;  %v13316_v46 = vld [vmem:[%s14116_s25 + $0x350] ss:$0 sps:$4 sm:$0x11]   ;;  %v13317_v41 = vld [vmem:[%s14116_s25 + $0x348] sm:$0xfe]  }
  0xee   : > { %v15130_v5 = vpop.permute.xlu1 %3241  ;;  %5828 = vmatprep.subr.bf16.mxu1 %v14003_v3  ;;  %4691 = vmatpush1.bf16.msra.mxu0 %v13322_v40  ;;  %v13866_v49 = vld [vmem:[%s14116_s25 + $0x290] ss:$0 sps:$4 sm:$0x11]  }
  0xef   : > { %v2333_v51 = vpop.permute.xlu0 %2332  ;;  %4692 = vmatprep.subr.bf16.mxu0 %v14003_v3  ;;  %4124 = vrot.lane.b32.xlu0 %v13302_v0, %s14004_s7  ;;  %v13363_v53 = vld [vmem:[%s18053_s2 + $0x170] sm:$0xff]  }
  0xf0   : > { %3571 = vmatmul.mubr.bf16.gmra.mrb[44].mxu1 %v3299_v52  ;;  %v2457_v32 = vsel %vm761_vm3, %v13283_v10, %v2333_v51  ;;  %5273 = vrot.lane.b32.xlu1 %v13304_v34, %s14004_s7  ;;  %v3311_v52 = vsel %vm761_vm3, %v13297_v58, %v15112_v4  ;;  %v13354_v4 = vld [vmem:[%s18053_s2 + $0x168] sm:$0xff]  }
  0xf1   : > { %11792 = vmatprep.mubr.msk.bf16.mxu1 %vm761_vm3, %v13858_v39  ;;  %5829 = vmatpush1.bf16.msra.mxu1 %v13290_v43  ;;  %v2582_v60 = vrot.slane %v2457_v32, 1  ;;  %v13303_v39 = vld [vmem:[%s14116_s25 + $0x22c] sm:$0xff]  }
  0xf2   : > { %v2337_v18 = vpop.permute.xlu1 %2336  ;;  %5830 = vmatprep.subr.bf16.mxu1 %v14003_v3  ;;  %4693 = vmatpush1.bf16.msra.mxu0 %v13332_v57  ;;  %v13324_v57 = vld [vmem:[%s14116_s25 + $0x370] ss:$0 sps:$4 sm:$0x11]  }
  0xf3   : > { %v2335_v20 = vpop.permute.xlu0 %2334  ;;  %4694 = vmatprep.subr.bf16.mxu0 %v14003_v3  ;;  %5271 = vrot.lane.b32.xlu0 %v13305_v24, %s14004_s7  ;;  %v2583_v6 = vsel %vm2550_vm5, %v2581_v19, %v2582_v60  ;;  %v2463_v23 = vsel %vm761_vm3, %v13860_v33, %v2337_v18  ;;  %v13867_v18 = vld [vmem:[%s14116_s25 + $0x288] sm:$0xfe]  }
  0xf4   : > { %2905 = vmatmul.mubr.bf16.gmra.mrb[72].mxu0 %v2577_v13  ;;  %v2460_v44 = vsel %vm761_vm3, %v13861_v11, %v2335_v20  ;;  %v2588_v48 = vrot.slane %v2463_v23, 1  ;;  %v13865_v13 = vld [vmem:[%s14116_s25 + $0x3ac] sm:$0xff]  }
  0xf5   : > { %11659 = vmatprep.mubr.msk.bf16.mxu0 %vm761_vm3, %v14798_v54  ;;  %5831 = vmatpush1.bf16.msra.mxu1 %v13298_v55  ;;  %v13308_v54 = vld [vmem:[%s14116_s25 + $0x328] ss:$0 sps:$4 sm:$0x77]   ;;  %v2587_v7 = vrot.slane %v2460_v44, 1  ;;  %v13321_v55 = vld [vmem:[%s14116_s25 + $0x360] sm:$0xf8]  }
  0xf6   : > { %v2339_v50 = vpop.permute.xlu1 %2338  ;;  %5832 = vmatprep.subr.bf16.mxu1 %v14003_v3  ;;  %4695 = vmatpush1.bf16.msra.mxu0 %v13343_v61  ;;  %v13325_v19 = vld [vmem:[%s14116_s25 + $0x368] sm:$0xfe]   ;;  %v13319_v61 = vld [vmem:[%s14116_s25 + $0x450] ss:$0 sps:$4 sm:$0x11]  }
  0xf7   : > { %v15165_v26 = vpop.permute.xlu0 %3243  ;;  %4130 = vrot.lane.b32.xlu1 %v13308_v54, %s14004_s7  ;;  %4696 = vmatprep.subr.bf16.mxu0 %v14003_v3  ;;  %v2466_v16 = vsel %vm761_vm3, %v13862_v36, %v2339_v50  ;;  %v2589_v2 = vsel %vm2550_vm5, %v2587_v7, %v2588_v48  ;;  %v13356_v60 = vld [vmem:[%s18053_s2 + $0x1c8] sm:$0xff]   ;;  %v3315_v50 = vsel %vm761_vm3, %v13303_v39, %v15130_v5  ;;  %v13870_v44 = vld [vmem:[%s14116_s25 + $0x2b0] ss:$0 sps:$4 sm:$0x11]   ;;  %v13369_v48 = vld [vmem:[%s18053_s2 + $0x178] sm:$0xff]   ;;  %v2615_v36 = vrot.slane %v13319_v61, 1 }
  0xf8   : > { %3579 = vmatmul.mubr.bf16.gmra.mrb[48].mxu1 %v3303_v63  ;;  %4128 = vrot.lane.b32.xlu0 %v13309_v25, %s14004_s7  ;;  %v2593_v10 = vrot.slane %v2466_v16, 1  ;;  %v13328_v25 = vld [vmem:[%s14116_s25 + $0x388] ss:$0 sps:$4 sm:$0x77]   ;;  %v13868_v33 = vld [vmem:[%s14116_s25 + $0x3cc] sm:$0xff]  }
  0xf9   : > { %11793 = vmatprep.mubr.msk.bf16.mxu1 %vm761_vm3, %v13859_v62  ;;  %5833 = vmatpush1.bf16.msra.mxu1 %v13307_v45  ;;  %v13869_v23 = vld [vmem:[%s14116_s25 + $0x2a8] sm:$0xfe]   ;;  %v15370_v61 = vld [vmem:[%s14116_s25 + $0x3d0] ss:$0 sps:$4 sm:$0x11]  }
  0xfa   : > { %v15184_v29 = vpop.permute.xlu1 %3245  ;;  %5834 = vmatprep.subr.bf16.mxu1 %v14003_v3  ;;  %4697 = vmatpush1.bf16.msra.mxu0 %v13354_v4 }
  0xfb   : > { %v2341_v14 = vpop.permute.xlu0 %2340  ;;  %5277 = vrot.lane.b32.xlu1 %v13310_v56, %s14004_s7  ;;  %4698 = vmatprep.subr.bf16.mxu0 %v14003_v3 }
  0xfc   : > { %2913 = vmatmul.mubr.bf16.gmra.mrb[76].mxu0 %v2583_v6  ;;  %5275 = vrot.lane.b32.xlu0 %v13311_v42, %s14004_s7  ;;  %v2469_v43 = vsel %vm761_vm3, %v13864_v22, %v2341_v14  ;;  %v13329_v6 = vld [vmem:[%s14116_s25 + $0x380] sm:$0xf8]   ;;  %v13330_v42 = vld [vmem:[%s14116_s25 + $0x390] ss:$0 sps:$4 sm:$0x11]  }
  0xfd   : > { %11660 = vmatprep.mubr.msk.bf16.mxu0 %vm761_vm3, %v14811_v47  ;;  %5835 = vmatpush1.bf16.msra.mxu1 %v13315_v9  ;;  %v13314_v47 = vld [vmem:[%s14116_s25 + $0x340] sm:$0xf8]   ;;  %v2594_v38 = vrot.slane %v2469_v43, 1  ;;  %v10669_v9 = vlaneseq  ;;  %v13372_v22 = vld [vmem:[%s18053_s2 + $0x1d0] sm:$0xff]  }
  0xfe   : > { %v2345_v12 = vpop.permute.xlu1 %2344  ;;  %5836 = vmatprep.subr.bf16.mxu1 %v14003_v3  ;;  %4699 = vmatpush1.bf16.msra.mxu0 %v13363_v53 }
  0xff   : > { %v2343_v28 = vpop.permute.xlu0 %2342  ;;  %4134 = vrot.lane.b32.xlu1 %v13313_v17, %s14004_s7  ;;  %v2595_v0 = vsel %vm2550_vm5, %v2593_v10, %v2594_v38  ;;  %v2475_v32 = vsel %vm761_vm3, %v13866_v49, %v2345_v12  ;;  %4700 = vmatprep.subr.bf16.mxu0 %v14003_v3  ;;  %v15296_v7 = vshrl.u32 %v10669_v9, 7  ;;  %v13331_v12 = vld [vmem:[%s14116_s25 + $0x388] sm:$0xfe]   ;;  %v13873_v10 = vld [vmem:[%s14116_s25 + $0x2d0] ss:$0 sps:$4 sm:$0x11]  }
 0x100   : > { %3587 = vmatmul.mubr.bf16.gmra.mrb[52].mxu1 %v3307_v31  ;;  %4132 = vrot.lane.b32.xlu0 %v13314_v47, %s14004_s7  ;;  %v2472_v34 = vsel %vm761_vm3, %v13867_v18, %v2343_v28  ;;  %v2600_v63 = vrot.slane %v2475_v32, 1  ;;  %v13871_v31 = vld [vmem:[%s14116_s25 + $0x24c] sm:$0xff]  }
 0x101   : > { %11794 = vmatprep.mubr.msk.bf16.mxu1 %vm761_vm3, %v13863_v21  ;;  %5837 = vmatpush1.bf16.msra.mxu1 %v13323_v1  ;;  %v2599_v45 = vrot.slane %v2472_v34, 1  ;;  %v3319_v1 = vsel %vm761_vm3, %v13871_v31, %v15165_v26  ;;  %v13326_v47 = vld [vmem:[%s14116_s25 + $0x468] sm:$0xfe]   ;;  %v13336_v26 = vld [vmem:[%s14116_s25 + $0x3a8] ss:$0 sps:$4 sm:$0x77]  }
 0x102   : > { %v15215_v30 = vpop.permute.xlu1 %2346  ;;  %5838 = vmatprep.subr.bf16.mxu1 %v14003_v3  ;;  %4701 = vmatpush1.bf16.msra.mxu0 %v13369_v48  ;;  %v13874_v38 = vld [vmem:[%s14116_s25 + $0x2c8] sm:$0xfe]   ;;  %v2620_v4 = vrot.slane %v13326_v47, 1  ;;  %v15406_v47 = vld [vmem:[%s14116_s25 + $0x4b0] ss:$0 sps:$4 sm:$0x11]  }
 0x103   : > { %v15219_v40 = vpop.permute.xlu0 %3247  ;;  %5281 = vrot.lane.b32.xlu1 %v13316_v46, %s14004_s7  ;;  %v2601_v62 = vsel %vm2550_vm5, %v2599_v45, %v2600_v63  ;;  %v2478_v11 = vsel %vm761_vm3, %v13869_v23, %v15215_v30  ;;  %6970 = vmatprep.subr.bf16.mxu0 %v14003_v3  ;;  %v13872_v30 = vld [vmem:[%s14116_s25 + $0x3ec] sm:$0xff]  }
 0x104   : > { %2921 = vmatmul.mubr.bf16.gmra.mrb[80].mxu0 %v2589_v2  ;;  %5279 = vrot.lane.b32.xlu0 %v13317_v41, %s14004_s7  ;;  %v2605_v58 = vrot.slane %v2478_v11, 1  ;;  %v13327_v2 = vld [vmem:[%s14116_s25 + $0x470] ss:$0 sps:$4 sm:$0x11]   ;;  %v15345_v34 = vld [vmem:[%s14116_s25 + $0x488] sm:$0xfe]  }
 0x105   : > { %11661 = vmatprep.mubr.msk.bf16.mxu0 %vm761_vm3, %v14814_v8  ;;  %5839 = vmatpush1.bf16.msra.mxu1 %v13335_v37  ;;  %v10671_v37 = vsub.s32 0, %v15296_v7  ;;  %v13875_v49 = vld [vmem:[%s14116_s25 + $0x26c] sm:$0xff]   ;;  %v2626_v11 = vrot.slane %v15345_v34, 1 }
 0x106   : > { %v15231_v51 = vpop.permute.xlu1 %3249  ;;  %5840 = vmatprep.subr.bf16.mxu1 %v14003_v3  ;;  %v3323_v32 = vsel %vm761_vm3, %v13875_v49, %v15184_v29  ;;  %v13877_v9 = vld [vmem:[%s14116_s25 + $0x2e8] sm:$0xfe]  }
 0x107   : > { %v2349_v8 = vpop.permute.xlu0 %2348  ;;  %4138 = vrot.lane.b32.xlu1 %v13320_v15, %s14004_s7 }
 0x108   : > { %3595 = vmatmul.mubr.bf16.gmra.mrb[56].mxu1 %v3311_v52  ;;  %4136 = vrot.lane.b32.xlu0 %v13321_v55, %s14004_s7  ;;  %v2481_v56 = vsel %vm761_vm3, %v13870_v44, %v2349_v8  ;;  %v13339_v8 = vld [vmem:[%s14116_s25 + $0x3b0] ss:$0 sps:$4 sm:$0x11]   ;;  %v2621_v55 = vrot.slane %v13327_v2, 1 }
 0x109   : > { %11795 = vmatprep.mubr.msk.bf16.mxu1 %vm761_vm3, %v13865_v13  ;;  %5841 = vmatpush1.bf16.msra.mxu1 %v13346_v35  ;;  %v2606_v28 = vrot.slane %v2481_v56, 1 }
 0x10a   : > { %v15250_v20 = vpop.permute.xlu1 %2352  ;;  %5842 = vmatprep.subr.bf16.mxu1 %v14003_v3 }
 0x10b   : > { %5285 = vrot.lane.b32.xlu1 %v13324_v57, %s14004_s7  ;;  %v2607_v43 = vsel %vm2550_vm5, %v2605_v58, %v2606_v28  ;;  %v2487_v41 = vsel %vm761_vm3, %v13873_v10, %v15250_v20  ;;  %v15348_v20 = vld [vmem:[%s14116_s25 + $0x490] ss:$0 sps:$4 sm:$0x11]   ;;  %v15419_v10 = vld [vmem:[%s14116_s25 + $0x3e0] sm:$0xf8]  }
 0x10c   : > { %2929 = vmatmul.mubr.bf16.gmra.mrb[84].mxu0 %v2595_v0  ;;  %v15255_v24 = vpop.permute.xlu0 %2350  ;;  %5283 = vrot.lane.b32.xlu0 %v13325_v19, %s14004_s7  ;;  %v13340_v0 = vld [vmem:[%s14116_s25 + $0x3a8] sm:$0xfe]   ;;  %v2612_v39 = vrot.slane %v2487_v41, 1  ;;  %v15352_v19 = vld [vmem:[%s14116_s25 + $0x3c8] ss:$0 sps:$4 sm:$0x77]  }
 0x10d   : > { %11662 = vmatprep.mubr.msk.bf16.mxu0 %vm761_vm3, %v14817_v27  ;;  %5843 = vmatpush1.bf16.msra.mxu1 %v13356_v60  ;;  %v13318_v27 = vld [vmem:[%s14116_s25 + $0x448] sm:$0xfe]   ;;  %v2484_v52 = vsel %vm761_vm3, %v13874_v38, %v15255_v24  ;;  %v15358_v60 = vld [vmem:[%s14116_s25 + $0x3c0] sm:$0xf8]   ;;  %v2627_v56 = vrot.slane %v15348_v20, 1 }
 0x10e   : > { %v15269_v54 = vpop.permute.xlu1 %2354  ;;  %5844 = vmatprep.subr.bf16.mxu1 %v14003_v3  ;;  %v2614_v17 = vrot.slane %v13318_v27, 1  ;;  %v2611_v57 = vrot.slane %v2484_v52, 1  ;;  %v13879_v58 = vld [vmem:[%s14116_s25 + $0x28c] sm:$0xff]  }
 0x10f   : > { %4142 = vrot.lane.b32.xlu1 %v13328_v25, %s14004_s7  ;;  %v12992_v13 = vpop.f32.mrb[0].mxu0  ;;  %v10667_v25 = vld [vmem:[%s18054_s3] sm:$0xf]  ;;  %v2490_v27 = vsel %vm761_vm3, %v13877_v9, %v15269_v54  ;;  %v15390_v54 = vld [vmem:[%s14116_s25 + $0x3c8] sm:$0xfe]   ;;  %v3327_v28 = vsel %vm761_vm3, %v13879_v58, %v15219_v40 }
 0x110   : > { %3603 = vmatmul.mubr.bf16.gmra.mrb[60].mxu1 %v3315_v50  ;;  %v15274_v5 = vpop.permute.xlu0 %3251  ;;  %4140 = vrot.lane.b32.xlu0 %v13329_v6, %s14004_s7  ;;  %v2616_v35 = vsel %vm2550_vm5, %v2614_v17, %v2615_v36  ;;  %v844_v24 = vpop.f32.mrb[1].mxu0  ;;  %v2613_v45 = vsel %vm2550_vm5, %v2611_v57, %v2612_v39  ;;  %v13876_v50 = vld [vmem:[%s14116_s25 + $0x40c] sm:$0xff]   ;;  %v15381_v23 = vrot.slane %v10667_v25, %v10671_v37  ;;  %v15413_v40 = vld [vmem:[%s14116_s25 + $0x3e8] ss:$0 sps:$4 sm:$0x77]  }
 0x111   : > { %11796 = vmatprep.mubr.msk.bf16.mxu1 %vm761_vm3, %v13868_v33  ;;  %5845 = vmatpush1.bf16.msra.mxu1 %v13372_v22  ;;  %v12993_v63 = vpop.f32.mrb[2].mxu0  ;;  %v13878_v6 = vld [vmem:[%s14116_s25 + $0x2f0] ss:$0 sps:$4 sm:$0x11]   ;;  %v2622_v33 = vsel %vm2550_vm5, %v2620_v4, %v2621_v55  ;;  %v13882_v55 = vld [vmem:[%s14116_s25 + $0x308] sm:$0xfe]  }
 0x112   : > { %v15288_v14 = vpop.permute.xlu1 %3253  ;;  %5846 = vmatprep.subr.bf16.mxu1 %v14003_v3  ;;  %v847_v44 = vpop.f32.mrb[3].mxu0  ;;  %v10689_v48 = vadd.f32 %v15381_v23, %v844_v24  ;;  %v10701_v31 = vadd.f32 %v12993_v63, %v15381_v23  ;;  %v13880_v52 = vld [vmem:[%s14116_s25 + $0x42c] sm:$0xff]  }
 0x113   : > { %5289 = vrot.lane.b32.xlu1 %v13330_v42, %s14004_s7  ;;  %v10697_v42 = vadd.f32 %v12992_v13, %v15381_v23  ;;  %v10693_v36 = vadd.f32 %v15381_v23, %v847_v44  ;;  %v13881_v4 = vld [vmem:[%s14116_s25 + $0x310] ss:$0 sps:$4 sm:$0x11]   ;;  %v2628_v13 = vsel %vm2550_vm5, %v2626_v11, %v2627_v56  ;;  %v15454_v20 = vld [vmem:[%s14116_s25 + $0x3e8] sm:$0xfe]  }
 0x114   : > { %2937 = vmatmul.mubr.bf16.gmra.mrb[88].mxu0 %v2601_v62  ;;  %v2357_v16 = vpop.permute.xlu0 %2356  ;;  %5287 = vrot.lane.b32.xlu0 %v13331_v12, %s14004_s7  ;;  %v10829_v37 = vmax.f32 %v10701_v31, 0.0  ;;  %v15442_v57 = vld [vmem:[%s14116_s25 + $0x3f0] ss:$0 sps:$4 sm:$0x11]   ;;  %v13350_v11 = vld [vmem:[%s14116_s25 + $0x4c8] sm:$0xfe]  }
 0x115   : > { %11663 = vmatprep.mubr.msk.bf16.mxu0 %vm761_vm3, %v14881_v59  ;;  %v13337_v59 = vld [vmem:[%s14116_s25 + $0x3a0] sm:$0xf8]   ;;  %v2493_v62 = vsel %vm761_vm3, %v13878_v6, %v2357_v16  ;;  %v15403_v16 = vld [vmem:[%s14116_s25 + $0x4a8] sm:$0xfe]  }
 0x116   : > { %v15307_v21 = vpop.permute.xlu1 %2360  ;;  %v2618_v12 = vrot.slane %v2493_v62, 1  ;;  %10957 = vst [vmem:[%s15422_s8 + $0x80] sm:$0xff] %v10829_v37  ;;  %v15467_v62 = vld [vmem:[%s14116_s25 + $0x408] ss:$0 sps:$4 sm:$0x77]  }
 0x117   : > { %4146 = vrot.lane.b32.xlu1 %v13336_v26, %s14004_s7  ;;  %v10825_v26 = vmax.f32 %v10697_v42, 0.0  ;;  %v13351_v44 = vld [vmem:[%s14116_s25 + $0x4d0] ss:$0 sps:$4 sm:$0x11]   ;;  %v15478_v56 = vld [vmem:[%s14116_s25 + $0x400] sm:$0xf8]  }
 0x118   : > { %3611 = vmatmul.mubr.bf16.gmra.mrb[64].mxu1 %v3319_v1  ;;  %4144 = vrot.lane.b32.xlu0 %v13337_v59, %s14004_s7  ;;  %v2617_v1 = vrot.slane %v2490_v27, 1  ;;  %v10817_v59 = vmax.f32 %v10689_v48, 0.0 }
 0x119   : > { %11797 = vmatprep.mubr.msk.bf16.mxu1 %vm761_vm3, %v13872_v30  ;;  %v15322_v46 = vpop.permute.xlu0 %2358  ;;  %10953 = vst [vmem:[%s15422_s8 + $0x58] sm:$0xff] %v10825_v26  ;;  %v13347_v26 = vld [vmem:[%s14116_s25 + $0x46c] sm:$0xff]  }
 0x11a   : > { %v15331_v15 = vpop.permute.xlu1 %2362  ;;  %10945 = vst [vmem:[%s15422_s8 + $0x8] sm:$0xff] %v10817_v59  ;;  %v2619_v38 = vsel %vm2550_vm5, %v2617_v1, %v2618_v12  ;;  %v13885_v1 = vld [vmem:[%s14116_s25 + $0x330] ss:$0 sps:$4 sm:$0x11]  }
 0x11b   : > { %5293 = vrot.lane.b32.xlu1 %v13339_v8, %s14004_s7  ;;  %v2499_v8 = vsel %vm761_vm3, %v13881_v4, %v15307_v21  ;;  %v2632_v21 = vrot.slane %v15403_v16, 1  ;;  %v15493_v16 = vld [vmem:[%s14116_s25 + $0x410] ss:$0 sps:$4 sm:$0x11]   ;;  %v2638_v4 = vrot.slane %v13350_v11, 1 }
 0x11c   : > { %2945 = vmatmul.mubr.bf16.gmra.mrb[92].mxu0 %v2607_v43  ;;  %5291 = vrot.lane.b32.xlu0 %v13340_v0, %s14004_s7  ;;  %v12996_v22 = vpop.f32.mrb[4].mxu0  ;;  %v10821_v43 = vmax.f32 %v10693_v36, 0.0  ;;  %v2496_v0 = vsel %vm761_vm3, %v13882_v55, %v15322_v46  ;;  %v2633_v46 = vrot.slane %v15406_v47, 1  ;;  %v2624_v24 = vrot.slane %v2499_v8, 1  ;;  %v13889_v11 = vld [vmem:[%s14116_s25 + $0x2ec] sm:$0xff]  }
 0x11d   : > { %11664 = vmatprep.mubr.msk.bf16.mxu0 %vm761_vm3, %v2616_v35  ;;  %v15342_v18 = vpop.permute.xlu0 %3255  ;;  %v10713_v30 = vadd.f32 %v12996_v22, %v15381_v23  ;;  %v860_v41 = vpop.f32.mrb[5].mxu0  ;;  %v2623_v63 = vrot.slane %v2496_v0, 1  ;;  %v2639_v8 = vrot.slane %v13351_v44, 1 }
 0x11e   : > { %v15355_v29 = vpop.permute.xlu1 %3257  ;;  %10949 = vst [vmem:[%s15422_s8 + $0x30] sm:$0xff] %v10821_v43  ;;  %v10705_v35 = vadd.f32 %v15381_v23, %v860_v41  ;;  %v12997_v9 = vpop.f32.mrb[6].mxu0  ;;  %v13886_v43 = vld [vmem:[%s14116_s25 + $0x2cc] sm:$0xff]  }
 0x11f   : > { %4150 = vrot.lane.b32.xlu1 %v15352_v19, %s14004_s7  ;;  %v10841_v49 = vmax.f32 %v10713_v30, 0.0  ;;  %v10717_v6 = vadd.f32 %v12997_v9, %v15381_v23  ;;  %v863_v48 = vpop.f32.mrb[7].mxu0  ;;  %v2625_v31 = vsel %vm2550_vm5, %v2623_v63, %v2624_v24  ;;  %v3335_v30 = vsel %vm761_vm3, %v13886_v43, %v15274_v5  ;;  %v13359_v24 = vld [vmem:[%s14116_s25 + $0x4e8] sm:$0xfe]   ;;  %v13384_v43 = vld [vmem:[%s18053_s2 + $0x1d8] sm:$0xff]  }
 0x120   : > { %3619 = vmatmul.mubr.bf16.gmra.mrb[68].mxu1 %v3323_v32  ;;  %4148 = vrot.lane.b32.xlu0 %v15358_v60, %s14004_s7  ;;  %v13338_v32 = vld [vmem:[%s14116_s25 + $0x44c] sm:$0xff]   ;;  %v10833_v25 = vmax.f32 %v10705_v35, 0.0  ;;  %v10709_v58 = vadd.f32 %v15381_v23, %v863_v48 }
 0x121   : > { %11798 = vmatprep.mubr.msk.bf16.mxu1 %vm761_vm3, %v13876_v50  ;;  %v15367_v53 = vpop.permute.xlu0 %2364  ;;  %10969 = vst [vmem:[%s15422_s8 + $0xf8] sm:$0xff] %v10841_v49  ;;  %v10845_v42 = vmax.f32 %v10717_v6, 0.0  ;;  %v13360_v9 = vld [vmem:[%s14116_s25 + $0x4f0] ss:$0 sps:$4 sm:$0x11]   ;;  %5847 = vmatpush1.bf16.msra.mxu1 %v13384_v43 }
 0x122   : > { %v15408_v2 = vpop.permute.xlu1 %2368  ;;  %10961 = vst [vmem:[%s15422_s8 + $0xa8] sm:$0xff] %v10833_v25  ;;  %v2505_v12 = vsel %vm761_vm3, %v13885_v1, %v15367_v53  ;;  %v15499_v53 = vld [vmem:[%s14116_s25 + $0x408] sm:$0xfe]   ;;  %v10837_v59 = vmax.f32 %v10709_v58, 0.0  ;;  %v2640_v25 = vsel %vm2550_vm5, %v2638_v4, %v2639_v8  ;;  %7804 = vmatprep.subr.bf16.mxu1 %v14003_v3 }
 0x123   : > { %5297 = vrot.lane.b32.xlu1 %v15370_v61, %s14004_s7  ;;  %10973 = vst [vmem:[%s15422_s8 + $0x120] sm:$0xff] %v10845_v42  ;;  %v2630_v37 = vrot.slane %v2505_v12, 1  ;;  %v15553_v42 = vld [vmem:[%s14116_s25 + $0x428] sm:$0xfe]   ;;  %v2644_v12 = vrot.slane %v13359_v24, 1 }
 0x124   : > { %2953 = vmatmul.mubr.bf16.gmra.mrb[96].mxu0 %v2613_v45  ;;  %5295 = vrot.lane.b32.xlu0 %v15390_v54, %s14004_s7  ;;  %v13883_v45 = vld [vmem:[%s14116_s25 + $0x2ac] sm:$0xff]   ;;  %10965 = vst [vmem:[%s15422_s8 + $0xd0] sm:$0xff] %v10837_v59 }
 0x125   : > { %11665 = vmatprep.mubr.msk.bf16.mxu0 %vm761_vm3, %v2622_v33  ;;  %v15399_v17 = vpop.permute.xlu0 %2366  ;;  %v3331_v50 = vsel %vm761_vm3, %v13883_v45, %v15231_v51  ;;  %v13884_v33 = vld [vmem:[%s14116_s25 + $0x328] sm:$0xfe]   ;;  %v13891_v4 = vld [vmem:[%s14116_s25 + $0x370] ss:$0 sps:$4 sm:$0x11]  }
 0x126   : > { %v15439_v39 = vpop.permute.xlu1 %2370  ;;  %v2502_v51 = vsel %vm761_vm3, %v13884_v33, %v15331_v15  ;;  %v13000_v22 = vpop.f32.mrb[8].mxu0  ;;  %v13888_v45 = vld [vmem:[%s14116_s25 + $0x348] sm:$0xfe]   ;;  %v15543_v33 = vld [vmem:[%s14116_s25 + $0x430] ss:$0 sps:$4 sm:$0x11]  }
 0x127   : > { %4154 = vrot.lane.b32.xlu1 %v15413_v40, %s14004_s7  ;;  %v2629_v47 = vrot.slane %v2502_v51, 1  ;;  %v876_v35 = vpop.f32.mrb[9].mxu0  ;;  %v13355_v1 = vld [vmem:[%s14116_s25 + $0x48c] sm:$0xff]  }
 0x128   : > { %3627 = vmatmul.mubr.bf16.gmra.mrb[72].mxu1 %v3327_v28  ;;  %4152 = vrot.lane.b32.xlu0 %v15419_v10, %s14004_s7  ;;  %v2634_v28 = vsel %vm2550_vm5, %v2632_v21, %v2633_v46  ;;  %v10721_v55 = vadd.f32 %v15381_v23, %v876_v35  ;;  %v13887_v21 = vld [vmem:[%s14116_s25 + $0x350] ss:$0 sps:$4 sm:$0x11]   ;;  %v13001_v6 = vpop.f32.mrb[10].mxu0 }
 0x129   : > { %11799 = vmatprep.mubr.msk.bf16.mxu1 %vm761_vm3, %v13880_v52  ;;  %v15445_v34 = vpop.permute.xlu0 %3259  ;;  %v10729_v52 = vadd.f32 %v13000_v22, %v15381_v23  ;;  %v2511_v46 = vsel %vm761_vm3, %v13887_v21, %v15408_v2  ;;  %v10733_v2 = vadd.f32 %v13001_v6, %v15381_v23  ;;  %v879_v48 = vpop.f32.mrb[11].mxu0  ;;  %v13382_v22 = vld [vmem:[%s14116_s25 + $0x254] ss:$0 sps:$4 sm:$0x77]   ;;  %v13366_v24 = vld [vmem:[%s14116_s25 + $0x4ac] sm:$0xff]  }
 0x12a   : > { %v15461_v27 = vpop.permute.xlu1 %3261  ;;  %v10849_v49 = vmax.f32 %v10721_v55, 0.0  ;;  %v2636_v51 = vrot.slane %v2511_v46, 1 }
 0x12b   : > { %5301 = vrot.lane.b32.xlu1 %v15442_v57, %s14004_s7  ;;  %v10857_v5 = vmax.f32 %v10729_v52, 0.0  ;;  %v13890_v52 = vld [vmem:[%s14116_s25 + $0x368] sm:$0xfe]  }
 0x12c   : > { %2961 = vmatmul.mubr.bf16.gmra.mrb[100].mxu0 %v2619_v38  ;;  %5299 = vrot.lane.b32.xlu0 %v15454_v20, %s14004_s7  ;;  %v15511_v38 = vld [vmem:[%s14116_s25 + $0x428] ss:$0 sps:$4 sm:$0x77]   ;;  %10977 = vst [vmem:[%s15422_s8 + $0x148] sm:$0xff] %v10849_v49  ;;  %v2514_v35 = vsel %vm761_vm3, %v13890_v52, %v15439_v39 }
 0x12d   : > { %11666 = vmatprep.mubr.msk.bf16.mxu0 %vm761_vm3, %v2628_v13  ;;  %v15485_v15 = vpop.permute.xlu0 %2372  ;;  %v15522_v13 = vld [vmem:[%s14116_s25 + $0x420] sm:$0xf8]   ;;  %10985 = vst [vmem:[%s15422_s8 + $0x198] sm:$0xff] %v10857_v5  ;;  %v13383_v5 = vld [vmem:[%s14116_s25 + $0x24c] sm:$0xf8]  }
 0x12e   : > { %v15489_v36 = vpop.permute.xlu1 %4102  ;;  %v2517_v8 = vsel %vm761_vm3, %v13891_v4, %v15485_v15  ;;  %v2641_v15 = vrot.slane %v2514_v35, 1  ;;  %v13391_v35 = vld [vmem:[%s14116_s25 + $0x26c] sm:$0xf8]  }
 0x12f   : > { %4158 = vrot.lane.b32.xlu1 %v15467_v62, %s14004_s7 }
 0x130   : > { %3635 = vmatmul.mubr.bf16.gmra.mrb[76].mxu1 %v3331_v50  ;;  %4156 = vrot.lane.b32.xlu0 %v15478_v56, %s14004_s7  ;;  %v2508_v50 = vsel %vm761_vm3, %v13888_v45, %v15399_v17  ;;  %v3339_v17 = vsel %vm761_vm3, %v13889_v11, %v15288_v14  ;;  %v10725_v14 = vadd.f32 %v15381_v23, %v879_v48  ;;  %v2642_v45 = vrot.slane %v2517_v8, 1  ;;  %v13392_v8 = vld [vmem:[%s14116_s25 + $0x274] ss:$0 sps:$4 sm:$0x77]  }
 0x131   : > { %11800 = vmatprep.mubr.msk.bf16.mxu1 %vm761_vm3, %v13338_v32  ;;  %v15507_v41 = vpop.permute.xlu0 %4100  ;;  %v2631_v32 = vsel %vm2550_vm5, %v2629_v47, %v2630_v37  ;;  %v2645_v47 = vrot.slane %v13360_v9, 1  ;;  %v4392_v9 = vrot.slane %v15358_v60, 3  ;;  %v4393_v11 = vrot.slane %v15352_v19, 3 }
 0x132   : > { %v15519_v0 = vpop.permute.xlu1 %5249  ;;  %v10853_v59 = vmax.f32 %v10725_v14, 0.0  ;;  %v2643_v19 = vsel %vm2550_vm5, %v2641_v15, %v2642_v45  ;;  %v13375_v14 = vld [vmem:[%s14116_s25 + $0xe8] ss:$0 sps:$4 sm:$0x77]   ;;  %v4398_v45 = vrot.slane %v15419_v10, 3 }
 0x133   : > { %5305 = vrot.lane.b32.xlu1 %v15493_v16, %s14004_s7  ;;  %v2646_v21 = vsel %vm2550_vm5, %v2644_v12, %v2645_v47  ;;  %v4394_v43 = vsel %vm4388_vm6, %v4392_v9, %v4393_v11  ;;  %v13393_v11 = vld [vmem:[%s18053_s2 + $0x1e0] sm:$0xff]  }
 0x134   : > { %2969 = vmatmul.mubr.bf16.gmra.mrb[104].mxu0 %v2625_v31  ;;  %5303 = vrot.lane.b32.xlu0 %v15499_v53, %s14004_s7  ;;  %v2635_v31 = vrot.slane %v2508_v50, 1  ;;  %10981 = vst [vmem:[%s15422_s8 + $0x170] sm:$0xff] %v10853_v59  ;;  %v13364_v50 = vld [vmem:[%s14116_s25 + $0xc8] ss:$0 sps:$4 sm:$0x77]  }
 0x135   : > { %11667 = vmatprep.mubr.msk.bf16.mxu0 %vm761_vm3, %v2634_v28  ;;  %v15530_v63 = vpop.permute.xlu0 %5247  ;;  %v10861_v28 = vmax.f32 %v10733_v2, 0.0  ;;  %v13892_v2 = vld [vmem:[%s14116_s25 + $0x30c] sm:$0xff]  }
 0x136   : > { %v15550_v44 = vpop.permute.xlu1 %4106 }
 0x137   : > { %4162 = vrot.lane.b32.xlu1 %v15511_v38, %s14004_s7  ;;  %10989 = vst [vmem:[%s15422_s8 + $0x1c0] sm:$0xff] %v10861_v28  ;;  %v15638_v15 = vsel %vm761_vm3, %v13375_v14, %v15550_v44 }
 0x138   : > { %3643 = vmatmul.mubr.bf16.gmra.mrb[80].mxu1 %v3335_v30  ;;  %4160 = vrot.lane.b32.xlu0 %v15522_v13, %s14004_s7  ;;  %v2637_v30 = vsel %vm2550_vm5, %v2635_v31, %v2636_v51  ;;  %v3343_v51 = vsel %vm761_vm3, %v13892_v2, %v15342_v18  ;;  %v13380_v2 = vld [vmem:[%s14116_s25 + $0xf0] ss:$0 sps:$4 sm:$0x11]  }
 0x139   : > { %11801 = vmatprep.mubr.msk.bf16.mxu1 %vm761_vm3, %v13347_v26  ;;  %v15557_v58 = vpop.permute.xlu0 %4104  ;;  %v13004_v26 = vpop.f32.mrb[12].mxu0 }
 0x13a   : > { %v10745_v37 = vadd.f32 %v13004_v26, %v15381_v23  ;;  %v15579_v55 = vpop.permute.xlu1 %5253 }
 0x13b   : > { %5309 = vrot.lane.b32.xlu1 %v15543_v33, %s14004_s7 }
 0x13c   : > { %2977 = vmatmul.mubr.bf16.gmra.mrb[108].mxu0 %v2631_v32  ;;  %5307 = vrot.lane.b32.xlu0 %v15553_v42, %s14004_s7  ;;  %v10873_v49 = vmax.f32 %v10745_v37, 0.0  ;;  %v892_v32 = vpop.f32.mrb[13].mxu0  ;;  %v4265_v37 = vsel %vm761_vm3, %v13364_v50, %v15489_v36  ;;  %v4399_v50 = vrot.slane %v15413_v40, 3  ;;  %v4396_v40 = vrot.slane %v15638_v15, 3 }
 0x13d   : > { %11668 = vmatprep.mubr.msk.bf16.mxu0 %vm761_vm3, %v2640_v25  ;;  %v15583_v46 = vpop.permute.xlu0 %5251  ;;  %v10737_v39 = vadd.f32 %v15381_v23, %v892_v32  ;;  %v13365_v25 = vld [vmem:[%s14116_s25 + $0xc0] sm:$0xf8]   ;;  %v13005_v48 = vpop.f32.mrb[14].mxu0 }
 0x13e   : > { %11001 = vst [vmem:[%s15422_s8 + $0x238] sm:$0xff] %v10873_v49  ;;  %v10749_v60 = vadd.f32 %v13005_v48, %v15381_v23  ;;  %v895_v12 = vpop.f32.mrb[15].mxu0  ;;  %v13893_v49 = vld [vmem:[%s14116_s25 + $0x32c] sm:$0xff]  }
 0x13f   : > { %6395 = vrot.lane.b32.xlu1 %v13382_v22, %s14004_s7  ;;  %v10865_v6 = vmax.f32 %v10737_v39, 0.0  ;;  %v10741_v18 = vadd.f32 %v15381_v23, %v895_v12  ;;  %v13008_v59 = vpop.f32.mrb[16].mxu0  ;;  %v4262_v22 = vsel %vm761_vm3, %v13365_v25, %v15507_v41  ;;  %v4390_v41 = vrot.slane %v4265_v37, 3  ;;  %v13381_v12 = vld [vmem:[%s14116_s25 + $0xe8] sm:$0xfe]  }
 0x140   : > { %3651 = vmatmul.mubr.bf16.gmra.mrb[84].mxu1 %v3339_v17  ;;  %6393 = vrot.lane.b32.xlu0 %v13383_v5, %s14004_s7  ;;  %v15599_v17 = vpop.permute.xlu1 %4110  ;;  %v10877_v28 = vmax.f32 %v10749_v60, 0.0  ;;  %v10761_v4 = vadd.f32 %v13008_v59, %v15381_v23  ;;  %v4389_v5 = vrot.slane %v4262_v22, 3  ;;  %v3347_v32 = vsel %vm761_vm3, %v13893_v49, %v15355_v29  ;;  %v13371_v29 = vld [vmem:[%s14116_s25 + $0xc8] sm:$0xfe]   ;;  %v908_v9 = vpop.f32.mrb[17].mxu0  ;;  %v13397_v60 = vld [vmem:[%s14116_s25 + $0x260] sm:$0xff]  }
 0x141   : > { %11802 = vmatprep.mubr.msk.bf16.mxu1 %vm761_vm3, %v13355_v1  ;;  %v15601_v31 = vpop.permute.xlu0 %4108  ;;  %10993 = vst [vmem:[%s15422_s8 + $0x1e8] sm:$0xff] %v10865_v6  ;;  %v13388_v1 = vld [vmem:[%s14116_s25 + $0x240] sm:$0xff]   ;;  %v10869_v47 = vmax.f32 %v10741_v18, 0.0  ;;  %v10753_v44 = vadd.f32 %v15381_v23, %v908_v9  ;;  %v4400_v18 = vsel %vm4388_vm6, %v4398_v45, %v4399_v50 }
 0x142   : > { %11005 = vst [vmem:[%s15422_s8 + $0x260] sm:$0xff] %v10877_v28  ;;  %v10889_v36 = vmax.f32 %v10761_v4, 0.0  ;;  %v4391_v10 = vsel %vm4388_vm6, %v4389_v5, %v4390_v41  ;;  %v13385_v28 = vld [vmem:[%s14116_s25 + $0x108] ss:$0 sps:$4 sm:$0x77]   ;;  %v13894_v41 = vld [vmem:[%s14116_s25 + $0x34c] sm:$0xff]  }
 0x143   : > { %10997 = vst [vmem:[%s15422_s8 + $0x210] sm:$0xff] %v10869_v47  ;;  %6397 = vrot.lane.b32.xlu1 %v13391_v35, %s14004_s7  ;;  %v13386_v59 = vld [vmem:[%s14116_s25 + $0x100] sm:$0xf8]   ;;  %v4405_v5 = vrot.slane %v15467_v62, 3  ;;  %v4277_v45 = vsel %vm761_vm3, %v13385_v28, %v15599_v17 }
 0x144   : > { %2985 = vmatmul.mubr.bf16.gmra.mrb[112].mxu0 %v2637_v30  ;;  %7451 = vrot.lane.b32.xlu0 %v13388_v1, %s14004_s7  ;;  %v15611_v26 = vpop.permute.xlu1 %5257  ;;  %v13376_v30 = vld [vmem:[%s14116_s25 + $0xe0] sm:$0xf8]   ;;  %11017 = vst [vmem:[%s15422_s8 + $0x2d8] sm:$0xff] %v10889_v36  ;;  %v15677_v36 = vsel %vm761_vm3, %v13371_v29, %v15530_v63  ;;  %v13401_v63 = vld [vmem:[%s14116_s25 + $0x28c] sm:$0xf8]  }
 0x145   : > { %11669 = vmatprep.mubr.msk.bf16.mxu0 %vm761_vm3, %v2646_v21  ;;  %v15620_v52 = vpop.permute.xlu0 %5255  ;;  %v13377_v21 = vld [vmem:[%s14116_s25 + $0x4cc] sm:$0xff]   ;;  %v4268_v6 = vsel %vm761_vm3, %v13376_v30, %v15557_v58  ;;  %v4404_v30 = vrot.slane %v15478_v56, 3  ;;  %v13400_v56 = vld [vmem:[%s14116_s25 + $0x294] ss:$0 sps:$4 sm:$0x77]   ;;  %v5535_v15 = vrot.slane %v15677_v36, 1 }
 0x146   : > { %v4395_v47 = vrot.slane %v4268_v6, 3  ;;  %v4274_v6 = vsel %vm761_vm3, %v13386_v59, %v15601_v31  ;;  %v13404_v17 = vld [vmem:[%s14116_s25 + $0x280] sm:$0xff]   ;;  %v13405_v31 = vld [vmem:[%s18053_s2 + $0x1e8] sm:$0xff]   ;;  %v13389_v59 = vld [vmem:[%s14116_s25 + $0x110] ss:$0 sps:$4 sm:$0x11]  }
 0x147   : > { %7453 = vrot.lane.b32.xlu1 %v13397_v60, %s14004_s7  ;;  %v4402_v60 = vrot.slane %v4277_v45, 3 }
 0x148   : > { %3659 = vmatmul.mubr.bf16.gmra.mrb[88].mxu1 %v3343_v51  ;;  %6399 = vrot.lane.b32.xlu0 %v13392_v8, %s14004_s7  ;;  %v15633_v39 = vpop.permute.xlu1 %4114  ;;  %v13009_v51 = vpop.f32.mrb[18].mxu0  ;;  %v4397_v9 = vsel %vm4388_vm6, %v4395_v47, %v4396_v40 }
 0x149   : > { %11803 = vmatprep.mubr.msk.bf16.mxu1 %vm761_vm3, %v13366_v24  ;;  %v13370_v24 = vld [vmem:[%s14116_s25 + $0xd0] ss:$0 sps:$4 sm:$0x11]   ;;  %v15643_v25 = vpop.permute.xlu0 %4112  ;;  %v10765_v48 = vadd.f32 %v13009_v51, %v15381_v23  ;;  %v911_v58 = vpop.f32.mrb[19].mxu0  ;;  %v5539_v51 = vrot.slane %v15370_v61, 1  ;;  %v4401_v61 = vrot.slane %v4274_v6, 3 }
 0x14a   : > { %v10757_v14 = vadd.f32 %v15381_v23, %v911_v58  ;;  %v15668_v22 = vsel %vm761_vm3, %v13370_v24, %v15519_v0  ;;  %v13012_v8 = vpop.f32.mrb[20].mxu0  ;;  %v3351_v0 = vsel %vm761_vm3, %v13894_v41, %v15445_v34  ;;  %v13394_v58 = vld [vmem:[%s14116_s25 + $0x128] ss:$0 sps:$4 sm:$0x77]   ;;  %v13411_v6 = vld [vmem:[%s14116_s25 + $0x2ac] sm:$0xf8]  }
 0x14b   : > { %v10893_v37 = vmax.f32 %v10765_v48, 0.0  ;;  %v10777_v49 = vadd.f32 %v13012_v8, %v15381_v23  ;;  %6403 = vrot.lane.b32.xlu1 %v13400_v56, %s14004_s7  ;;  %v924_v24 = vpop.f32.mrb[21].mxu0  ;;  %v13895_v8 = vld [vmem:[%s14116_s25 + $0x36c] sm:$0xff]   ;;  %v13409_v56 = vld [vmem:[%s14116_s25 + $0x448] ss:$0 sps:$4 sm:$0x77]  }
 0x14c   : > { %2993 = vmatmul.mubr.bf16.gmra.mrb[116].mxu0 %v2643_v19  ;;  %v15658_v1 = vpop.permute.xlu1 %5261  ;;  %v10881_v19 = vmax.f32 %v10753_v44, 0.0  ;;  %v10885_v35 = vmax.f32 %v10757_v14, 0.0  ;;  %6401 = vrot.lane.b32.xlu0 %v13401_v63, %s14004_s7  ;;  %v10769_v50 = vadd.f32 %v15381_v23, %v924_v24  ;;  %v4406_v44 = vsel %vm4388_vm6, %v4404_v30, %v4405_v5  ;;  %v13408_v24 = vld [vmem:[%s14116_s25 + $0x440] sm:$0xf8]  }
 0x14d   : > { %12042 = vmatprep.mubr.msk.bf16.mxu0 %vm761_vm3, %v4394_v43  ;;  %v13387_v43 = vld [vmem:[%s14116_s25 + $0x4ec] sm:$0xff]   ;;  %v15673_v4 = vpop.permute.xlu0 %5259  ;;  %11021 = vst [vmem:[%s15422_s8 + $0x300] sm:$0xff] %v10893_v37  ;;  %v10905_v34 = vmax.f32 %v10777_v49, 0.0  ;;  %v4411_v30 = vrot.slane %v15511_v38, 3  ;;  %v3355_v41 = vsel %vm761_vm3, %v13895_v8, %v15461_v27  ;;  %v5544_v5 = vrot.slane %v15454_v20, 1 }
 0x14e   : > { %11009 = vst [vmem:[%s15422_s8 + $0x288] sm:$0xff] %v10881_v19  ;;  %11013 = vst [vmem:[%s15422_s8 + $0x2b0] sm:$0xff] %v10885_v35  ;;  %v10897_v40 = vmax.f32 %v10769_v50, 0.0  ;;  %v4283_v27 = vsel %vm761_vm3, %v13394_v58, %v15633_v39  ;;  %v13402_v50 = vld [vmem:[%s14116_s25 + $0x148] ss:$0 sps:$4 sm:$0x77]  }
 0x14f   : > { %11033 = vst [vmem:[%s15422_s8 + $0x378] sm:$0xff] %v10905_v34  ;;  %v4403_v34 = vsel %vm4388_vm6, %v4401_v61, %v4402_v60  ;;  %v13396_v39 = vld [vmem:[%s18053_s2 + $0x240] sm:$0xff]   ;;  %6405 = vrot.lane.b32.xlu1 %v13411_v6, %s14004_s7 }
 0x150   : > { %3667 = vmatmul.mubr.bf16.gmra.mrb[92].mxu1 %v3347_v32  ;;  %v15689_v32 = vsel %vm761_vm3, %v13380_v2, %v15579_v55  ;;  %v15696_v62 = vpop.permute.xlu1 %4118  ;;  %v15701_v55 = vsel %vm761_vm3, %v13381_v12, %v15583_v46  ;;  %v5538_v46 = vrot.slane %v15390_v54, 1  ;;  %v13013_v2 = vpop.f32.mrb[22].mxu0  ;;  %11025 = vst [vmem:[%s15422_s8 + $0x328] sm:$0xff] %v10897_v40  ;;  %7455 = vrot.lane.b32.xlu0 %v13404_v17, %s14004_s7  ;;  %v13403_v40 = vld [vmem:[%s14116_s25 + $0x140] sm:$0xf8]  }
 0x151   : > { %11804 = vmatprep.mubr.msk.bf16.mxu1 %vm761_vm3, %v13377_v21  ;;  %v5536_v21 = vrot.slane %v15668_v22, 1  ;;  %v5542_v29 = vrot.slane %v15689_v32, 1  ;;  %v927_v48 = vpop.f32.mrb[23].mxu0  ;;  %v5541_v54 = vrot.slane %v15701_v55, 1 }
 0x152   : > { %v10773_v12 = vadd.f32 %v15381_v23, %v927_v48  ;;  %v13016_v47 = vpop.f32.mrb[24].mxu0  ;;  %v5540_v37 = vsel %vm2550_vm5, %v5538_v46, %v5539_v51  ;;  %v4417_v48 = vrot.slane %v13409_v56, 3 }
 0x153   : > { %v10793_v35 = vadd.f32 %v13016_v47, %v15381_v23  ;;  %v5551_v47 = vrot.slane %v15493_v16, 1  ;;  %v13413_v16 = vld [vmem:[%s14116_s25 + $0x168] ss:$0 sps:$4 sm:$0x77]  }
 0x154   : > { %4711 = vmatmul.mubr.bf16.vlgmr.msra.gmra.mrb[120].mxu0 %v4391_v10  ;;  %v15717_v10 = vpop.permute.xlu0 %4116  ;;  %v10901_v19 = vmax.f32 %v10773_v12, 0.0  ;;  %v15730_v14 = vpop.permute.xlu1 %5265  ;;  %v13415_v12 = vld [vmem:[%s14116_s25 + $0x2a0] sm:$0xff]  }
 0x155   : > { %12043 = vmatprep.mubr.msk.bf16.mxu0 %vm761_vm3, %v4400_v18  ;;  %6971 = vmatpush1.bf16.msra.mxu0 %v13393_v11  ;;  %v10781_v11 = vadd.f32 %v13013_v2, %v15381_v23  ;;  %v13395_v18 = vld [vmem:[%s14116_s25 + $0x120] sm:$0xf8]   ;;  %v10921_v49 = vmax.f32 %v10793_v35, 0.0  ;;  %v13412_v2 = vld [vmem:[%s14116_s25 + $0x2b4] ss:$0 sps:$4 sm:$0x77]  }
 0x156   : > { %6972 = vmatprep.subr.bf16.mxu0 %v14003_v3  ;;  %11029 = vst [vmem:[%s15422_s8 + $0x350] sm:$0xff] %v10901_v19  ;;  %v4280_v20 = vsel %vm761_vm3, %v13395_v18, %v15643_v25  ;;  %v15769_v25 = vsel %vm761_vm3, %v13389_v59, %v15611_v26  ;;  %v4416_v26 = vrot.slane %v13408_v24, 3  ;;  %6407 = vrot.lane.b32.xlu0 %v13412_v2, %s14004_s7  ;;  %v13410_v18 = vld [vmem:[%s18053_s2 + $0x248] sm:$0xff]  }
 0x157   : > { %v10909_v28 = vmax.f32 %v10781_v11, 0.0  ;;  %11049 = vst [vmem:[%s15422_s8 + $0x418] sm:$0xff] %v10921_v49  ;;  %v4407_v51 = vrot.slane %v4280_v20, 3  ;;  %v5537_v11 = vsel %vm2550_vm5, %v5535_v15, %v5536_v21  ;;  %v4289_v15 = vsel %vm761_vm3, %v13402_v50, %v15696_v62  ;;  %7457 = vrot.lane.b32.xlu1 %v13415_v12, %s14004_s7  ;;  %v13399_v50 = vld [vmem:[%s14116_s25 + $0x128] sm:$0xfe]  }
 0x158   : > { %3675 = vmatmul.mubr.bf16.gmra.mrb[96].mxu1 %v3351_v0  ;;  %v13390_v0 = vld [vmem:[%s14116_s25 + $0x108] sm:$0xfe]   ;;  %v15745_v38 = vpop.permute.xlu0 %5263  ;;  %v15765_v17 = vpop.permute.xlu1 %4122  ;;  %v4286_v19 = vsel %vm761_vm3, %v13403_v40, %v15717_v10  ;;  %v5550_v62 = vrot.slane %v15499_v53, 1  ;;  %v4414_v53 = vrot.slane %v4289_v15, 3  ;;  %v5543_v24 = vsel %vm2550_vm5, %v5541_v54, %v5542_v29 }
 0x159   : > { %11805 = vmatprep.mubr.msk.bf16.mxu1 %vm761_vm3, %v13387_v43  ;;  %6973 = vmatpush1.bf16.msra.mxu0 %v13405_v31  ;;  %v4410_v43 = vrot.slane %v15522_v13, 3  ;;  %11037 = vst [vmem:[%s15422_s8 + $0x3a0] sm:$0xff] %v10909_v28  ;;  %v940_v13 = vpop.f32.mrb[25].mxu0  ;;  %v4413_v56 = vrot.slane %v4286_v19, 3  ;;  %v13422_v2 = vld [vmem:[%s14116_s25 + $0x2cc] sm:$0xf8]   ;;  %v4295_v54 = vsel %vm761_vm3, %v13413_v16, %v15765_v17 }
 0x15a   : > { %6974 = vmatprep.subr.bf16.mxu0 %v14003_v3  ;;  %v10785_v63 = vadd.f32 %v15381_v23, %v940_v13  ;;  %v13017_v58 = vpop.f32.mrb[26].mxu0  ;;  %v5552_v6 = vsel %vm2550_vm5, %v5550_v62, %v5551_v47  ;;  %6409 = vrot.lane.b32.xlu0 %v13422_v2, %s14004_s7  ;;  %v5557_v17 = vrot.slane %v15543_v33, 1  ;;  %v4420_v15 = vrot.slane %v4295_v54, 3  ;;  %v13433_v33 = vld [vmem:[%s18053_s2 + $0x1f8] sm:$0xff]   ;;  %v13429_v16 = vld [vmem:[%s14116_s25 + $0x480] sm:$0xf8]  }
 0x15b   : > { %v4412_v45 = vsel %vm4388_vm6, %v4410_v43, %v4411_v30  ;;  %v10797_v61 = vadd.f32 %v13017_v58, %v15381_v23  ;;  %v943_v22 = vpop.f32.mrb[27].mxu0  ;;  %v13420_v43 = vld [vmem:[%s18053_s2 + $0x1f0] sm:$0xff]   ;;  %v4418_v30 = vsel %vm4388_vm6, %v4416_v26, %v4417_v48  ;;  %v4415_v29 = vsel %vm4388_vm6, %v4413_v56, %v4414_v53  ;;  %v13425_v26 = vld [vmem:[%s14116_s25 + $0x180] sm:$0xf8]   ;;  %v13407_v53 = vld [vmem:[%s14116_s25 + $0x148] sm:$0xfe]  }
 0x15c   : > { %4719 = vmatmul.mubr.bf16.gmra.mrb[124].mxu0 %v4397_v9  ;;  %v5545_v9 = vrot.slane %v15442_v57, 1  ;;  %v10913_v46 = vmax.f32 %v10785_v63, 0.0  ;;  %v15776_v57 = vsel %vm761_vm3, %v13390_v0, %v15620_v52  ;;  %v4121_v60 = vpop.permute.xlu0 %4120  ;;  %v5548_v52 = vrot.slane %v15769_v25, 1  ;;  %v13020_v35 = vpop.f32.mrb[28].mxu0  ;;  %v13418_v0 = vld [vmem:[%s14116_s25 + $0x460] sm:$0xf8]  }
 0x15d   : > { %12044 = vmatprep.mubr.msk.bf16.mxu0 %vm761_vm3, %v4406_v44  ;;  %v4408_v44 = vrot.slane %v4283_v27, 3  ;;  %v5547_v36 = vrot.slane %v15776_v57, 1  ;;  %v10789_v28 = vadd.f32 %v15381_v23, %v943_v22  ;;  %v10925_v59 = vmax.f32 %v10797_v61, 0.0  ;;  %6975 = vmatpush1.bf16.msra.mxu0 %v13420_v43  ;;  %v13419_v63 = vld [vmem:[%s14116_s25 + $0x468] ss:$0 sps:$4 sm:$0x77]  }
 0x15e   : > { %11041 = vst [vmem:[%s15422_s8 + $0x3c8] sm:$0xff] %v10913_v46  ;;  %v5546_v31 = vsel %vm2550_vm5, %v5544_v5, %v5545_v9  ;;  %v10809_v5 = vadd.f32 %v13020_v35, %v15381_v23  ;;  %6976 = vmatprep.subr.bf16.mxu0 %v14003_v3  ;;  %v13398_v27 = vld [vmem:[%s14116_s25 + $0x130] ss:$0 sps:$4 sm:$0x11]   ;;  %v4423_v46 = vrot.slane %v13419_v63, 3  ;;  %v956_v40 = vpop.f32.mrb[29].mxu0  ;;  %v5427_v22 = vsel %vm761_vm3, %v13399_v50, %v15673_v4 }
 0x15f   : > { %v4409_v21 = vsel %vm4388_vm6, %v4407_v51, %v4408_v44  ;;  %v10917_v10 = vmax.f32 %v10789_v28, 0.0  ;;  %11053 = vst [vmem:[%s15422_s8 + $0x440] sm:$0xff] %v10925_v59  ;;  %v13424_v51 = vld [vmem:[%s14116_s25 + $0x188] ss:$0 sps:$4 sm:$0x77]   ;;  %v5556_v58 = vrot.slane %v15553_v42, 1  ;;  %v5549_v4 = vsel %vm2550_vm5, %v5547_v36, %v5548_v52 }
 0x160   : > { %3683 = vmatmul.mubr.bf16.gmra.mrb[100].mxu1 %v3355_v41  ;;  %v13414_v41 = vld [vmem:[%s14116_s25 + $0x160] sm:$0xf8]   ;;  %v15818_v49 = vpop.permute.xlu0 %5267  ;;  %v10937_v32 = vmax.f32 %v10809_v5, 0.0  ;;  %v13021_v61 = vpop.f32.mrb[30].mxu0  ;;  %v5553_v57 = vrot.slane %v5427_v22, 1  ;;  %v13438_v63 = vld [vmem:[%s18053_s2 + $0x258] sm:$0xff]  }
 0x161   : > { %12294 = vmatprep.mubr.msk.bf16.mxu1 %vm761_vm3, %v5540_v37  ;;  %v15803_v37 = vpop.permute.xlu1 %5269  ;;  %11045 = vst [vmem:[%s15422_s8 + $0x3f0] sm:$0xff] %v10917_v10  ;;  %v4292_v44 = vsel %vm761_vm3, %v13414_v41, %v4121_v60  ;;  %v5430_v60 = vsel %vm761_vm3, %v13398_v27, %v15658_v1  ;;  %v13426_v28 = vld [vmem:[%s14116_s25 + $0x2c0] sm:$0xff]   ;;  %v959_v42 = vpop.f32.mrb[31].mxu0  ;;  %v10813_v62 = vadd.f32 %v13021_v61, %v15381_v23  ;;  %v13406_v52 = vld [vmem:[%s14116_s25 + $0x150] ss:$0 sps:$4 sm:$0x11]  }
 0x162   : > { %11065 = vst [vmem:[%s15422_s8 + $0x4b8] sm:$0xff] %v10937_v32  ;;  %v4419_v19 = vrot.slane %v4292_v44, 3  ;;  %v10805_v47 = vadd.f32 %v15381_v23, %v959_v42  ;;  %v5554_v43 = vrot.slane %v5430_v60, 1  ;;  %v5558_v25 = vsel %vm2550_vm5, %v5556_v58, %v5557_v17  ;;  %7459 = vrot.lane.b32.xlu0 %v13426_v28, %s14004_s7  ;;  %6977 = vmatpush1.bf16.msra.mxu0 %v13433_v33  ;;  %v13431_v50 = vld [vmem:[%s14116_s25 + $0x2ec] sm:$0xf8]   ;;  %v13439_v32 = vld [vmem:[%s14116_s25 + $0x2e0] sm:$0xff]  }
 0x163   : > { %v10941_v36 = vmax.f32 %v10813_v62, 0.0  ;;  %6978 = vmatprep.subr.bf16.mxu0 %v14003_v3  ;;  %v4428_v27 = vrot.slane %v13429_v16, 3  ;;  %v5436_v2 = vsel %vm761_vm3, %v13406_v52, %v15730_v14  ;;  %v13434_v14 = vld [vmem:[%s14116_s25 + $0x1a8] ss:$0 sps:$4 sm:$0x77]  }
 0x164   : > { %4727 = vmatmul.mubr.bf16.gmra.mrb[128].mxu0 %v4403_v34  ;;  %v13423_v34 = vld [vmem:[%s18053_s2 + $0x250] sm:$0xff]   ;;  %v4125_v48 = vpop.permute.xlu0 %4124  ;;  %v10933_v35 = vmax.f32 %v10805_v47, 0.0  ;;  %v4421_v41 = vsel %vm4388_vm6, %v4419_v19, %v4420_v15  ;;  %v13436_v61 = vld [vmem:[%s14116_s25 + $0x448] sm:$0xfe]  }
 0x165   : > { %12045 = vmatprep.mubr.msk.bf16.mxu0 %vm761_vm3, %v4412_v45  ;;  %v4422_v45 = vrot.slane %v13418_v0, 3  ;;  %v4127_v55 = vpop.permute.xlu1 %4126  ;;  %11069 = vst [vmem:[%s15422_s8 + $0x4e0] sm:$0xff] %v10941_v36  ;;  %v13437_v22 = vld [vmem:[%s14116_s25 + $0x450] ss:$0 sps:$4 sm:$0x11]   ;;  %v5562_v42 = vrot.slane %v13436_v61, 1 }
 0x166   : > { %v4301_v10 = vsel %vm761_vm3, %v13424_v51, %v4127_v55  ;;  %11061 = vst [vmem:[%s15422_s8 + $0x490] sm:$0xff] %v10933_v35  ;;  %v5433_v51 = vsel %vm761_vm3, %v13407_v53, %v15745_v38  ;;  %v5563_v19 = vrot.slane %v13437_v22, 1  ;;  %v13442_v36 = vld [vmem:[%s14116_s25 + $0x4a0] sm:$0xf8]  }
 0x167   : > { %v4426_v0 = vrot.slane %v4301_v10, 3  ;;  %v5559_v17 = vrot.slane %v5433_v51, 1  ;;  %v13443_v35 = vld [vmem:[%s14116_s25 + $0x4a8] ss:$0 sps:$4 sm:$0x77]  }
 0x168   : > { %5857 = vmatmul.mubr.bf16.vlgmr.msra.gmra.mrb[104].mxu1 %v5537_v11  ;;  %v4424_v11 = vsel %vm4388_vm6, %v4422_v45, %v4423_v46  ;;  %v15889_v5 = vpop.permute.xlu0 %5271  ;;  %v13432_v46 = vld [vmem:[%s14116_s25 + $0x2f4] ss:$0 sps:$4 sm:$0x77]   ;;  %v5564_v52 = vsel %vm2550_vm5, %v5562_v42, %v5563_v19  ;;  %v13428_v51 = vld [vmem:[%s14116_s25 + $0x188] sm:$0xfe]  }
 0x169   : > { %7805 = vmatpush1.bf16.msra.mxu1 %v13396_v39  ;;  %12295 = vmatprep.mubr.msk.bf16.mxu1 %vm761_vm3, %v5546_v31  ;;  %v13421_v39 = vld [vmem:[%s14116_s25 + $0x2d4] ss:$0 sps:$4 sm:$0x77]   ;;  %v10801_v31 = vadd.f32 %v15381_v23, %v956_v40  ;;  %v15874_v59 = vpop.permute.xlu1 %5273  ;;  %v4298_v23 = vsel %vm761_vm3, %v13425_v26, %v4125_v48  ;;  %v5560_v48 = vrot.slane %v5436_v2, 1 }
 0x16a   : > { %7806 = vmatprep.subr.bf16.mxu1 %v14003_v3  ;;  %6411 = vrot.lane.b32.xlu1 %v13421_v39, %s14004_s7 }
 0x16b   : > { %v15810_v8 = vpop.f32.mrb[0].mxu1  ;;  %6415 = vrot.lane.b32.xlu0 %v13432_v46, %s14004_s7  ;;  %v5561_v62 = vsel %vm2550_vm5, %v5559_v17, %v5560_v48  ;;  %v13446_v46 = vld [vmem:[%s14116_s25 + $0x1c8] ss:$0 sps:$4 sm:$0x77]   ;;  %v13456_v48 = vld [vmem:[%s18053_s2 + $0x260] sm:$0xff]  }
 0x16c   : > { %v1909_v13 = vpop.f32.mrb[1].mxu1  ;;  %4735 = vmatmul.mubr.bf16.gmra.mrb[132].mxu0 %v4409_v21  ;;  %v4129_v26 = vpop.permute.xlu0 %4128 }
 0x16d   : > { %v15826_v20 = vpop.f32.mrb[2].mxu1  ;;  %12046 = vmatprep.mubr.msk.bf16.mxu0 %vm761_vm3, %v4418_v30  ;;  %7807 = vmatpush1.bf16.msra.mxu1 %v13410_v18  ;;  %v10929_v18 = vmax.f32 %v10801_v31, 0.0  ;;  %v13430_v13 = vld [vmem:[%s14116_s25 + $0x488] ss:$0 sps:$4 sm:$0x77]  }
 0x16e   : > { %v1912_v9 = vpop.f32.mrb[3].mxu1  ;;  %7808 = vmatprep.subr.bf16.mxu1 %v14003_v3  ;;  %v4429_v45 = vrot.slane %v13430_v13, 3  ;;  %6413 = vrot.lane.b32.xlu1 %v13431_v50, %s14004_s7  ;;  %v13416_v31 = vld [vmem:[%s14116_s25 + $0x170] ss:$0 sps:$4 sm:$0x11]  }
 0x16f   : > { %11057 = vst [vmem:[%s15422_s8 + $0x468] sm:$0xff] %v10929_v18  ;;  %v4131_v9 = vpop.permute.xlu1 %4130 }
 0x170   : > { %5865 = vmatmul.mubr.bf16.gmra.mrb[108].mxu1 %v5543_v24  ;;  %v4430_v54 = vsel %vm4388_vm6, %v4428_v27, %v4429_v45  ;;  %v4307_v18 = vsel %vm761_vm3, %v13434_v14, %v4131_v9  ;;  %v15934_v47 = vpop.permute.xlu0 %5275  ;;  %v13450_v45 = vld [vmem:[%s14116_s25 + $0x300] sm:$0xff]  }
 0x171   : > { %12296 = vmatprep.mubr.msk.bf16.mxu1 %vm761_vm3, %v5552_v6  ;;  %7809 = vmatpush1.bf16.msra.mxu1 %v13423_v34  ;;  %v4425_v34 = vrot.slane %v4298_v23, 3 }
 0x172   : > { %7810 = vmatprep.subr.bf16.mxu1 %v14003_v3  ;;  %7461 = vrot.lane.b32.xlu1 %v13439_v32, %s14004_s7  ;;  %v13427_v32 = vld [vmem:[%s14116_s25 + $0x190] ss:$0 sps:$4 sm:$0x11]  }
 0x173   : > { %v15855_v12 = vpop.f32.mrb[4].mxu1  ;;  %v4427_v60 = vsel %vm4388_vm6, %v4425_v34, %v4426_v0  ;;  %v4435_v0 = vrot.slane %v13443_v35, 3  ;;  %v13445_v34 = vld [vmem:[%s14116_s25 + $0x30c] sm:$0xf8]   ;;  %v5448_v42 = vsel %vm761_vm3, %v13427_v32, %v15874_v59 }
 0x174   : > { %v1917_v21 = vpop.f32.mrb[5].mxu1  ;;  %4743 = vmatmul.mubr.bf16.gmra.mrb[136].mxu0 %v4415_v29  ;;  %v5555_v29 = vsel %vm2550_vm5, %v5553_v57, %v5554_v43  ;;  %v5442_v43 = vsel %vm761_vm3, %v13416_v31, %v15803_v37  ;;  %v4434_v37 = vrot.slane %v13442_v36, 3  ;;  %6417 = vrot.lane.b32.xlu0 %v13445_v34, %s14004_s7  ;;  %v13449_v31 = vld [vmem:[%s14116_s25 + $0x470] ss:$0 sps:$4 sm:$0x11]  }
 0x175   : > { %v15864_v1 = vpop.f32.mrb[6].mxu1  ;;  %12047 = vmatprep.mubr.msk.bf16.mxu0 %vm761_vm3, %v4424_v11  ;;  %7811 = vmatpush1.bf16.msra.mxu1 %v13438_v63  ;;  %v13435_v11 = vld [vmem:[%s14116_s25 + $0x1a0] sm:$0xf8]   ;;  %v15925_v21 = vpop.permute.xlu1 %5277  ;;  %v5566_v16 = vrot.slane %v5442_v43, 1  ;;  %v5569_v22 = vrot.slane %v13449_v31, 1 }
 0x176   : > { %v1920_v30 = vpop.f32.mrb[7].mxu1  ;;  %7812 = vmatprep.subr.bf16.mxu1 %v14003_v3  ;;  %v4304_v28 = vsel %vm761_vm3, %v13435_v11, %v4129_v26  ;;  %v4436_v9 = vsel %vm4388_vm6, %v4434_v37, %v4435_v0  ;;  %v13448_v26 = vld [vmem:[%s14116_s25 + $0x468] sm:$0xfe]   ;;  %v13455_v59 = vld [vmem:[%s14116_s25 + $0x4c8] ss:$0 sps:$4 sm:$0x77]  }
 0x177   : > { %v15892_v56 = vpop.f32.mrb[32].mxu0  ;;  %v13417_v30 = vld [vmem:[%s14116_s25 + $0x168] sm:$0xfe]   ;;  %v4431_v57 = vrot.slane %v4304_v28, 3 }
 0x178   : > { %5873 = vmatmul.mubr.bf16.gmra.mrb[112].mxu1 %v5549_v4  ;;  %v1861_v39 = vpop.f32.mrb[33].mxu0  ;;  %v5439_v50 = vsel %vm761_vm3, %v13417_v30, %v15818_v49  ;;  %v13451_v49 = vld [vmem:[%s18053_s2 + $0x200] sm:$0xff]   ;;  %7463 = vrot.lane.b32.xlu0 %v13450_v45, %s14004_s7  ;;  %v13440_v36 = vld [vmem:[%s14116_s25 + $0x1b0] ss:$0 sps:$4 sm:$0x11]  }
 0x179   : > { %12297 = vmatprep.mubr.msk.bf16.mxu1 %vm761_vm3, %v5558_v25  ;;  %v15910_v44 = vpop.f32.mrb[34].mxu0  ;;  %v4432_v25 = vrot.slane %v4307_v18, 3  ;;  %v4135_v53 = vpop.permute.xlu1 %4134  ;;  %v5565_v11 = vrot.slane %v5439_v50, 1  ;;  %6979 = vmatpush1.bf16.msra.mxu0 %v13451_v49  ;;  %v13441_v50 = vld [vmem:[%s14116_s25 + $0x1a8] sm:$0xfe]  }
 0x17a   : > { %v1864_v58 = vpop.f32.mrb[35].mxu0  ;;  %v4133_v39 = vpop.permute.xlu0 %4132  ;;  %7813 = vmatpush1.bf16.msra.mxu1 %v13456_v48  ;;  %6980 = vmatprep.subr.bf16.mxu0 %v14003_v3  ;;  %v13452_v32 = vld [vmem:[%s14116_s25 + $0x1d0] ss:$0 sps:$4 sm:$0x11]   ;;  %v13461_v49 = vld [vmem:[%s14116_s25 + $0x488] sm:$0xfe]  }
 0x17b   : > { %v15897_v24 = vpop.f32.mrb[8].mxu1  ;;  %v4433_v63 = vsel %vm4388_vm6, %v4431_v57, %v4432_v25  ;;  %v4313_v58 = vsel %vm761_vm3, %v13446_v46, %v4135_v53  ;;  %7814 = vmatprep.subr.bf16.mxu1 %v14003_v3  ;;  %v13454_v57 = vld [vmem:[%s14116_s25 + $0x4c0] sm:$0xf8]   ;;  %v13462_v48 = vld [vmem:[%s14116_s25 + $0x490] ss:$0 sps:$4 sm:$0x11]  }
 0x17c   : > { %v1925_v6 = vpop.f32.mrb[9].mxu1  ;;  %4751 = vmatmul.mubr.bf16.gmra.mrb[140].mxu0 %v4421_v41  ;;  %v13444_v41 = vld [vmem:[%s14116_s25 + $0x314] ss:$0 sps:$4 sm:$0x77]   ;;  %v4438_v43 = vrot.slane %v4313_v58, 3  ;;  %v4440_v35 = vrot.slane %v13454_v57, 3 }
 0x17d   : > { %v15905_v55 = vpop.f32.mrb[10].mxu1  ;;  %12048 = vmatprep.mubr.msk.bf16.mxu0 %vm761_vm3, %v4430_v54  ;;  %6419 = vrot.lane.b32.xlu1 %v13444_v41, %s14004_s7  ;;  %v15966_v14 = vpop.permute.xlu1 %5281  ;;  %v13463_v46 = vld [vmem:[%s14116_s25 + $0x320] sm:$0xff]   ;;  %v5574_v31 = vrot.slane %v13461_v49, 1  ;;  %v13465_v49 = vld [vmem:[%s14116_s25 + $0x1e8] sm:$0xfe]  }
 0x17e   : > { %v1928_v40 = vpop.f32.mrb[11].mxu1  ;;  %v15978_v18 = vpop.permute.xlu0 %5279  ;;  %v13466_v57 = vld [vmem:[%s14116_s25 + $0x4e0] sm:$0xf8]  }
 0x17f   : > { %v15922_v38 = vpop.f32.mrb[36].mxu0 }
 0x180   : > { %5881 = vmatmul.mubr.bf16.gmra.mrb[116].mxu1 %v5555_v29  ;;  %v1869_v23 = vpop.f32.mrb[37].mxu0  ;;  %v13447_v29 = vld [vmem:[%s14116_s25 + $0x1c0] sm:$0xf8]  }
 0x181   : > { %12298 = vmatprep.mubr.msk.bf16.mxu1 %vm761_vm3, %v5564_v52  ;;  %v15949_v27 = vpop.f32.mrb[38].mxu0  ;;  %v4310_v17 = vsel %vm761_vm3, %v13447_v29, %v4133_v39  ;;  %v4139_v25 = vpop.permute.xlu1 %4138  ;;  %v5572_v52 = vrot.slane %v5448_v42, 1  ;;  %v13459_v29 = vld [vmem:[%s14116_s25 + $0x1e8] ss:$0 sps:$4 sm:$0x77]  }
 0x182   : > { %v1872_v54 = vpop.f32.mrb[39].mxu0  ;;  %v4437_v30 = vrot.slane %v4310_v17, 3  ;;  %v4137_v37 = vpop.permute.xlu0 %4136 }
 0x183   : > { %v15927_v15 = vpop.f32.mrb[12].mxu1 }
 0x184   : > { %v1933_v33 = vpop.f32.mrb[13].mxu1  ;;  %4759 = vmatmul.mubr.bf16.gmra.mrb[144].mxu0 %v4427_v60  ;;  %v5568_v60 = vrot.slane %v13448_v26, 1  ;;  %v4439_v0 = vsel %vm4388_vm6, %v4437_v30, %v4438_v43 }
 0x185   : > { %v15931_v4 = vpop.f32.mrb[14].mxu1  ;;  %12049 = vmatprep.mubr.msk.bf16.mxu0 %vm761_vm3, %v4436_v9  ;;  %v5567_v33 = vsel %vm2550_vm5, %v5565_v11, %v5566_v16  ;;  %v4441_v16 = vrot.slane %v13455_v59, 3  ;;  %v5286_v39 = vpop.permute.xlu1 %5285  ;;  %v4319_v11 = vsel %vm761_vm3, %v13459_v29, %v4139_v25  ;;  %v13453_v25 = vld [vmem:[%s14116_s25 + $0x1c8] sm:$0xfe]  }
 0x186   : > { %v1936_v10 = vpop.f32.mrb[15].mxu1  ;;  %v16021_v58 = vpop.permute.xlu0 %5283  ;;  %v4444_v42 = vrot.slane %v4319_v11, 3  ;;  %v13467_v59 = vld [vmem:[%s14116_s25 + $0x4e8] ss:$0 sps:$4 sm:$0x77]  }
 0x187   : > { %v15976_v61 = vpop.f32.mrb[40].mxu0  ;;  %v5570_v10 = vsel %vm2550_vm5, %v5568_v60, %v5569_v22  ;;  %v4442_v9 = vsel %vm4388_vm6, %v4440_v35, %v4441_v16  ;;  %v5575_v60 = vrot.slane %v13462_v48, 1  ;;  %v13472_v11 = vld [vmem:[%s14116_s25 + $0x208] ss:$0 sps:$4 sm:$0x77]  }
 0x188   : > { %5889 = vmatmul.mubr.bf16.gmra.mrb[120].mxu1 %v5561_v62  ;;  %v1877_v28 = vpop.f32.mrb[41].mxu0  ;;  %v5445_v62 = vsel %vm761_vm3, %v13428_v51, %v15889_v5  ;;  %v13460_v51 = vld [vmem:[%s14116_s25 + $0x1e0] sm:$0xf8]  }
 0x189   : > { %12299 = vmatprep.mubr.msk.bf16.mxu1 %vm761_vm3, %v5570_v10  ;;  %v5571_v23 = vrot.slane %v5445_v62, 1  ;;  %v15994_v53 = vpop.f32.mrb[42].mxu0  ;;  %v4316_v26 = vsel %vm761_vm3, %v13460_v51, %v4137_v37  ;;  %v4143_v22 = vpop.permute.xlu1 %4142  ;;  %v16030_v28 = vsel %vm761_vm3, %v13452_v32, %v15966_v14  ;;  %v5576_v10 = vsel %vm2550_vm5, %v5574_v31, %v5575_v60  ;;  %v13471_v32 = vld [vmem:[%s18053_s2 + $0x268] sm:$0xff]   ;;  %v13473_v31 = vld [vmem:[%s14116_s25 + $0x200] sm:$0xf8]  }
 0x18a   : > { %v1880_v45 = vpop.f32.mrb[43].mxu0  ;;  %v5584_v14 = vrot.slane %v16030_v28, 1  ;;  %v4141_v37 = vpop.permute.xlu0 %4140  ;;  %v16063_v51 = vsel %vm761_vm3, %v13453_v25, %v15978_v18  ;;  %7815 = vmatpush1.bf16.msra.mxu1 %v13471_v32  ;;  %v13474_v18 = vld [vmem:[%s14116_s25 + $0x4a8] sm:$0xfe]  }
 0x18b   : > { %v15944_v13 = vpop.f32.mrb[16].mxu1  ;;  %v5573_v62 = vsel %vm2550_vm5, %v5571_v23, %v5572_v52  ;;  %v4446_v52 = vrot.slane %v13466_v57, 3  ;;  %v4447_v23 = vrot.slane %v13467_v59, 3  ;;  %7816 = vmatprep.subr.bf16.mxu1 %v14003_v3  ;;  %v13475_v60 = vld [vmem:[%s14116_s25 + $0x4b0] ss:$0 sps:$4 sm:$0x11]  }
 0x18c   : > { %v1941_v6 = vpop.f32.mrb[17].mxu1  ;;  %4767 = vmatmul.mubr.bf16.gmra.mrb[148].mxu0 %v4433_v63  ;;  %v13457_v63 = vld [vmem:[%s14116_s25 + $0x32c] sm:$0xf8]   ;;  %v5580_v25 = vrot.slane %v13474_v18, 1  ;;  %v5581_v57 = vrot.slane %v13475_v60, 1 }
 0x18d   : > { %v15959_v2 = vpop.f32.mrb[18].mxu1  ;;  %v13458_v6 = vld [vmem:[%s14116_s25 + $0x334] ss:$0 sps:$4 sm:$0x77]   ;;  %12050 = vmatprep.mubr.msk.bf16.mxu0 %vm761_vm3, %v4442_v9  ;;  %6421 = vrot.lane.b32.xlu1 %v13457_v63, %s14004_s7  ;;  %v5290_v45 = vpop.permute.xlu1 %5289  ;;  %v13470_v9 = vld [vmem:[%s14116_s25 + $0x34c] sm:$0xf8]  }
 0x18e   : > { %v1944_v40 = vpop.f32.mrb[19].mxu1  ;;  %6423 = vrot.lane.b32.xlu0 %v13458_v6, %s14004_s7  ;;  %v13469_v63 = vld [vmem:[%s14116_s25 + $0x354] ss:$0 sps:$4 sm:$0x77]  }
 0x18f   : > { %v16008_v54 = vpop.f32.mrb[44].mxu0  ;;  %v16014_v40 = vsel %vm761_vm3, %v13440_v36, %v15925_v21  ;;  %v16026_v21 = vsel %vm761_vm3, %v13441_v50, %v15934_v47  ;;  %v13464_v36 = vld [vmem:[%s14116_s25 + $0x1f0] ss:$0 sps:$4 sm:$0x11]   ;;  %v4448_v50 = vsel %vm4388_vm6, %v4446_v52, %v4447_v23 }
 0x190   : > { %5897 = vmatmul.mubr.bf16.gmra.mrb[124].mxu1 %v5567_v33  ;;  %v5578_v17 = vrot.slane %v16014_v40, 1  ;;  %v4443_v33 = vrot.slane %v4316_v26, 3  ;;  %v1885_v30 = vpop.f32.mrb[45].mxu0  ;;  %v5577_v47 = vrot.slane %v16026_v21, 1  ;;  %v16069_v48 = vsel %vm761_vm3, %v13464_v36, %v5286_v39 }
 0x191   : > { %7465 = vrot.lane.b32.xlu1 %v13463_v46, %s14004_s7  ;;  %12300 = vmatprep.mubr.msk.bf16.mxu1 %vm761_vm3, %v5576_v10  ;;  %v16046_v16 = vpop.f32.mrb[46].mxu0  ;;  %v5583_v21 = vrot.slane %v16063_v51, 1  ;;  %v4322_v39 = vsel %vm761_vm3, %v13473_v31, %v4141_v37  ;;  %v13476_v30 = vld [vmem:[%s14116_s25 + $0x340] sm:$0xff]   ;;  %v4147_v10 = vpop.permute.xlu1 %4146  ;;  %v13477_v23 = vld [vmem:[%s14116_s25 + $0x210] ss:$0 sps:$4 sm:$0x11]  }
 0x192   : > { %v1888_v6 = vpop.f32.mrb[47].mxu0  ;;  %6425 = vrot.lane.b32.xlu0 %v13470_v9, %s14004_s7  ;;  %v4449_v37 = vrot.slane %v4322_v39, 3 }
 0x193   : > { %v15985_v19 = vpop.f32.mrb[20].mxu1 }
 0x194   : > { %v1949_v5 = vpop.f32.mrb[21].mxu1  ;;  %4775 = vmatmul.mubr.bf16.gmra.mrb[152].mxu0 %v4439_v0  ;;  %v4445_v0 = vsel %vm4388_vm6, %v4443_v33, %v4444_v42  ;;  %v16077_v42 = vpop.permute.xlu0 %5287  ;;  %v5590_v33 = vrot.slane %v16069_v48, 1  ;;  %v13899_v48 = vld [vmem:[%s14116_s25 + $0x248] sm:$0xfe]  }
 0x195   : > { %v15996_v41 = vpop.f32.mrb[22].mxu1  ;;  %v13468_v5 = vld [vmem:[%s18053_s2 + $0x208] sm:$0xff]   ;;  %12051 = vmatprep.mubr.msk.bf16.mxu0 %vm761_vm3, %v4448_v50  ;;  %6427 = vrot.lane.b32.xlu1 %v13469_v63, %s14004_s7  ;;  %v5294_v32 = vpop.permute.xlu1 %5293 }
 0x196   : > { %v1952_v34 = vpop.f32.mrb[23].mxu1  ;;  %6981 = vmatpush1.bf16.msra.mxu0 %v13468_v5  ;;  %7467 = vrot.lane.b32.xlu0 %v13476_v30, %s14004_s7 }
 0x197   : > { %v16059_v29 = vpop.f32.mrb[48].mxu0  ;;  %6982 = vmatprep.subr.bf16.mxu0 %v14003_v3 }
 0x198   : > { %5905 = vmatmul.mubr.bf16.gmra.mrb[128].mxu1 %v5573_v62  ;;  %v1893_v26 = vpop.f32.mrb[49].mxu0  ;;  %v4325_v62 = vsel %vm761_vm3, %v13472_v11, %v4143_v22  ;;  %v5579_v22 = vsel %vm2550_vm5, %v5577_v47, %v5578_v17  ;;  %v13479_v17 = vld [vmem:[%s14116_s25 + $0x500] sm:$0xf8]   ;;  %v13480_v47 = vld [vmem:[%s14116_s25 + $0x508] ss:$0 sps:$4 sm:$0x77]   ;;  %v4145_v9 = vpop.permute.xlu0 %4144 }
 0x199   : > { %v16083_v59 = vpop.f32.mrb[50].mxu0  ;;  %v4450_v5 = vrot.slane %v4325_v62, 3  ;;  %v4453_v11 = vrot.slane %v13480_v47, 3  ;;  %v13481_v26 = vld [vmem:[%s14116_s25 + $0x36c] sm:$0xf8]  }
 0x19a   : > { %v1896_v52 = vpop.f32.mrb[51].mxu0  ;;  %v13483_v62 = vld [vmem:[%s18053_s2 + $0x210] sm:$0xff]   ;;  %6429 = vrot.lane.b32.xlu1 %v13481_v26, %s14004_s7 }
 0x19b   : > { %v16033_v43 = vpop.f32.mrb[24].mxu1  ;;  %v4451_v31 = vsel %vm4388_vm6, %v4449_v37, %v4450_v5  ;;  %v13478_v52 = vld [vmem:[%s14116_s25 + $0x208] sm:$0xfe]   ;;  %6983 = vmatpush1.bf16.msra.mxu0 %v13483_v62  ;;  %v13489_v62 = vld [vmem:[%s14116_s25 + $0x360] sm:$0xff]  }
 0x19c   : > { %v1957_v35 = vpop.f32.mrb[25].mxu1  ;;  %4783 = vmatmul.mubr.bf16.gmra.mrb[156].mxu0 %v4445_v0  ;;  %v5582_v0 = vsel %vm2550_vm5, %v5580_v25, %v5581_v57  ;;  %v13484_v57 = vld [vmem:[%s14116_s25 + $0x228] ss:$0 sps:$4 sm:$0x77]   ;;  %v5292_v37 = vpop.permute.xlu0 %5291  ;;  %6984 = vmatprep.subr.bf16.mxu0 %v14003_v3 }
 0x19d   : > { %v16050_v34 = vpop.f32.mrb[26].mxu1  ;;  %v16089_v35 = vsel %vm761_vm3, %v13465_v49, %v16021_v58  ;;  %12301 = vmatprep.mubr.msk.bf16.mxu1 %vm761_vm3, %v5582_v0  ;;  %v16101_v58 = vsel %vm761_vm3, %v13477_v23, %v5290_v45  ;;  %v4452_v49 = vrot.slane %v13479_v17, 3  ;;  %v13482_v45 = vld [vmem:[%s14116_s25 + $0x374] ss:$0 sps:$4 sm:$0x77]   ;;  %v4331_v0 = vsel %vm761_vm3, %v13484_v57, %v4147_v10 }
 0x19e   : > { %v1960_v46 = vpop.f32.mrb[27].mxu1  ;;  %v5589_v40 = vrot.slane %v16089_v35, 1  ;;  %v5596_v6 = vrot.slane %v16101_v58, 1  ;;  %6431 = vrot.lane.b32.xlu0 %v13482_v45, %s14004_s7  ;;  %v13485_v23 = vld [vmem:[%s14116_s25 + $0x220] sm:$0xf8]   ;;  %v4456_v17 = vrot.slane %v4331_v0, 3  ;;  %v5585_v10 = vsel %vm2550_vm5, %v5583_v21, %v5584_v14  ;;  %7469 = vrot.lane.b32.xlu1 %v13489_v62, %s14004_s7 }
 0x19f   : > { %v16097_v63 = vpop.f32.mrb[52].mxu0  ;;  %v4454_v39 = vsel %vm4388_vm6, %v4452_v49, %v4453_v11  ;;  %v4328_v47 = vsel %vm761_vm3, %v13485_v23, %v4145_v9  ;;  %v13487_v49 = vld [vmem:[%s14116_s25 + $0x4d0] ss:$0 sps:$4 sm:$0x11]   ;;  %v13491_v57 = vld [vmem:[%s14116_s25 + $0x228] sm:$0xfe]  }
 0x1a0   : > { %5913 = vmatmul.mubr.bf16.gmra.mrb[132].mxu1 %v5579_v22  ;;  %v1901_v46 = vpop.f32.mrb[53].mxu0  ;;  %12052 = vmatprep.mubr.msk.bf16.mxu0 %vm761_vm3, %v4454_v39  ;;  %v4455_v11 = vrot.slane %v4328_v47, 3  ;;  %v5587_v45 = vrot.slane %v13487_v49, 1  ;;  %v13490_v14 = vld [vmem:[%s14116_s25 + $0x230] ss:$0 sps:$4 sm:$0x11]   ;;  %v4149_v21 = vpop.permute.xlu0 %4148 }
 0x1a1   : > { %v16110_v18 = vpop.f32.mrb[54].mxu0  ;;  %v13486_v46 = vld [vmem:[%s14116_s25 + $0x4c8] sm:$0xfe]   ;;  %v13493_v0 = vld [vmem:[%s14116_s25 + $0x528] ss:$0 sps:$4 sm:$0x77]  }
 0x1a2   : > { %v1904_v30 = vpop.f32.mrb[55].mxu0  ;;  %v13896_v47 = vld [vmem:[%s14116_s25 + $0x248] ss:$0 sps:$4 sm:$0x77]   ;;  %v13897_v49 = vld [vmem:[%s14116_s25 + $0x240] sm:$0xf8]  }
 0x1a3   : > { %v16085_v36 = vpop.f32.mrb[28].mxu1  ;;  %v16145_v30 = vsel %vm761_vm3, %v13478_v52, %v16077_v42  ;;  %v13492_v52 = vld [vmem:[%s14116_s25 + $0x520] sm:$0xf8]   ;;  %v4459_v62 = vrot.slane %v13493_v0, 3  ;;  %v13499_v0 = vld [vmem:[%s18053_s2 + $0x218] sm:$0xff]  }
 0x1a4   : > { %v1965_v50 = vpop.f32.mrb[29].mxu1  ;;  %4791 = vmatmul.mubr.bf16.gmra.mrb[160].mxu0 %v4451_v31  ;;  %v5586_v31 = vrot.slane %v13486_v46, 1  ;;  %v5595_v23 = vrot.slane %v16145_v30, 1  ;;  %v13904_v30 = vld [vmem:[%s14116_s25 + $0x268] sm:$0xfe]  }
 0x1a5   : > { %v16112_v60 = vpop.f32.mrb[30].mxu1  ;;  %v4151_v50 = vpop.permute.xlu1 %4150  ;;  %6985 = vmatpush1.bf16.msra.mxu0 %v13499_v0  ;;  %v13501_v0 = vld [vmem:[%s14116_s25 + $0x548] ss:$0 sps:$4 sm:$0x77]  }
 0x1a6   : > { %v1968_v25 = vpop.f32.mrb[31].mxu1  ;;  %v16167_v46 = vsel %vm761_vm3, %v13896_v47, %v4151_v50  ;;  %v13495_v50 = vld [vmem:[%s14116_s25 + $0x38c] sm:$0xf8]   ;;  %6986 = vmatprep.subr.bf16.mxu0 %v14003_v3 }
 0x1a7   : > { %v2874_v22 = vpop.f32.mrb[56].mxu0  ;;  %v5588_v25 = vsel %vm2550_vm5, %v5586_v31, %v5587_v45  ;;  %v4458_v45 = vrot.slane %v13492_v52, 3  ;;  %v13898_v47 = vld [vmem:[%s14116_s25 + $0x250] ss:$0 sps:$4 sm:$0x11]   ;;  %6433 = vrot.lane.b32.xlu0 %v13495_v50, %s14004_s7 }
 0x1a8   : > { %v16125_v5 = vadd.f32 %v2874_v22, %v15892_v56  ;;  %v2876_v26 = vpop.f32.mrb[57].mxu0  ;;  %v13488_v56 = vld [vmem:[%s18053_s2 + $0x270] sm:$0xff]   ;;  %12302 = vmatprep.mubr.msk.bf16.mxu1 %vm761_vm3, %v5588_v25  ;;  %v16157_v22 = vsel %vm761_vm3, %v13490_v14, %v5294_v32  ;;  %v4462_v14 = vrot.slane %v16167_v46, 3 }
 0x1a9   : > { %v2877_v9 = vpop.f32.mrb[58].mxu0  ;;  %7817 = vmatpush1.bf16.msra.mxu1 %v13488_v56  ;;  %v5298_v42 = vpop.permute.xlu1 %5297  ;;  %v4334_v26 = vsel %vm761_vm3, %v13897_v49, %v4149_v21  ;;  %v5602_v31 = vrot.slane %v16157_v22, 1  ;;  %v13494_v32 = vld [vmem:[%s14116_s25 + $0x394] ss:$0 sps:$4 sm:$0x77]  }
 0x1aa   : > { %v16150_v28 = vadd.f32 %v2877_v9, %v15910_v44  ;;  %7818 = vmatprep.subr.bf16.mxu1 %v14003_v3  ;;  %5921 = vmatmul.mubr.bf16.gmra.mrb[136].mxu1 %v5585_v10  ;;  %v16162_v44 = vsel %vm761_vm3, %v13491_v57, %v5292_v37  ;;  %v4457_v9 = vsel %vm4388_vm6, %v4455_v11, %v4456_v17  ;;  %v2879_v25 = vpop.f32.mrb[59].mxu0  ;;  %v5296_v21 = vpop.permute.xlu0 %5295  ;;  %v13496_v49 = vld [vmem:[%s14116_s25 + $0x4e8] sm:$0xfe]  }
 0x1ab   : > { %v16141_v39 = vpop.f32.mrb[32].mxu1  ;;  %6435 = vrot.lane.b32.xlu1 %v13494_v32, %s14004_s7  ;;  %v4460_v57 = vsel %vm4388_vm6, %v4458_v45, %v4459_v62  ;;  %v16186_v17 = vsel %vm761_vm3, %v13898_v47, %v5298_v42  ;;  %v13498_v45 = vld [vmem:[%s14116_s25 + $0x380] sm:$0xff]   ;;  %v13497_v32 = vld [vmem:[%s14116_s25 + $0x4f0] ss:$0 sps:$4 sm:$0x11]   ;;  %v13502_v47 = vld [vmem:[%s18053_s2 + $0x278] sm:$0xff]  }
 0x1ac   : > { %v1973_v51 = vpop.f32.mrb[33].mxu1  ;;  %12053 = vmatprep.mubr.msk.bf16.mxu0 %vm761_vm3, %v4460_v57  ;;  %v5593_v50 = vrot.slane %v13497_v32, 1  ;;  %7471 = vrot.lane.b32.xlu0 %v13498_v45, %s14004_s7  ;;  %v4465_v32 = vrot.slane %v13501_v0, 3 }
 0x1ad   : > { %v16173_v56 = vpop.f32.mrb[34].mxu1  ;;  %v4461_v51 = vrot.slane %v4334_v26, 3  ;;  %v4155_v11 = vpop.permute.xlu1 %4154  ;;  %4799 = vmatmul.mubr.bf16.gmra.mrb[164].mxu0 %v4457_v9  ;;  %v5591_v9 = vsel %vm2550_vm5, %v5589_v40, %v5590_v33  ;;  %v16218_v33 = vsel %vm761_vm3, %v13899_v48, %v5296_v21  ;;  %7819 = vmatpush1.bf16.msra.mxu1 %v13502_v47  ;;  %v13504_v21 = vld [vmem:[%s14116_s25 + $0x3b4] ss:$0 sps:$4 sm:$0x77]  }
 0x1ae   : > { %v1976_v10 = vpop.f32.mrb[35].mxu1  ;;  %v4153_v57 = vpop.permute.xlu0 %4152  ;;  %7820 = vmatprep.subr.bf16.mxu1 %v14003_v3 }
 0x1af   : > { %v2882_v52 = vpop.f32.mrb[60].mxu0  ;;  %v5592_v10 = vrot.slane %v13496_v49, 1 }
 0x1b0   : > { %v16191_v46 = vadd.f32 %v2882_v52, %v15922_v38  ;;  %v2884_v26 = vpop.f32.mrb[61].mxu0  ;;  %6439 = vrot.lane.b32.xlu0 %v13504_v21, %s14004_s7  ;;  %v5597_v21 = vsel %vm2550_vm5, %v5595_v23, %v5596_v6  ;;  %v13510_v6 = vld [vmem:[%s18053_s2 + $0x220] sm:$0xff]  }
 0x1b1   : > { %v2885_v62 = vpop.f32.mrb[62].mxu0  ;;  %v5594_v52 = vsel %vm2550_vm5, %v5592_v10, %v5593_v50  ;;  %v5302_v49 = vpop.permute.xlu1 %5301  ;;  %v13900_v26 = vld [vmem:[%s14116_s25 + $0x268] ss:$0 sps:$4 sm:$0x77]   ;;  %v13901_v50 = vld [vmem:[%s14116_s25 + $0x260] sm:$0xf8]   ;;  %6987 = vmatpush1.bf16.msra.mxu0 %v13510_v6 }
 0x1b2   : > { %v16197_v42 = vadd.f32 %v2885_v62, %v15949_v27  ;;  %v13500_v27 = vld [vmem:[%s14116_s25 + $0x540] sm:$0xf8]   ;;  %12303 = vmatprep.mubr.msk.bf16.mxu1 %vm761_vm3, %v5594_v52  ;;  %v4343_v45 = vsel %vm761_vm3, %v13900_v26, %v4155_v11  ;;  %v13503_v62 = vld [vmem:[%s14116_s25 + $0x3ac] sm:$0xf8]   ;;  %v4340_v25 = vsel %vm761_vm3, %v13901_v50, %v4153_v57  ;;  %v4463_v52 = vsel %vm4388_vm6, %v4461_v51, %v4462_v14  ;;  %v5300_v57 = vpop.permute.xlu0 %5299 }
 0x1b3   : > { %v16200_v38 = vpop.f32.mrb[36].mxu1  ;;  %v4464_v35 = vrot.slane %v13500_v27, 3  ;;  %5929 = vmatmul.mubr.bf16.gmra.mrb[140].mxu1 %v5591_v9  ;;  %v5607_v27 = vrot.slane %v16218_v33, 1  ;;  %6437 = vrot.lane.b32.xlu1 %v13503_v62, %s14004_s7  ;;  %v2887_v9 = vpop.f32.mrb[63].mxu0  ;;  %v4468_v0 = vrot.slane %v4343_v45, 3  ;;  %v4467_v14 = vrot.slane %v4340_v25, 3 }
 0x1b4   : > { %v1981_v40 = vpop.f32.mrb[37].mxu1  ;;  %v13902_v26 = vld [vmem:[%s14116_s25 + $0x270] ss:$0 sps:$4 sm:$0x11]   ;;  %v16271_v23 = vsel %vm761_vm3, %v13904_v30, %v5300_v57  ;;  %6988 = vmatprep.subr.bf16.mxu0 %v14003_v3  ;;  %v13906_v6 = vld [vmem:[%s14116_s25 + $0x280] sm:$0xf8]  }
 0x1b5   : > { %v16223_v10 = vpop.f32.mrb[38].mxu1  ;;  %v4466_v11 = vsel %vm4388_vm6, %v4464_v35, %v4465_v32  ;;  %v13507_v40 = vld [vmem:[%s14116_s25 + $0x3a0] sm:$0xff]   ;;  %v16235_v37 = vsel %vm761_vm3, %v13902_v26, %v5302_v49  ;;  %v13505_v35 = vld [vmem:[%s14116_s25 + $0x508] sm:$0xfe]   ;;  %v4159_v49 = vpop.permute.xlu1 %4158 }
 0x1b6   : > { %v1984_v48 = vpop.f32.mrb[39].mxu1  ;;  %12054 = vmatprep.mubr.msk.bf16.mxu0 %vm761_vm3, %v4466_v11  ;;  %v13506_v45 = vld [vmem:[%s14116_s25 + $0x510] ss:$0 sps:$4 sm:$0x11]   ;;  %v5614_v50 = vrot.slane %v16235_v37, 1 }
 0x1b7   : > { %v2890_v51 = vpop.f32.mrb[64].mxu0  ;;  %4807 = vmatmul.mubr.bf16.gmra.mrb[168].mxu0 %v4463_v52  ;;  %v5598_v48 = vrot.slane %v13505_v35, 1  ;;  %v5599_v11 = vrot.slane %v13506_v45, 1  ;;  %7473 = vrot.lane.b32.xlu1 %v13507_v40, %s14004_s7  ;;  %v13508_v26 = vld [vmem:[%s14116_s25 + $0x560] sm:$0xf8]   ;;  %v13538_v37 = vld [vmem:[%s18053_s2 + $0x290] sm:$0xff]  }
 0x1b8   : > { %v16241_v47 = vadd.f32 %v2890_v51, %v15976_v61  ;;  %v2892_v32 = vpop.f32.mrb[65].mxu0  ;;  %v10675_v61 = vsub.s32 1, %v15296_v7  ;;  %v13509_v35 = vld [vmem:[%s14116_s25 + $0x568] ss:$0 sps:$4 sm:$0x77]   ;;  %v4470_v58 = vrot.slane %v13508_v26, 3  ;;  %v4469_v26 = vsel %vm4388_vm6, %v4467_v14, %v4468_v0 }
 0x1b9   : > { %v2893_v62 = vpop.f32.mrb[66].mxu0  ;;  %v5600_v40 = vsel %vm2550_vm5, %v5598_v48, %v5599_v11  ;;  %v16275_v48 = vld [vmem:[%s14116_s25 + $0x3d4] ss:$0 sps:$4 sm:$0x77]   ;;  %v5613_v0 = vrot.slane %v16271_v23, 1  ;;  %v13513_v14 = vld [vmem:[%s18053_s2 + $0x280] sm:$0xff]  }
 0x1ba   : > { %v16248_v25 = vadd.f32 %v2893_v62, %v15994_v53  ;;  %v13903_v53 = vld [vmem:[%s18054_s3] sm:$0xf]  ;;  %12304 = vmatprep.mubr.msk.bf16.mxu1 %vm761_vm3, %v5600_v40  ;;  %v4471_v62 = vrot.slane %v13509_v35, 3  ;;  %v13905_v11 = vld [vmem:[%s14116_s25 + $0x288] ss:$0 sps:$4 sm:$0x77]   ;;  %7821 = vmatpush1.bf16.msra.mxu1 %v13513_v14 }
 0x1bb   : > { %v3564_v52 = vpop.f32.mrb[40].mxu1  ;;  %v16262_v51 = vrot.slane %v13903_v53, %v10675_v61  ;;  %5937 = vmatmul.mubr.bf16.gmra.mrb[144].mxu1 %v5597_v21  ;;  %v5306_v61 = vpop.permute.xlu1 %5305  ;;  %v16283_v40 = vld [vmem:[%s14116_s25 + $0x3cc] sm:$0xf8]   ;;  %6443 = vrot.lane.b32.xlu1 %v16275_v48, %s14004_s7  ;;  %v13527_v33 = vld [vmem:[%s14116_s25 + $0x5a8] ss:$0 sps:$4 sm:$0x77]  }
 0x1bc   : > { %v3691_v9 = vadd.f32 %v3564_v52, %v16125_v5  ;;  %v3566_v45 = vpop.f32.mrb[41].mxu1  ;;  %v4157_v5 = vpop.permute.xlu0 %4156  ;;  %v16279_v52 = vsel %vm761_vm3, %v13905_v11, %v4159_v49  ;;  %6441 = vrot.lane.b32.xlu0 %v16283_v40, %s14004_s7  ;;  %v13907_v11 = vld [vmem:[%s14116_s25 + $0x290] ss:$0 sps:$4 sm:$0x11]   ;;  %7822 = vmatprep.subr.bf16.mxu1 %v14003_v3 }
 0x1bd   : > { %v3567_v21 = vpop.f32.mrb[42].mxu1  ;;  %v2895_v53 = vpop.f32.mrb[67].mxu0  ;;  %v4474_v45 = vrot.slane %v16279_v52, 3  ;;  %v4346_v30 = vsel %vm761_vm3, %v13906_v6, %v4157_v5  ;;  %v13515_v52 = vld [vmem:[%s14116_s25 + $0x530] ss:$0 sps:$4 sm:$0x11]  }
 0x1be   : > { %v10690_v32 = vadd.f32 %v16262_v51, %v3691_v9  ;;  %v4472_v9 = vsel %vm4388_vm6, %v4470_v58, %v4471_v62  ;;  %v3692_v49 = vadd.f32 %v3567_v21, %v16150_v28  ;;  %v3569_v35 = vpop.f32.mrb[43].mxu1  ;;  %v13514_v62 = vld [vmem:[%s14116_s25 + $0x528] sm:$0xfe]   ;;  %v16308_v21 = vsel %vm761_vm3, %v13907_v11, %v5306_v61 }
 0x1bf   : > { %12055 = vmatprep.mubr.msk.bf16.mxu0 %vm761_vm3, %v4472_v9  ;;  %v2898_v58 = vpop.f32.mrb[68].mxu0  ;;  %v5605_v5 = vrot.slane %v13515_v52, 1  ;;  %v5620_v61 = vrot.slane %v16308_v21, 1  ;;  %v4163_v6 = vpop.permute.xlu1 %4162  ;;  %v13518_v52 = vld [vmem:[%s14116_s25 + $0x588] ss:$0 sps:$4 sm:$0x77]  }
 0x1c0   : > { %v10818_v57 = vmax.f32 %v10690_v32, 0.0  ;;  %4815 = vmatmul.mubr.bf16.gmra.mrb[172].mxu0 %v4469_v26  ;;  %v10694_v28 = vadd.f32 %v16262_v51, %v3692_v49  ;;  %v16303_v32 = vadd.f32 %v2898_v58, %v16008_v54  ;;  %v2900_v53 = vpop.f32.mrb[69].mxu0  ;;  %v5304_v9 = vpop.permute.xlu0 %5303  ;;  %v13516_v49 = vld [vmem:[%s14116_s25 + $0x3c0] sm:$0xff]   ;;  %v4473_v54 = vrot.slane %v4346_v30, 3 }
 0x1c1   : > { %v2901_v35 = vpop.f32.mrb[70].mxu0  ;;  %7475 = vrot.lane.b32.xlu0 %v13516_v49, %s14004_s7 }
 0x1c2   : > { %10946 = vst [vmem:[%s15422_s8 + $0x10] sm:$0xff] %v10818_v57  ;;  %v10822_v26 = vmax.f32 %v10694_v28, 0.0  ;;  %v5604_v57 = vrot.slane %v13514_v62, 1  ;;  %v16314_v58 = vadd.f32 %v2901_v35, %v16046_v16  ;;  %v18061_v28 = vrot.slane %v16162_v44, 1  ;;  %v13517_v16 = vld [vmem:[%s14116_s25 + $0x580] sm:$0xf8]  }
 0x1c3   : > { %v3572_v14 = vpop.f32.mrb[44].mxu1  ;;  %v13908_v35 = vld [vmem:[%s14116_s25 + $0x288] sm:$0xfe]   ;;  %v4476_v44 = vrot.slane %v13517_v16, 3 }
 0x1c4   : > { %10950 = vst [vmem:[%s15422_s8 + $0x38] sm:$0xff] %v10822_v26  ;;  %v5603_v62 = vsel %vm2550_vm5, %v18061_v28, %v5602_v31  ;;  %v3693_v30 = vadd.f32 %v3572_v14, %v16191_v46  ;;  %v5606_v11 = vsel %vm2550_vm5, %v5604_v57, %v5605_v5  ;;  %v3574_v53 = vpop.f32.mrb[45].mxu1  ;;  %v16331_v26 = vsel %vm761_vm3, %v13908_v35, %v5304_v9  ;;  %v16335_v31 = vld [vmem:[%s14116_s25 + $0x3ec] sm:$0xf8]  }
 0x1c5   : > { %12305 = vmatprep.mubr.msk.bf16.mxu1 %vm761_vm3, %v5606_v11  ;;  %v3575_v49 = vpop.f32.mrb[46].mxu1  ;;  %v13909_v28 = vld [vmem:[%s14116_s25 + $0x2a8] ss:$0 sps:$4 sm:$0x77]   ;;  %v4477_v57 = vrot.slane %v13518_v52, 3  ;;  %v4161_v11 = vpop.permute.xlu0 %4160  ;;  %v4475_v53 = vsel %vm4388_vm6, %v4473_v54, %v4474_v45  ;;  %6445 = vrot.lane.b32.xlu1 %v16335_v31, %s14004_s7 }
 0x1c6   : > { %v10698_v22 = vadd.f32 %v16262_v51, %v3693_v30  ;;  %v16339_v46 = vsel %vm761_vm3, %v13909_v28, %v4163_v6  ;;  %5945 = vmatmul.mubr.bf16.gmra.mrb[148].mxu1 %v5603_v62  ;;  %v16342_v5 = vld [vmem:[%s14116_s25 + $0x3f4] ss:$0 sps:$4 sm:$0x77]   ;;  %v3694_v14 = vadd.f32 %v3575_v49, %v16197_v42  ;;  %v2903_v30 = vpop.f32.mrb[71].mxu0  ;;  %v3577_v16 = vpop.f32.mrb[47].mxu1  ;;  %v13521_v6 = vld [vmem:[%s18053_s2 + $0x228] sm:$0xff]  }
 0x1c7   : > { %v5619_v62 = vrot.slane %v16331_v26, 1  ;;  %v4478_v52 = vsel %vm4388_vm6, %v4476_v44, %v4477_v57  ;;  %6447 = vrot.lane.b32.xlu0 %v16342_v5, %s14004_s7  ;;  %v4480_v45 = vrot.slane %v16339_v46, 3  ;;  %v2906_v54 = vpop.f32.mrb[72].mxu0  ;;  %v13524_v35 = vld [vmem:[%s18053_s2 + $0x288] sm:$0xff]   ;;  %6989 = vmatpush1.bf16.msra.mxu0 %v13521_v6  ;;  %v5310_v44 = vpop.permute.xlu1 %5309  ;;  %v13910_v28 = vld [vmem:[%s14116_s25 + $0x2a0] sm:$0xf8]  }
 0x1c8   : > { %v10826_v9 = vmax.f32 %v10698_v22, 0.0  ;;  %v10702_v42 = vadd.f32 %v16262_v51, %v3694_v14  ;;  %12056 = vmatprep.mubr.msk.bf16.mxu0 %vm761_vm3, %v4478_v52  ;;  %v16363_v22 = vadd.f32 %v2906_v54, %v16059_v29  ;;  %v4352_v46 = vsel %vm761_vm3, %v13910_v28, %v4161_v11  ;;  %v13522_v57 = vld [vmem:[%s14116_s25 + $0x548] sm:$0xfe]   ;;  %v13523_v14 = vld [vmem:[%s14116_s25 + $0x550] ss:$0 sps:$4 sm:$0x11]   ;;  %7823 = vmatpush1.bf16.msra.mxu1 %v13524_v35 }
 0x1c9   : > { %4823 = vmatmul.mubr.bf16.gmra.mrb[176].mxu0 %v4475_v53  ;;  %v13911_v30 = vld [vmem:[%s14116_s25 + $0x2b0] ss:$0 sps:$4 sm:$0x11]   ;;  %v13525_v52 = vld [vmem:[%s14116_s25 + $0x3e0] sm:$0xff]   ;;  %6990 = vmatprep.subr.bf16.mxu0 %v14003_v3  ;;  %v5610_v29 = vrot.slane %v13522_v57, 1  ;;  %v5611_v53 = vrot.slane %v13523_v14, 1  ;;  %v5308_v6 = vpop.permute.xlu0 %5307 }
 0x1ca   : > { %10954 = vst [vmem:[%s15422_s8 + $0x60] sm:$0xff] %v10826_v9  ;;  %v10830_v49 = vmax.f32 %v10702_v42, 0.0  ;;  %v16371_v16 = vsel %vm761_vm3, %v13911_v30, %v5310_v44  ;;  %v2908_v9 = vpop.f32.mrb[73].mxu0  ;;  %7824 = vmatprep.subr.bf16.mxu1 %v14003_v3  ;;  %v4479_v11 = vrot.slane %v4352_v46, 3  ;;  %v18062_v42 = vrot.slane %v16186_v17, 1  ;;  %7477 = vrot.lane.b32.xlu1 %v13525_v52, %s14004_s7 }
 0x1cb   : > { %v2909_v35 = vpop.f32.mrb[74].mxu0  ;;  %v3580_v28 = vpop.f32.mrb[48].mxu1  ;;  %v13526_v17 = vld [vmem:[%s14116_s25 + $0x5a0] sm:$0xf8]   ;;  %v4483_v52 = vrot.slane %v13527_v33, 3 }
 0x1cc   : > { %10958 = vst [vmem:[%s15422_s8 + $0x88] sm:$0xff] %v10830_v49  ;;  %v5609_v54 = vsel %vm2550_vm5, %v5607_v27, %v18062_v42  ;;  %v5612_v49 = vsel %vm2550_vm5, %v5610_v29, %v5611_v53  ;;  %v16386_v57 = vadd.f32 %v2909_v35, %v16083_v59  ;;  %v3695_v46 = vadd.f32 %v3580_v28, %v16241_v47  ;;  %v3582_v14 = vpop.f32.mrb[49].mxu1  ;;  %v16394_v9 = vld [vmem:[%s14116_s25 + $0x414] ss:$0 sps:$4 sm:$0x77]   ;;  %v6396_v35 = vpop.permute.xlu1 %6395 }
 0x1cd   : > { %12306 = vmatprep.mubr.msk.bf16.mxu1 %vm761_vm3, %v5612_v49  ;;  %v4482_v30 = vrot.slane %v13526_v17, 3  ;;  %v16397_v42 = vld [vmem:[%s14116_s25 + $0x40c] sm:$0xf8]   ;;  %v3583_v29 = vpop.f32.mrb[50].mxu1  ;;  %v4481_v47 = vsel %vm4388_vm6, %v4479_v11, %v4480_v45  ;;  %v6394_v28 = vpop.permute.xlu0 %6393  ;;  %7825 = vmatpush1.bf16.msra.mxu1 %v13538_v37 }
 0x1ce   : > { %5953 = vmatmul.mubr.bf16.gmra.mrb[152].mxu1 %v5609_v54  ;;  %v10706_v27 = vadd.f32 %v16262_v51, %v3695_v46  ;;  %6451 = vrot.lane.b32.xlu1 %v16394_v9, %s14004_s7  ;;  %v3696_v53 = vadd.f32 %v3583_v29, %v16248_v25  ;;  %v13530_v54 = vld [vmem:[%s18053_s2 + $0x230] sm:$0xff]   ;;  %v2911_v46 = vpop.f32.mrb[75].mxu0  ;;  %v3585_v45 = vpop.f32.mrb[51].mxu1  ;;  %v13543_v37 = vld [vmem:[%s14116_s25 + $0x588] sm:$0xfe]  }
 0x1cf   : > { %v4484_v49 = vsel %vm4388_vm6, %v4482_v30, %v4483_v52  ;;  %6449 = vrot.lane.b32.xlu0 %v16397_v42, %s14004_s7  ;;  %6991 = vmatpush1.bf16.msra.mxu0 %v13530_v54  ;;  %v13531_v11 = vld [vmem:[%s14116_s25 + $0xd4] ss:$0 sps:$4 sm:$0x77]   ;;  %v2914_v17 = vpop.f32.mrb[76].mxu0  ;;  %v13532_v33 = vld [vmem:[%s14116_s25 + $0xcc] sm:$0xf8]  }
 0x1d0   : > { %v10834_v59 = vmax.f32 %v10706_v27, 0.0  ;;  %12057 = vmatprep.mubr.msk.bf16.mxu0 %vm761_vm3, %v4484_v49  ;;  %v10710_v25 = vadd.f32 %v16262_v51, %v3696_v53  ;;  %v16415_v14 = vadd.f32 %v2914_v17, %v16097_v63  ;;  %6992 = vmatprep.subr.bf16.mxu0 %v14003_v3  ;;  %v6558_v30 = vsel %vm761_vm3, %v13531_v11, %v6396_v35  ;;  %v13533_v52 = vld [vmem:[%s14116_s25 + $0x568] sm:$0xfe]   ;;  %v2916_v29 = vpop.f32.mrb[77].mxu0  ;;  %v13535_v63 = vld [vmem:[%s14116_s25 + $0x400] sm:$0xff]   ;;  %v13536_v35 = vld [vmem:[%s18053_s2 + $0x238] sm:$0xff]  }
 0x1d1   : > { %4831 = vmatmul.mubr.bf16.gmra.mrb[180].mxu0 %v4481_v47  ;;  %v6682_v54 = vrot.slane %v6558_v30, 3  ;;  %v6555_v49 = vsel %vm761_vm3, %v13532_v33, %v6394_v28  ;;  %v13534_v47 = vld [vmem:[%s14116_s25 + $0x570] ss:$0 sps:$4 sm:$0x11]   ;;  %v5616_v45 = vrot.slane %v13533_v52, 1  ;;  %v2917_v17 = vpop.f32.mrb[78].mxu0  ;;  %v16434_v11 = vpop.permute.xlu0 %7451  ;;  %v5615_v28 = vsel %vm2550_vm5, %v5613_v0, %v5614_v50  ;;  %7826 = vmatprep.subr.bf16.mxu1 %v14003_v3 }
 0x1d2   : > { %10962 = vst [vmem:[%s15422_s8 + $0xb0] sm:$0xff] %v10834_v59  ;;  %v10838_v27 = vmax.f32 %v10710_v25, 0.0  ;;  %v13912_v59 = vld [vmem:[%s14116_s25 + $0x2a8] sm:$0xfe]   ;;  %v6681_v46 = vrot.slane %v6555_v49, 3  ;;  %v5617_v44 = vrot.slane %v13534_v47, 1  ;;  %v16429_v25 = vadd.f32 %v2917_v17, %v16110_v18  ;;  %v6398_v18 = vpop.permute.xlu1 %6397 }
 0x1d3   : > { %v16422_v53 = vsel %vm761_vm3, %v13912_v59, %v5308_v6  ;;  %7479 = vrot.lane.b32.xlu0 %v13535_v63, %s14004_s7  ;;  %v3588_v33 = vpop.f32.mrb[52].mxu1  ;;  %6993 = vmatpush1.bf16.msra.mxu0 %v13536_v35  ;;  %v6684_v52 = vrot.slane %v16283_v40, 3  ;;  %v6685_v29 = vrot.slane %v16275_v48, 3  ;;  %v16456_v40 = vld [vmem:[%s14116_s25 + $0x42c] sm:$0xf8]  }
 0x1d4   : > { %10966 = vst [vmem:[%s15422_s8 + $0xd8] sm:$0xff] %v10838_v27  ;;  %v5625_v6 = vrot.slane %v16422_v53, 1  ;;  %v5618_v27 = vsel %vm2550_vm5, %v5616_v45, %v5617_v44  ;;  %v3697_v30 = vadd.f32 %v3588_v33, %v16303_v32  ;;  %v3590_v50 = vpop.f32.mrb[53].mxu1  ;;  %v6683_v23 = vsel %vm4388_vm6, %v6681_v46, %v6682_v54  ;;  %9038 = vmatprep.subr.bf16.mxu0 %v14003_v3  ;;  %v2919_v44 = vpop.f32.mrb[79].mxu0  ;;  %v13541_v46 = vld [vmem:[%s14116_s25 + $0xec] sm:$0xf8]  }
 0x1d5   : > { %12307 = vmatprep.mubr.msk.bf16.mxu1 %vm761_vm3, %v5618_v27  ;;  %v6686_v32 = vsel %vm4388_vm6, %v6684_v52, %v6685_v29  ;;  %v3591_v48 = vpop.f32.mrb[54].mxu1  ;;  %v16460_v59 = vld [vmem:[%s14116_s25 + $0x434] ss:$0 sps:$4 sm:$0x77]   ;;  %6453 = vrot.lane.b32.xlu1 %v16456_v40, %s14004_s7  ;;  %v6400_v45 = vpop.permute.xlu0 %6399  ;;  %v6561_v27 = vsel %vm761_vm3, %v13541_v46, %v6398_v18  ;;  %v6690_v44 = vrot.slane %v16335_v31, 3 }
 0x1d6   : > { %5961 = vmatmul.mubr.bf16.gmra.mrb[156].mxu1 %v5615_v28  ;;  %v10714_v0 = vadd.f32 %v16262_v51, %v3697_v30  ;;  %12546 = vmatprep.mubr.msk.bf16.mxu0 %vm761_vm3, %v6686_v32  ;;  %v3698_v54 = vadd.f32 %v3591_v48, %v16314_v58  ;;  %v3593_v49 = vpop.f32.mrb[55].mxu1  ;;  %v13542_v35 = vld [vmem:[%s14116_s25 + $0xf4] ss:$0 sps:$4 sm:$0x77]   ;;  %v16473_v33 = vpop.permute.xlu1 %7453  ;;  %v6687_v52 = vrot.slane %v6561_v27, 3 }
 0x1d7   : > { %v2922_v63 = vpop.f32.mrb[80].mxu0  ;;  %6455 = vrot.lane.b32.xlu0 %v16460_v59, %s14004_s7  ;;  %v6564_v29 = vsel %vm761_vm3, %v13542_v35, %v6400_v45 }
 0x1d8   : > { %v10842_v47 = vmax.f32 %v10714_v0, 0.0  ;;  %v10718_v17 = vadd.f32 %v16262_v51, %v3698_v54  ;;  %v16471_v58 = vadd.f32 %v2922_v63, %v15810_v8  ;;  %v2924_v28 = vpop.f32.mrb[81].mxu0  ;;  %v6688_v50 = vrot.slane %v6564_v29, 3  ;;  %v13545_v8 = vld [vmem:[%s14116_s25 + $0x420] sm:$0xff]  }
 0x1d9   : > { %7003 = vmatmul.mubr.bf16.vlgmr.msra.gmra.mrb[184].mxu0 %v6683_v23  ;;  %v13544_v23 = vld [vmem:[%s14116_s25 + $0x590] ss:$0 sps:$4 sm:$0x11]   ;;  %v5622_v0 = vrot.slane %v13543_v37, 1  ;;  %v2925_v32 = vpop.f32.mrb[82].mxu0  ;;  %v6691_v54 = vrot.slane %v16342_v5, 3  ;;  %v5621_v63 = vsel %vm2550_vm5, %v5619_v62, %v5620_v61  ;;  %7481 = vrot.lane.b32.xlu1 %v13545_v8, %s14004_s7  ;;  %v6402_v27 = vpop.permute.xlu0 %6401 }
 0x1da   : > { %10970 = vst [vmem:[%s15422_s8 + $0x100] sm:$0xff] %v10842_v47  ;;  %v10846_v30 = vmax.f32 %v10718_v17, 0.0  ;;  %v5623_v49 = vrot.slane %v13544_v23, 1  ;;  %v16486_v18 = vadd.f32 %v2925_v32, %v15826_v20  ;;  %v6689_v45 = vsel %vm4388_vm6, %v6687_v52, %v6688_v50  ;;  %v13546_v5 = vld [vmem:[%s14116_s25 + $0x250] ss:$0 sps:$4 sm:$0x11]   ;;  %v6404_v35 = vpop.permute.xlu1 %6403 }
 0x1db   : > { %v3596_v48 = vpop.f32.mrb[56].mxu1  ;;  %v6692_v31 = vsel %vm4388_vm6, %v6690_v44, %v6691_v54  ;;  %v13547_v28 = vld [vmem:[%s14116_s25 + $0x248] sm:$0xfe]   ;;  %v2927_v26 = vpop.f32.mrb[83].mxu0  ;;  %v13548_v62 = vld [vmem:[%s18053_s2 + $0x298] sm:$0xff]  }
 0x1dc   : > { %10974 = vst [vmem:[%s15422_s8 + $0x128] sm:$0xff] %v10846_v30  ;;  %v3699_v47 = vadd.f32 %v3596_v48, %v16363_v22  ;;  %v3598_v46 = vpop.f32.mrb[57].mxu1  ;;  %v5624_v20 = vsel %vm2550_vm5, %v5622_v0, %v5623_v49  ;;  %12547 = vmatprep.mubr.msk.bf16.mxu0 %vm761_vm3, %v6692_v31  ;;  %8429 = vrot.lane.b32.xlu0 %v13547_v28, %s14004_s7  ;;  %v13549_v29 = vld [vmem:[%s14116_s25 + $0x114] ss:$0 sps:$4 sm:$0x77]   ;;  %v18063_v31 = vrot.slane %v16371_v16, 1 }
 0x1dd   : > { %v3599_v17 = vpop.f32.mrb[58].mxu1  ;;  %12308 = vmatprep.mubr.msk.bf16.mxu1 %vm761_vm3, %v5624_v20  ;;  %8431 = vrot.lane.b32.xlu1 %v13546_v5, %s14004_s7  ;;  %v13550_v50 = vld [vmem:[%s14116_s25 + $0x10c] sm:$0xf8]   ;;  %v6570_v0 = vsel %vm761_vm3, %v13549_v29, %v6404_v35  ;;  %v13553_v49 = vld [vmem:[%s14116_s25 + $0x258] ss:$0 sps:$4 sm:$0x33]  }
 0x1de   : > { %v10722_v22 = vadd.f32 %v16262_v51, %v3699_v47  ;;  %v3700_v21 = vadd.f32 %v3599_v17, %v16386_v57  ;;  %v3601_v61 = vpop.f32.mrb[59].mxu1  ;;  %5969 = vmatmul.mubr.bf16.gmra.mrb[160].mxu1 %v5621_v63  ;;  %v6694_v32 = vrot.slane %v6570_v0, 3  ;;  %v6567_v48 = vsel %vm761_vm3, %v13550_v50, %v6402_v27  ;;  %v13551_v44 = vld [vmem:[%s14116_s25 + $0x5a8] sm:$0xfe]   ;;  %v6406_v63 = vpop.permute.xlu1 %6405  ;;  %v13554_v17 = vld [vmem:[%s14116_s25 + $0x250] sm:$0xfc]  }
 0x1df   : > { %v2930_v30 = vpop.f32.mrb[84].mxu0  ;;  %7827 = vmatpush1.bf16.msra.mxu1 %v13548_v62  ;;  %v13552_v54 = vld [vmem:[%s14116_s25 + $0x5b0] ss:$0 sps:$4 sm:$0x11]   ;;  %v5628_v47 = vrot.slane %v13551_v44, 1  ;;  %v5627_v5 = vsel %vm2550_vm5, %v5625_v6, %v18063_v31  ;;  %v6697_v28 = vrot.slane %v16394_v9, 3 }
 0x1e0   : > { %v10850_v52 = vmax.f32 %v10722_v22, 0.0  ;;  %v10726_v57 = vadd.f32 %v16262_v51, %v3700_v21  ;;  %v16511_v37 = vadd.f32 %v2930_v30, %v15855_v12  ;;  %v2932_v8 = vpop.f32.mrb[85].mxu0  ;;  %10272 = vmatprep.subr.bf16.mxu1 %v14003_v3  ;;  %v6693_v12 = vrot.slane %v6567_v48, 3  ;;  %v13555_v61 = vld [vmem:[%s14116_s25 + $0x270] ss:$0 sps:$4 sm:$0x11]   ;;  %9663 = vrot.lane.b32.xlu0 %v13554_v17, %s14004_s7 }
 0x1e1   : > { %7011 = vmatmul.mubr.bf16.gmra.mrb[188].mxu0 %v6689_v45  ;;  %v5629_v46 = vrot.slane %v13552_v54, 1  ;;  %v16523_v45 = vpop.permute.xlu0 %7455  ;;  %9665 = vrot.lane.b32.xlu1 %v13553_v49, %s14004_s7  ;;  %v2933_v35 = vpop.f32.mrb[86].mxu0  ;;  %v6696_v22 = vrot.slane %v16397_v42, 3  ;;  %v13537_v62 = vld [vmem:[%s14116_s25] sm:$0xff]   ;;  %v13556_v9 = vld [vmem:[%s14116_s25 + $0x268] sm:$0xfe]  }
 0x1e2   : > { %10978 = vst [vmem:[%s15422_s8 + $0x150] sm:$0xff] %v10850_v52  ;;  %v10854_v23 = vmax.f32 %v10726_v57, 0.0  ;;  %v16536_v26 = vadd.f32 %v2933_v35, %v15864_v1  ;;  %v6695_v6 = vsel %vm4388_vm6, %v6693_v12, %v6694_v32  ;;  %v13557_v57 = vld [vmem:[%s18053_s2 + $0x2a0] sm:$0xff]   ;;  %v13558_v50 = vld [vmem:[%s14116_s25 + $0x12c] sm:$0xf8]   ;;  %v16561_v44 = vpop.permute.xlu1 %7457 }
 0x1e3   : > { %v3604_v20 = vpop.f32.mrb[60].mxu1  ;;  %v5630_v21 = vsel %vm2550_vm5, %v5628_v47, %v5629_v46  ;;  %v6698_v42 = vsel %vm4388_vm6, %v6696_v22, %v6697_v28  ;;  %9039 = vmatpush1.bf16.msra.mxu0 %v13557_v57  ;;  %v13559_v32 = vld [vmem:[%s14116_s25 + $0x134] ss:$0 sps:$4 sm:$0x77]   ;;  %v6573_v54 = vsel %vm761_vm3, %v13558_v50, %v6406_v63  ;;  %v13561_v49 = vld [vmem:[%s18053_s2 + $0x300] sm:$0xff]   ;;  %v7565_v47 = vsel %vm761_vm3, %v13537_v62, %v16434_v11 }
 0x1e4   : > { %10982 = vst [vmem:[%s15422_s8 + $0x178] sm:$0xff] %v10854_v23  ;;  %v3701_v16 = vadd.f32 %v3604_v20, %v16415_v14  ;;  %v3606_v53 = vpop.f32.mrb[61].mxu1  ;;  %12309 = vmatprep.mubr.msk.bf16.mxu1 %vm761_vm3, %v5630_v21  ;;  %12548 = vmatprep.mubr.msk.bf16.mxu0 %vm761_vm3, %v6698_v42  ;;  %v2935_v14 = vpop.f32.mrb[87].mxu0  ;;  %v13562_v17 = vld [vmem:[%s14116_s25 + $0x278] ss:$0 sps:$4 sm:$0x33]  }
 0x1e5   : > { %v3607_v1 = vpop.f32.mrb[62].mxu1  ;;  %8435 = vrot.lane.b32.xlu1 %v13555_v61, %s14004_s7  ;;  %v6408_v23 = vpop.permute.xlu0 %6407  ;;  %8433 = vrot.lane.b32.xlu0 %v13556_v9, %s14004_s7  ;;  %v13563_v63 = vld [vmem:[%s14116_s25 + $0x270] sm:$0xfc]   ;;  %v6702_v28 = vrot.slane %v16456_v40, 3  ;;  %v6703_v21 = vrot.slane %v16460_v59, 3 }
 0x1e6   : > { %5977 = vmatmul.mubr.bf16.gmra.mrb[164].mxu1 %v5627_v5  ;;  %v10730_v27 = vadd.f32 %v16262_v51, %v3701_v16  ;;  %v3702_v30 = vadd.f32 %v3607_v1, %v16429_v25  ;;  %v3609_v52 = vpop.f32.mrb[63].mxu1  ;;  %v13560_v25 = vld [vmem:[%s14116_s25 + $0x480] sm:$0xff]   ;;  %9040 = vmatprep.subr.bf16.mxu0 %v14003_v3  ;;  %v6576_v31 = vsel %vm761_vm3, %v13559_v32, %v6408_v23  ;;  %v13564_v61 = vld [vmem:[%s14116_s25 + $0x290] ss:$0 sps:$4 sm:$0x11]   ;;  %v6412_v42 = vpop.permute.xlu1 %6411 }
 0x1e7   : > { %v2938_v0 = vpop.f32.mrb[88].mxu0  ;;  %12646 = vmatprep.mubr.msk.bf16.mxu1 %vm761_vm3, %v13560_v25  ;;  %v6700_v5 = vrot.slane %v6576_v31, 3  ;;  %v13565_v9 = vld [vmem:[%s14116_s25 + $0x288] sm:$0xfe]   ;;  %v13569_v32 = vld [vmem:[%s14116_s25 + $0x20] sm:$0xff]  }
 0x1e8   : > { %v10858_v29 = vmax.f32 %v10730_v27, 0.0  ;;  %v10734_v8 = vadd.f32 %v16262_v51, %v3702_v30  ;;  %v16558_v48 = vadd.f32 %v2938_v0, %v15897_v24  ;;  %v2940_v12 = vpop.f32.mrb[89].mxu0  ;;  %v6699_v24 = vrot.slane %v6573_v54, 3  ;;  %v13566_v1 = vld [vmem:[%s14116_s25 + $0x154] ss:$0 sps:$4 sm:$0x77]  }
 0x1e9   : > { %7019 = vmatmul.mubr.bf16.gmra.mrb[192].mxu0 %v6695_v6  ;;  %v2941_v35 = vpop.f32.mrb[90].mxu0  ;;  %9669 = vrot.lane.b32.xlu1 %v13562_v17, %s14004_s7  ;;  %v13568_v30 = vld [vmem:[%s14116_s25 + $0x4a0] sm:$0xff]   ;;  %v6410_v57 = vpop.permute.xlu0 %6409  ;;  %v6582_v50 = vsel %vm761_vm3, %v13566_v1, %v6412_v42  ;;  %v13567_v23 = vld [vmem:[%s14116_s25 + $0x14c] sm:$0xf8]  }
 0x1ea   : > { %10986 = vst [vmem:[%s15422_s8 + $0x1a0] sm:$0xff] %v10858_v29  ;;  %v10862_v46 = vmax.f32 %v10734_v8, 0.0  ;;  %v16578_v22 = vadd.f32 %v2941_v35, %v15905_v55  ;;  %v2943_v53 = vpop.f32.mrb[91].mxu0  ;;  %9667 = vrot.lane.b32.xlu0 %v13563_v63, %s14004_s7  ;;  %v6701_v6 = vsel %vm4388_vm6, %v6699_v24, %v6700_v5  ;;  %v6706_v0 = vrot.slane %v6582_v50, 3  ;;  %v13572_v24 = vld [vmem:[%s18053_s2 + $0x2a8] sm:$0xff]   ;;  %v13580_v42 = vld [vmem:[%s14116_s25 + $0x4c0] sm:$0xff]  }
 0x1eb   : > { %v3612_v20 = vpop.f32.mrb[64].mxu1  ;;  %v6579_v8 = vsel %vm761_vm3, %v13567_v23, %v6410_v57  ;;  %v13570_v25 = vld [vmem:[%s14116_s25 + $0x298] ss:$0 sps:$4 sm:$0x33]   ;;  %v13573_v17 = vld [vmem:[%s14116_s25 + $0x44c] sm:$0xf8]   ;;  %9041 = vmatpush1.bf16.msra.mxu0 %v13572_v24 }
 0x1ec   : > { %10990 = vst [vmem:[%s15422_s8 + $0x1c8] sm:$0xff] %v10862_v46  ;;  %v3703_v11 = vadd.f32 %v3612_v20, %v16471_v58  ;;  %v3614_v16 = vpop.f32.mrb[65].mxu1  ;;  %v6704_v58 = vsel %vm4388_vm6, %v6702_v28, %v6703_v21  ;;  %v6705_v54 = vrot.slane %v6579_v8, 3  ;;  %v13574_v63 = vld [vmem:[%s14116_s25 + $0x454] ss:$0 sps:$4 sm:$0x77]   ;;  %9042 = vmatprep.subr.bf16.mxu0 %v14003_v3 }
 0x1ed   : > { %v3615_v62 = vpop.f32.mrb[66].mxu1  ;;  %12549 = vmatprep.mubr.msk.bf16.mxu0 %vm761_vm3, %v6704_v58  ;;  %8439 = vrot.lane.b32.xlu1 %v13564_v61, %s14004_s7  ;;  %v16619_v5 = vpop.permute.xlu0 %7459  ;;  %v6708_v20 = vrot.slane %v13573_v17, 3  ;;  %v6709_v28 = vrot.slane %v13574_v63, 3  ;;  %v13576_v21 = vld [vmem:[%s14116_s25 + $0x2b0] ss:$0 sps:$4 sm:$0x11]  }
 0x1ee   : > { %7837 = vmatmul.mubr.bf16.vlgmr.msra.gmra.mrb[168].mxu1 %v7565_v47  ;;  %v10738_v55 = vadd.f32 %v16262_v51, %v3703_v11  ;;  %v3704_v40 = vadd.f32 %v3615_v62, %v16486_v18  ;;  %v3617_v59 = vpop.f32.mrb[67].mxu1  ;;  %8437 = vrot.lane.b32.xlu0 %v13565_v9, %s14004_s7  ;;  %v13571_v47 = vld [vmem:[%s14116_s25 + $0x290] sm:$0xfc]   ;;  %v6414_v16 = vpop.permute.xlu1 %6413  ;;  %v6707_v53 = vsel %vm4388_vm6, %v6705_v54, %v6706_v0  ;;  %v13581_v57 = vld [vmem:[%s14116_s25 + $0x40] sm:$0xff]  }
 0x1ef   : > { %10273 = vmatpush1.bf16.msra.mxu1 %v13561_v49  ;;  %v2946_v27 = vpop.f32.mrb[92].mxu0  ;;  %12647 = vmatprep.mubr.msk.bf16.mxu1 %vm761_vm3, %v13568_v30  ;;  %v7569_v49 = vsel %vm761_vm3, %v13569_v32, %v16473_v33  ;;  %v13578_v59 = vld [vmem:[%s14116_s25 + $0x16c] sm:$0xf8]   ;;  %v7573_v8 = vsel %vm761_vm3, %v13581_v57, %v16523_v45  ;;  %v13582_v32 = vld [vmem:[%s14116_s25 + $0x2b8] ss:$0 sps:$4 sm:$0x33]  }
 0x1f0   : > { %10274 = vmatprep.subr.bf16.mxu1 %v14003_v3  ;;  %v16594_v14 = vadd.f32 %v2946_v27, %v15927_v15  ;;  %v10866_v52 = vmax.f32 %v10738_v55, 0.0  ;;  %v10742_v18 = vadd.f32 %v16262_v51, %v3704_v40  ;;  %v2948_v29 = vpop.f32.mrb[93].mxu0  ;;  %v6710_v55 = vsel %vm4388_vm6, %v6708_v20, %v6709_v28  ;;  %v13583_v54 = vld [vmem:[%s14116_s25 + $0x2b0] sm:$0xfc]  }
 0x1f1   : > { %7027 = vmatmul.mubr.bf16.gmra.mrb[196].mxu0 %v6701_v6  ;;  %v2949_v12 = vpop.f32.mrb[94].mxu0  ;;  %9673 = vrot.lane.b32.xlu1 %v13570_v25, %s14004_s7  ;;  %v13577_v6 = vld [vmem:[%s14116_s25 + $0x2a8] sm:$0xfe]   ;;  %v6416_v27 = vpop.permute.xlu0 %6415  ;;  %v13585_v45 = vld [vmem:[%s14116_s25 + $0x474] ss:$0 sps:$4 sm:$0x77]  }
 0x1f2   : > { %10994 = vst [vmem:[%s15422_s8 + $0x1f0] sm:$0xff] %v10866_v52  ;;  %v10870_v15 = vmax.f32 %v10742_v18, 0.0  ;;  %v16613_v46 = vadd.f32 %v2949_v12, %v15931_v4  ;;  %9671 = vrot.lane.b32.xlu0 %v13571_v47, %s14004_s7  ;;  %v13575_v4 = vld [vmem:[%s18053_s2 + $0x308] sm:$0xff]   ;;  %v2951_v62 = vpop.f32.mrb[95].mxu0  ;;  %12550 = vmatprep.mubr.msk.bf16.mxu0 %vm761_vm3, %v6710_v55  ;;  %v6585_v18 = vsel %vm761_vm3, %v13578_v59, %v6414_v16  ;;  %v16656_v25 = vpop.permute.xlu1 %7461  ;;  %v6715_v63 = vrot.slane %v13585_v45, 3 }
 0x1f3   : > { %v3620_v31 = vpop.f32.mrb[68].mxu1  ;;  %10275 = vmatpush1.bf16.msra.mxu1 %v13575_v4  ;;  %v13579_v52 = vld [vmem:[%s14116_s25 + $0x174] ss:$0 sps:$4 sm:$0x77]   ;;  %v6711_v23 = vrot.slane %v6585_v18, 3 }
 0x1f4   : > { %10998 = vst [vmem:[%s15422_s8 + $0x218] sm:$0xff] %v10870_v15  ;;  %v3705_v33 = vadd.f32 %v3620_v31, %v16511_v37  ;;  %v3622_v11 = vpop.f32.mrb[69].mxu1  ;;  %10276 = vmatprep.subr.bf16.mxu1 %v14003_v3  ;;  %v13584_v47 = vld [vmem:[%s14116_s25 + $0x46c] sm:$0xf8]  }
 0x1f5   : > { %v3623_v61 = vpop.f32.mrb[70].mxu1  ;;  %8443 = vrot.lane.b32.xlu1 %v13576_v21, %s14004_s7  ;;  %v13587_v4 = vld [vmem:[%s14116_s25 + $0x2d0] ss:$0 sps:$4 sm:$0x11]   ;;  %v13588_v11 = vld [vmem:[%s14116_s25 + $0x2c8] sm:$0xfe]  }
 0x1f6   : > { %7845 = vmatmul.mubr.bf16.gmra.mrb[172].mxu1 %v7569_v49  ;;  %v10746_v35 = vadd.f32 %v16262_v51, %v3705_v33  ;;  %v3706_v58 = vadd.f32 %v3623_v61, %v16536_v26  ;;  %v3625_v9 = vpop.f32.mrb[71].mxu1  ;;  %8441 = vrot.lane.b32.xlu0 %v13577_v6, %s14004_s7  ;;  %v13586_v49 = vld [vmem:[%s18053_s2 + $0x2b0] sm:$0xff]   ;;  %v6714_v33 = vrot.slane %v13584_v47, 3  ;;  %v6420_v21 = vpop.permute.xlu1 %6419 }
 0x1f7   : > { %v2954_v40 = vpop.f32.mrb[96].mxu0  ;;  %12648 = vmatprep.mubr.msk.bf16.mxu1 %vm761_vm3, %v13580_v42  ;;  %9043 = vmatpush1.bf16.msra.mxu0 %v13586_v49  ;;  %v13589_v6 = vld [vmem:[%s18053_s2 + $0x310] sm:$0xff]  }
 0x1f8   : > { %v10874_v37 = vmax.f32 %v10746_v35, 0.0  ;;  %v16642_v1 = vadd.f32 %v2954_v40, %v15944_v13  ;;  %v10750_v30 = vadd.f32 %v16262_v51, %v3706_v58  ;;  %v2956_v26 = vpop.f32.mrb[97].mxu0  ;;  %v6588_v13 = vsel %vm761_vm3, %v13579_v52, %v6416_v27  ;;  %9044 = vmatprep.subr.bf16.mxu0 %v14003_v3  ;;  %v13590_v61 = vld [vmem:[%s14116_s25 + $0x194] ss:$0 sps:$4 sm:$0x77]   ;;  %10277 = vmatpush1.bf16.msra.mxu1 %v13589_v6  ;;  %v13592_v58 = vld [vmem:[%s14116_s25 + $0x4e0] sm:$0xff]  }
 0x1f9   : > { %7035 = vmatmul.mubr.bf16.gmra.mrb[200].mxu0 %v6707_v53  ;;  %v2957_v29 = vpop.f32.mrb[98].mxu0  ;;  %v6712_v0 = vrot.slane %v6588_v13, 3  ;;  %9677 = vrot.lane.b32.xlu1 %v13582_v32, %s14004_s7  ;;  %v6716_v16 = vsel %vm4388_vm6, %v6714_v33, %v6715_v63  ;;  %v6594_v9 = vsel %vm761_vm3, %v13590_v61, %v6420_v21  ;;  %v13591_v40 = vld [vmem:[%s14116_s25 + $0x18c] sm:$0xf8]   ;;  %v13593_v26 = vld [vmem:[%s14116_s25 + $0x60] sm:$0xff]  }
 0x1fa   : > { %11002 = vst [vmem:[%s15422_s8 + $0x240] sm:$0xff] %v10874_v37  ;;  %v10878_v50 = vmax.f32 %v10750_v30, 0.0  ;;  %v16651_v15 = vadd.f32 %v2957_v29, %v15959_v2  ;;  %9675 = vrot.lane.b32.xlu0 %v13583_v54, %s14004_s7  ;;  %v2959_v28 = vpop.f32.mrb[99].mxu0  ;;  %12551 = vmatprep.mubr.msk.bf16.mxu0 %vm761_vm3, %v6716_v16  ;;  %v6718_v27 = vrot.slane %v6594_v9, 3  ;;  %v13596_v54 = vld [vmem:[%s14116_s25 + $0x48c] sm:$0xf8]  }
 0x1fb   : > { %v3628_v12 = vpop.f32.mrb[72].mxu1  ;;  %10278 = vmatprep.subr.bf16.mxu1 %v14003_v3  ;;  %v6720_v47 = vrot.slane %v13596_v54, 3  ;;  %v13598_v45 = vld [vmem:[%s14116_s25 + $0x2f0] ss:$0 sps:$4 sm:$0x11]   ;;  %v13603_v16 = vld [vmem:[%s14116_s25 + $0x500] sm:$0xff]  }
 0x1fc   : > { %11006 = vst [vmem:[%s15422_s8 + $0x268] sm:$0xff] %v10878_v50  ;;  %v3707_v2 = vadd.f32 %v3628_v12, %v16558_v48  ;;  %v3630_v24 = vpop.f32.mrb[73].mxu1  ;;  %v6713_v48 = vsel %vm4388_vm6, %v6711_v23, %v6712_v0  ;;  %v7577_v50 = vsel %vm761_vm3, %v13593_v26, %v16561_v44  ;;  %v13595_v23 = vld [vmem:[%s14116_s25 + $0x2d0] sm:$0xfc]   ;;  %v13605_v9 = vld [vmem:[%s18053_s2 + $0x318] sm:$0xff]  }
 0x1fd   : > { %v3631_v17 = vpop.f32.mrb[74].mxu1  ;;  %8447 = vrot.lane.b32.xlu1 %v13587_v4, %s14004_s7  ;;  %v13597_v12 = vld [vmem:[%s14116_s25 + $0x494] ss:$0 sps:$4 sm:$0x77]   ;;  %v13601_v28 = vld [vmem:[%s14116_s25 + $0x1ac] sm:$0xf8]   ;;  %10279 = vmatpush1.bf16.msra.mxu1 %v13605_v9 }
 0x1fe   : > { %7853 = vmatmul.mubr.bf16.gmra.mrb[176].mxu1 %v7573_v8  ;;  %v10754_v31 = vadd.f32 %v16262_v51, %v3707_v2  ;;  %v3708_v35 = vadd.f32 %v3631_v17, %v16578_v22  ;;  %v3633_v53 = vpop.f32.mrb[75].mxu1  ;;  %v6418_v22 = vpop.permute.xlu0 %6417  ;;  %8445 = vrot.lane.b32.xlu0 %v13588_v11, %s14004_s7  ;;  %v6721_v24 = vrot.slane %v13597_v12, 3  ;;  %v13602_v21 = vld [vmem:[%s14116_s25 + $0x1b4] ss:$0 sps:$4 sm:$0x77]   ;;  %v13621_v9 = vld [vmem:[%s18053_s2 + $0x320] sm:$0xff]  }
 0x1ff   : > { %v2962_v62 = vpop.f32.mrb[100].mxu0  ;;  %v6422_v59 = vpop.permute.xlu1 %6421  ;;  %12649 = vmatprep.mubr.msk.bf16.mxu1 %vm761_vm3, %v13592_v58  ;;  %v6591_v52 = vsel %vm761_vm3, %v13591_v40, %v6418_v22  ;;  %10280 = vmatprep.subr.bf16.mxu1 %v14003_v3  ;;  %v13611_v12 = vld [vmem:[%s14116_s25 + $0x308] sm:$0xfe]  }
 0x200   : > { %v10882_v20 = vmax.f32 %v10754_v31, 0.0  ;;  %v10758_v37 = vadd.f32 %v16262_v51, %v3708_v35  ;;  %v16685_v55 = vadd.f32 %v2962_v62, %v15985_v19  ;;  %v2964_v30 = vpop.f32.mrb[101].mxu0  ;;  %v13594_v19 = vld [vmem:[%s14116_s25 + $0x2d8] ss:$0 sps:$4 sm:$0x33]   ;;  %v6717_v18 = vrot.slane %v6591_v52, 3 }
 0x201   : > { %7043 = vmatmul.mubr.bf16.gmra.mrb[204].mxu0 %v6713_v48  ;;  %v2965_v57 = vpop.f32.mrb[102].mxu0  ;;  %9681 = vrot.lane.b32.xlu1 %v13594_v19, %s14004_s7  ;;  %v6722_v4 = vsel %vm4388_vm6, %v6720_v47, %v6721_v24  ;;  %v13600_v35 = vld [vmem:[%s18053_s2 + $0x2b8] sm:$0xff]   ;;  %v6597_v6 = vsel %vm761_vm3, %v13601_v28, %v6422_v59  ;;  %v13607_v52 = vld [vmem:[%s14116_s25 + $0x2f0] sm:$0xfc]   ;;  %v13615_v28 = vld [vmem:[%s14116_s25 + $0xa0] sm:$0xff]  }
 0x202   : > { %11010 = vst [vmem:[%s15422_s8 + $0x290] sm:$0xff] %v10882_v20  ;;  %v10886_v42 = vmax.f32 %v10758_v37, 0.0  ;;  %v16696_v29 = vpop.permute.xlu0 %7463  ;;  %v16703_v13 = vadd.f32 %v2965_v57, %v15996_v41  ;;  %v2967_v8 = vpop.f32.mrb[103].mxu0  ;;  %9679 = vrot.lane.b32.xlu0 %v13595_v23, %s14004_s7  ;;  %v13599_v41 = vld [vmem:[%s14116_s25 + $0x2e8] sm:$0xfe]   ;;  %12552 = vmatprep.mubr.msk.bf16.mxu0 %vm761_vm3, %v6722_v4  ;;  %v6723_v61 = vrot.slane %v6597_v6, 3 }
 0x203   : > { %v3636_v0 = vpop.f32.mrb[76].mxu1  ;;  %v16709_v2 = vpop.permute.xlu1 %7465  ;;  %9045 = vmatpush1.bf16.msra.mxu0 %v13600_v35  ;;  %v13606_v59 = vld [vmem:[%s14116_s25 + $0x2f8] ss:$0 sps:$4 sm:$0x33]   ;;  %v13614_v4 = vld [vmem:[%s14116_s25 + $0x520] sm:$0xff]   ;;  %10281 = vmatpush1.bf16.msra.mxu1 %v13621_v9 }
 0x204   : > { %11014 = vst [vmem:[%s15422_s8 + $0x2b8] sm:$0xff] %v10886_v42  ;;  %v3709_v32 = vadd.f32 %v3636_v0, %v16594_v14  ;;  %v3638_v49 = vpop.f32.mrb[77].mxu1  ;;  %v6719_v14 = vsel %vm4388_vm6, %v6717_v18, %v6718_v27  ;;  %v13604_v42 = vld [vmem:[%s14116_s25 + $0x80] sm:$0xff]   ;;  %9046 = vmatprep.subr.bf16.mxu0 %v14003_v3  ;;  %v13610_v8 = vld [vmem:[%s14116_s25 + $0x310] ss:$0 sps:$4 sm:$0x11]   ;;  %10282 = vmatprep.subr.bf16.mxu1 %v14003_v3 }
 0x205   : > { %v3639_v31 = vpop.f32.mrb[78].mxu1  ;;  %8451 = vrot.lane.b32.xlu1 %v13598_v45, %s14004_s7  ;;  %v7581_v40 = vsel %vm761_vm3, %v13604_v42, %v16619_v5  ;;  %v13609_v5 = vld [vmem:[%s14116_s25 + $0x4b4] ss:$0 sps:$4 sm:$0x77]  }
 0x206   : > { %7861 = vmatmul.mubr.bf16.gmra.mrb[180].mxu1 %v7577_v50  ;;  %v10762_v44 = vadd.f32 %v16262_v51, %v3709_v32  ;;  %v3710_v17 = vadd.f32 %v3639_v31, %v16613_v46  ;;  %v3641_v63 = vpop.f32.mrb[79].mxu1  ;;  %8449 = vrot.lane.b32.xlu0 %v13599_v41, %s14004_s7  ;;  %v6424_v20 = vpop.permute.xlu0 %6423  ;;  %v13608_v50 = vld [vmem:[%s14116_s25 + $0x4ac] sm:$0xf8]   ;;  %v6727_v54 = vrot.slane %v13609_v5, 3 }
 0x207   : > { %v2970_v48 = vpop.f32.mrb[104].mxu0  ;;  %v6428_v37 = vpop.permute.xlu1 %6427  ;;  %v6600_v62 = vsel %vm761_vm3, %v13602_v21, %v6424_v20  ;;  %12650 = vmatprep.mubr.msk.bf16.mxu1 %vm761_vm3, %v13603_v16  ;;  %v13612_v41 = vld [vmem:[%s14116_s25 + $0x1d4] ss:$0 sps:$4 sm:$0x77]  }
 0x208   : > { %v10890_v33 = vmax.f32 %v10762_v44, 0.0  ;;  %v10766_v11 = vadd.f32 %v16262_v51, %v3710_v17  ;;  %v16727_v46 = vadd.f32 %v2970_v48, %v16033_v43  ;;  %v2972_v22 = vpop.f32.mrb[105].mxu0  ;;  %v6724_v43 = vrot.slane %v6600_v62, 3  ;;  %v13613_v17 = vld [vmem:[%s14116_s25 + $0x1cc] sm:$0xf8]  }
 0x209   : > { %7051 = vmatmul.mubr.bf16.gmra.mrb[208].mxu0 %v6719_v14  ;;  %v2973_v27 = vpop.f32.mrb[106].mxu0  ;;  %9685 = vrot.lane.b32.xlu1 %v13606_v59, %s14004_s7  ;;  %v6606_v63 = vsel %vm761_vm3, %v13612_v41, %v6428_v37  ;;  %v7585_v37 = vsel %vm761_vm3, %v13615_v28, %v16656_v25  ;;  %v13617_v22 = vld [vmem:[%s14116_s25 + $0x310] sm:$0xfc]   ;;  %v13632_v28 = vld [vmem:[%s18053_s2 + $0x2c8] sm:$0xff]  }
 0x20a   : > { %11018 = vst [vmem:[%s15422_s8 + $0x2e0] sm:$0xff] %v10890_v33  ;;  %v10894_v53 = vmax.f32 %v10766_v11, 0.0  ;;  %v6426_v58 = vpop.permute.xlu0 %6425  ;;  %v16747_v26 = vadd.f32 %v2973_v27, %v16050_v34  ;;  %v2975_v18 = vpop.f32.mrb[107].mxu0  ;;  %9683 = vrot.lane.b32.xlu0 %v13607_v52, %s14004_s7  ;;  %v6726_v34 = vrot.slane %v13608_v50, 3  ;;  %v6725_v44 = vsel %vm4388_vm6, %v6723_v61, %v6724_v43  ;;  %v13618_v61 = vld [vmem:[%s18053_s2 + $0x2c0] sm:$0xff]  }
 0x20b   : > { %v3644_v19 = vpop.f32.mrb[80].mxu1  ;;  %v6730_v48 = vrot.slane %v6606_v63, 3  ;;  %v6603_v11 = vsel %vm761_vm3, %v13613_v17, %v6426_v58  ;;  %v13619_v58 = vld [vmem:[%s14116_s25 + $0x4cc] sm:$0xf8]   ;;  %9047 = vmatpush1.bf16.msra.mxu0 %v13618_v61  ;;  %v13627_v17 = vld [vmem:[%s14116_s25 + $0xc0] sm:$0xff]  }
 0x20c   : > { %11022 = vst [vmem:[%s15422_s8 + $0x308] sm:$0xff] %v10894_v53  ;;  %v16743_v30 = vpop.permute.xlu1 %6429  ;;  %v3711_v57 = vadd.f32 %v3644_v19, %v16642_v1  ;;  %v3646_v23 = vpop.f32.mrb[81].mxu1  ;;  %v6728_v24 = vsel %vm4388_vm6, %v6726_v34, %v6727_v54  ;;  %v6729_v53 = vrot.slane %v6603_v11, 3  ;;  %v13620_v25 = vld [vmem:[%s14116_s25 + $0x4d4] ss:$0 sps:$4 sm:$0x77]   ;;  %9048 = vmatprep.subr.bf16.mxu0 %v14003_v3 }
 0x20d   : > { %v3647_v49 = vpop.f32.mrb[82].mxu1  ;;  %8455 = vrot.lane.b32.xlu1 %v13610_v8, %s14004_s7  ;;  %12553 = vmatprep.mubr.msk.bf16.mxu0 %vm761_vm3, %v6728_v24  ;;  %v6732_v59 = vrot.slane %v13619_v58, 3  ;;  %v6733_v52 = vrot.slane %v13620_v25, 3  ;;  %v13623_v50 = vld [vmem:[%s14116_s25 + $0x328] sm:$0xfe]  }
 0x20e   : > { %7869 = vmatmul.mubr.bf16.gmra.mrb[184].mxu1 %v7581_v40  ;;  %v10770_v0 = vadd.f32 %v16262_v51, %v3711_v57  ;;  %v16757_v32 = vpop.permute.xlu0 %7467  ;;  %v3712_v47 = vadd.f32 %v3647_v49, %v16651_v15  ;;  %v3649_v45 = vpop.f32.mrb[83].mxu1  ;;  %8453 = vrot.lane.b32.xlu0 %v13611_v12, %s14004_s7  ;;  %v6731_v57 = vsel %vm4388_vm6, %v6729_v53, %v6730_v48  ;;  %v13624_v54 = vld [vmem:[%s14116_s25 + $0x1ec] sm:$0xf8]   ;;  %v13626_v49 = vld [vmem:[%s14116_s25 + $0x540] sm:$0xff]  }
 0x20f   : > { %v2978_v31 = vpop.f32.mrb[108].mxu0  ;;  %12651 = vmatprep.mubr.msk.bf16.mxu1 %vm761_vm3, %v13614_v4  ;;  %v6734_v23 = vsel %vm4388_vm6, %v6732_v59, %v6733_v52  ;;  %v6609_v24 = vsel %vm761_vm3, %v13624_v54, %v16743_v30  ;;  %v7589_v30 = vsel %vm761_vm3, %v13627_v17, %v16696_v29  ;;  %v13629_v48 = vld [vmem:[%s14116_s25 + $0x330] sm:$0xfc]   ;;  %9049 = vmatpush1.bf16.msra.mxu0 %v13632_v28  ;;  %v13633_v61 = vld [vmem:[%s14116_s25 + $0x350] ss:$0 sps:$4 sm:$0x11]  }
 0x210   : > { %v10898_v1 = vmax.f32 %v10770_v0, 0.0  ;;  %v16766_v33 = vpop.permute.xlu1 %7469  ;;  %v10774_v14 = vadd.f32 %v16262_v51, %v3712_v47  ;;  %v16773_v15 = vadd.f32 %v2978_v31, %v16085_v36  ;;  %v2980_v35 = vpop.f32.mrb[109].mxu0  ;;  %v13616_v36 = vld [vmem:[%s14116_s25 + $0x318] ss:$0 sps:$4 sm:$0x33]   ;;  %v6735_v31 = vrot.slane %v6609_v24, 3  ;;  %9050 = vmatprep.subr.bf16.mxu0 %v14003_v3 }
 0x211   : > { %7059 = vmatmul.mubr.bf16.gmra.mrb[212].mxu0 %v6725_v44  ;;  %v2981_v21 = vpop.f32.mrb[110].mxu0  ;;  %9689 = vrot.lane.b32.xlu1 %v13616_v36, %s14004_s7  ;;  %v13625_v47 = vld [vmem:[%s14116_s25 + $0x1f4] ss:$0 sps:$4 sm:$0x77]  }
 0x212   : > { %11026 = vst [vmem:[%s15422_s8 + $0x330] sm:$0xff] %v10898_v1  ;;  %v10902_v20 = vmax.f32 %v10774_v14, 0.0  ;;  %v6432_v16 = vpop.permute.xlu0 %6431  ;;  %v16782_v6 = vadd.f32 %v2981_v21, %v16112_v60  ;;  %9687 = vrot.lane.b32.xlu0 %v13617_v22, %s14004_s7  ;;  %v2983_v34 = vpop.f32.mrb[111].mxu0  ;;  %12554 = vmatprep.mubr.msk.bf16.mxu0 %vm761_vm3, %v6734_v23  ;;  %v13631_v53 = vld [vmem:[%s14116_s25 + $0x4f4] ss:$0 sps:$4 sm:$0x77]  }
 0x213   : > { %v3652_v62 = vpop.f32.mrb[84].mxu1  ;;  %v6612_v14 = vsel %vm761_vm3, %v13625_v47, %v6432_v16  ;;  %v6739_v22 = vrot.slane %v13631_v53, 3  ;;  %v13640_v24 = vld [vmem:[%s14116_s25 + $0x358] ss:$0 sps:$4 sm:$0x33]  }
 0x214   : > { %11030 = vst [vmem:[%s15422_s8 + $0x358] sm:$0xff] %v10902_v20  ;;  %v3713_v60 = vadd.f32 %v3652_v62, %v16685_v55  ;;  %v3654_v27 = vpop.f32.mrb[85].mxu1  ;;  %v13622_v55 = vld [vmem:[%s14116_s25 + $0x330] ss:$0 sps:$4 sm:$0x11]   ;;  %v6736_v35 = vrot.slane %v6612_v14, 3 }
 0x215   : > { %v3655_v5 = vpop.f32.mrb[86].mxu1  ;;  %8459 = vrot.lane.b32.xlu1 %v13622_v55, %s14004_s7  ;;  %v13628_v20 = vld [vmem:[%s14116_s25 + $0x338] ss:$0 sps:$4 sm:$0x33]   ;;  %v13634_v27 = vld [vmem:[%s14116_s25 + $0x348] sm:$0xfe]  }
 0x216   : > { %7877 = vmatmul.mubr.bf16.gmra.mrb[188].mxu1 %v7585_v37  ;;  %v10778_v40 = vadd.f32 %v16262_v51, %v3713_v60  ;;  %v3714_v0 = vadd.f32 %v3655_v5, %v16703_v13  ;;  %v3657_v8 = vpop.f32.mrb[87].mxu1  ;;  %8457 = vrot.lane.b32.xlu0 %v13623_v50, %s14004_s7  ;;  %v6737_v58 = vsel %vm4388_vm6, %v6735_v31, %v6736_v35  ;;  %v13635_v55 = vld [vmem:[%s18053_s2 + $0x328] sm:$0xff]   ;;  %v13641_v31 = vld [vmem:[%s14116_s25 + $0x350] sm:$0xfc]  }
 0x217   : > { %v2986_v12 = vpop.f32.mrb[112].mxu0  ;;  %12652 = vmatprep.mubr.msk.bf16.mxu1 %vm761_vm3, %v13626_v49  ;;  %10283 = vmatpush1.bf16.msra.mxu1 %v13635_v55  ;;  %v13637_v5 = vld [vmem:[%s14116_s25 + $0x20c] sm:$0xf8]   ;;  %v13650_v55 = vld [vmem:[%s14116_s25 + $0x100] sm:$0xff]  }
 0x218   : > { %v10906_v18 = vmax.f32 %v10778_v40, 0.0  ;;  %v10782_v44 = vadd.f32 %v16262_v51, %v3714_v0  ;;  %v16824_v13 = vadd.f32 %v2986_v12, %v16141_v39  ;;  %v2988_v45 = vpop.f32.mrb[113].mxu0  ;;  %v13638_v0 = vld [vmem:[%s14116_s25 + $0x560] sm:$0xff]   ;;  %10284 = vmatprep.subr.bf16.mxu1 %v14003_v3 }
 0x219   : > { %v16797_v43 = vpop.permute.xlu0 %6433  ;;  %7067 = vmatmul.mubr.bf16.gmra.mrb[216].mxu0 %v6731_v57  ;;  %v2989_v63 = vpop.f32.mrb[114].mxu0  ;;  %9693 = vrot.lane.b32.xlu1 %v13628_v20, %s14004_s7  ;;  %v13639_v12 = vld [vmem:[%s14116_s25 + $0xe0] sm:$0xff]  }
 0x21a   : > { %11034 = vst [vmem:[%s15422_s8 + $0x380] sm:$0xff] %v10906_v18  ;;  %v10910_v41 = vmax.f32 %v10782_v44, 0.0  ;;  %v16835_v39 = vadd.f32 %v2989_v63, %v16173_v56  ;;  %9691 = vrot.lane.b32.xlu0 %v13629_v48, %s14004_s7  ;;  %v13630_v56 = vld [vmem:[%s14116_s25 + $0x4ec] sm:$0xf8]   ;;  %v2991_v9 = vpop.f32.mrb[115].mxu0  ;;  %v6615_v44 = vsel %vm761_vm3, %v13637_v5, %v16797_v43 }
 0x21b   : > { %v3660_v11 = vpop.f32.mrb[88].mxu1  ;;  %v6738_v37 = vrot.slane %v13630_v56, 3  ;;  %v13636_v18 = vld [vmem:[%s14116_s25 + $0x214] ss:$0 sps:$4 sm:$0x77]   ;;  %v6741_v45 = vrot.slane %v6615_v44, 3 }
 0x21c   : > { %11038 = vst [vmem:[%s15422_s8 + $0x3a8] sm:$0xff] %v10910_v41  ;;  %v3715_v21 = vadd.f32 %v3660_v11, %v16727_v46  ;;  %v3662_v36 = vpop.f32.mrb[89].mxu1  ;;  %v13646_v43 = vld [vmem:[%s18053_s2 + $0x2d0] sm:$0xff]   ;;  %v13649_v9 = vld [vmem:[%s14116_s25 + $0x580] sm:$0xff]  }
 0x21d   : > { %v16792_v42 = vpop.permute.xlu1 %6435  ;;  %v3663_v62 = vpop.f32.mrb[90].mxu1  ;;  %v6740_v59 = vsel %vm4388_vm6, %v6738_v37, %v6739_v22  ;;  %8463 = vrot.lane.b32.xlu1 %v13633_v61, %s14004_s7  ;;  %v13642_v63 = vld [vmem:[%s14116_s25 + $0x50c] sm:$0xf8]   ;;  %9051 = vmatpush1.bf16.msra.mxu0 %v13646_v43 }
 0x21e   : > { %v16819_v1 = vpop.permute.xlu0 %7471  ;;  %7885 = vmatmul.mubr.bf16.gmra.mrb[192].mxu1 %v7589_v30  ;;  %v10786_v29 = vadd.f32 %v16262_v51, %v3715_v21  ;;  %v3716_v25 = vadd.f32 %v3663_v62, %v16747_v26  ;;  %v3665_v52 = vpop.f32.mrb[91].mxu1  ;;  %12555 = vmatprep.mubr.msk.bf16.mxu0 %vm761_vm3, %v6740_v59  ;;  %v6618_v8 = vsel %vm761_vm3, %v13636_v18, %v16792_v42  ;;  %v13644_v30 = vld [vmem:[%s14116_s25 + $0x370] ss:$0 sps:$4 sm:$0x11]   ;;  %v6744_v11 = vrot.slane %v13642_v63, 3 }
 0x21f   : > { %8461 = vrot.lane.b32.xlu0 %v13634_v27, %s14004_s7  ;;  %v2994_v57 = vpop.f32.mrb[116].mxu0  ;;  %v6742_v49 = vrot.slane %v6618_v8, 3  ;;  %12653 = vmatprep.mubr.msk.bf16.mxu1 %vm761_vm3, %v13638_v0  ;;  %v7593_v42 = vsel %vm761_vm3, %v13639_v12, %v16709_v2  ;;  %v13643_v2 = vld [vmem:[%s14116_s25 + $0x514] ss:$0 sps:$4 sm:$0x77]  }
 0x220   : > { %v10914_v46 = vmax.f32 %v10786_v29, 0.0  ;;  %v10790_v26 = vadd.f32 %v16262_v51, %v3716_v25  ;;  %v16873_v23 = vadd.f32 %v2994_v57, %v16200_v38  ;;  %v2996_v54 = vpop.f32.mrb[117].mxu0  ;;  %9052 = vmatprep.subr.bf16.mxu0 %v14003_v3  ;;  %v6745_v28 = vrot.slane %v13643_v2, 3  ;;  %v13645_v36 = vld [vmem:[%s14116_s25 + $0x368] sm:$0xfe]  }
 0x221   : > { %7075 = vmatmul.mubr.bf16.gmra.mrb[220].mxu0 %v6737_v58  ;;  %v2997_v38 = vpop.f32.mrb[118].mxu0  ;;  %9697 = vrot.lane.b32.xlu1 %v13640_v24, %s14004_s7  ;;  %v6743_v53 = vsel %vm4388_vm6, %v6741_v45, %v6742_v49  ;;  %v13648_v62 = vld [vmem:[%s14116_s25 + $0x234] ss:$0 sps:$4 sm:$0x77]   ;;  %v7597_v57 = vsel %vm761_vm3, %v13650_v55, %v16757_v32  ;;  %v13654_v54 = vld [vmem:[%s14116_s25 + $0x52c] sm:$0xf8]  }
 0x222   : > { %v16846_v16 = vpop.permute.xlu0 %6439  ;;  %11042 = vst [vmem:[%s15422_s8 + $0x3d0] sm:$0xff] %v10914_v46  ;;  %v10918_v50 = vmax.f32 %v10790_v26, 0.0  ;;  %v16892_v41 = vadd.f32 %v2997_v38, %v16223_v10  ;;  %v6746_v37 = vsel %vm4388_vm6, %v6744_v11, %v6745_v28  ;;  %v13913_v32 = vld [vmem:[%s14116_s25 + $0x254] ss:$0 sps:$4 sm:$0x77]   ;;  %v13658_v11 = vld [vmem:[%s14116_s25 + $0x5a0] sm:$0xff]  }
 0x223   : > { %v3668_v14 = vpop.f32.mrb[92].mxu1  ;;  %9695 = vrot.lane.b32.xlu0 %v13641_v31, %s14004_s7  ;;  %12556 = vmatprep.mubr.msk.bf16.mxu0 %vm761_vm3, %v6746_v37  ;;  %v6624_v52 = vsel %vm761_vm3, %v13648_v62, %v16846_v16  ;;  %v13655_v38 = vld [vmem:[%s14116_s25 + $0x534] ss:$0 sps:$4 sm:$0x77]   ;;  %v13914_v24 = vld [vmem:[%s14116_s25 + $0x24c] sm:$0xf8]  }
 0x224   : > { %11046 = vst [vmem:[%s15422_s8 + $0x3f8] sm:$0xff] %v10918_v50  ;;  %v3717_v17 = vadd.f32 %v3668_v14, %v16773_v15  ;;  %v3670_v35 = vpop.f32.mrb[93].mxu1  ;;  %v6748_v18 = vrot.slane %v6624_v52, 3  ;;  %v13652_v50 = vld [vmem:[%s14116_s25 + $0x378] ss:$0 sps:$4 sm:$0x33]  }
 0x225   : > { %v16806_v19 = vpop.permute.xlu1 %6437  ;;  %v3671_v48 = vpop.f32.mrb[94].mxu1  ;;  %8467 = vrot.lane.b32.xlu1 %v13644_v30, %s14004_s7  ;;  %v6750_v14 = vrot.slane %v13654_v54, 3  ;;  %v13656_v43 = vld [vmem:[%s14116_s25 + $0x390] ss:$0 sps:$4 sm:$0x11]   ;;  %v13659_v28 = vld [vmem:[%s14116_s25 + $0x120] sm:$0xff]  }
 0x226   : > { %7893 = vmatmul.mubr.bf16.gmra.mrb[196].mxu1 %v7593_v42  ;;  %v10794_v20 = vadd.f32 %v16262_v51, %v3717_v17  ;;  %v3718_v15 = vadd.f32 %v3671_v48, %v16782_v6  ;;  %v3673_v29 = vpop.f32.mrb[95].mxu1  ;;  %v13647_v6 = vld [vmem:[%s14116_s25 + $0x22c] sm:$0xf8]   ;;  %v2999_v35 = vpop.f32.mrb[119].mxu0 }
 0x227   : > { %8465 = vrot.lane.b32.xlu0 %v13645_v36, %s14004_s7  ;;  %v6621_v25 = vsel %vm761_vm3, %v13647_v6, %v16806_v19  ;;  %12654 = vmatprep.mubr.msk.bf16.mxu1 %vm761_vm3, %v13649_v9  ;;  %v13651_v19 = vld [vmem:[%s18053_s2 + $0x330] sm:$0xff]   ;;  %v13657_v17 = vld [vmem:[%s14116_s25 + $0x388] sm:$0xfe]   ;;  %v7601_v36 = vsel %vm761_vm3, %v13659_v28, %v16766_v33  ;;  %v13662_v29 = vld [vmem:[%s18053_s2 + $0x2d8] sm:$0xff]  }
 0x228   : > { %v10922_v56 = vmax.f32 %v10794_v20, 0.0  ;;  %v10798_v22 = vadd.f32 %v16262_v51, %v3718_v15  ;;  %v6747_v27 = vrot.slane %v6621_v25, 3  ;;  %10285 = vmatpush1.bf16.msra.mxu1 %v13651_v19  ;;  %v13660_v15 = vld [vmem:[%s14116_s25 + $0x398] ss:$0 sps:$4 sm:$0x33]   ;;  %9053 = vmatpush1.bf16.msra.mxu0 %v13662_v29 }
 0x229   : > { %v16831_v4 = vpop.permute.xlu1 %7473  ;;  %7083 = vmatmul.mubr.bf16.gmra.mrb[224].mxu0 %v6743_v53  ;;  %9701 = vrot.lane.b32.xlu1 %v13652_v50, %s14004_s7  ;;  %v13661_v53 = vld [vmem:[%s14116_s25 + $0x390] sm:$0xfc]   ;;  %v13665_v33 = vld [vmem:[%s18053_s2 + $0x338] sm:$0xff]   ;;  %v13675_v28 = vld [vmem:[%s14116_s25 + $0x3d0] ss:$0 sps:$4 sm:$0x11]  }
 0x22a   : > { %11050 = vst [vmem:[%s15422_s8 + $0x420] sm:$0xff] %v10922_v56  ;;  %v10926_v61 = vmax.f32 %v10798_v22, 0.0  ;;  %10286 = vmatprep.subr.bf16.mxu1 %v14003_v3  ;;  %v13663_v6 = vld [vmem:[%s14116_s25 + $0x54c] sm:$0xf8]   ;;  %9054 = vmatprep.subr.bf16.mxu0 %v14003_v3 }
 0x22b   : > { %v3676_v59 = vpop.f32.mrb[96].mxu1  ;;  %v13915_v52 = vld [vmem:[%s14116_s25 + $0x26c] sm:$0xf8]   ;;  %v13916_v55 = vld [vmem:[%s14116_s25 + $0x274] ss:$0 sps:$4 sm:$0x77]  }
 0x22c   : > { %11054 = vst [vmem:[%s15422_s8 + $0x448] sm:$0xff] %v10926_v61  ;;  %v3719_v26 = vadd.f32 %v3676_v59, %v16824_v13  ;;  %v3678_v16 = vpop.f32.mrb[97].mxu1  ;;  %v13653_v13 = vld [vmem:[%s14116_s25 + $0x370] sm:$0xfc]   ;;  %10287 = vmatpush1.bf16.msra.mxu1 %v13665_v33 }
 0x22d   : > { %v16854_v60 = vpop.permute.xlu1 %6443  ;;  %v3679_v12 = vpop.f32.mrb[98].mxu1  ;;  %9699 = vrot.lane.b32.xlu0 %v13653_v13, %s14004_s7  ;;  %8471 = vrot.lane.b32.xlu1 %v13656_v43, %s14004_s7  ;;  %v13664_v61 = vld [vmem:[%s14116_s25 + $0x554] ss:$0 sps:$4 sm:$0x77]  }
 0x22e   : > { %v16858_v40 = vpop.permute.xlu0 %6441  ;;  %v10802_v5 = vadd.f32 %v16262_v51, %v3719_v26  ;;  %7901 = vmatmul.mubr.bf16.gmra.mrb[200].mxu1 %v7597_v57  ;;  %v6630_v49 = vsel %vm761_vm3, %v13913_v32, %v16854_v60  ;;  %v3720_v45 = vadd.f32 %v3679_v12, %v16835_v39  ;;  %v3681_v42 = vpop.f32.mrb[99].mxu1  ;;  %v6751_v60 = vrot.slane %v13655_v38, 3  ;;  %10288 = vmatprep.subr.bf16.mxu1 %v14003_v3  ;;  %v13673_v35 = vld [vmem:[%s14116_s25 + $0x574] ss:$0 sps:$4 sm:$0x77]  }
 0x22f   : > { %v6627_v31 = vsel %vm761_vm3, %v13914_v24, %v16858_v40  ;;  %v6754_v2 = vrot.slane %v6630_v49, 3  ;;  %v6749_v39 = vsel %vm4388_vm6, %v6747_v27, %v6748_v18  ;;  %12655 = vmatprep.mubr.msk.bf16.mxu1 %vm761_vm3, %v13658_v11  ;;  %v4712_v27 = vpop.f32.mrb[120].mxu0  ;;  %v6756_v18 = vrot.slane %v13663_v6, 3  ;;  %v13669_v24 = vld [vmem:[%s14116_s25 + $0x140] sm:$0xff]  }
 0x230   : > { %v10930_v8 = vmax.f32 %v10802_v5, 0.0  ;;  %v10806_v63 = vadd.f32 %v16262_v51, %v3720_v45  ;;  %v6753_v40 = vrot.slane %v6627_v31, 3  ;;  %v6752_v30 = vsel %vm4388_vm6, %v6750_v14, %v6751_v60  ;;  %v13666_v5 = vld [vmem:[%s14116_s25 + $0x3b0] ss:$0 sps:$4 sm:$0x11]   ;;  %v13668_v45 = vld [vmem:[%s14116_s25 + $0x5c0] sm:$0xff]  }
 0x231   : > { %8469 = vrot.lane.b32.xlu0 %v13657_v17, %s14004_s7  ;;  %12557 = vmatprep.mubr.msk.bf16.mxu0 %vm761_vm3, %v6752_v30  ;;  %v6757_v19 = vrot.slane %v13664_v61, 3  ;;  %v13670_v31 = vld [vmem:[%s14116_s25 + $0x3b8] ss:$0 sps:$4 sm:$0x33]   ;;  %v7605_v17 = vsel %vm761_vm3, %v13669_v24, %v16819_v1  ;;  %v13674_v1 = vld [vmem:[%s18053_s2 + $0x2e0] sm:$0xff]   ;;  %v6763_v11 = vrot.slane %v13673_v35, 3 }
 0x232   : > { %11058 = vst [vmem:[%s15422_s8 + $0x470] sm:$0xff] %v10930_v8  ;;  %v10934_v48 = vmax.f32 %v10806_v63, 0.0  ;;  %7091 = vmatmul.mubr.bf16.gmra.mrb[228].mxu0 %v6749_v39  ;;  %9705 = vrot.lane.b32.xlu1 %v13660_v15, %s14004_s7  ;;  %v6755_v50 = vsel %vm4388_vm6, %v6753_v40, %v6754_v2  ;;  %v4714_v8 = vpop.f32.mrb[121].mxu0  ;;  %v13672_v2 = vld [vmem:[%s14116_s25 + $0x56c] sm:$0xf8]  }
 0x233   : > { %v16886_v47 = vpop.permute.xlu0 %7475  ;;  %v3684_v37 = vpop.f32.mrb[100].mxu1  ;;  %v6758_v16 = vsel %vm4388_vm6, %v6756_v18, %v6757_v19  ;;  %v6762_v30 = vrot.slane %v13672_v2, 3  ;;  %9055 = vmatpush1.bf16.msra.mxu0 %v13674_v1  ;;  %v13917_v15 = vld [vmem:[%s14116_s25 + $0x294] ss:$0 sps:$4 sm:$0x77]   ;;  %v13679_v18 = vld [vmem:[%s14116_s25 + $0x160] sm:$0xff]  }
 0x234   : > { %11062 = vst [vmem:[%s15422_s8 + $0x498] sm:$0xff] %v10934_v48  ;;  %v3721_v22 = vadd.f32 %v3684_v37, %v16873_v23  ;;  %v3686_v59 = vpop.f32.mrb[101].mxu1  ;;  %12558 = vmatprep.mubr.msk.bf16.mxu0 %vm761_vm3, %v6758_v16  ;;  %v4715_v49 = vpop.f32.mrb[122].mxu0  ;;  %v13676_v61 = vld [vmem:[%s14116_s25 + $0x3c8] sm:$0xfe]   ;;  %9056 = vmatprep.subr.bf16.mxu0 %v14003_v3  ;;  %v7609_v16 = vsel %vm761_vm3, %v13679_v18, %v16831_v4 }
 0x235   : > { %9703 = vrot.lane.b32.xlu0 %v13661_v53, %s14004_s7  ;;  %v3687_v13 = vpop.f32.mrb[102].mxu1  ;;  %v4717_v38 = vpop.f32.mrb[123].mxu0  ;;  %v13680_v19 = vld [vmem:[%s14116_s25 + $0x3d8] ss:$0 sps:$4 sm:$0x33]  }
 0x236   : > { %7909 = vmatmul.mubr.bf16.gmra.mrb[204].mxu1 %v7601_v36  ;;  %v10810_v9 = vadd.f32 %v16262_v51, %v3721_v22  ;;  %8475 = vrot.lane.b32.xlu1 %v13666_v5, %s14004_s7  ;;  %v3722_v12 = vadd.f32 %v3687_v13, %v16892_v41  ;;  %v3689_v32 = vpop.f32.mrb[103].mxu1  ;;  %v13671_v41 = vld [vmem:[%s14116_s25 + $0x3b0] sm:$0xfc]   ;;  %v4720_v39 = vpop.f32.mrb[124].mxu0  ;;  %v13695_v18 = vld [vmem:[%s14116_s25 + $0x408] sm:$0xfe]  }
 0x237   : > { %v16876_v34 = vpop.permute.xlu1 %6445  ;;  %12656 = vmatprep.mubr.msk.bf16.mxu1 %vm761_vm3, %v13668_v45  ;;  %v4722_v48 = vpop.f32.mrb[125].mxu0  ;;  %v13918_v36 = vld [vmem:[%s14116_s25 + $0x28c] sm:$0xf8]   ;;  %v13683_v32 = vld [vmem:[%s14116_s25 + $0x594] ss:$0 sps:$4 sm:$0x77]  }
 0x238   : > { %v6633_v23 = vsel %vm761_vm3, %v13915_v52, %v16876_v34  ;;  %v10938_v57 = vmax.f32 %v10810_v9, 0.0  ;;  %v13667_v34 = vld [vmem:[%s14116_s25 + $0x3a8] sm:$0xfe]   ;;  %v10814_v42 = vadd.f32 %v16262_v51, %v3722_v12  ;;  %v4723_v9 = vpop.f32.mrb[126].mxu0  ;;  %v13687_v48 = vld [vmem:[%s14116_s25 + $0x600] sm:$0xff]  }
 0x239   : > { %v16909_v21 = vpop.permute.xlu0 %6447  ;;  %8473 = vrot.lane.b32.xlu0 %v13667_v34, %s14004_s7  ;;  %v13684_v45 = vld [vmem:[%s14116_s25 + $0x3f0] ss:$0 sps:$4 sm:$0x11]  }
 0x23a   : > { %v6636_v26 = vsel %vm761_vm3, %v13916_v55, %v16909_v21  ;;  %v6759_v21 = vrot.slane %v6633_v23, 3  ;;  %11066 = vst [vmem:[%s15422_s8 + $0x4c0] sm:$0xff] %v10938_v57  ;;  %7099 = vmatmul.mubr.bf16.gmra.mrb[232].mxu0 %v6755_v50  ;;  %v10942_v60 = vmax.f32 %v10814_v42, 0.0  ;;  %9709 = vrot.lane.b32.xlu1 %v13670_v31, %s14004_s7  ;;  %v4725_v55 = vpop.f32.mrb[127].mxu0  ;;  %v13681_v57 = vld [vmem:[%s14116_s25 + $0x3d0] sm:$0xfc]  }
 0x23b   : > { %v6760_v54 = vrot.slane %v6636_v26, 3  ;;  %v5858_v51 = vpop.f32.mrb[104].mxu1  ;;  %v13678_v26 = vld [vmem:[%s14116_s25 + $0x5e0] sm:$0xff]   ;;  %v4728_v13 = vpop.f32.mrb[128].mxu0  ;;  %v13919_v4 = vld [vmem:[%s14116_s25 + $0x2ac] sm:$0xf8]  }
 0x23c   : > { %v16903_v10 = vpop.permute.xlu1 %7477  ;;  %v17026_v63 = vadd.f32 %v5858_v51, %v4712_v27  ;;  %v5860_v40 = vpop.f32.mrb[105].mxu1  ;;  %11070 = vst [vmem:[%s15422_s8 + $0x4e8] sm:$0xff] %v10942_v60  ;;  %v13677_v27 = vld [vmem:[%s18053_s2 + $0x340] sm:$0xff]   ;;  %v13920_v31 = vld [vmem:[%s14116_s25 + $0x2b4] ss:$0 sps:$4 sm:$0x77]  }
 0x23d   : > { %9707 = vrot.lane.b32.xlu0 %v13671_v41, %s14004_s7  ;;  %v6761_v6 = vsel %vm4388_vm6, %v6759_v21, %v6760_v54  ;;  %v5861_v33 = vpop.f32.mrb[106].mxu1  ;;  %10289 = vmatpush1.bf16.msra.mxu1 %v13677_v27  ;;  %v13682_v21 = vld [vmem:[%s14116_s25 + $0x58c] sm:$0xf8]   ;;  %v4730_v12 = vpop.f32.mrb[129].mxu0  ;;  %v6769_v60 = vrot.slane %v13683_v32, 3 }
 0x23e   : > { %7917 = vmatmul.mubr.bf16.gmra.mrb[208].mxu1 %v7605_v17  ;;  %8479 = vrot.lane.b32.xlu1 %v13675_v28, %s14004_s7  ;;  %v5863_v59 = vpop.f32.mrb[107].mxu1  ;;  %v6768_v38 = vrot.slane %v13682_v21, 3  ;;  %v13685_v17 = vld [vmem:[%s14116_s25 + $0x3e8] sm:$0xfe]   ;;  %v4731_v51 = vpop.f32.mrb[130].mxu0  ;;  %v13688_v28 = vld [vmem:[%s14116_s25 + $0x180] sm:$0xff]  }
 0x23f   : > { %12657 = vmatprep.mubr.msk.bf16.mxu1 %vm761_vm3, %v13678_v26  ;;  %10290 = vmatprep.subr.bf16.mxu1 %v14003_v3  ;;  %v13686_v40 = vld [vmem:[%s18053_s2 + $0x2e8] sm:$0xff]   ;;  %v13699_v12 = vld [vmem:[%s14116_s25 + $0x620] sm:$0xff]   ;;  %v13697_v32 = vld [vmem:[%s14116_s25 + $0x10] ss:$0 sps:$4 sm:$0x11]  }
 0x240   : > { %v16921_v46 = vpop.permute.xlu1 %6451  ;;  %v6770_v35 = vsel %vm4388_vm6, %v6768_v38, %v6769_v60  ;;  %9057 = vmatpush1.bf16.msra.mxu0 %v13686_v40  ;;  %v13698_v38 = vld [vmem:[%s14116_s25 + $0x8] sm:$0xfe]  }
 0x241   : > { %v16923_v58 = vpop.permute.xlu0 %6449  ;;  %v6642_v53 = vsel %vm761_vm3, %v13917_v15, %v16921_v46  ;;  %v6764_v46 = vsel %vm4388_vm6, %v6762_v30, %v6763_v11  ;;  %8477 = vrot.lane.b32.xlu0 %v13676_v61, %s14004_s7  ;;  %v4733_v30 = vpop.f32.mrb[131].mxu0  ;;  %9058 = vmatprep.subr.bf16.mxu0 %v14003_v3  ;;  %v13691_v61 = vld [vmem:[%s14116_s25 + $0x3f0] sm:$0xfc]  }
 0x242   : > { %v6639_v29 = vsel %vm761_vm3, %v13918_v36, %v16923_v58  ;;  %v17050_v58 = vadd.f32 %v5861_v33, %v4715_v49  ;;  %12559 = vmatprep.mubr.msk.bf16.mxu0 %vm761_vm3, %v6764_v46  ;;  %v6766_v52 = vrot.slane %v6642_v53, 3  ;;  %9713 = vrot.lane.b32.xlu1 %v13680_v19, %s14004_s7  ;;  %v13689_v53 = vld [vmem:[%s18053_s2 + $0x348] sm:$0xff]   ;;  %v13690_v36 = vld [vmem:[%s14116_s25 + $0x3f8] ss:$0 sps:$4 sm:$0x33]   ;;  %v4736_v59 = vpop.f32.mrb[132].mxu0 }
 0x243   : > { %v6765_v23 = vrot.slane %v6639_v29, 3  ;;  %7107 = vmatmul.mubr.bf16.gmra.mrb[236].mxu0 %v6761_v6  ;;  %v5866_v34 = vpop.f32.mrb[108].mxu1  ;;  %v7613_v6 = vsel %vm761_vm3, %v13688_v28, %v16886_v47  ;;  %10291 = vmatpush1.bf16.msra.mxu1 %v13689_v53  ;;  %v13693_v46 = vld [vmem:[%s14116_s25 + $0x5b4] ss:$0 sps:$4 sm:$0x77]   ;;  %v4738_v19 = vpop.f32.mrb[133].mxu0 }
 0x244   : > { %v17071_v8 = vadd.f32 %v5866_v34, %v4720_v39  ;;  %v5868_v54 = vpop.f32.mrb[109].mxu1  ;;  %12560 = vmatprep.mubr.msk.bf16.mxu0 %vm761_vm3, %v6770_v35  ;;  %10292 = vmatprep.subr.bf16.mxu1 %v14003_v3  ;;  %v6775_v55 = vrot.slane %v13693_v46, 3  ;;  %v4739_v21 = vpop.f32.mrb[134].mxu0  ;;  %v13707_v30 = vld [vmem:[%s14116_s25 + $0x490] ss:$0 sps:$4 sm:$0x11]  }
 0x245   : > { %v16949_v44 = vpop.permute.xlu0 %7479  ;;  %9711 = vrot.lane.b32.xlu0 %v13681_v57, %s14004_s7  ;;  %v5869_v49 = vpop.f32.mrb[110].mxu1  ;;  %v6767_v2 = vsel %vm4388_vm6, %v6765_v23, %v6766_v52  ;;  %v13694_v23 = vld [vmem:[%s14116_s25 + $0x410] ss:$0 sps:$4 sm:$0x11]   ;;  %v8753_v53 = vrot.slane %v13707_v30, 1 }
 0x246   : > { %7925 = vmatmul.mubr.bf16.gmra.mrb[212].mxu1 %v7609_v16  ;;  %v17076_v42 = vadd.f32 %v5869_v49, %v4723_v9  ;;  %8483 = vrot.lane.b32.xlu1 %v13684_v45, %s14004_s7  ;;  %v5871_v39 = vpop.f32.mrb[111].mxu1  ;;  %v13692_v9 = vld [vmem:[%s14116_s25 + $0x5ac] sm:$0xf8]   ;;  %v4741_v49 = vpop.f32.mrb[135].mxu0 }
 0x247   : > { %v16941_v0 = vpop.permute.xlu1 %6453  ;;  %12658 = vmatprep.mubr.msk.bf16.mxu1 %vm761_vm3, %v13687_v48  ;;  %v6774_v47 = vrot.slane %v13692_v9, 3  ;;  %v4744_v28 = vpop.f32.mrb[136].mxu0  ;;  %v13712_v19 = vld [vmem:[%s14116_s25 + $0x28] sm:$0xfe]  }
 0x248   : > { %v6645_v24 = vsel %vm761_vm3, %v13919_v4, %v16941_v0 }
 0x249   : > { %v16972_v56 = vpop.permute.xlu0 %6455  ;;  %8481 = vrot.lane.b32.xlu0 %v13685_v17, %s14004_s7  ;;  %v6776_v16 = vsel %vm4388_vm6, %v6774_v47, %v6775_v55 }
 0x24a   : > { %v6648_v41 = vsel %vm761_vm3, %v13920_v31, %v16972_v56  ;;  %v6771_v56 = vrot.slane %v6645_v24, 3  ;;  %9717 = vrot.lane.b32.xlu1 %v13690_v36, %s14004_s7  ;;  %v13700_v24 = vld [vmem:[%s14116_s25 + $0x1a0] sm:$0xff]   ;;  %v13701_v31 = vld [vmem:[%s14116_s25 + $0x418] ss:$0 sps:$4 sm:$0x33]  }
 0x24b   : > { %v16964_v20 = vpop.permute.xlu1 %7481  ;;  %v6772_v1 = vrot.slane %v6648_v41, 3  ;;  %7115 = vmatmul.mubr.bf16.gmra.mrb[240].mxu0 %v6767_v2  ;;  %v5874_v15 = vpop.f32.mrb[112].mxu1  ;;  %v7617_v17 = vsel %vm761_vm3, %v13700_v24, %v16903_v10  ;;  %v13703_v2 = vld [vmem:[%s18053_s2 + $0x2f8] sm:$0xff]   ;;  %v13709_v36 = vld [vmem:[%s14116_s25 + $0x430] ss:$0 sps:$4 sm:$0x11]  }
 0x24c   : > { %v17104_v29 = vadd.f32 %v5874_v15, %v4728_v13  ;;  %v5876_v52 = vpop.f32.mrb[113].mxu1  ;;  %v13696_v13 = vld [vmem:[%s18053_s2 + $0x2f0] sm:$0xff]   ;;  %12561 = vmatprep.mubr.msk.bf16.mxu0 %vm761_vm3, %v6776_v16  ;;  %v13714_v16 = vld [vmem:[%s14116_s25 + $0x1c0] sm:$0xff]  }
 0x24d   : > { %9715 = vrot.lane.b32.xlu0 %v13691_v61, %s14004_s7  ;;  %v6773_v26 = vsel %vm4388_vm6, %v6771_v56, %v6772_v1  ;;  %v5877_v57 = vpop.f32.mrb[114].mxu1  ;;  %9059 = vmatpush1.bf16.msra.mxu0 %v13696_v13  ;;  %v13706_v1 = vld [vmem:[%s14116_s25 + $0x488] sm:$0xfe]  }
 0x24e   : > { %v16992_v25 = vpop.permute.xlu0 %8429  ;;  %7933 = vmatmul.mubr.bf16.gmra.mrb[216].mxu1 %v7613_v6  ;;  %8487 = vrot.lane.b32.xlu1 %v13694_v23, %s14004_s7  ;;  %v17124_v34 = vadd.f32 %v5877_v57, %v4731_v51  ;;  %v5879_v54 = vpop.f32.mrb[115].mxu1  ;;  %v13702_v51 = vld [vmem:[%s14116_s25 + $0x410] sm:$0xfc]   ;;  %v8752_v48 = vrot.slane %v13706_v1, 1  ;;  %v13710_v61 = vld [vmem:[%s14116_s25 + $0x428] sm:$0xfe]  }
 0x24f   : > { %v16990_v62 = vpop.permute.xlu1 %8431  ;;  %12659 = vmatprep.mubr.msk.bf16.mxu1 %vm761_vm3, %v13699_v12  ;;  %9060 = vmatprep.subr.bf16.mxu0 %v14003_v3  ;;  %v8623_v60 = vsel %vm761_vm3, %v13698_v38, %v16992_v25  ;;  %v13708_v25 = vld [vmem:[%s18053_s2 + $0x350] sm:$0xff]   ;;  %v13719_v1 = vld [vmem:[%s18053_s2 + $0x358] sm:$0xff]  }
 0x250   : > { %v8626_v41 = vsel %vm761_vm3, %v13697_v32, %v16990_v62  ;;  %v8749_v56 = vrot.slane %v8623_v60, 1  ;;  %10293 = vmatpush1.bf16.msra.mxu1 %v13708_v25 }
 0x251   : > { %8485 = vrot.lane.b32.xlu0 %v13695_v18, %s14004_s7  ;;  %v8750_v35 = vrot.slane %v8626_v41, 1  ;;  %9061 = vmatpush1.bf16.msra.mxu0 %v13703_v2  ;;  %v13713_v18 = vld [vmem:[%s14116_s25 + $0x640] sm:$0xff]   ;;  %v13718_v41 = vld [vmem:[%s14116_s25 + $0x4b0] ss:$0 sps:$4 sm:$0x11]  }
 0x252   : > { %v17018_v43 = vpop.permute.xlu0 %9663  ;;  %9721 = vrot.lane.b32.xlu1 %v13701_v31, %s14004_s7  ;;  %10294 = vmatprep.subr.bf16.mxu1 %v14003_v3  ;;  %v4746_v3 = vpop.f32.mrb[137].mxu0  ;;  %v13717_v31 = vld [vmem:[%s14116_s25 + $0x4a8] sm:$0xfe]   ;;  %v13704_v2 = vld [vmem:[%s14116_s25 + $0x18] ss:$0 sps:$4 sm:$0x33]  }
 0x253   : > { %v17016_v14 = vpop.permute.xlu1 %9665  ;;  %7123 = vmatmul.mubr.bf16.gmra.mrb[244].mxu0 %v6773_v26  ;;  %v5882_v39 = vpop.f32.mrb[116].mxu1  ;;  %v8751_v6 = vsel %vm2550_vm5, %v8749_v56, %v8750_v35  ;;  %v13711_v26 = vld [vmem:[%s14116_s25 + $0x30] ss:$0 sps:$4 sm:$0x11]  }
 0x254   : > { %v17154_v62 = vadd.f32 %v5882_v39, %v4736_v59  ;;  %v5884_v15 = vpop.f32.mrb[117].mxu1  ;;  %v8754_v59 = vsel %vm2550_vm5, %v8752_v48, %v8753_v53  ;;  %v4747_v47 = vpop.f32.mrb[138].mxu0  ;;  %v8759_v39 = vrot.slane %v13718_v41, 1  ;;  %v13720_v48 = vld [vmem:[%s14116_s25 + $0x50] ss:$0 sps:$4 sm:$0x11]   ;;  %10295 = vmatpush1.bf16.msra.mxu1 %v13719_v1 }
 0x255   : > { %9719 = vrot.lane.b32.xlu0 %v13702_v51, %s14004_s7  ;;  %v5885_v52 = vpop.f32.mrb[118].mxu1  ;;  %12794 = vmatprep.mubr.msk.bf16.mxu0 %vm761_vm3, %v8754_v59  ;;  %v4749_v57 = vpop.f32.mrb[139].mxu0  ;;  %v13705_v53 = vld [vmem:[%s14116_s25 + $0x10] sm:$0xfc]   ;;  %v13722_v59 = vld [vmem:[%s14116_s25 + $0x660] sm:$0xff]  }
 0x256   : > { %7941 = vmatmul.mubr.bf16.gmra.mrb[220].mxu1 %v7617_v17  ;;  %8491 = vrot.lane.b32.xlu1 %v13709_v36, %s14004_s7  ;;  %v17177_v23 = vadd.f32 %v5885_v52, %v4739_v21  ;;  %v5887_v55 = vpop.f32.mrb[119].mxu1  ;;  %v7621_v21 = vsel %vm761_vm3, %v13714_v16, %v16949_v44  ;;  %v4752_v60 = vpop.f32.mrb[140].mxu0  ;;  %v8758_v17 = vrot.slane %v13717_v31, 1 }
 0x257   : > { %v17041_v37 = vpop.permute.xlu1 %8435  ;;  %v17043_v22 = vpop.permute.xlu0 %8433  ;;  %12660 = vmatprep.mubr.msk.bf16.mxu1 %vm761_vm3, %v13713_v18 }
 0x258   : > { %v8632_v13 = vsel %vm761_vm3, %v13711_v26, %v17041_v37  ;;  %v8629_v54 = vsel %vm761_vm3, %v13712_v19, %v17043_v22  ;;  %v4754_v51 = vpop.f32.mrb[141].mxu0  ;;  %v8760_v36 = vsel %vm2550_vm5, %v8758_v17, %v8759_v39  ;;  %v9860_v26 = vsel %vm761_vm3, %v13704_v2, %v17016_v14  ;;  %v13729_v39 = vld [vmem:[%s14116_s25 + $0x68] sm:$0xfe]  }
 0x259   : > { %8489 = vrot.lane.b32.xlu0 %v13710_v61, %s14004_s7  ;;  %v8756_v38 = vrot.slane %v8632_v13, 1  ;;  %v8755_v24 = vrot.slane %v8629_v54, 1  ;;  %v4755_v35 = vpop.f32.mrb[142].mxu0  ;;  %v13726_v13 = vld [vmem:[%s14116_s25 + $0x4c8] sm:$0xfe]  }
 0x25a   : > { %v13727_v54 = vld [vmem:[%s14116_s25 + $0x4d0] ss:$0 sps:$4 sm:$0x11]  }
 0x25b   : > { %v17063_v50 = vpop.permute.xlu1 %9669  ;;  %9071 = vmatmul.mubr.bf16.vlgmr.msra.gmra.mrb[248].mxu0 %v8751_v6  ;;  %v5890_v12 = vpop.f32.mrb[120].mxu1  ;;  %v8757_v30 = vsel %vm2550_vm5, %v8755_v24, %v8756_v38  ;;  %v13721_v6 = vld [vmem:[%s14116_s25 + $0x48] sm:$0xfe]   ;;  %v8764_v38 = vrot.slane %v13726_v13, 1  ;;  %v8765_v24 = vrot.slane %v13727_v54, 1 }
 0x25c   : > { %v17065_v5 = vpop.permute.xlu0 %9667  ;;  %v17190_v32 = vadd.f32 %v5890_v12, %v4744_v28  ;;  %v5892_v22 = vpop.f32.mrb[121].mxu1  ;;  %12795 = vmatprep.mubr.msk.bf16.mxu0 %vm761_vm3, %v8760_v36  ;;  %v13728_v51 = vld [vmem:[%s14116_s25 + $0x70] ss:$0 sps:$4 sm:$0x11]  }
 0x25d   : > { %v5893_v44 = vpop.f32.mrb[122].mxu1  ;;  %v4757_v28 = vpop.f32.mrb[143].mxu0  ;;  %v8766_v2 = vsel %vm2550_vm5, %v8764_v38, %v8765_v24  ;;  %v13731_v36 = vld [vmem:[%s14116_s25 + $0x498] ss:$0 sps:$4 sm:$0x33]  }
 0x25e   : > { %7949 = vmatmul.mubr.bf16.gmra.mrb[224].mxu1 %v7621_v21  ;;  %v17199_v25 = vadd.f32 %v5893_v44, %v4747_v47  ;;  %v5895_v56 = vpop.f32.mrb[123].mxu1  ;;  %v13723_v47 = vld [vmem:[%s14116_s25 + $0x1e0] sm:$0xff]   ;;  %v9984_v21 = vrot.slane %v9860_v26, 2  ;;  %v4760_v14 = vpop.f32.mrb[144].mxu0  ;;  %v13733_v26 = vld [vmem:[%s14116_s25 + $0x430] sm:$0xfc]  }
 0x25f   : > { %v17090_v0 = vpop.permute.xlu1 %8439  ;;  %12661 = vmatprep.mubr.msk.bf16.mxu1 %vm761_vm3, %v13722_v59  ;;  %v13715_v44 = vld [vmem:[%s14116_s25 + $0x38] ss:$0 sps:$4 sm:$0x33]   ;;  %9723 = vrot.lane.b32.xlu0 %v13733_v26, %s14004_s7 }
 0x260   : > { %v17095_v11 = vpop.permute.xlu0 %8437  ;;  %v8638_v61 = vsel %vm761_vm3, %v13720_v48, %v17090_v0  ;;  %v7625_v0 = vsel %vm761_vm3, %v13723_v47, %v16964_v20  ;;  %v4762_v20 = vpop.f32.mrb[145].mxu0 }
 0x261   : > { %v8635_v52 = vsel %vm761_vm3, %v13721_v6, %v17095_v11  ;;  %v8762_v18 = vrot.slane %v8638_v61, 1  ;;  %v9857_v11 = vsel %vm761_vm3, %v13705_v53, %v17018_v43  ;;  %v4763_v43 = vpop.f32.mrb[146].mxu0  ;;  %v13730_v53 = vld [vmem:[%s14116_s25 + $0x490] sm:$0xfc]  }
 0x262   : > { %v8761_v19 = vrot.slane %v8635_v52, 1  ;;  %v9983_v41 = vrot.slane %v9857_v11, 2  ;;  %v4765_v56 = vpop.f32.mrb[147].mxu0  ;;  %v13732_v6 = vld [vmem:[%s14116_s25 + $0x438] ss:$0 sps:$4 sm:$0x33]  }
 0x263   : > { %v17111_v33 = vpop.permute.xlu1 %9673  ;;  %v5898_v3 = vpop.f32.mrb[124].mxu1  ;;  %9079 = vmatmul.mubr.bf16.gmra.mrb[252].mxu0 %v8757_v30  ;;  %v13716_v30 = vld [vmem:[%s14116_s25 + $0x30] sm:$0xfc]   ;;  %v9987_v52 = vrot.slane %v13731_v36, 2  ;;  %9725 = vrot.lane.b32.xlu1 %v13732_v6, %s14004_s7  ;;  %s14005_s7 = smov [#allocation3]  }
 0x264   : > { %v17116_v27 = vpop.permute.xlu0 %9671  ;;  %v17218_v55 = vadd.f32 %v5898_v3, %v4752_v60  ;;  %v5900_v12 = vpop.f32.mrb[125].mxu1  ;;  %v8763_v60 = vsel %vm2550_vm5, %v8761_v19, %v8762_v18  ;;  %12796 = vmatprep.mubr.msk.bf16.mxu0 %vm761_vm3, %v8766_v2  ;;  %v9986_v3 = vrot.slane %v13730_v53, 2  ;;  %v9985_v47 = vsel %vm1536_vm0, %v9983_v41, %v9984_v21  ;;  %v13740_v53 = vld [vmem:[%s14116_s25 + $0x4b0] sm:$0xfc]   ;;  %s13927_s10 = sshll.u32 %s14005_s7, 4  ;;  %s13928_s10 = int_to_ptr.vmem [resolvable:$false] %s13927_s10 }
 0x265   : > { %v5901_v31 = vpop.f32.mrb[126].mxu1  ;;  %v9866_v18 = vsel %vm761_vm3, %v13715_v44, %v17063_v50  ;;  %v13736_v50 = vld [vmem:[%s14116_s25 + $0x4e8] sm:$0xfe]   ;;  %v13725_v44 = vld [vmem:[%s14116_s25 + $0x50] sm:$0xfc]   ;;  %p13930_p1 = scmp.lt.s32.totalorder %s17999_s16, %s13928_s10 }
 0x266   : > { %7957 = vmatmul.mubr.bf16.gmra.mrb[228].mxu1 %v7625_v0  ;;  %v17234_v22 = vadd.f32 %v5901_v31, %v4755_v35  ;;  %v5903_v17 = vpop.f32.mrb[127].mxu1  ;;  %v9988_v19 = vsel %vm1536_vm0, %v9986_v3, %v9987_v52  ;;  %v4768_v0 = vpop.f32.mrb[148].mxu0  ;;  %v9990_v12 = vrot.slane %v9866_v18, 2  ;;  %v13724_v31 = vld [vmem:[%s14116_s25 + $0x58] ss:$0 sps:$4 sm:$0x33]  }
 0x267   : > { %v17135_v45 = vpop.permute.xlu1 %8443  ;;  %12942 = vmatprep.mubr.msk.bf16.mxu1 %vm761_vm3, %v9988_v19  ;;  %v8770_v41 = vrot.slane %v13736_v50, 1  ;;  %v13741_v6 = vld [vmem:[%s14116_s25 + $0x4b8] ss:$0 sps:$4 sm:$0x33]   ;;  %v9869_v19 = vsel %vm761_vm3, %v13725_v44, %v17116_v27  ;;  %v13744_v50 = vld [vmem:[%s14116_s25 + $0x508] sm:$0xfe]  }
 0x268   : > { %v17137_v4 = vpop.permute.xlu0 %8441  ;;  %v8644_v61 = vsel %vm761_vm3, %v13728_v51, %v17135_v45  ;;  %v9863_v45 = vsel %vm761_vm3, %v13716_v30, %v17065_v5  ;;  %v13737_v5 = vld [vmem:[%s14116_s25 + $0x4f0] ss:$0 sps:$4 sm:$0x11]   ;;  %v9993_v26 = vrot.slane %v13741_v6, 2  ;;  %v8776_v27 = vrot.slane %v13744_v50, 1 }
 0x269   : > { %v8641_v59 = vsel %vm761_vm3, %v13729_v39, %v17137_v4  ;;  %v8768_v4 = vrot.slane %v8644_v61, 1  ;;  %v9989_v20 = vrot.slane %v9863_v45, 2  ;;  %v8771_v2 = vrot.slane %v13737_v5, 1  ;;  %v13738_v39 = vld [vmem:[%s14116_s25 + $0x90] ss:$0 sps:$4 sm:$0x11]  }
 0x26a   : > { %v8767_v11 = vrot.slane %v8641_v59, 1  ;;  %v9992_v59 = vrot.slane %v13740_v53, 2  ;;  %v13746_v44 = vld [vmem:[%s14116_s25 + $0xb0] ss:$0 sps:$4 sm:$0x11]  }
 0x26b   : > { %v17159_v10 = vpop.permute.xlu1 %9677  ;;  %v5906_v1 = vpop.f32.mrb[128].mxu1  ;;  %9087 = vmatmul.mubr.bf16.gmra.mrb[0].mxu0 %v8763_v60  ;;  %v8772_v30 = vsel %vm2550_vm5, %v8770_v41, %v8771_v2 }
 0x26c   : > { %v17161_v40 = vpop.permute.xlu0 %9675  ;;  %v17242_v48 = vadd.f32 %v5906_v1, %v4760_v14  ;;  %v5908_v21 = vpop.f32.mrb[129].mxu1  ;;  %v8769_v56 = vsel %vm2550_vm5, %v8767_v11, %v8768_v4  ;;  %v13739_v1 = vld [vmem:[%s14116_s25 + $0x88] sm:$0xfe]   ;;  %12797 = vmatprep.mubr.msk.bf16.mxu0 %vm761_vm3, %v8772_v30  ;;  %v9991_v4 = vsel %vm1536_vm0, %v9989_v20, %v9990_v12  ;;  %v9994_v11 = vsel %vm1536_vm0, %v9992_v59, %v9993_v26  ;;  %v13749_v59 = vld [vmem:[%s14116_s25 + $0x4d8] ss:$0 sps:$4 sm:$0x33]  }
 0x26d   : > { %v4770_v14 = vpop.f32.mrb[149].mxu0  ;;  %v5909_v38 = vpop.f32.mrb[130].mxu1 }
 0x26e   : > { %10305 = vmatmul.mubr.bf16.vlgmr.msra.gmra.mrb[232].mxu1 %v9985_v47  ;;  %v4771_v24 = vpop.f32.mrb[150].mxu0  ;;  %v17272_v60 = vadd.f32 %v5909_v38, %v4763_v43  ;;  %v5911_v17 = vpop.f32.mrb[131].mxu1  ;;  %v9872_v47 = vsel %vm761_vm3, %v13724_v31, %v17111_v33  ;;  %v13745_v33 = vld [vmem:[%s14116_s25 + $0x510] ss:$0 sps:$4 sm:$0x11]   ;;  %v9995_v38 = vrot.slane %v9869_v19, 2 }
 0x26f   : > { %v17169_v9 = vpop.permute.xlu1 %8447  ;;  %v4773_v51 = vpop.f32.mrb[151].mxu0  ;;  %v9996_v14 = vrot.slane %v9872_v47, 2  ;;  %12943 = vmatprep.mubr.msk.bf16.mxu1 %vm761_vm3, %v9994_v11  ;;  %v13734_v31 = vld [vmem:[%s14116_s25 + $0x78] ss:$0 sps:$4 sm:$0x33]   ;;  %v9999_v19 = vrot.slane %v13749_v59, 2 }
 0x270   : > { %v17171_v46 = vpop.permute.xlu0 %8445  ;;  %v8650_v36 = vsel %vm761_vm3, %v13738_v39, %v17169_v9  ;;  %v4776_v9 = vpop.f32.mrb[152].mxu0  ;;  %v13735_v17 = vld [vmem:[%s14116_s25 + $0x70] sm:$0xfc]   ;;  %v8777_v51 = vrot.slane %v13745_v33, 1  ;;  %v9878_v47 = vsel %vm761_vm3, %v13734_v31, %v17159_v10 }
 0x271   : > { %v8647_v61 = vsel %vm761_vm3, %v13739_v1, %v17171_v46  ;;  %v8774_v45 = vrot.slane %v8650_v36, 1  ;;  %v13747_v1 = vld [vmem:[%s14116_s25 + $0xa8] sm:$0xfe]   ;;  %v10002_v10 = vrot.slane %v9878_v47, 2  ;;  %v13743_v59 = vld [vmem:[%s14116_s25 + $0x90] sm:$0xfc]  }
 0x272   : > { %v8773_v46 = vrot.slane %v8647_v61, 1  ;;  %v13748_v61 = vld [vmem:[%s14116_s25 + $0x4d0] sm:$0xfc]  }
 0x273   : > { %v17192_v49 = vpop.permute.xlu1 %9681  ;;  %9095 = vmatmul.mubr.bf16.gmra.mrb[4].mxu0 %v8769_v56  ;;  %v5914_v3 = vpop.f32.mrb[132].mxu1  ;;  %v9998_v26 = vrot.slane %v13748_v61, 2  ;;  %v13757_v61 = vld [vmem:[%s14116_s25 + $0x4f8] ss:$0 sps:$4 sm:$0x33]  }
 0x274   : > { %v17195_v37 = vpop.permute.xlu0 %9679  ;;  %v17292_v18 = vadd.f32 %v5914_v3, %v4768_v0  ;;  %v5916_v21 = vpop.f32.mrb[133].mxu1  ;;  %v8775_v56 = vsel %vm2550_vm5, %v8773_v46, %v8774_v45 }
 0x275   : > { %v4778_v0 = vpop.f32.mrb[153].mxu0  ;;  %v5917_v5 = vpop.f32.mrb[134].mxu1  ;;  %v10000_v50 = vsel %vm1536_vm0, %v9998_v26, %v9999_v19  ;;  %v13752_v21 = vld [vmem:[%s14116_s25 + $0x528] sm:$0xfe]   ;;  %v10005_v19 = vrot.slane %v13757_v61, 2 }
 0x276   : > { %10313 = vmatmul.mubr.bf16.gmra.mrb[236].mxu1 %v9991_v4  ;;  %v17302_v41 = vadd.f32 %v5917_v5, %v4771_v24  ;;  %v4779_v12 = vpop.f32.mrb[154].mxu0  ;;  %v5919_v20 = vpop.f32.mrb[135].mxu1  ;;  %v8778_v24 = vsel %vm2550_vm5, %v8776_v27, %v8777_v51  ;;  %v9997_v4 = vsel %vm1536_vm0, %v9995_v38, %v9996_v14  ;;  %v13753_v0 = vld [vmem:[%s14116_s25 + $0x530] ss:$0 sps:$4 sm:$0x11]   ;;  %v8782_v14 = vrot.slane %v13752_v21, 1 }
 0x277   : > { %v17206_v15 = vpop.permute.xlu1 %8451  ;;  %v4781_v30 = vpop.f32.mrb[155].mxu0  ;;  %12798 = vmatprep.mubr.msk.bf16.mxu0 %vm761_vm3, %v8778_v24  ;;  %12944 = vmatprep.mubr.msk.bf16.mxu1 %vm761_vm3, %v10000_v50  ;;  %v8783_v20 = vrot.slane %v13753_v0, 1 }
 0x278   : > { %v17225_v57 = vpop.permute.xlu0 %8449  ;;  %v8656_v6 = vsel %vm761_vm3, %v13746_v44, %v17206_v15  ;;  %v13742_v15 = vld [vmem:[%s14116_s25 + $0x98] ss:$0 sps:$4 sm:$0x33]   ;;  %v13754_v44 = vld [vmem:[%s14116_s25 + $0xd0] ss:$0 sps:$4 sm:$0x11]  }
 0x279   : > { %v8653_v3 = vsel %vm761_vm3, %v13747_v1, %v17225_v57  ;;  %v8780_v45 = vrot.slane %v8656_v6, 1  ;;  %v4784_v57 = vpop.f32.mrb[156].mxu0  ;;  %v13755_v30 = vld [vmem:[%s14116_s25 + $0xc8] sm:$0xfe]   ;;  %v17344_v24 = vsel %vm761_vm3, %v13742_v15, %v17192_v49 }
 0x27a   : > { %v8779_v11 = vrot.slane %v8653_v3, 1  ;;  %v4786_v5 = vpop.f32.mrb[157].mxu0 }
 0x27b   : > { %v17227_v16 = vpop.permute.xlu1 %9685  ;;  %9103 = vmatmul.mubr.bf16.gmra.mrb[8].mxu0 %v8775_v56  ;;  %v4787_v27 = vpop.f32.mrb[158].mxu0  ;;  %v13761_v5 = vld [vmem:[%s14116_s25 + $0x550] ss:$0 sps:$4 sm:$0x11]  }
 0x27c   : > { %v17244_v28 = vpop.permute.xlu0 %9683  ;;  %v4789_v56 = vpop.f32.mrb[159].mxu0  ;;  %v8781_v1 = vsel %vm2550_vm5, %v8779_v11, %v8780_v45  ;;  %v13750_v45 = vld [vmem:[%s14116_s25 + $0xb8] ss:$0 sps:$4 sm:$0x33]  }
 0x27d   : > { %v5922_v53 = vpop.f32.mrb[136].mxu1  ;;  %v4792_v11 = vpop.f32.mrb[160].mxu0 }
 0x27e   : > { %v17313_v36 = vadd.f32 %v5922_v53, %v4776_v9  ;;  %v9875_v9 = vsel %vm761_vm3, %v13735_v17, %v17161_v40  ;;  %v5924_v40 = vpop.f32.mrb[137].mxu1  ;;  %10321 = vmatmul.mubr.bf16.gmra.mrb[240].mxu1 %v9997_v4  ;;  %v8784_v53 = vsel %vm2550_vm5, %v8782_v14, %v8783_v20  ;;  %v4794_v14 = vpop.f32.mrb[161].mxu0 }
 0x27f   : > { %v17246_v35 = vpop.permute.xlu1 %8455  ;;  %v10001_v31 = vrot.slane %v9875_v9, 2  ;;  %v5925_v38 = vpop.f32.mrb[138].mxu1  ;;  %12799 = vmatprep.mubr.msk.bf16.mxu0 %vm761_vm3, %v8784_v53  ;;  %v10008_v9 = vrot.slane %v17344_v24, 2  ;;  %v13760_v40 = vld [vmem:[%s14116_s25 + $0x548] sm:$0xfe]  }
 0x280   : > { %v17265_v13 = vpop.permute.xlu0 %8453  ;;  %v17336_v17 = vadd.f32 %v5925_v38, %v4779_v12  ;;  %v5927_v51 = vpop.f32.mrb[139].mxu1  ;;  %v8662_v6 = vsel %vm761_vm3, %v13754_v44, %v17246_v35  ;;  %v13756_v12 = vld [vmem:[%s14116_s25 + $0x4f0] sm:$0xfc]   ;;  %v8789_v44 = vrot.slane %v13761_v5, 1  ;;  %v13763_v24 = vld [vmem:[%s14116_s25 + $0xe8] sm:$0xfe]  }
 0x281   : > { %v8659_v3 = vsel %vm761_vm3, %v13755_v30, %v17265_v13  ;;  %v10004_v26 = vrot.slane %v13756_v12, 2  ;;  %v8786_v35 = vrot.slane %v8662_v6, 1  ;;  %v10003_v4 = vsel %vm1536_vm0, %v10001_v31, %v10002_v10  ;;  %v13751_v38 = vld [vmem:[%s14116_s25 + $0xb0] sm:$0xfc]   ;;  %v4795_v51 = vpop.f32.mrb[162].mxu0 }
 0x282   : > { %v8785_v50 = vrot.slane %v8659_v3, 1  ;;  %v9881_v10 = vsel %vm761_vm3, %v13743_v59, %v17195_v37  ;;  %v8788_v31 = vrot.slane %v13760_v40, 1  ;;  %v9890_v12 = vsel %vm761_vm3, %v13750_v45, %v17227_v16  ;;  %v4797_v61 = vpop.f32.mrb[163].mxu0  ;;  %v13765_v16 = vld [vmem:[%s14116_s25 + $0x518] ss:$0 sps:$4 sm:$0x33]  }
 0x283   : > { %v17267_v54 = vpop.permute.xlu1 %9689  ;;  %9111 = vmatmul.mubr.bf16.gmra.mrb[12].mxu0 %v8781_v1  ;;  %v10006_v13 = vsel %vm1536_vm0, %v10004_v26, %v10005_v19  ;;  %v13762_v1 = vld [vmem:[%s14116_s25 + $0xf0] ss:$0 sps:$4 sm:$0x11]   ;;  %v10007_v3 = vrot.slane %v9881_v10, 2  ;;  %v13764_v19 = vld [vmem:[%s14116_s25 + $0x510] sm:$0xfc]  }
 0x284   : > { %v17284_v43 = vpop.permute.xlu0 %9687  ;;  %12945 = vmatprep.mubr.msk.bf16.mxu1 %vm761_vm3, %v10006_v13  ;;  %v8787_v53 = vsel %vm2550_vm5, %v8785_v50, %v8786_v35  ;;  %v8790_v37 = vsel %vm2550_vm5, %v8788_v31, %v8789_v44  ;;  %v10014_v45 = vrot.slane %v9890_v12, 2  ;;  %v10010_v50 = vrot.slane %v13764_v19, 2  ;;  %v13769_v10 = vld [vmem:[%s14116_s25 + $0x570] ss:$0 sps:$4 sm:$0x11]  }
 0x285   : > { %12800 = vmatprep.mubr.msk.bf16.mxu0 %vm761_vm3, %v8790_v37  ;;  %v13758_v44 = vld [vmem:[%s14116_s25 + $0xd8] ss:$0 sps:$4 sm:$0x33]   ;;  %v13770_v61 = vld [vmem:[%s14116_s25 + $0x110] ss:$0 sps:$4 sm:$0x11]  }
 0x286   : > { %v5930_v15 = vpop.f32.mrb[140].mxu1  ;;  %10329 = vmatmul.mubr.bf16.gmra.mrb[244].mxu1 %v10003_v4  ;;  %v4800_v4 = vpop.f32.mrb[164].mxu0 }
 0x287   : > { %v17288_v52 = vpop.permute.xlu1 %8459  ;;  %v17362_v21 = vadd.f32 %v5930_v15, %v4784_v57  ;;  %v5932_v0 = vpop.f32.mrb[141].mxu1  ;;  %v9887_v15 = vsel %vm761_vm3, %v13751_v38, %v17244_v28  ;;  %v13759_v28 = vld [vmem:[%s14116_s25 + $0xd0] sm:$0xfc]  }
 0x288   : > { %v17306_v2 = vpop.permute.xlu0 %8457  ;;  %v5933_v20 = vpop.f32.mrb[142].mxu1  ;;  %v10011_v0 = vrot.slane %v13765_v16, 2  ;;  %v10013_v5 = vrot.slane %v9887_v15, 2  ;;  %v13772_v16 = vld [vmem:[%s14116_s25 + $0x530] sm:$0xfc]  }
 0x289   : > { %v17370_v56 = vadd.f32 %v5933_v20, %v4787_v27  ;;  %v5935_v57 = vpop.f32.mrb[143].mxu1  ;;  %v8668_v27 = vsel %vm761_vm3, %v13762_v1, %v17288_v52  ;;  %v8665_v26 = vsel %vm761_vm3, %v13763_v24, %v17306_v2  ;;  %v13768_v20 = vld [vmem:[%s14116_s25 + $0x568] sm:$0xfe]   ;;  %v4802_v38 = vpop.f32.mrb[165].mxu0 }
 0x28a   : > { %v8792_v13 = vrot.slane %v8668_v27, 1  ;;  %v8791_v52 = vrot.slane %v8665_v26, 1  ;;  %v10012_v14 = vsel %vm1536_vm0, %v10010_v50, %v10011_v0  ;;  %v8794_v1 = vrot.slane %v13768_v20, 1  ;;  %v4803_v24 = vpop.f32.mrb[166].mxu0  ;;  %v13771_v27 = vld [vmem:[%s14116_s25 + $0x108] sm:$0xfe]  }
 0x28b   : > { %v17308_v39 = vpop.permute.xlu1 %9693  ;;  %9119 = vmatmul.mubr.bf16.gmra.mrb[16].mxu0 %v8787_v53  ;;  %12946 = vmatprep.mubr.msk.bf16.mxu1 %vm761_vm3, %v10012_v14  ;;  %v13773_v15 = vld [vmem:[%s14116_s25 + $0x538] ss:$0 sps:$4 sm:$0x33]   ;;  %v9896_v50 = vsel %vm761_vm3, %v13758_v44, %v17267_v54  ;;  %v13776_v54 = vld [vmem:[%s14116_s25 + $0x588] sm:$0xfe]  }
 0x28c   : > { %v17327_v46 = vpop.permute.xlu0 %9691  ;;  %v8793_v37 = vsel %vm2550_vm5, %v8791_v52, %v8792_v13  ;;  %v9893_v13 = vsel %vm761_vm3, %v13759_v28, %v17284_v43  ;;  %v10016_v52 = vrot.slane %v13772_v16, 2  ;;  %v10017_v14 = vrot.slane %v13773_v15, 2  ;;  %v13777_v44 = vld [vmem:[%s14116_s25 + $0x590] ss:$0 sps:$4 sm:$0x11]  }
 0x28d   : > { %v10020_v43 = vrot.slane %v9896_v50, 2  ;;  %v10019_v28 = vrot.slane %v9893_v13, 2  ;;  %v13779_v15 = vld [vmem:[%s14116_s25 + $0x128] sm:$0xfe]  }
 0x28e   : > { %v5938_v59 = vpop.f32.mrb[144].mxu1  ;;  %v10018_v38 = vsel %vm1536_vm0, %v10016_v52, %v10017_v14  ;;  %v13780_v52 = vld [vmem:[%s14116_s25 + $0x550] sm:$0xfc]  }
 0x28f   : > { %v17332_v33 = vpop.permute.xlu1 %8463  ;;  %v17388_v35 = vadd.f32 %v5938_v59, %v4792_v11  ;;  %v5940_v40 = vpop.f32.mrb[145].mxu1  ;;  %v10009_v11 = vsel %vm1536_vm0, %v10007_v3, %v10008_v9  ;;  %v8795_v9 = vrot.slane %v13769_v10, 1  ;;  %v10022_v14 = vrot.slane %v13780_v52, 2  ;;  %v13786_v52 = vld [vmem:[%s14116_s25 + $0x150] ss:$0 sps:$4 sm:$0x11]  }
 0x290   : > { %v5941_v57 = vpop.f32.mrb[146].mxu1  ;;  %10337 = vmatmul.mubr.bf16.gmra.mrb[248].mxu1 %v10009_v11  ;;  %v4805_v59 = vpop.f32.mrb[167].mxu0  ;;  %v8674_v19 = vsel %vm761_vm3, %v13770_v61, %v17332_v33  ;;  %v13767_v61 = vld [vmem:[%s14116_s25 + $0xf0] sm:$0xfc]  }
 0x291   : > { %v17354_v47 = vpop.permute.xlu0 %8461  ;;  %v17404_v53 = vadd.f32 %v5941_v57, %v4795_v51  ;;  %v5943_v12 = vpop.f32.mrb[147].mxu1  ;;  %v8796_v3 = vsel %vm2550_vm5, %v8794_v1, %v8795_v9  ;;  %v8798_v33 = vrot.slane %v8674_v19, 1  ;;  %12947 = vmatprep.mubr.msk.bf16.mxu1 %vm761_vm3, %v10018_v38  ;;  %v13778_v19 = vld [vmem:[%s14116_s25 + $0x130] ss:$0 sps:$4 sm:$0x11]  }
 0x292   : > { %12801 = vmatprep.mubr.msk.bf16.mxu0 %vm761_vm3, %v8796_v3  ;;  %v8671_v51 = vsel %vm761_vm3, %v13771_v27, %v17354_v47  ;;  %v4808_v10 = vpop.f32.mrb[168].mxu0  ;;  %v10015_v47 = vsel %vm1536_vm0, %v10013_v5, %v10014_v45  ;;  %v8800_v12 = vrot.slane %v13776_v54, 1  ;;  %v8801_v45 = vrot.slane %v13777_v44, 1 }
 0x293   : > { %v17356_v49 = vpop.permute.xlu1 %9697  ;;  %9127 = vmatmul.mubr.bf16.gmra.mrb[20].mxu0 %v8793_v37  ;;  %v8797_v11 = vrot.slane %v8671_v51, 1  ;;  %v4810_v9 = vpop.f32.mrb[169].mxu0 }
 0x294   : > { %v4811_v37 = vpop.f32.mrb[170].mxu0  ;;  %v8802_v51 = vsel %vm2550_vm5, %v8800_v12, %v8801_v45 }
 0x295   : > { %v17373_v30 = vpop.permute.xlu0 %9695  ;;  %v8799_v59 = vsel %vm2550_vm5, %v8797_v11, %v8798_v33  ;;  %v4813_v50 = vpop.f32.mrb[171].mxu0  ;;  %12802 = vmatprep.mubr.msk.bf16.mxu0 %vm761_vm3, %v8802_v51  ;;  %v13781_v33 = vld [vmem:[%s14116_s25 + $0x558] ss:$0 sps:$4 sm:$0x33]  }
 0x296   : > { %v10023_v54 = vrot.slane %v13781_v33, 2  ;;  %v13775_v50 = vld [vmem:[%s14116_s25 + $0x110] sm:$0xfc]   ;;  %v13787_v33 = vld [vmem:[%s14116_s25 + $0x148] sm:$0xfe]  }
 0x297   : > { %v17377_v6 = vpop.permute.xlu1 %8467 }
 0x298   : > { %10345 = vmatmul.mubr.bf16.gmra.mrb[252].mxu1 %v10015_v47  ;;  %v4816_v47 = vpop.f32.mrb[172].mxu0 }
 0x299   : > { %v17393_v2 = vpop.permute.xlu0 %8465  ;;  %v5946_v0 = vpop.f32.mrb[148].mxu1 }
 0x29a   : > { %v17425_v20 = vadd.f32 %v5946_v0, %v4800_v4  ;;  %v5948_v1 = vpop.f32.mrb[149].mxu1  ;;  %v13766_v4 = vld [vmem:[%s14116_s25 + $0xf8] ss:$0 sps:$4 sm:$0x33]   ;;  %v8677_v11 = vsel %vm761_vm3, %v13779_v15, %v17393_v2  ;;  %v4818_v44 = vpop.f32.mrb[173].mxu0  ;;  %v10024_v2 = vsel %vm1536_vm0, %v10022_v14, %v10023_v54 }
 0x29b   : > { %v17399_v31 = vpop.permute.xlu1 %9701  ;;  %v5949_v5 = vpop.f32.mrb[150].mxu1  ;;  %9135 = vmatmul.mubr.bf16.gmra.mrb[24].mxu0 %v8799_v59  ;;  %v9902_v38 = vsel %vm761_vm3, %v13766_v4, %v17308_v39  ;;  %v9899_v1 = vsel %vm761_vm3, %v13767_v61, %v17327_v46  ;;  %v8803_v45 = vrot.slane %v8677_v11, 1  ;;  %12948 = vmatprep.mubr.msk.bf16.mxu1 %vm761_vm3, %v10024_v2 }
 0x29c   : > { %v17437_v3 = vadd.f32 %v5949_v5, %v4803_v24  ;;  %v5951_v27 = vpop.f32.mrb[151].mxu1  ;;  %v8680_v24 = vsel %vm761_vm3, %v13778_v19, %v17377_v6  ;;  %v13774_v6 = vld [vmem:[%s14116_s25 + $0x118] ss:$0 sps:$4 sm:$0x33]   ;;  %v13784_v5 = vld [vmem:[%s14116_s25 + $0x5a8] sm:$0xfe]  }
 0x29d   : > { %v8804_v9 = vrot.slane %v8680_v24, 1  ;;  %v10026_v39 = vrot.slane %v9902_v38, 2  ;;  %v10025_v4 = vrot.slane %v9899_v1, 2  ;;  %v8806_v61 = vrot.slane %v13784_v5, 1 }
 0x29e   : > { %v9908_v44 = vsel %vm761_vm3, %v13774_v6, %v17356_v49  ;;  %v13789_v1 = vld [vmem:[%s14116_s25 + $0x578] ss:$0 sps:$4 sm:$0x33]  }
 0x29f   : > { %v17410_v26 = vpop.permute.xlu0 %9699  ;;  %v17423_v40 = vpop.permute.xlu1 %8471  ;;  %v8805_v24 = vsel %vm2550_vm5, %v8803_v45, %v8804_v9  ;;  %v10027_v6 = vsel %vm1536_vm0, %v10025_v4, %v10026_v39  ;;  %v13792_v39 = vld [vmem:[%s14116_s25 + $0x5c8] sm:$0xfe]  }
 0x2a1   : > { %v5954_v13 = vpop.f32.mrb[152].mxu1 }
 0x2a2   : > { %v17446_v0 = vadd.f32 %v5954_v13, %v4808_v10  ;;  %v10021_v10 = vsel %vm1536_vm0, %v10019_v28, %v10020_v43  ;;  %v5956_v59 = vpop.f32.mrb[153].mxu1  ;;  %v13785_v43 = vld [vmem:[%s14116_s25 + $0x5b0] ss:$0 sps:$4 sm:$0x11]   ;;  %v4819_v28 = vpop.f32.mrb[174].mxu0 }
 0x2a3   : > { %v17431_v57 = vpop.permute.xlu0 %8469  ;;  %v5957_v46 = vpop.f32.mrb[154].mxu1  ;;  %10353 = vmatmul.mubr.bf16.gmra.mrb[0].mxu1 %v10021_v10  ;;  %v8807_v13 = vrot.slane %v13785_v43, 1  ;;  %v13788_v10 = vld [vmem:[%s14116_s25 + $0x570] sm:$0xfc]   ;;  %v10679_v43 = vsub.s32 2, %v15296_v7 }
 0x2a4   : > { %v17440_v16 = vpop.permute.xlu1 %9705  ;;  %v17467_v19 = vadd.f32 %v5957_v46, %v4811_v37  ;;  %v4821_v51 = vpop.f32.mrb[175].mxu0  ;;  %v8686_v37 = vsel %vm761_vm3, %v13786_v52, %v17423_v40  ;;  %v8683_v45 = vsel %vm761_vm3, %v13787_v33, %v17431_v57  ;;  %v10028_v5 = vrot.slane %v13788_v10, 2 }
 0x2a5   : > { %v5959_v15 = vpop.f32.mrb[155].mxu1  ;;  %v4824_v11 = vpop.f32.mrb[176].mxu0  ;;  %v8808_v38 = vsel %vm2550_vm5, %v8806_v61, %v8807_v13  ;;  %v10032_v40 = vrot.slane %v9908_v44, 2  ;;  %v9905_v46 = vsel %vm761_vm3, %v13775_v50, %v17373_v30  ;;  %v8810_v61 = vrot.slane %v8686_v37, 1 }
 0x2a6   : > { %12803 = vmatprep.mubr.msk.bf16.mxu0 %vm761_vm3, %v8808_v38  ;;  %v4826_v2 = vpop.f32.mrb[177].mxu0  ;;  %v10031_v30 = vrot.slane %v9905_v46, 2  ;;  %v13793_v50 = vld [vmem:[%s14116_s25 + $0x5d0] ss:$0 sps:$4 sm:$0x11]   ;;  %v8812_v37 = vrot.slane %v13792_v39, 1 }
 0x2a7   : > { %v17458_v12 = vpop.permute.xlu0 %9703  ;;  %9143 = vmatmul.mubr.bf16.gmra.mrb[28].mxu0 %v8805_v24  ;;  %v4827_v59 = vpop.f32.mrb[178].mxu0  ;;  %v8809_v24 = vrot.slane %v8683_v45, 1  ;;  %v13782_v44 = vld [vmem:[%s14116_s25 + $0x138] ss:$0 sps:$4 sm:$0x33]   ;;  %v8813_v45 = vrot.slane %v13793_v50, 1 }
 0x2a8   : > { %v17463_v27 = vpop.permute.xlu1 %8475  ;;  %v4829_v51 = vpop.f32.mrb[179].mxu0  ;;  %v13783_v2 = vld [vmem:[%s14116_s25 + $0x130] sm:$0xfc]   ;;  %v13795_v46 = vld [vmem:[%s14116_s25 + $0x168] sm:$0xfe]  }
 0x2a9   : > { %v5962_v14 = vpop.f32.mrb[156].mxu1  ;;  %v17492_v13 = vpop.f32.mrb[180].mxu0  ;;  %v13796_v39 = vld [vmem:[%s14116_s25 + $0x590] sm:$0xfc]  }
 0x2aa   : > { %v17474_v54 = vadd.f32 %v5962_v14, %v4816_v47  ;;  %v10029_v47 = vrot.slane %v13789_v1, 2  ;;  %v5964_v15 = vpop.f32.mrb[157].mxu1  ;;  %v4834_v4 = vpop.f32.mrb[181].mxu0 }
 0x2ab   : > { %v8474_v9 = vpop.permute.xlu0 %8473  ;;  %v5965_v52 = vpop.f32.mrb[158].mxu1 }
 0x2ac   : > { %v17486_v49 = vpop.permute.xlu1 %9709  ;;  %v10030_v57 = vsel %vm1536_vm0, %v10028_v5, %v10029_v47  ;;  %v17496_v33 = vadd.f32 %v5965_v52, %v4819_v28  ;;  %v17499_v14 = vpop.f32.mrb[182].mxu0  ;;  %v13794_v5 = vld [vmem:[%s14116_s25 + $0x170] ss:$0 sps:$4 sm:$0x11]   ;;  %v13921_v28 = vld [vmem:[%s18054_s3] sm:$0xf] }
 0x2ad   : > { %12949 = vmatprep.mubr.msk.bf16.mxu1 %vm761_vm3, %v10030_v57  ;;  %v5967_v38 = vpop.f32.mrb[159].mxu1  ;;  %v4837_v10 = vpop.f32.mrb[183].mxu0  ;;  %v17509_v47 = vrot.slane %v13921_v28, %v10679_v43  ;;  %v8814_v57 = vsel %vm2550_vm5, %v8812_v37, %v8813_v45  ;;  %v8689_v43 = vsel %vm761_vm3, %v13795_v46, %v8474_v9  ;;  %v10033_v28 = vsel %vm1536_vm0, %v10031_v30, %v10032_v40 }
 0x2ae   : > { %10361 = vmatmul.mubr.bf16.gmra.mrb[4].mxu1 %v10027_v6  ;;  %v8811_v6 = vsel %vm2550_vm5, %v8809_v24, %v8810_v61  ;;  %v7004_v51 = vpop.f32.mrb[184].mxu0  ;;  %12804 = vmatprep.mubr.msk.bf16.mxu0 %vm761_vm3, %v8814_v57  ;;  %v8692_v38 = vsel %vm761_vm3, %v13794_v5, %v17463_v27  ;;  %v13797_v10 = vld [vmem:[%s14116_s25 + $0x598] ss:$0 sps:$4 sm:$0x33]   ;;  %v9911_v40 = vsel %vm761_vm3, %v13783_v2, %v17410_v26 }
 0x2af   : > { %v17502_v1 = vpop.permute.xlu0 %9707  ;;  %v7131_v52 = vadd.f32 %v7004_v51, %v17026_v63  ;;  %v7006_v61 = vpop.f32.mrb[185].mxu0  ;;  %9151 = vmatmul.mubr.bf16.gmra.mrb[32].mxu0 %v8811_v6  ;;  %v10034_v63 = vrot.slane %v13796_v39, 2  ;;  %v9914_v51 = vsel %vm761_vm3, %v13782_v44, %v17399_v31  ;;  %v10035_v27 = vrot.slane %v13797_v10, 2  ;;  %v13790_v2 = vld [vmem:[%s14116_s25 + $0x158] ss:$0 sps:$4 sm:$0x33]  }
 0x2b0   : > { %v8480_v50 = vpop.permute.xlu1 %8479  ;;  %v8816_v30 = vrot.slane %v8692_v38, 1  ;;  %v8815_v6 = vrot.slane %v8689_v43, 1  ;;  %v10038_v44 = vrot.slane %v9914_v51, 2  ;;  %v10037_v26 = vrot.slane %v9911_v40, 2  ;;  %v13791_v61 = vld [vmem:[%s14116_s25 + $0x150] sm:$0xfc]  }
 0x2b1   : > { %v5970_v15 = vpop.f32.mrb[160].mxu1  ;;  %v10691_v37 = vadd.f32 %v17509_v47, %v7131_v52  ;;  %v10036_v52 = vsel %vm1536_vm0, %v10034_v63, %v10035_v27  ;;  %v13802_v63 = vld [vmem:[%s14116_s25 + $0x190] ss:$0 sps:$4 sm:$0x11]   ;;  %v13803_v27 = vld [vmem:[%s14116_s25 + $0x188] sm:$0xfe]  }
 0x2b2   : > { %v17516_v4 = vadd.f32 %v5970_v15, %v4824_v11  ;;  %v5972_v24 = vpop.f32.mrb[161].mxu1  ;;  %v7007_v11 = vpop.f32.mrb[186].mxu0  ;;  %12950 = vmatprep.mubr.msk.bf16.mxu1 %vm761_vm3, %v10036_v52  ;;  %v8817_v51 = vsel %vm2550_vm5, %v8815_v6, %v8816_v30  ;;  %v13804_v52 = vld [vmem:[%s14116_s25 + $0x5b0] sm:$0xfc]   ;;  %v10039_v30 = vsel %vm1536_vm0, %v10037_v26, %v10038_v44  ;;  %v9920_v6 = vsel %vm761_vm3, %v13790_v2, %v17440_v16 }
 0x2b3   : > { %v5973_v45 = vpop.f32.mrb[162].mxu1  ;;  %v7132_v9 = vadd.f32 %v7007_v11, %v17050_v58  ;;  %v8478_v46 = vpop.permute.xlu0 %8477  ;;  %v10819_v15 = vmax.f32 %v10691_v37, 0.0  ;;  %v13800_v58 = vld [vmem:[%s14116_s25 + $0x5e8] sm:$0xfe]  }
 0x2b4   : > { %v17528_v5 = vadd.f32 %v5973_v45, %v4827_v59  ;;  %v5975_v57 = vpop.f32.mrb[163].mxu1  ;;  %v13801_v59 = vld [vmem:[%s14116_s25 + $0x5f0] ss:$0 sps:$4 sm:$0x11]   ;;  %v17538_v39 = vpop.permute.xlu1 %9713  ;;  %v8818_v24 = vrot.slane %v13800_v58, 1 }
 0x2b5   : > { %v10695_v31 = vadd.f32 %v17509_v47, %v7132_v9  ;;  %10947 = vst [vmem:[%s15422_s8 + $0x18] sm:$0xff] %v10819_v15  ;;  %v7009_v43 = vpop.f32.mrb[187].mxu0  ;;  %v8819_v37 = vrot.slane %v13801_v59, 1  ;;  %v8698_v15 = vsel %vm761_vm3, %v13802_v63, %v8480_v50  ;;  %v8695_v57 = vsel %vm761_vm3, %v13803_v27, %v8478_v46 }
 0x2b6   : > { %10369 = vmatmul.mubr.bf16.gmra.mrb[8].mxu1 %v10033_v28  ;;  %v7012_v11 = vpop.f32.mrb[188].mxu0  ;;  %v10040_v59 = vrot.slane %v13804_v52, 2  ;;  %v9917_v46 = vsel %vm761_vm3, %v13791_v61, %v17458_v12  ;;  %v10044_v61 = vrot.slane %v9920_v6, 2  ;;  %v13810_v52 = vld [vmem:[%s14116_s25 + $0x1b0] ss:$0 sps:$4 sm:$0x11]  }
 0x2b7   : > { %v10823_v38 = vmax.f32 %v10695_v31, 0.0  ;;  %v7133_v9 = vadd.f32 %v7012_v11, %v17071_v8  ;;  %v17550_v28 = vpop.permute.xlu0 %9711  ;;  %v8820_v40 = vsel %vm2550_vm5, %v8818_v24, %v8819_v37  ;;  %v13805_v31 = vld [vmem:[%s14116_s25 + $0x5b8] ss:$0 sps:$4 sm:$0x33]   ;;  %v7014_v8 = vpop.f32.mrb[189].mxu0  ;;  %v8822_v24 = vrot.slane %v8698_v15, 1 }
 0x2b8   : > { %12805 = vmatprep.mubr.msk.bf16.mxu0 %vm761_vm3, %v8820_v40  ;;  %v7015_v50 = vpop.f32.mrb[190].mxu0  ;;  %v8484_v43 = vpop.permute.xlu1 %8483  ;;  %v8821_v37 = vrot.slane %v8695_v57, 1  ;;  %v13808_v11 = vld [vmem:[%s14116_s25 + $0x608] sm:$0xfe]   ;;  %v10043_v27 = vrot.slane %v9917_v46, 2 }
 0x2b9   : > { %v5978_v10 = vpop.f32.mrb[164].mxu1  ;;  %10951 = vst [vmem:[%s15422_s8 + $0x40] sm:$0xff] %v10823_v38  ;;  %9159 = vmatmul.mubr.bf16.gmra.mrb[36].mxu0 %v8817_v51  ;;  %v10041_v38 = vrot.slane %v13805_v31, 2  ;;  %v7134_v44 = vadd.f32 %v7015_v50, %v17076_v42  ;;  %v13809_v51 = vld [vmem:[%s14116_s25 + $0x610] ss:$0 sps:$4 sm:$0x11]  }
 0x2ba   : > { %v17544_v45 = vadd.f32 %v5978_v10, %v17492_v13  ;;  %v10699_v13 = vadd.f32 %v17509_v47, %v7133_v9  ;;  %v13798_v10 = vld [vmem:[%s14116_s25 + $0x178] ss:$0 sps:$4 sm:$0x33]   ;;  %v5980_v26 = vpop.f32.mrb[165].mxu1  ;;  %v7017_v40 = vpop.f32.mrb[191].mxu0  ;;  %v8824_v57 = vrot.slane %v13808_v11, 1  ;;  %v8823_v6 = vsel %vm2550_vm5, %v8821_v37, %v8822_v24 }
 0x2bb   : > { %v10042_v63 = vsel %vm1536_vm0, %v10040_v59, %v10041_v38  ;;  %v8482_v16 = vpop.permute.xlu0 %8481  ;;  %v10703_v2 = vadd.f32 %v17509_v47, %v7134_v44  ;;  %v5981_v12 = vpop.f32.mrb[166].mxu1  ;;  %v17578_v31 = vsel %vm761_vm3, %v13798_v10, %v17486_v49  ;;  %v13799_v8 = vld [vmem:[%s14116_s25 + $0x170] sm:$0xfc]   ;;  %v8704_v37 = vsel %vm761_vm3, %v13810_v52, %v8484_v43  ;;  %v13813_v44 = vld [vmem:[%s14116_s25 + $0x5d8] ss:$0 sps:$4 sm:$0x33]  }
 0x2bc   : > { %v10827_v58 = vmax.f32 %v10699_v13, 0.0  ;;  %12951 = vmatprep.mubr.msk.bf16.mxu1 %vm761_vm3, %v10042_v63  ;;  %v17573_v42 = vadd.f32 %v5981_v12, %v17499_v14  ;;  %v5983_v9 = vpop.f32.mrb[167].mxu1  ;;  %v8825_v13 = vrot.slane %v13809_v51, 1  ;;  %v7020_v59 = vpop.f32.mrb[192].mxu0  ;;  %v13812_v49 = vld [vmem:[%s14116_s25 + $0x5d0] sm:$0xfc]   ;;  %v10045_v12 = vsel %vm1536_vm0, %v10043_v27, %v10044_v61 }
 0x2bd   : > { %v10831_v15 = vmax.f32 %v10703_v2, 0.0  ;;  %v7135_v50 = vadd.f32 %v7020_v59, %v17104_v29  ;;  %v7022_v46 = vpop.f32.mrb[193].mxu0  ;;  %v10050_v24 = vrot.slane %v17578_v31, 2  ;;  %v10046_v51 = vrot.slane %v13812_v49, 2  ;;  %v13807_v59 = vld [vmem:[%s14116_s25 + $0x190] sm:$0xfc]  }
 0x2be   : > { %10955 = vst [vmem:[%s15422_s8 + $0x68] sm:$0xff] %v10827_v58  ;;  %10377 = vmatmul.mubr.bf16.gmra.mrb[12].mxu1 %v10039_v30  ;;  %v13811_v58 = vld [vmem:[%s14116_s25 + $0x1a8] sm:$0xfe]   ;;  %v17583_v30 = vpop.permute.xlu1 %9717  ;;  %v8826_v14 = vsel %vm2550_vm5, %v8824_v57, %v8825_v13  ;;  %v7023_v26 = vpop.f32.mrb[194].mxu0  ;;  %v10047_v40 = vrot.slane %v13813_v44, 2  ;;  %v9923_v43 = vsel %vm761_vm3, %v13799_v8, %v17502_v1  ;;  %v8828_v57 = vrot.slane %v8704_v37, 1 }
 0x2bf   : > { %10959 = vst [vmem:[%s15422_s8 + $0x90] sm:$0xff] %v10831_v15  ;;  %12806 = vmatprep.mubr.msk.bf16.mxu0 %vm761_vm3, %v8826_v14  ;;  %v17592_v10 = vpop.permute.xlu0 %9715  ;;  %v8701_v2 = vsel %vm761_vm3, %v13811_v58, %v8482_v16  ;;  %v10707_v11 = vadd.f32 %v17509_v47, %v7135_v50  ;;  %v7136_v29 = vadd.f32 %v7023_v26, %v17124_v34  ;;  %v13806_v9 = vld [vmem:[%s14116_s25 + $0x198] ss:$0 sps:$4 sm:$0x33]   ;;  %v7025_v52 = vpop.f32.mrb[195].mxu0  ;;  %v10049_v14 = vrot.slane %v9923_v43, 2 }
 0x2c0   : > { %v8827_v61 = vrot.slane %v8701_v2, 1  ;;  %v10048_v27 = vsel %vm1536_vm0, %v10046_v51, %v10047_v40  ;;  %v13816_v1 = vld [vmem:[%s14116_s25 + $0x628] sm:$0xfe]   ;;  %v13817_v8 = vld [vmem:[%s14116_s25 + $0x630] ss:$0 sps:$4 sm:$0x11]   ;;  %v17618_v44 = vsel %vm761_vm3, %v13806_v9, %v17538_v39 }
 0x2c1   : > { %v17587_v38 = vpop.f32.mrb[168].mxu1  ;;  %9167 = vmatmul.mubr.bf16.gmra.mrb[40].mxu0 %v8823_v6  ;;  %v10835_v16 = vmax.f32 %v10707_v11, 0.0  ;;  %v10711_v13 = vadd.f32 %v17509_v47, %v7136_v29  ;;  %12952 = vmatprep.mubr.msk.bf16.mxu1 %vm761_vm3, %v10048_v27  ;;  %v13818_v50 = vld [vmem:[%s14116_s25 + $0x1d0] ss:$0 sps:$4 sm:$0x11]   ;;  %v8830_v46 = vrot.slane %v13816_v1, 1 }
 0x2c2   : > { %v7840_v63 = vpop.f32.mrb[169].mxu1  ;;  %v8488_v34 = vpop.permute.xlu1 %8487  ;;  %v13814_v49 = vld [vmem:[%s14116_s25 + $0x1b8] ss:$0 sps:$4 sm:$0x33]   ;;  %v8831_v37 = vrot.slane %v13817_v8, 1  ;;  %v8829_v26 = vsel %vm2550_vm5, %v8827_v61, %v8828_v57  ;;  %v10056_v9 = vrot.slane %v17618_v44, 2 }
 0x2c3   : > { %v17602_v15 = vpop.f32.mrb[170].mxu1  ;;  %10963 = vst [vmem:[%s15422_s8 + $0xb8] sm:$0xff] %v10835_v16  ;;  %v10839_v6 = vmax.f32 %v10711_v13, 0.0  ;;  %v8486_v58 = vpop.permute.xlu0 %8485  ;;  %v13819_v63 = vld [vmem:[%s14116_s25 + $0x1c8] sm:$0xfe]   ;;  %v8710_v43 = vsel %vm761_vm3, %v13818_v50, %v8488_v34  ;;  %v9929_v34 = vsel %vm761_vm3, %v13807_v59, %v17550_v28  ;;  %v17642_v8 = vsel %vm761_vm3, %v13814_v49, %v17583_v30 }
 0x2c4   : > { %v7843_v31 = vpop.f32.mrb[171].mxu1  ;;  %v7028_v2 = vpop.f32.mrb[196].mxu0  ;;  %v8832_v51 = vsel %vm2550_vm5, %v8830_v46, %v8831_v37  ;;  %v13820_v16 = vld [vmem:[%s14116_s25 + $0x5f0] sm:$0xfc]   ;;  %v8707_v52 = vsel %vm761_vm3, %v13819_v63, %v8486_v58  ;;  %v8834_v58 = vrot.slane %v8710_v43, 1  ;;  %v10062_v63 = vrot.slane %v17642_v8, 2 }
 0x2c5   : > { %10967 = vst [vmem:[%s15422_s8 + $0xe0] sm:$0xff] %v10839_v6  ;;  %v7137_v29 = vadd.f32 %v7028_v2, %v17154_v62  ;;  %12807 = vmatprep.mubr.msk.bf16.mxu0 %vm761_vm3, %v8832_v51  ;;  %v13821_v13 = vld [vmem:[%s14116_s25 + $0x5f8] ss:$0 sps:$4 sm:$0x33]   ;;  %v13815_v57 = vld [vmem:[%s14116_s25 + $0x1b0] sm:$0xfc]   ;;  %v10051_v31 = vsel %vm1536_vm0, %v10049_v14, %v10050_v24 }
 0x2c6   : > { %10385 = vmatmul.mubr.bf16.gmra.mrb[16].mxu1 %v10045_v12  ;;  %v7030_v12 = vpop.f32.mrb[197].mxu0  ;;  %v9722_v40 = vpop.permute.xlu1 %9721  ;;  %v10052_v6 = vrot.slane %v13820_v16, 2  ;;  %v10053_v1 = vrot.slane %v13821_v13, 2  ;;  %v8833_v37 = vrot.slane %v8707_v52, 1  ;;  %v13824_v44 = vld [vmem:[%s14116_s25 + $0x648] sm:$0xfe]  }
 0x2c7   : > { %v7031_v39 = vpop.f32.mrb[198].mxu0  ;;  %v10715_v61 = vadd.f32 %v17509_v47, %v7137_v29  ;;  %v17635_v27 = vpop.permute.xlu0 %9719  ;;  %v13822_v59 = vld [vmem:[%s14116_s25 + $0x1d8] ss:$0 sps:$4 sm:$0x33]   ;;  %v17656_v29 = vsel %vm761_vm3, %v13815_v57, %v17592_v10  ;;  %v8836_v12 = vrot.slane %v13824_v44, 1 }
 0x2c8   : > { %v7138_v62 = vadd.f32 %v7031_v39, %v17177_v23  ;;  %v10054_v24 = vsel %vm1536_vm0, %v10052_v6, %v10053_v1  ;;  %v13825_v30 = vld [vmem:[%s14116_s25 + $0x650] ss:$0 sps:$4 sm:$0x11]   ;;  %v7033_v2 = vpop.f32.mrb[199].mxu0  ;;  %v8835_v52 = vsel %vm2550_vm5, %v8833_v37, %v8834_v58  ;;  %v10061_v10 = vrot.slane %v17656_v29, 2 }
 0x2c9   : > { %v17622_v11 = vpop.f32.mrb[172].mxu1  ;;  %9175 = vmatmul.mubr.bf16.gmra.mrb[44].mxu0 %v8829_v26  ;;  %v10843_v50 = vmax.f32 %v10715_v61, 0.0  ;;  %12953 = vmatprep.mubr.msk.bf16.mxu1 %vm761_vm3, %v10054_v24  ;;  %v10055_v26 = vrot.slane %v9929_v34, 2  ;;  %v8837_v43 = vrot.slane %v13825_v30, 1  ;;  %v13827_v61 = vld [vmem:[%s14116_s25 + $0x1e8] sm:$0xfe]   ;;  %v17673_v58 = vsel %vm761_vm3, %v13822_v59, %v9722_v40 }
 0x2ca   : > { %v10719_v23 = vadd.f32 %v17509_v47, %v7138_v62  ;;  %v7848_v46 = vpop.f32.mrb[173].mxu1  ;;  %v8492_v49 = vpop.permute.xlu1 %8491  ;;  %v13826_v16 = vld [vmem:[%s14116_s25 + $0x1f0] ss:$0 sps:$4 sm:$0x11]   ;;  %v13830_v29 = vld [vmem:[%s14116_s25 + $0x668] sm:$0xfe]  }
 0x2cb   : > { %v17646_v14 = vpop.f32.mrb[174].mxu1  ;;  %10971 = vst [vmem:[%s15422_s8 + $0x108] sm:$0xff] %v10843_v50  ;;  %v8490_v13 = vpop.permute.xlu0 %8489  ;;  %v8838_v34 = vsel %vm2550_vm5, %v8836_v12, %v8837_v43  ;;  %v8716_v6 = vsel %vm761_vm3, %v13826_v16, %v8492_v49  ;;  %v13828_v50 = vld [vmem:[%s14116_s25 + $0x610] sm:$0xfc]   ;;  %v10057_v2 = vsel %vm1536_vm0, %v10055_v26, %v10056_v9  ;;  %v10068_v59 = vrot.slane %v17673_v58, 2 }
 0x2cc   : > { %v10847_v28 = vmax.f32 %v10719_v23, 0.0  ;;  %v7851_v51 = vpop.f32.mrb[175].mxu1  ;;  %v7036_v39 = vpop.f32.mrb[200].mxu0  ;;  %12808 = vmatprep.mubr.msk.bf16.mxu0 %vm761_vm3, %v8838_v34  ;;  %v8713_v57 = vsel %vm761_vm3, %v13827_v61, %v8490_v13  ;;  %v13829_v23 = vld [vmem:[%s14116_s25 + $0x618] ss:$0 sps:$4 sm:$0x33]  }
 0x2cd   : > { %v7139_v62 = vadd.f32 %v7036_v39, %v17190_v32  ;;  %v8840_v32 = vrot.slane %v8716_v6, 1  ;;  %v8839_v46 = vrot.slane %v8713_v57, 1  ;;  %v7038_v37 = vpop.f32.mrb[201].mxu0  ;;  %v10058_v44 = vrot.slane %v13828_v50, 2  ;;  %v13832_v34 = vld [vmem:[%s14116_s25 + $0x630] sm:$0xfc]  }
 0x2ce   : > { %10393 = vmatmul.mubr.bf16.gmra.mrb[20].mxu1 %v10051_v31  ;;  %10975 = vst [vmem:[%s15422_s8 + $0x130] sm:$0xff] %v10847_v28  ;;  %v13823_v31 = vld [vmem:[%s14116_s25 + $0x1d0] sm:$0xfc]   ;;  %v10059_v30 = vrot.slane %v13829_v23, 2  ;;  %v7039_v49 = vpop.f32.mrb[202].mxu0  ;;  %v8842_v9 = vrot.slane %v13830_v29, 1 }
 0x2cf   : > { %v10723_v1 = vadd.f32 %v17509_v47, %v7139_v62  ;;  %v7140_v51 = vadd.f32 %v7039_v49, %v17199_v25  ;;  %v7041_v40 = vpop.f32.mrb[203].mxu0  ;;  %v13831_v16 = vld [vmem:[%s14116_s25 + $0x670] ss:$0 sps:$4 sm:$0x11]   ;;  %v8841_v57 = vsel %vm2550_vm5, %v8839_v46, %v8840_v32 }
 0x2d0   : > { %v10060_v43 = vsel %vm1536_vm0, %v10058_v44, %v10059_v30  ;;  %v8843_v62 = vrot.slane %v13831_v16, 1  ;;  %v10063_v16 = vsel %vm1536_vm0, %v10061_v10, %v10062_v63 }
 0x2d1   : > { %9183 = vmatmul.mubr.bf16.gmra.mrb[48].mxu0 %v8835_v52  ;;  %v17675_v24 = vpop.f32.mrb[176].mxu1  ;;  %v10851_v28 = vmax.f32 %v10723_v1, 0.0  ;;  %v17688_v52 = vsel %vm761_vm3, %v13823_v31, %v17635_v27  ;;  %12954 = vmatprep.mubr.msk.bf16.mxu1 %vm761_vm3, %v10060_v43  ;;  %v10727_v25 = vadd.f32 %v17509_v47, %v7140_v51  ;;  %v13833_v27 = vld [vmem:[%s14116_s25 + $0x638] ss:$0 sps:$4 sm:$0x33]  }
 0x2d2   : > { %v7856_v12 = vpop.f32.mrb[177].mxu1  ;;  %v10067_v37 = vrot.slane %v17688_v52, 2  ;;  %v10065_v46 = vrot.slane %v13833_v27, 2  ;;  %v13834_v43 = vld [vmem:[%s14116_s25 + $0x650] sm:$0xfc]  }
 0x2d3   : > { %10979 = vst [vmem:[%s15422_s8 + $0x158] sm:$0xff] %v10851_v28  ;;  %v17684_v13 = vpop.f32.mrb[178].mxu1  ;;  %v10855_v1 = vmax.f32 %v10727_v25, 0.0  ;;  %v8844_v28 = vsel %vm2550_vm5, %v8842_v9, %v8843_v62  ;;  %v13835_v52 = vld [vmem:[%s14116_s25 + $0x658] ss:$0 sps:$4 sm:$0x33]  }
 0x2d4   : > { %v7044_v39 = vpop.f32.mrb[204].mxu0  ;;  %v7859_v26 = vpop.f32.mrb[179].mxu1  ;;  %12809 = vmatprep.mubr.msk.bf16.mxu0 %vm761_vm3, %v8844_v28  ;;  %v10071_v8 = vrot.slane %v13835_v52, 2  ;;  %v13837_v27 = vld [vmem:[%s14116_s25 + $0x1f0] sm:$0xfc]  }
 0x2d5   : > { %v7141_v61 = vadd.f32 %v7044_v39, %v17218_v55  ;;  %v7046_v6 = vpop.f32.mrb[205].mxu0  ;;  %v10064_v55 = vrot.slane %v13832_v34, 2  ;;  %10983 = vst [vmem:[%s15422_s8 + $0x180] sm:$0xff] %v10855_v1 }
 0x2d6   : > { %10401 = vmatmul.mubr.bf16.gmra.mrb[24].mxu1 %v10057_v2  ;;  %v7047_v31 = vpop.f32.mrb[206].mxu0  ;;  %v13836_v6 = vld [vmem:[%s14116_s25 + $0x1f8] ss:$0 sps:$4 sm:$0x33]  }
 0x2d7   : > { %v10731_v50 = vadd.f32 %v17509_v47, %v7141_v61  ;;  %v7142_v44 = vadd.f32 %v7047_v31, %v17234_v22  ;;  %v7049_v49 = vpop.f32.mrb[207].mxu0  ;;  %v10066_v39 = vsel %vm1536_vm0, %v10064_v55, %v10065_v46  ;;  %v9726_v55 = vpop.permute.xlu1 %9725  ;;  %v13839_v46 = vld [vmem:[%s14116_s25 + $0x678] ss:$0 sps:$4 sm:$0x33]  }
 0x2d8   : > { %12955 = vmatprep.mubr.msk.bf16.mxu1 %vm761_vm3, %v10066_v39  ;;  %v9724_v49 = vpop.permute.xlu0 %9723 }
 0x2d9   : > { %v17697_v23 = vpop.f32.mrb[180].mxu1  ;;  %v10859_v32 = vmax.f32 %v10731_v50, 0.0  ;;  %9191 = vmatmul.mubr.bf16.gmra.mrb[52].mxu0 %v8841_v57  ;;  %v10735_v29 = vadd.f32 %v17509_v47, %v7142_v44 }
 0x2da   : > { %v7864_v30 = vpop.f32.mrb[181].mxu1 }
 0x2db   : > { %v17704_v2 = vpop.f32.mrb[182].mxu1  ;;  %10987 = vst [vmem:[%s15422_s8 + $0x1a8] sm:$0xff] %v10859_v32  ;;  %v10863_v9 = vmax.f32 %v10735_v29, 0.0  ;;  %v13838_v32 = vld [vmem:[%s14116_s25 + $0x670] sm:$0xfc]   ;;  %s13929_s25 = scalar_lea.vmem %s13928_s10, 40960 }
 0x2dc   : > { %v7052_v51 = vpop.f32.mrb[208].mxu0  ;;  %v7867_v12 = vpop.f32.mrb[183].mxu1  ;;  %p13931_p2 = scmp.lt.s32.totalorder %s13929_s25, %s13923_s29 }
 0x2dd   : > { %v7143_v40 = vadd.f32 %v7052_v51, %v17242_v48  ;;  %v7054_v22 = vpop.f32.mrb[209].mxu0  ;;  %v10070_v48 = vrot.slane %v13834_v43, 2  ;;  %10991 = vst [vmem:[%s15422_s8 + $0x1d0] sm:$0xff] %v10863_v9  ;;  %v10069_v51 = vsel %vm1536_vm0, %v10067_v37, %v10068_v59  ;;  %v9950_v43 = vsel %vm761_vm3, %v13836_v6, %v9726_v55 }
 0x2de   : > { %v7055_v25 = vpop.f32.mrb[210].mxu0  ;;  %10409 = vmatmul.mubr.bf16.gmra.mrb[28].mxu1 %v10063_v16  ;;  %v10076_v22 = vrot.slane %v13838_v32, 2  ;;  %v10077_v16 = vrot.slane %v13839_v46, 2  ;;  %p13932_p3 = por %p13931_p2, %p13930_p1 }
 0x2df   : > { %v10739_v26 = vadd.f32 %v17509_v47, %v7143_v40  ;;  %v7144_v61 = vadd.f32 %v7055_v25, %v17272_v60  ;;  %v7057_v1 = vpop.f32.mrb[211].mxu0  ;;  %v10072_v50 = vsel %vm1536_vm0, %v10070_v48, %v10071_v8  ;;  %v9947_v25 = vsel %vm761_vm3, %v13837_v27, %v9724_v49 }
 0x2e0   : > { %12956 = vmatprep.mubr.msk.bf16.mxu1 %vm761_vm3, %v10072_v50  ;;  %v10078_v37 = vsel %vm1536_vm0, %v10076_v22, %v10077_v16  ;;  %p13933_p5 = pnand %p13932_p3, %p13926_p0 }
 0x2e1   : > { %v17718_v62 = vpop.f32.mrb[184].mxu1  ;;  %v10867_v10 = vmax.f32 %v10739_v26, 0.0  ;;  %v10743_v34 = vadd.f32 %v17509_v47, %v7144_v61 }
 0x2e2   : > { %v7872_v63 = vpop.f32.mrb[185].mxu1 }
 0x2e3   : > { %v17723_v57 = vpop.f32.mrb[186].mxu1  ;;  %10995 = vst [vmem:[%s15422_s8 + $0x1f8] sm:$0xff] %v10867_v10  ;;  %v10871_v28 = vmax.f32 %v10743_v34, 0.0  ;;  %v10074_v63 = vrot.slane %v9950_v43, 2  ;;  %v10073_v34 = vrot.slane %v9947_v25, 2 }
 0x2e4   : > { %v7875_v60 = vpop.f32.mrb[187].mxu1  ;;  %v7060_v31 = vpop.f32.mrb[212].mxu0 }
 0x2e5   : > { %v7145_v44 = vadd.f32 %v7060_v31, %v17292_v18  ;;  %v7062_v30 = vpop.f32.mrb[213].mxu0  ;;  %10999 = vst [vmem:[%s15422_s8 + $0x220] sm:$0xff] %v10871_v28 }
 0x2e6   : > { %v7063_v12 = vpop.f32.mrb[214].mxu0  ;;  %10417 = vmatmul.mubr.bf16.gmra.mrb[32].mxu1 %v10069_v51  ;;  %v10075_v51 = vsel %vm1536_vm0, %v10073_v34, %v10074_v63 }
 0x2e7   : > { %v10747_v29 = vadd.f32 %v17509_v47, %v7145_v44  ;;  %v7146_v18 = vadd.f32 %v7063_v12, %v17302_v41  ;;  %v7065_v52 = vpop.f32.mrb[215].mxu0  ;;  %12957 = vmatprep.mubr.msk.bf16.mxu1 %vm761_vm3, %v10078_v37 }
 0x2e9   : > { %v17737_v40 = vpop.f32.mrb[188].mxu1  ;;  %v10875_v58 = vmax.f32 %v10747_v29, 0.0  ;;  %v10751_v26 = vadd.f32 %v17509_v47, %v7146_v18 }
 0x2ea   : > { %v7880_v39 = vpop.f32.mrb[189].mxu1 }
 0x2eb   : > { %v17742_v9 = vpop.f32.mrb[190].mxu1  ;;  %11003 = vst [vmem:[%s15422_s8 + $0x248] sm:$0xff] %v10875_v58  ;;  %v10879_v6 = vmax.f32 %v10751_v26, 0.0 }
 0x2ec   : > { %v7068_v59 = vpop.f32.mrb[216].mxu0  ;;  %v7883_v48 = vpop.f32.mrb[191].mxu1 }
 0x2ed   : > { %v7147_v61 = vadd.f32 %v7068_v59, %v17313_v36  ;;  %v7070_v8 = vpop.f32.mrb[217].mxu0  ;;  %11007 = vst [vmem:[%s15422_s8 + $0x270] sm:$0xff] %v10879_v6 }
 0x2ee   : > { %v7071_v41 = vpop.f32.mrb[218].mxu0  ;;  %10425 = vmatmul.mubr.bf16.gmra.mrb[36].mxu1 %v10075_v51 }
 0x2ef   : > { %v10755_v1 = vadd.f32 %v17509_v47, %v7147_v61  ;;  %v7148_v50 = vadd.f32 %v7071_v41, %v17336_v17  ;;  %v7073_v60 = vpop.f32.mrb[219].mxu0 }
 0x2f1   : > { %v17748_v10 = vpop.f32.mrb[192].mxu1  ;;  %v10883_v28 = vmax.f32 %v10755_v1, 0.0  ;;  %v10759_v55 = vadd.f32 %v17509_v47, %v7148_v50 }
 0x2f2   : > { %v7888_v27 = vpop.f32.mrb[193].mxu1 }
 0x2f3   : > { %v17753_v36 = vpop.f32.mrb[194].mxu1  ;;  %11011 = vst [vmem:[%s15422_s8 + $0x298] sm:$0xff] %v10883_v28  ;;  %v10887_v17 = vmax.f32 %v10759_v55, 0.0 }
 0x2f4   : > { %v7076_v31 = vpop.f32.mrb[220].mxu0  ;;  %v7891_v44 = vpop.f32.mrb[195].mxu1 }
 0x2f5   : > { %v7149_v30 = vadd.f32 %v7076_v31, %v17362_v21  ;;  %v7078_v49 = vpop.f32.mrb[221].mxu0  ;;  %11015 = vst [vmem:[%s15422_s8 + $0x2c0] sm:$0xff] %v10887_v17 }
 0x2f6   : > { %v7079_v32 = vpop.f32.mrb[222].mxu0 }
 0x2f7   : > { %v10763_v29 = vadd.f32 %v17509_v47, %v7149_v30  ;;  %v7150_v12 = vadd.f32 %v7079_v32, %v17370_v56  ;;  %v7081_v22 = vpop.f32.mrb[223].mxu0 }
 0x2f9   : > { %v17758_v46 = vpop.f32.mrb[196].mxu1  ;;  %v10891_v21 = vmax.f32 %v10763_v29, 0.0  ;;  %v10767_v39 = vadd.f32 %v17509_v47, %v7150_v12 }
 0x2fa   : > { %v7896_v43 = vpop.f32.mrb[197].mxu1 }
 0x2fb   : > { %v17764_v16 = vpop.f32.mrb[198].mxu1  ;;  %11019 = vst [vmem:[%s15422_s8 + $0x2e8] sm:$0xff] %v10891_v21  ;;  %v10895_v56 = vmax.f32 %v10767_v39, 0.0 }
 0x2fc   : > { %v7084_v18 = vpop.f32.mrb[224].mxu0  ;;  %v7899_v52 = vpop.f32.mrb[199].mxu1 }
 0x2fd   : > { %v7151_v25 = vadd.f32 %v7084_v18, %v17388_v35  ;;  %v7086_v58 = vpop.f32.mrb[225].mxu0  ;;  %11023 = vst [vmem:[%s15422_s8 + $0x310] sm:$0xff] %v10895_v56 }
 0x2fe   : > { %v7087_v59 = vpop.f32.mrb[226].mxu0 }
 0x2ff   : > { %v10771_v26 = vadd.f32 %v17509_v47, %v7151_v25  ;;  %v7152_v48 = vadd.f32 %v7087_v59, %v17404_v53  ;;  %v7089_v8 = vpop.f32.mrb[227].mxu0 }
 0x301   : > { %v17769_v37 = vpop.f32.mrb[200].mxu1  ;;  %v10899_v35 = vmax.f32 %v10771_v26, 0.0  ;;  %v10775_v34 = vadd.f32 %v17509_v47, %v7152_v48 }
 0x302   : > { %v7904_v61 = vpop.f32.mrb[201].mxu1 }
 0x303   : > { %v17774_v63 = vpop.f32.mrb[202].mxu1  ;;  %11027 = vst [vmem:[%s15422_s8 + $0x338] sm:$0xff] %v10899_v35  ;;  %v10903_v53 = vmax.f32 %v10775_v34, 0.0 }
 0x304   : > { %v7907_v6 = vpop.f32.mrb[203].mxu1 }
 0x305   : > { %v7092_v41 = vpop.f32.mrb[228].mxu0  ;;  %11031 = vst [vmem:[%s15422_s8 + $0x360] sm:$0xff] %v10903_v53 }
 0x306   : > { %v7153_v1 = vadd.f32 %v7092_v41, %v17425_v20  ;;  %v7094_v50 = vpop.f32.mrb[229].mxu0 }
 0x307   : > { %v7095_v27 = vpop.f32.mrb[230].mxu0 }
 0x308   : > { %v10779_v31 = vadd.f32 %v17509_v47, %v7153_v1  ;;  %v7154_v28 = vadd.f32 %v7095_v27, %v17437_v3  ;;  %v7097_v44 = vpop.f32.mrb[231].mxu0 }
 0x309   : > { %v17779_v60 = vpop.f32.mrb[204].mxu1 }
 0x30a   : > { %v7912_v55 = vpop.f32.mrb[205].mxu1  ;;  %v10907_v32 = vmax.f32 %v10779_v31, 0.0  ;;  %v10783_v20 = vadd.f32 %v17509_v47, %v7154_v28 }
 0x30b   : > { %v17784_v30 = vpop.f32.mrb[206].mxu1 }
 0x30c   : > { %v7915_v51 = vpop.f32.mrb[207].mxu1  ;;  %11035 = vst [vmem:[%s15422_s8 + $0x388] sm:$0xff] %v10907_v32  ;;  %v10911_v3 = vmax.f32 %v10783_v20, 0.0 }
 0x30d   : > { %v7100_v49 = vpop.f32.mrb[232].mxu0 }
 0x30e   : > { %v7155_v17 = vadd.f32 %v7100_v49, %v17446_v0  ;;  %v7102_v29 = vpop.f32.mrb[233].mxu0  ;;  %11039 = vst [vmem:[%s15422_s8 + $0x3b0] sm:$0xff] %v10911_v3 }
 0x30f   : > { %v7103_v12 = vpop.f32.mrb[234].mxu0 }
 0x310   : > { %v10787_v22 = vadd.f32 %v17509_v47, %v7155_v17  ;;  %v7156_v18 = vadd.f32 %v7103_v12, %v17467_v19  ;;  %v7105_v39 = vpop.f32.mrb[235].mxu0 }
 0x311   : > { %v17789_v43 = vpop.f32.mrb[208].mxu1 }
 0x312   : > { %v7920_v21 = vpop.f32.mrb[209].mxu1  ;;  %v10915_v58 = vmax.f32 %v10787_v22, 0.0  ;;  %v10791_v0 = vadd.f32 %v17509_v47, %v7156_v18 }
 0x313   : > { %v17794_v52 = vpop.f32.mrb[210].mxu1 }
 0x314   : > { %v7923_v59 = vpop.f32.mrb[211].mxu1  ;;  %11043 = vst [vmem:[%s15422_s8 + $0x3d8] sm:$0xff] %v10915_v58  ;;  %v10919_v19 = vmax.f32 %v10791_v0, 0.0 }
 0x316   : > { %v7108_v25 = vpop.f32.mrb[236].mxu0  ;;  %11047 = vst [vmem:[%s15422_s8 + $0x400] sm:$0xff] %v10919_v19 }
 0x317   : > { %v7157_v56 = vadd.f32 %v7108_v25, %v17474_v54  ;;  %v7110_v26 = vpop.f32.mrb[237].mxu0 }
 0x318   : > { %v7111_v48 = vpop.f32.mrb[238].mxu0 }
 0x319   : > { %v17799_v61 = vpop.f32.mrb[212].mxu1  ;;  %v10795_v8 = vadd.f32 %v17509_v47, %v7157_v56  ;;  %v7158_v41 = vadd.f32 %v7111_v48, %v17496_v33  ;;  %v7113_v34 = vpop.f32.mrb[239].mxu0 }
 0x31a   : > { %v7928_v35 = vpop.f32.mrb[213].mxu1 }
 0x31b   : > { %v17804_v6 = vpop.f32.mrb[214].mxu1  ;;  %v10923_v50 = vmax.f32 %v10795_v8, 0.0  ;;  %v10799_v54 = vadd.f32 %v17509_v47, %v7158_v41 }
 0x31c   : > { %v7931_v27 = vpop.f32.mrb[215].mxu1 }
 0x31d   : > { %11051 = vst [vmem:[%s15422_s8 + $0x428] sm:$0xff] %v10923_v50  ;;  %v10927_v33 = vmax.f32 %v10799_v54, 0.0 }
 0x31e   : > { %v7116_v1 = vpop.f32.mrb[240].mxu0 }
 0x31f   : > { %v7159_v53 = vadd.f32 %v7116_v1, %v17516_v4  ;;  %v7118_v31 = vpop.f32.mrb[241].mxu0  ;;  %11055 = vst [vmem:[%s15422_s8 + $0x450] sm:$0xff] %v10927_v33 }
 0x320   : > { %v7119_v28 = vpop.f32.mrb[242].mxu0 }
 0x321   : > { %v17809_v55 = vpop.f32.mrb[216].mxu1  ;;  %v10803_v44 = vadd.f32 %v17509_v47, %v7159_v53  ;;  %v7160_v49 = vadd.f32 %v7119_v28, %v17528_v5  ;;  %v7121_v20 = vpop.f32.mrb[243].mxu0 }
 0x322   : > { %v7936_v32 = vpop.f32.mrb[217].mxu1 }
 0x323   : > { %v17814_v51 = vpop.f32.mrb[218].mxu1  ;;  %v10931_v17 = vmax.f32 %v10803_v44, 0.0  ;;  %v10807_v4 = vadd.f32 %v17509_v47, %v7160_v49 }
 0x324   : > { %v7939_v29 = vpop.f32.mrb[219].mxu1 }
 0x325   : > { %11059 = vst [vmem:[%s15422_s8 + $0x478] sm:$0xff] %v10931_v17  ;;  %v10935_v18 = vmax.f32 %v10807_v4, 0.0  ;;  %v10683_v29 = vsub.s32 3, %v15296_v7 }
 0x326   : > { %v7124_v12 = vpop.f32.mrb[244].mxu0 }
 0x327   : > { %v7161_v3 = vadd.f32 %v7124_v12, %v17544_v45  ;;  %v7126_v22 = vpop.f32.mrb[245].mxu0  ;;  %11063 = vst [vmem:[%s15422_s8 + $0x4a0] sm:$0xff] %v10935_v18 }
 0x328   : > { %v7127_v21 = vpop.f32.mrb[246].mxu0 }
 0x329   : > { %v10811_v5 = vadd.f32 %v17509_v47, %v7161_v3  ;;  %v7162_v39 = vadd.f32 %v7127_v21, %v17573_v42  ;;  %v7129_v25 = vpop.f32.mrb[247].mxu0  ;;  %v17824_v59 = vpop.f32.mrb[220].mxu1 }
 0x32a   : > { %v7944_v56 = vpop.f32.mrb[221].mxu1 }
 0x32b   : > { %v10939_v58 = vmax.f32 %v10811_v5, 0.0  ;;  %v10815_v0 = vadd.f32 %v17509_v47, %v7162_v39  ;;  %v17827_v45 = vpop.f32.mrb[222].mxu1 }
 0x32c   : > { %v7947_v48 = vpop.f32.mrb[223].mxu1 }
 0x32d   : > { %11067 = vst [vmem:[%s15422_s8 + $0x4c8] sm:$0xff] %v10939_v58  ;;  %v10943_v26 = vmax.f32 %v10815_v0, 0.0 }
 0x32e   : > { %v9072_v19 = vpop.f32.mrb[248].mxu0 }
 0x32f   : > { %11071 = vst [vmem:[%s15422_s8 + $0x4f0] sm:$0xff] %v10943_v26  ;;  %v9199_v8 = vadd.f32 %v9072_v19, %v17587_v38  ;;  %v9074_v41 = vpop.f32.mrb[249].mxu0 }
 0x330   : > { %v9075_v35 = vpop.f32.mrb[250].mxu0 }
 0x331   : > { %v9200_v42 = vadd.f32 %v9075_v35, %v17602_v15  ;;  %v17832_v34 = vpop.f32.mrb[224].mxu1  ;;  %v9077_v1 = vpop.f32.mrb[251].mxu0 }
 0x332   : > { %v7952_v47 = vpop.f32.mrb[225].mxu1 }
 0x333   : > { %v17834_v50 = vpop.f32.mrb[226].mxu1 }
 0x334   : > { %v7955_v54 = vpop.f32.mrb[227].mxu1 }
 0x336   : > { %v9080_v27 = vpop.f32.mrb[252].mxu0 }
 0x337   : > { %v9201_v53 = vadd.f32 %v9080_v27, %v17622_v11  ;;  %v9082_v31 = vpop.f32.mrb[253].mxu0 }
 0x338   : > { %v9083_v28 = vpop.f32.mrb[254].mxu0 }
 0x339   : > { %v9202_v33 = vadd.f32 %v9083_v28, %v17646_v14  ;;  %v17838_v44 = vpop.f32.mrb[228].mxu1  ;;  %v9085_v38 = vpop.f32.mrb[255].mxu0  ;;  %v13922_v14 = vld [vmem:[%s18054_s3] sm:$0xf] }
 0x33a   : > { %v7960_v49 = vpop.f32.mrb[229].mxu1  ;;  %v17848_v22 = vrot.slane %v13922_v14, %v10683_v29 }
 0x33b   : > { %v17840_v32 = vpop.f32.mrb[230].mxu1 }
 0x33c   : > { %v7963_v15 = vpop.f32.mrb[231].mxu1 }
 0x33e   : > { %v9088_v20 = vpop.f32.mrb[0].mxu0 }
 0x33f   : > { %v9203_v17 = vadd.f32 %v9088_v20, %v17675_v24  ;;  %v9090_v4 = vpop.f32.mrb[1].mxu0 }
 0x340   : > { %v9091_v12 = vpop.f32.mrb[2].mxu0 }
 0x341   : > { %v9204_v11 = vadd.f32 %v9091_v12, %v17684_v13  ;;  %v9093_v3 = vpop.f32.mrb[3].mxu0  ;;  %v10306_v18 = vpop.f32.mrb[232].mxu1 }
 0x342   : > { %v10433_v21 = vadd.f32 %v10306_v18, %v9199_v8  ;;  %v10308_v5 = vpop.f32.mrb[233].mxu1 }
 0x343   : > { %v10309_v39 = vpop.f32.mrb[234].mxu1 }
 0x344   : > { %v10692_v24 = vadd.f32 %v17848_v22, %v10433_v21  ;;  %v10434_v25 = vadd.f32 %v10309_v39, %v9200_v42  ;;  %v10311_v58 = vpop.f32.mrb[235].mxu1 }
 0x346   : > { %v10820_v7 = vmax.f32 %v10692_v24, 0.0  ;;  %v10696_v0 = vadd.f32 %v17848_v22, %v10434_v25  ;;  %v9096_v56 = vpop.f32.mrb[4].mxu0  ;;  %v12958_v25 = vld [vmem:[%s303_s14] ss:$0 sm:$0xff] }
 0x347   : > { %v17854_v26 = vadd.f32 %v9096_v56, %v17697_v23  ;;  %v9098_v48 = vpop.f32.mrb[5].mxu0  ;;  %10507 = vst [vmem:[%s15422_s8] sm:$0xff] %v12958_v25  ;;  %10508 = vst [vmem:[%s15422_s8 + $0x28] sm:$0xff] %v12958_v25 }
 0x348   : > { %10948 = vst [vmem:[%s15422_s8 + $0x20] sm:$0xff] %v10820_v7  ;;  %v10824_v13 = vmax.f32 %v10696_v0, 0.0  ;;  %v9099_v19 = vpop.f32.mrb[6].mxu0  ;;  %10509 = vst [vmem:[%s15422_s8 + $0x50] sm:$0xff] %v12958_v25 }
 0x349   : > { %v17858_v8 = vadd.f32 %v9099_v19, %v17704_v2  ;;  %v9101_v41 = vpop.f32.mrb[7].mxu0  ;;  %v10314_v35 = vpop.f32.mrb[236].mxu1  ;;  %10510 = vst [vmem:[%s15422_s8 + $0x78] sm:$0xff] %v12958_v25  ;;  %10511 = vst [vmem:[%s15422_s8 + $0xa0] sm:$0xff] %v12958_v25 }
 0x34a   : > { %10952 = vst [vmem:[%s15422_s8 + $0x48] sm:$0xff] %v10824_v13  ;;  %v10435_v42 = vadd.f32 %v10314_v35, %v9201_v53  ;;  %v10316_v1 = vpop.f32.mrb[237].mxu1  ;;  %10512 = vst [vmem:[%s15422_s8 + $0xc8] sm:$0xff] %v12958_v25 }
 0x34b   : > { %v10317_v47 = vpop.f32.mrb[238].mxu1  ;;  %10513 = vst [vmem:[%s15422_s8 + $0xf0] sm:$0xff] %v12958_v25  ;;  %10514 = vst [vmem:[%s15422_s8 + $0x118] sm:$0xff] %v12958_v25 }
 0x34c   : > { %v10700_v54 = vadd.f32 %v17848_v22, %v10435_v42  ;;  %v10436_v27 = vadd.f32 %v10317_v47, %v9202_v33  ;;  %v10319_v31 = vpop.f32.mrb[239].mxu1  ;;  %10515 = vst [vmem:[%s15422_s8 + $0x140] sm:$0xff] %v12958_v25  ;;  %10516 = vst [vmem:[%s15422_s8 + $0x168] sm:$0xff] %v12958_v25 }
 0x34d   : > { %10517 = vst [vmem:[%s15422_s8 + $0x190] sm:$0xff] %v12958_v25  ;;  %10518 = vst [vmem:[%s15422_s8 + $0x1b8] sm:$0xff] %v12958_v25 }
 0x34e   : > { %v10828_v28 = vmax.f32 %v10700_v54, 0.0  ;;  %v10704_v23 = vadd.f32 %v17848_v22, %v10436_v27  ;;  %v9104_v38 = vpop.f32.mrb[8].mxu0  ;;  %10519 = vst [vmem:[%s15422_s8 + $0x1e0] sm:$0xff] %v12958_v25  ;;  %10520 = vst [vmem:[%s15422_s8 + $0x208] sm:$0xff] %v12958_v25 }
 0x34f   : > { %v17863_v49 = vadd.f32 %v9104_v38, %v17718_v62  ;;  %v9106_v15 = vpop.f32.mrb[9].mxu0  ;;  %10521 = vst [vmem:[%s15422_s8 + $0x230] sm:$0xff] %v12958_v25  ;;  %10522 = vst [vmem:[%s15422_s8 + $0x258] sm:$0xff] %v12958_v25 }
 0x350   : > { %10956 = vst [vmem:[%s15422_s8 + $0x70] sm:$0xff] %v10828_v28  ;;  %v10832_v2 = vmax.f32 %v10704_v23, 0.0  ;;  %v9107_v20 = vpop.f32.mrb[10].mxu0  ;;  %10523 = vst [vmem:[%s15422_s8 + $0x280] sm:$0xff] %v12958_v25 }
 0x351   : > { %v17867_v53 = vadd.f32 %v9107_v20, %v17723_v57  ;;  %v9109_v4 = vpop.f32.mrb[11].mxu0  ;;  %v10322_v33 = vpop.f32.mrb[240].mxu1  ;;  %10524 = vst [vmem:[%s15422_s8 + $0x2a8] sm:$0xff] %v12958_v25  ;;  %10525 = vst [vmem:[%s15422_s8 + $0x2d0] sm:$0xff] %v12958_v25 }
 0x352   : > { %10960 = vst [vmem:[%s15422_s8 + $0x98] sm:$0xff] %v10832_v2  ;;  %v10437_v29 = vadd.f32 %v10322_v33, %v9203_v17  ;;  %v10324_v12 = vpop.f32.mrb[241].mxu1  ;;  %10526 = vst [vmem:[%s15422_s8 + $0x2f8] sm:$0xff] %v12958_v25 }
 0x353   : > { %v10325_v3 = vpop.f32.mrb[242].mxu1  ;;  %10527 = vst [vmem:[%s15422_s8 + $0x320] sm:$0xff] %v12958_v25  ;;  %10528 = vst [vmem:[%s15422_s8 + $0x348] sm:$0xff] %v12958_v25 }
 0x354   : > { %v10708_v14 = vadd.f32 %v17848_v22, %v10437_v29  ;;  %v10438_v62 = vadd.f32 %v10325_v3, %v9204_v11  ;;  %v10327_v18 = vpop.f32.mrb[243].mxu1  ;;  %10529 = vst [vmem:[%s15422_s8 + $0x370] sm:$0xff] %v12958_v25  ;;  %10530 = vst [vmem:[%s15422_s8 + $0x398] sm:$0xff] %v12958_v25 }
 0x355   : > { %10531 = vst [vmem:[%s15422_s8 + $0x3c0] sm:$0xff] %v12958_v25  ;;  %10532 = vst [vmem:[%s15422_s8 + $0x3e8] sm:$0xff] %v12958_v25 }
 0x356   : > { %v10836_v21 = vmax.f32 %v10708_v14, 0.0  ;;  %v10712_v57 = vadd.f32 %v17848_v22, %v10438_v62  ;;  %v9112_v5 = vpop.f32.mrb[12].mxu0  ;;  %10533 = vst [vmem:[%s15422_s8 + $0x410] sm:$0xff] %v12958_v25  ;;  %10534 = vst [vmem:[%s15422_s8 + $0x438] sm:$0xff] %v12958_v25 }
 0x357   : > { %v17873_v39 = vadd.f32 %v9112_v5, %v17737_v40  ;;  %v9114_v17 = vpop.f32.mrb[13].mxu0  ;;  %10535 = vst [vmem:[%s15422_s8 + $0x460] sm:$0xff] %v12958_v25  ;;  %10536 = vst [vmem:[%s15422_s8 + $0x488] sm:$0xff] %v12958_v25 }
 0x358   : > { %10964 = vst [vmem:[%s15422_s8 + $0xc0] sm:$0xff] %v10836_v21  ;;  %v10840_v11 = vmax.f32 %v10712_v57, 0.0  ;;  %v9115_v24 = vpop.f32.mrb[14].mxu0  ;;  %10537 = vst [vmem:[%s15422_s8 + $0x4b0] sm:$0xff] %v12958_v25 }
 0x359   : > { %v17881_v58 = vadd.f32 %v9115_v24, %v17742_v9  ;;  %v9117_v40 = vpop.f32.mrb[15].mxu0  ;;  %10538 = vst [vmem:[%s15422_s8 + $0x4d8] sm:$0xff] %v12958_v25  ;;  %v10330_v9 = vpop.f32.mrb[244].mxu1 }
 0x35a   : > { %10968 = vst [vmem:[%s15422_s8 + $0xe8] sm:$0xff] %v10840_v11  ;;  %v10439_v7 = vadd.f32 %v10330_v9, %v17854_v26  ;;  %v10332_v0 = vpop.f32.mrb[245].mxu1 }
 0x35b   : > { %v10333_v13 = vpop.f32.mrb[246].mxu1 }
 0x35c   : > { %v10716_v56 = vadd.f32 %v17848_v22, %v10439_v7  ;;  %v10440_v48 = vadd.f32 %v10333_v13, %v17858_v8  ;;  %v10335_v19 = vpop.f32.mrb[247].mxu1 }
 0x35e   : > { %v10844_v41 = vmax.f32 %v10716_v56, 0.0  ;;  %v10720_v35 = vadd.f32 %v17848_v22, %v10440_v48  ;;  %v9120_v42 = vpop.f32.mrb[16].mxu0 }
 0x35f   : > { %v9211_v1 = vadd.f32 %v9120_v42, %v17748_v10  ;;  %v9122_v47 = vpop.f32.mrb[17].mxu0 }
 0x360   : > { %10972 = vst [vmem:[%s15422_s8 + $0x110] sm:$0xff] %v10844_v41  ;;  %v10848_v54 = vmax.f32 %v10720_v35, 0.0  ;;  %v9123_v27 = vpop.f32.mrb[18].mxu0 }
 0x361   : > { %v9212_v26 = vadd.f32 %v9123_v27, %v17753_v36  ;;  %v9125_v31 = vpop.f32.mrb[19].mxu0 }
 0x362   : > { %10976 = vst [vmem:[%s15422_s8 + $0x138] sm:$0xff] %v10848_v54 }
 0x363   : > { %v10338_v28 = vpop.f32.mrb[248].mxu1 }
 0x364   : > { %v10441_v23 = vadd.f32 %v10338_v28, %v17863_v49  ;;  %v10340_v8 = vpop.f32.mrb[249].mxu1 }
 0x365   : > { %v10341_v38 = vpop.f32.mrb[250].mxu1 }
 0x366   : > { %v10724_v15 = vadd.f32 %v17848_v22, %v10441_v23  ;;  %v10442_v2 = vadd.f32 %v10341_v38, %v17867_v53  ;;  %v10343_v10 = vpop.f32.mrb[251].mxu1  ;;  %v9128_v20 = vpop.f32.mrb[20].mxu0 }
 0x367   : > { %v9213_v36 = vadd.f32 %v9128_v20, %v17758_v46  ;;  %v9130_v29 = vpop.f32.mrb[21].mxu0 }
 0x368   : > { %v10852_v4 = vmax.f32 %v10724_v15, 0.0  ;;  %v10728_v33 = vadd.f32 %v17848_v22, %v10442_v2  ;;  %v9131_v12 = vpop.f32.mrb[22].mxu0 }
 0x369   : > { %v9214_v49 = vadd.f32 %v9131_v12, %v17764_v16  ;;  %v9133_v14 = vpop.f32.mrb[23].mxu0 }
 0x36a   : > { %10980 = vst [vmem:[%s15422_s8 + $0x160] sm:$0xff] %v10852_v4  ;;  %v10856_v3 = vmax.f32 %v10728_v33, 0.0 }
 0x36b   : > { %v10346_v62 = vpop.f32.mrb[252].mxu1 }
 0x36c   : > { %10984 = vst [vmem:[%s15422_s8 + $0x188] sm:$0xff] %v10856_v3  ;;  %v10443_v18 = vadd.f32 %v10346_v62, %v17873_v39  ;;  %v10348_v53 = vpop.f32.mrb[253].mxu1 }
 0x36d   : > { %v10349_v21 = vpop.f32.mrb[254].mxu1 }
 0x36e   : > { %v10732_v57 = vadd.f32 %v17848_v22, %v10443_v18  ;;  %v10444_v5 = vadd.f32 %v10349_v21, %v17881_v58  ;;  %v10351_v46 = vpop.f32.mrb[255].mxu1  ;;  %v9136_v17 = vpop.f32.mrb[24].mxu0 }
 0x36f   : > { %v9215_v16 = vadd.f32 %v9136_v17, %v17769_v37  ;;  %v9138_v25 = vpop.f32.mrb[25].mxu0 }
 0x370   : > { %v10860_v11 = vmax.f32 %v10732_v57, 0.0  ;;  %v10736_v24 = vadd.f32 %v17848_v22, %v10444_v5  ;;  %v9139_v40 = vpop.f32.mrb[26].mxu0 }
 0x371   : > { %v9216_v39 = vadd.f32 %v9139_v40, %v17774_v63  ;;  %v9141_v7 = vpop.f32.mrb[27].mxu0 }
 0x372   : > { %10988 = vst [vmem:[%s15422_s8 + $0x1b0] sm:$0xff] %v10860_v11  ;;  %v10864_v9 = vmax.f32 %v10736_v24, 0.0 }
 0x374   : > { %10992 = vst [vmem:[%s15422_s8 + $0x1d8] sm:$0xff] %v10864_v9 }
 0x376   : > { %v10354_v0 = vpop.f32.mrb[0].mxu1 }
 0x377   : > { %v10445_v13 = vadd.f32 %v10354_v0, %v9211_v1  ;;  %v10356_v58 = vpop.f32.mrb[1].mxu1 }
 0x378   : > { %v10357_v56 = vpop.f32.mrb[2].mxu1 }
 0x379   : > { %v10740_v48 = vadd.f32 %v17848_v22, %v10445_v13  ;;  %v10446_v19 = vadd.f32 %v10357_v56, %v9212_v26  ;;  %v10359_v41 = vpop.f32.mrb[3].mxu1 }
 0x37a   : > { %v9144_v42 = vpop.f32.mrb[28].mxu0 }
 0x37b   : > { %v10868_v35 = vmax.f32 %v10740_v48, 0.0  ;;  %v10744_v37 = vadd.f32 %v17848_v22, %v10446_v19  ;;  %v9217_v47 = vadd.f32 %v9144_v42, %v17779_v60  ;;  %v9146_v54 = vpop.f32.mrb[29].mxu0 }
 0x37c   : > { %v9147_v27 = vpop.f32.mrb[30].mxu0 }
 0x37d   : > { %10996 = vst [vmem:[%s15422_s8 + $0x200] sm:$0xff] %v10868_v35  ;;  %v10872_v63 = vmax.f32 %v10744_v37, 0.0  ;;  %v9218_v1 = vadd.f32 %v9147_v27, %v17784_v30  ;;  %v9149_v31 = vpop.f32.mrb[31].mxu0 }
 0x37f   : > { %11000 = vst [vmem:[%s15422_s8 + $0x228] sm:$0xff] %v10872_v63 }
 0x381   : > { %v10362_v28 = vpop.f32.mrb[4].mxu1 }
 0x382   : > { %v10447_v23 = vadd.f32 %v10362_v28, %v9213_v36  ;;  %v10364_v26 = vpop.f32.mrb[5].mxu1  ;;  %v9152_v20 = vpop.f32.mrb[32].mxu0 }
 0x383   : > { %v10365_v8 = vpop.f32.mrb[6].mxu1  ;;  %v9219_v33 = vadd.f32 %v9152_v20, %v17789_v43  ;;  %v9154_v30 = vpop.f32.mrb[33].mxu0 }
 0x384   : > { %v10748_v38 = vadd.f32 %v17848_v22, %v10447_v23  ;;  %v10448_v15 = vadd.f32 %v10365_v8, %v9214_v49  ;;  %v10367_v2 = vpop.f32.mrb[7].mxu1  ;;  %v9155_v29 = vpop.f32.mrb[34].mxu0 }
 0x385   : > { %v9220_v36 = vadd.f32 %v9155_v29, %v17794_v52  ;;  %v9157_v12 = vpop.f32.mrb[35].mxu0 }
 0x386   : > { %v10876_v10 = vmax.f32 %v10748_v38, 0.0  ;;  %v10752_v60 = vadd.f32 %v17848_v22, %v10448_v15 }
 0x388   : > { %11004 = vst [vmem:[%s15422_s8 + $0x250] sm:$0xff] %v10876_v10  ;;  %v10880_v4 = vmax.f32 %v10752_v60, 0.0 }
 0x389   : > { %v10370_v3 = vpop.f32.mrb[8].mxu1 }
 0x38a   : > { %11008 = vst [vmem:[%s15422_s8 + $0x278] sm:$0xff] %v10880_v4  ;;  %v10449_v14 = vadd.f32 %v10370_v3, %v9215_v16  ;;  %v10372_v49 = vpop.f32.mrb[9].mxu1 }
 0x38b   : > { %v10373_v62 = vpop.f32.mrb[10].mxu1 }
 0x38c   : > { %v10756_v18 = vadd.f32 %v17848_v22, %v10449_v14  ;;  %v10450_v53 = vadd.f32 %v10373_v62, %v9216_v39  ;;  %v10375_v21 = vpop.f32.mrb[11].mxu1  ;;  %v9160_v43 = vpop.f32.mrb[36].mxu0 }
 0x38d   : > { %v9221_v46 = vadd.f32 %v9160_v43, %v17799_v61  ;;  %v9162_v17 = vpop.f32.mrb[37].mxu0 }
 0x38e   : > { %v10884_v57 = vmax.f32 %v10756_v18, 0.0  ;;  %v10760_v5 = vadd.f32 %v17848_v22, %v10450_v53  ;;  %v9163_v52 = vpop.f32.mrb[38].mxu0 }
 0x38f   : > { %v9222_v24 = vadd.f32 %v9163_v52, %v17804_v6  ;;  %v9165_v16 = vpop.f32.mrb[39].mxu0 }
 0x390   : > { %11012 = vst [vmem:[%s15422_s8 + $0x2a0] sm:$0xff] %v10884_v57  ;;  %v10888_v11 = vmax.f32 %v10760_v5, 0.0 }
 0x391   : > { %v10378_v25 = vpop.f32.mrb[12].mxu1 }
 0x392   : > { %11016 = vst [vmem:[%s15422_s8 + $0x2c8] sm:$0xff] %v10888_v11  ;;  %v10451_v40 = vadd.f32 %v10378_v25, %v9217_v47  ;;  %v10380_v9 = vpop.f32.mrb[13].mxu1 }
 0x393   : > { %v10381_v39 = vpop.f32.mrb[14].mxu1 }
 0x394   : > { %v10764_v7 = vadd.f32 %v17848_v22, %v10451_v40  ;;  %v10452_v0 = vadd.f32 %v10381_v39, %v9218_v1  ;;  %v10383_v13 = vpop.f32.mrb[15].mxu1  ;;  %v9168_v56 = vpop.f32.mrb[40].mxu0 }
 0x395   : > { %v9223_v48 = vadd.f32 %v9168_v56, %v17809_v55  ;;  %v9170_v19 = vpop.f32.mrb[41].mxu0 }
 0x396   : > { %v10892_v58 = vmax.f32 %v10764_v7, 0.0  ;;  %v10768_v61 = vadd.f32 %v17848_v22, %v10452_v0  ;;  %v9171_v41 = vpop.f32.mrb[42].mxu0 }
 0x397   : > { %v9224_v35 = vadd.f32 %v9171_v41, %v17814_v51  ;;  %v9173_v37 = vpop.f32.mrb[43].mxu0 }
 0x398   : > { %11020 = vst [vmem:[%s15422_s8 + $0x2f0] sm:$0xff] %v10892_v58  ;;  %v10896_v6 = vmax.f32 %v10768_v61, 0.0 }
 0x399   : > { %v10386_v42 = vpop.f32.mrb[16].mxu1 }
 0x39a   : > { %11024 = vst [vmem:[%s15422_s8 + $0x318] sm:$0xff] %v10896_v6  ;;  %v10453_v47 = vadd.f32 %v10386_v42, %v9219_v33  ;;  %v10388_v54 = vpop.f32.mrb[17].mxu1 }
 0x39b   : > { %v10389_v63 = vpop.f32.mrb[18].mxu1 }
 0x39c   : > { %v10772_v27 = vadd.f32 %v17848_v22, %v10453_v47  ;;  %v10454_v1 = vadd.f32 %v10389_v63, %v9220_v36  ;;  %v10391_v31 = vpop.f32.mrb[19].mxu1  ;;  %v9176_v23 = vpop.f32.mrb[44].mxu0 }
 0x39d   : > { %v9225_v26 = vadd.f32 %v9176_v23, %v17824_v59  ;;  %v9178_v8 = vpop.f32.mrb[45].mxu0 }
 0x39e   : > { %v10900_v28 = vmax.f32 %v10772_v27, 0.0  ;;  %v10776_v55 = vadd.f32 %v17848_v22, %v10454_v1  ;;  %v9179_v38 = vpop.f32.mrb[46].mxu0 }
 0x39f   : > { %v9226_v15 = vadd.f32 %v9179_v38, %v17827_v45  ;;  %v9181_v2 = vpop.f32.mrb[47].mxu0 }
 0x3a0   : > { %11028 = vst [vmem:[%s15422_s8 + $0x340] sm:$0xff] %v10900_v28  ;;  %v10904_v51 = vmax.f32 %v10776_v55, 0.0 }
 0x3a1   : > { %v10394_v10 = vpop.f32.mrb[20].mxu1 }
 0x3a2   : > { %11032 = vst [vmem:[%s15422_s8 + $0x368] sm:$0xff] %v10904_v51  ;;  %v10455_v60 = vadd.f32 %v10394_v10, %v9221_v46  ;;  %v10396_v20 = vpop.f32.mrb[21].mxu1 }
 0x3a3   : > { %v10397_v4 = vpop.f32.mrb[22].mxu1 }
 0x3a4   : > { %v10780_v33 = vadd.f32 %v17848_v22, %v10455_v60  ;;  %v10456_v30 = vadd.f32 %v10397_v4, %v9222_v24  ;;  %v10399_v29 = vpop.f32.mrb[23].mxu1  ;;  %v9184_v12 = vpop.f32.mrb[48].mxu0 }
 0x3a5   : > { %v9227_v3 = vadd.f32 %v9184_v12, %v17832_v34  ;;  %v9186_v14 = vpop.f32.mrb[49].mxu0 }
 0x3a6   : > { %v10908_v36 = vmax.f32 %v10780_v33, 0.0  ;;  %v10784_v59 = vadd.f32 %v17848_v22, %v10456_v30  ;;  %v9187_v49 = vpop.f32.mrb[50].mxu0 }
 0x3a7   : > { %v9228_v62 = vadd.f32 %v9187_v49, %v17834_v50  ;;  %v9189_v18 = vpop.f32.mrb[51].mxu0 }
 0x3a8   : > { %11036 = vst [vmem:[%s15422_s8 + $0x390] sm:$0xff] %v10908_v36  ;;  %v10912_v45 = vmax.f32 %v10784_v59, 0.0 }
 0x3a9   : > { %v10402_v53 = vpop.f32.mrb[24].mxu1 }
 0x3aa   : > { %11040 = vst [vmem:[%s15422_s8 + $0x3b8] sm:$0xff] %v10912_v45  ;;  %v10457_v21 = vadd.f32 %v10402_v53, %v9223_v48  ;;  %v10404_v57 = vpop.f32.mrb[25].mxu1 }
 0x3ab   : > { %v10405_v5 = vpop.f32.mrb[26].mxu1 }
 0x3ac   : > { %v10788_v43 = vadd.f32 %v17848_v22, %v10457_v21  ;;  %v10458_v46 = vadd.f32 %v10405_v5, %v9224_v35  ;;  %v10407_v17 = vpop.f32.mrb[27].mxu1  ;;  %v9192_v11 = vpop.f32.mrb[52].mxu0 }
 0x3ad   : > { %v9229_v24 = vadd.f32 %v9192_v11, %v17838_v44  ;;  %v9194_v16 = vpop.f32.mrb[53].mxu0 }
 0x3ae   : > { %v10916_v34 = vmax.f32 %v10788_v43, 0.0  ;;  %v10792_v52 = vadd.f32 %v17848_v22, %v10458_v46  ;;  %v9195_v50 = vpop.f32.mrb[54].mxu0 }
 0x3af   : > { %v9230_v40 = vadd.f32 %v9195_v50, %v17840_v32  ;;  %v9197_v9 = vpop.f32.mrb[55].mxu0 }
 0x3b0   : > { %11044 = vst [vmem:[%s15422_s8 + $0x3e0] sm:$0xff] %v10916_v34  ;;  %v10920_v25 = vmax.f32 %v10792_v52, 0.0 }
 0x3b1   : > { %v10410_v39 = vpop.f32.mrb[28].mxu1 }
 0x3b2   : > { %11048 = vst [vmem:[%s15422_s8 + $0x408] sm:$0xff] %v10920_v25  ;;  %v10459_v7 = vadd.f32 %v10410_v39, %v9225_v26  ;;  %v10412_v0 = vpop.f32.mrb[29].mxu1 }
 0x3b3   : > { %v10413_v13 = vpop.f32.mrb[30].mxu1 }
 0x3b4   : > { %v10796_v58 = vadd.f32 %v17848_v22, %v10459_v7  ;;  %v10460_v61 = vadd.f32 %v10413_v13, %v9226_v15  ;;  %v10415_v56 = vpop.f32.mrb[31].mxu1 }
 0x3b6   : > { %v10924_v44 = vmax.f32 %v10796_v58, 0.0  ;;  %v10800_v48 = vadd.f32 %v17848_v22, %v10460_v61 }
 0x3b8   : > { %11052 = vst [vmem:[%s15422_s8 + $0x430] sm:$0xff] %v10924_v44  ;;  %v10928_v19 = vmax.f32 %v10800_v48, 0.0 }
 0x3b9   : > { %v10418_v6 = vpop.f32.mrb[32].mxu1 }
 0x3ba   : > { %11056 = vst [vmem:[%s15422_s8 + $0x458] sm:$0xff] %v10928_v19  ;;  %v10461_v32 = vadd.f32 %v10418_v6, %v9227_v3  ;;  %v10420_v41 = vpop.f32.mrb[33].mxu1 }
 0x3bb   : > { %v10421_v35 = vpop.f32.mrb[34].mxu1 }
 0x3bc   : > { %v10804_v37 = vadd.f32 %v17848_v22, %v10461_v32  ;;  %v10462_v42 = vadd.f32 %v10421_v35, %v9228_v62  ;;  %v10423_v47 = vpop.f32.mrb[35].mxu1 }
 0x3be   : > { %v10932_v54 = vmax.f32 %v10804_v37, 0.0  ;;  %v10808_v63 = vadd.f32 %v17848_v22, %v10462_v42 }
 0x3c0   : > { %11060 = vst [vmem:[%s15422_s8 + $0x480] sm:$0xff] %v10932_v54  ;;  %v10936_v27 = vmax.f32 %v10808_v63, 0.0 }
 0x3c1   : > { %v10426_v1 = vpop.f32.mrb[36].mxu1 }
 0x3c2   : > { %11064 = vst [vmem:[%s15422_s8 + $0x4a8] sm:$0xff] %v10936_v27  ;;  %v10463_v31 = vadd.f32 %v10426_v1, %v9229_v24  ;;  %v10428_v28 = vpop.f32.mrb[37].mxu1 }
 0x3c3   : > { %v10429_v55 = vpop.f32.mrb[38].mxu1 }
 0x3c4   : > { %v10812_v23 = vadd.f32 %v17848_v22, %v10463_v31  ;;  %v10464_v26 = vadd.f32 %v10429_v55, %v9230_v40  ;;  %v10431_v8 = vpop.f32.mrb[39].mxu1 }
 0x3c6   : > { %v10940_v51 = vmax.f32 %v10812_v23, 0.0  ;;  %v10816_v38 = vadd.f32 %v17848_v22, %v10464_v26 }
 0x3c8   : > { %11068 = vst [vmem:[%s15422_s8 + $0x4d0] sm:$0xff] %v10940_v51  ;;  %v10944_v15 = vmax.f32 %v10816_v38, 0.0 }
 0x3ca   : > { %11072 = vst [vmem:[%s15422_s8 + $0x4f8] sm:$0xff] %v10944_v15 }
 0x3cb   : > { %13936 = shalt.err (!%p13933_p5)
}
 0x3cc   : > { %s13937_s15 = scalar_lea.hbm %s17997_s27, 20480  ;;  %s13941_s12 = scalar_lea.hbm %s18056_s5, 40960 }
 0x3cd   : > { %p13938_p6 = scmp.ne.s32.totalorder %s17997_s27, %s13937_s15  ;;  %p13942_p10 = scmp.lt.u32.totalorder %s17997_s27, %s18056_s5 }
 0x3ce   : > { %p13943_p11 = scmp.lt.u32.totalorder %s13941_s12, %s13937_s15  ;;  %p13945_p13 = scmp.lt.u32.totalorder %s13937_s15, %s17997_s27 }
 0x3cf   : > { %p13939_p7 = pnand %p13938_p6, %p14078_p4 }
 0x3d0   : > { %p13944_p12 = por %p13943_p11, %p13942_p10 }
 0x3d1   : > { %p13940_p9 = pneg %p13939_p7 }
 0x3d2   : > { %p13946_p0 = por %p13945_p13, %p13944_p12 }
 0x3d4   : > { %p13947_p1 = pnand %p13946_p0, %p13940_p9 }
 0x3d6   : > { %13950 = shalt.err (!%p13947_p1)
}
 0x3d7   : > { %s14006_s9 = smov 640   ;;  %s14007_s17 = smov 40  }
 0x3d8   : > { %13049 = dma.vmem_to_hbm [thread:$0]  (%p14078_p4), %s17999_s16, 20480, %s17997_s27, %s18005_s21, %s14006_s9, %s14006_s9, %s14007_s17  }
 0x3d9 PF: > { %p13055_p2 = scmp.ge.s32.totalorder %s14001_s23, 2  ;;  %s11102_s24 = sand.u32 1, %s13981_s18  }
 0x3da   : > { %s11103_s29 = scalar_lea.sflag [#allocation4], %s11102_s24 }
 0x3db   : > { %p13052_p3 = pnand %p13055_p2, %p14085_p8 }
 0x3dd   : > { %13976 = dma.done.wait (!%p13052_p3), %s11103_s29, 20480  }
 0x3de   : > { %13978 = vsyncadd (!%p13052_p3), %s11103_s29, 4294946816  ;;  %s18_s23 = sadd.s32 1, %s14001_s23   ;;  %s18064_s18 = smov %s13985_s19 }
 0x3df   : > { %p15_p5 = scmp.ge.s32.totalorder %s18_s23, 4   ;;  %s18065_s19 = smov %s13989_s20 }
 0x3e0   : > { %s18066_s20 = smov %s14091_s6  ;;  %s18067_s21 = smov %s13997_s22 }
 0x3e1   : > { %s18068_s22 = smov %s18070_s26  ;;  %17 = sbr.rel (!%p15_p5) target bundleno = 4 (0x4), region = 103 }
 0x3e8   :  { %11108 = vsyncpa [#allocation4], 1 }
 0x3e9   :  { %11110 = vsyncpa [#allocation4 + $0x1], 1 }

</bundles_post_ra>
